<compile_context>
chip_gen: v7x
topology: tpu7x:2x2x1
jax: 0.10.0
libtpu: 0.0.40
codegen_flags: <defaults>
</compile_context>

<pallas_src>
import numpy as np
import jax
import jax.numpy as jnp
from jax.experimental import pallas as pl
from jax.experimental.pallas import tpu as pltpu


# ----------------------------------------------------------------------------
# Pallas kernel: Linear(9 -> C) + LayerNorm(C) + ReLU + running max over points
# ----------------------------------------------------------------------------
def _pointnet_kernel(x_ref, w_ref, wsum_ref, b_ref, g_ref, bt_ref, ones_ref, o_ref):
    # x_ref   : (pt_chunk, pillar_tile, 9)  compute dtype
    # w_ref   : (9, C) compute dtype        wsum_ref: (9, 1) compute dtype  (= W @ 1)
    # b/g/bt  : (1, C) f32                  ones_ref: (C, 1) f32
    # o_ref   : (pillar_tile, C) f32 running max, resident across the point axis (j)
    pc, tp, d = x_ref.shape
    c = o_ref.shape[-1]
    j = pl.program_id(1)

    @pl.when(j == 0)
    def _init():
        # ReLU output >= 0, so 0 is a valid identity for the running max.
        o_ref[...] = jnp.zeros_like(o_ref)

    # Sublane-clean merge (pillar_tile is a multiple of 8/16) -> one MXU matmul.
    x2 = x_ref[...].reshape(pc * tp, d)
    y = jnp.dot(x2, w_ref[...], preferred_element_type=jnp.float32) + b_ref[...]

    # LayerNorm statistics on the MXU (keeps the XLU out of the hot loop):
    #   s1 = sum_c(y) = x @ (W @ 1) + sum(b);   s2 = sum_c(y^2) = (y*y) @ 1
    bsum = jnp.sum(b_ref[...], axis=-1, keepdims=True)                 # one vreg reduce
    s1 = jnp.dot(x2, wsum_ref[...], preferred_element_type=jnp.float32) + bsum
    s2 = jnp.dot(y * y, ones_ref[...], preferred_element_type=jnp.float32)

    inv_c = 1.0 / c
    mu = s1 * inv_c
    var = jnp.maximum(s2 * inv_c - mu * mu, 0.0)    # one-pass var can go < 0: clamp
    # LN normalize + affine + ReLU (single chain; rsqrt goes to the EUP slot).
    y = (y - mu) * jax.lax.rsqrt(var + 1e-5)
    y = jnp.maximum(y * g_ref[...] + bt_ref[...], 0.0)

    chunk_max = jnp.max(y.reshape(pc, tp, c), axis=0)                  # VPU-only max
    o_ref[...] = jnp.maximum(o_ref[...], chunk_max)


# ----------------------------------------------------------------------------
# VMEM-aware tiling (single honest budget, per-generation tile caps)
# ----------------------------------------------------------------------------
def _vmem_budget_bytes():
    cap = 64 * 1024 * 1024                       # assume smallest (v7x per-TC) if unknown
    try:
        info = pltpu.get_tpu_info()
        cap = int(getattr(info, "vmem_capacity_bytes", cap) or cap)
    except Exception:
        pass
    return int(0.8 * cap)                        # one safety factor, also vmem_limit_bytes


def _estimate_vmem_bytes(pillar_tile, pt_chunk, c, in_itemsize):
    # TODO(synk): pack k points per lane row + block-diagonal weight to make the x DMA
    # lane-dense and drop the 9->128 lane padding modeled below (biggest win on v7x).
    rows = pillar_tile * pt_chunk
    lane_c = -(-c // 128) * 128
    x_in = 2 * rows * 128 * in_itemsize          # double-buffered x block (9 lane-padded)
    inter = int(2.5 * rows * lane_c * 4)         # y + y*y live across the s2 dot, LN chain reuses
    out_b = 2 * pillar_tile * lane_c * 4         # resident/double-buffered output accumulator
    return x_in + inter + out_b


def _pick_tiles(total, max_points, c, compute_dtype, vmem_budget, max_pillar_tile=None):
    isz = np.dtype(compute_dtype).itemsize
    sub = 16 if isz < 4 else 8                   # keep in-kernel reshapes sublane-clean
    if max_pillar_tile is None:
        # v5e/v6e (128 MiB VMEM) afford 1024-pillar tiles; v7x (64 MiB/TC) caps at 512.
        max_pillar_tile = 1024 if vmem_budget >= int(0.8 * 96 * 1024 * 1024) else 512
    cap = min(total, max_pillar_tile)
    tiles = [t for t in range(cap, 0, -1)
             if total % t == 0 and (t % sub == 0 or t == total)]
    if not tiles:
        tiles = [t for t in range(cap, 0, -1) if total % t == 0]
    if not tiles:
        raise ValueError(f"no pillar tile <= {cap} divides total={total}")
    chunks = [p for p in range(max_points, 0, -1) if max_points % p == 0]
    cands = []
    for t in tiles:
        for p in chunks:
            if _estimate_vmem_bytes(t, p, c, isz) <= vmem_budget:
                cands.append((t * p, t, p))      # rows per grid step, tile, chunk
                break                            # largest feasible chunk for this tile
    if not cands:
        return tiles[-1], 1
    best_rows = max(r for r, _, _ in cands)
    good = [x for x in cands if x[0] >= 0.9 * best_rows]
    # Prefer an even pillar-grid extent (balances v7x's two TensorCores) when ~free.
    even = [x for x in good if (total // x[1]) % 2 == 0 and total // x[1] >= 2]
    pick = max(even or good)
    return pick[1], pick[2]


# ----------------------------------------------------------------------------
# PointNet wrappers
# ----------------------------------------------------------------------------
def pointnet_forward_tp(xp_t, w, b, gamma, beta, *, pillar_tile, pt_chunk,
                        vmem_limit_bytes):
    """xp_t: (max_points, total_pillars, 9), points-major. Returns (total_pillars, C) f32."""
    pts, total, d = xp_t.shape
    C = w.shape[1]
    assert total % pillar_tile == 0, (total, pillar_tile)
    assert pts % pt_chunk == 0, (pts, pt_chunk)
    assert pillar_tile % 8 == 0 or pillar_tile == total, pillar_tile
    # Precomputed weight column-sum (W @ 1) for the MXU-side LN mean, and the ones
    # column used for the MXU-side sum-of-squares.
    wsum = jnp.sum(w.astype(jnp.float32), axis=1, keepdims=True).astype(w.dtype)
    ones_c = jnp.ones((C, 1), jnp.float32)
    grid = (total // pillar_tile, pts // pt_chunk)
    return pl.pallas_call(
        _pointnet_kernel,
        out_shape=jax.ShapeDtypeStruct((total, C), jnp.float32),
        grid_spec=pltpu.PrefetchScalarGridSpec(
            num_scalar_prefetch=0,
            grid=grid,
            in_specs=[
                pl.BlockSpec((pt_chunk, pillar_tile, d), lambda i, j: (j, i, 0)),
                pl.BlockSpec((d, C), lambda i, j: (0, 0)),
                pl.BlockSpec((d, 1), lambda i, j: (0, 0)),
                pl.BlockSpec((1, C), lambda i, j: (0, 0)),
                pl.BlockSpec((1, C), lambda i, j: (0, 0)),
                pl.BlockSpec((1, C), lambda i, j: (0, 0)),
                pl.BlockSpec((C, 1), lambda i, j: (0, 0)),
            ],
            out_specs=pl.BlockSpec((pillar_tile, C), lambda i, j: (i, 0)),
        ),
        compiler_params=pltpu.CompilerParams(
            dimension_semantics=("parallel", "arbitrary"),
            vmem_limit_bytes=int(vmem_limit_bytes),
        ),
    )(xp_t, w, wsum, b, gamma, beta, ones_c)


def pointnet_forward(xp, w, b, gamma, beta, *, compute_dtype=jnp.bfloat16,
                     pillar_tile=None, pt_chunk=None):
    """xp: (N, max_pillars, max_points, 9) -> (N, max_pillars, C)."""
    N, n_pillars, pts, d = xp.shape
    total = N * n_pillars
    C = w.shape[1]
    budget = _vmem_budget_bytes()
    if pillar_tile is None or pt_chunk is None:
        pillar_tile, pt_chunk = _pick_tiles(total, pts, C, compute_dtype, budget)
    xp_t = jnp.transpose(xp.reshape(total, pts, d), (1, 0, 2)).astype(compute_dtype)
    out = pointnet_forward_tp(xp_t, w.astype(compute_dtype), b, gamma, beta,
                              pillar_tile=pillar_tile, pt_chunk=pt_chunk,
                              vmem_limit_bytes=budget)
    return out.reshape(N, n_pillars, C)


def pointnet_reference(xp, w, b, gamma, beta):
    """Plain-JAX reference of SimplifiedPointNet for sanity checking."""
    y = jnp.einsum("npqd,dc->npqc", xp, w) + b[0]
    mu = jnp.mean(y, axis=-1, keepdims=True)
    var = jnp.mean(jnp.square(y - mu), axis=-1, keepdims=True)
    yn = (y - mu) / jnp.sqrt(var + 1e-5) * gamma[0] + beta[0]
    return jnp.max(jnp.maximum(yn, 0.0), axis=2)


# ----------------------------------------------------------------------------
# PillarFeatureGenerator (dynamic-shape preprocessing, host-side NumPy)
# ----------------------------------------------------------------------------
def pillar_features_np(point_clouds, pillar_wh, max_points, max_pillars, xyz_range,
                       pad_value=0.0):
    # TODO(synk): dynamic-shape pillarization (unique / randperm / sort / index_add with
    # data-dependent sizes) stays host-side in NumPy; no clean static-shape Pallas path.
    pc = np.array(point_clouds, dtype=np.float32, copy=True)
    N = pc.shape[0]
    min_xyz = np.array([xyz_range[0][0], xyz_range[1][0], xyz_range[2][0]], np.float32)
    max_xyz = np.array([xyz_range[0][1], xyz_range[1][1], xyz_range[2][1]], np.float32)
    min_xy, max_xy = min_xyz[:2], max_xyz[:2]
    pw = np.array(pillar_wh, np.float32)
    num_xy_grids = np.ceil((max_xy - min_xy) / pw).astype(np.int64)
    pw = 2.0 * pw / (max_xy - min_xy)
    pc[..., :3] = 2.0 * (pc[..., :3] - min_xyz) / (max_xyz - min_xyz) - 1.0
    min_xy = (min_xy / max_xy).astype(np.float32)
    pillar_ij = np.minimum(np.floor((pc[:, :, :2] - min_xy) / pw),
                           (num_xy_grids - 1).astype(np.float32)).astype(np.int64)
    pillar_indexes = pillar_ij[:, :, 1] * num_xy_grids[0] + pillar_ij[:, :, 0]

    output = np.full((N, max_pillars, max_points, 9), np.nan, np.float32)
    output_pillars = np.full((N, max_pillars), -1, np.int64)
    for i in range(N):
        # randperm in the reference only matters when unique pillars > max_pillars;
        # with the small config used here all pillars survive -> deterministic.
        uniq_all = np.unique(pillar_indexes[i])
        selected = uniq_all[:max_pillars]
        mask = np.isin(pillar_indexes[i], selected)
        sel_idx = pillar_indexes[i][mask]
        uniq, inv = np.unique(sel_idx, return_inverse=True)
        num_pillars = uniq.shape[0]
        output_pillars[i, :num_pillars] = uniq
        pillars_ij = np.stack([uniq % num_xy_grids[0], uniq // num_xy_grids[0]], axis=-1)
        pillar_xy_centers = (min_xy + pillars_ij * pw + pw / 2.0).astype(np.float32)
        sample_pc = pc[i][mask]
        order = np.argsort(inv, kind="stable")
        inv, sample_pc = inv[order], sample_pc[order]
        counts = np.zeros(num_pillars, np.int64)
        sums = np.zeros((num_pillars, 3), np.float32)
        np.add.at(counts, inv, 1)
        np.add.at(sums, inv, sample_pc[:, :3])
        means = (sums / counts[:, None]).astype(np.float32)
        offsets = np.concatenate([np.zeros(1, np.int64), np.cumsum(counts)])
        repeated = np.repeat(np.arange(num_pillars, dtype=np.int64), counts)
        point_idx = np.arange(repeated.shape[0], dtype=np.int64) - offsets[repeated]
        keep = point_idx < max_points
        inv_k, point_idx_k, pc_k = inv[keep], point_idx[keep], sample_pc[keep]
        flat = inv_k * max_points + point_idx_k
        sample_out = np.full((num_pillars * max_points, 9), np.nan, np.float32)
        sample_out[flat, :4] = pc_k
        sample_out = sample_out.reshape(num_pillars, max_points, 9)
        sample_out[..., 4:7] = np.abs(sample_out[..., :3] - means[:, None, :])
        sample_out[..., 7:9] = pillar_xy_centers[:, None, :] - sample_out[..., :2]
        output[i, :num_pillars] = sample_out
    output[np.isnan(output)] = pad_value
    return output, output_pillars


# ----------------------------------------------------------------------------
# PointPillarNet
# ----------------------------------------------------------------------------
class PointPillarNetPallas:
    def __init__(self, out_dim=128, pillar_wh=(0.16, 0.16), max_points=100,
                 max_pillars=12000, out_grid_hw=(200, 200), xyz_range=None,
                 compute_dtype=jnp.bfloat16, nhwc_output=False, seed=42):
        self.out_dim = out_dim
        self.pillar_wh = pillar_wh
        self.max_points = max_points
        self.max_pillars = max_pillars
        self.out_grid_hw = out_grid_hw
        self.xyz_range = xyz_range or [(-51.2, 51.2), (-51.2, 51.2), (-5.0, 3.0)]
        self.compute_dtype = compute_dtype
        # NHWC output skips a ~40 MB/sample relayout and is TPU-conv-friendly; default
        # False to match the PyTorch module's NCHW output exactly.
        self.nhwc_output = nhwc_output
        # Deterministic synthetic parameters (nn.Linear(9, out_dim) + nn.LayerNorm).
        kw, kb = jax.random.split(jax.random.PRNGKey(seed))
        bound = 1.0 / float(np.sqrt(9.0))
        self.w = jax.random.uniform(kw, (9, out_dim), jnp.float32, -bound, bound)
        self.b = jax.random.uniform(kb, (1, out_dim), jnp.float32, -bound, bound)
        self.gamma = jnp.ones((1, out_dim), jnp.float32)   # LayerNorm weight
        self.beta = jnp.zeros((1, out_dim), jnp.float32)   # LayerNorm bias

    def __call__(self, points):
        pts_np = np.asarray(points, dtype=np.float32)
        xp, pillar_idx = pillar_features_np(pts_np, self.pillar_wh, self.max_points,
                                            self.max_pillars, self.xyz_range)
        N, n_pillars, pts, d = xp.shape
        total = N * n_pillars
        C = self.out_dim
        # Host-side transpose to points-major so kernel blocks are (pt_chunk, pillar_tile, 9).
        # TODO(synk): transfer only valid points + per-pillar counts instead of the padded
        # tensor, and/or pack k points per lane row (block-diag weight) for lane-dense DMA.
        xp_t = np.ascontiguousarray(xp.reshape(total, pts, d).transpose(1, 0, 2))
        budget = _vmem_budget_bytes()
        pillar_tile, pt_chunk = _pick_tiles(total, pts, C, self.compute_dtype, budget)
        gfeat = pointnet_forward_tp(
            jnp.asarray(xp_t, dtype=self.compute_dtype),
            self.w.astype(self.compute_dtype), self.b, self.gamma, self.beta,
            pillar_tile=pillar_tile, pt_chunk=pt_chunk, vmem_limit_bytes=budget)
        gfeat = gfeat.reshape(N, n_pillars, C)

        out_h, out_w = self.out_grid_hw
        grid_h = (self.xyz_range[1][1] - self.xyz_range[1][0]) / self.pillar_wh[1]
        grid_w = (self.xyz_range[0][1] - self.xyz_range[0][0]) / self.pillar_wh[0]
        pif = pillar_idx.astype(np.float32)
        ij_x = np.mod(pif, np.float32(grid_w)) * (out_w - 1) / (grid_w - 1)
        # NOTE: // grid_h (not grid_w) intentionally matches the PyTorch module.
        ij_y = np.floor_divide(pif, np.float32(grid_h)) * (out_h - 1) / (grid_h - 1)
        ij_x = np.trunc(ij_x).astype(np.int64)                # torch .long() truncation
        ij_y = np.trunc(ij_y).astype(np.int64)
        # Padded pillars (index -1) wrap to real edge cells exactly like the PyTorch
        # module's negative-index write (bug-for-bug; last write wins).
        ij_x = np.where(ij_x < 0, ij_x + out_w, ij_x)
        ij_y = np.where(ij_y < 0, ij_y + out_h, ij_y)
        b_idx = np.broadcast_to(np.arange(N)[:, None], (N, n_pillars))
        # TODO(synk): data-dependent scatter onto the canvas stays in plain JAX; fusing it
        # into Pallas would need per-pillar manual DMAs.
        canvas = jnp.zeros((N, out_h, out_w, C), jnp.float32)
        canvas = canvas.at[b_idx, ij_y, ij_x].set(gfeat)
        if self.nhwc_output:
            return canvas                                      # NHWC (TPU-preferred)
        return jnp.transpose(canvas, (0, 3, 1, 2))             # NCHW, like the PyTorch module


if __name__ == "__main__":
    N, n_points = 2, 64
    key = jax.random.PRNGKey(0)
    kxy, kz, kr = jax.random.split(key, 3)
    xy = jax.random.uniform(kxy, (N, n_points, 2), jnp.float32, -3.1, 3.1)
    z = jax.random.uniform(kz, (N, n_points, 1), jnp.float32, -0.9, 0.9)
    refl = jax.random.uniform(kr, (N, n_points, 1), jnp.float32, 0.0, 1.0)
    points = jnp.concatenate([xy, z, refl], axis=-1)           # (N, n_points, 4): x, y, z, r

    net = PointPillarNetPallas(
        out_dim=128, pillar_wh=(0.8, 0.8), max_points=8, max_pillars=64,
        out_grid_hw=(8, 8), xyz_range=[(-3.2, 3.2), (-3.2, 3.2), (-1.0, 1.0)],
        compute_dtype=jnp.bfloat16)

    # Sanity check: Pallas PointNet vs plain-JAX reference (f32 exact path, bf16 fast path).
    xp_test = jax.random.uniform(jax.random.PRNGKey(1), (N, 64, 8, 9), jnp.float32, -1.0, 1.0)
    want = pointnet_reference(xp_test, net.w, net.b, net.gamma, net.beta)
    got_f32 = pointnet_forward(xp_test, net.w, net.b, net.gamma, net.beta,
                               compute_dtype=jnp.float32)
    np.testing.assert_allclose(np.asarray(got_f32), np.asarray(want), atol=5e-3, rtol=5e-3)
    got_bf16 = pointnet_forward(xp_test, net.w, net.b, net.gamma, net.beta,
                                compute_dtype=jnp.bfloat16)
    np.testing.assert_allclose(np.asarray(got_bf16), np.asarray(want), atol=1e-1, rtol=1e-1)

    out = net(points)
    out = jax.block_until_ready(out)
    assert out.shape == (N, 128, 8, 8), out.shape
    assert np.isfinite(np.asarray(out)).all()
    print("KERNEL_OK")
</pallas_src>

<mosaic_0001>
module attributes {stable_mosaic.version = 11 : i64} {
  func.func @_pointnet_kernel(%arg0: i32, %arg1: i32, %arg2: memref<8x128x9xf32, #tpu.memory_space<vmem>>, %arg3: memref<9x128xf32, #tpu.memory_space<vmem>>, %arg4: memref<9x1xf32, #tpu.memory_space<vmem>>, %arg5: memref<1x128xf32, #tpu.memory_space<vmem>>, %arg6: memref<1x128xf32, #tpu.memory_space<vmem>>, %arg7: memref<1x128xf32, #tpu.memory_space<vmem>>, %arg8: memref<128x1xf32, #tpu.memory_space<vmem>>, %arg9: memref<128x128xf32, #tpu.memory_space<vmem>>) attributes {dimension_semantics = [#tpu.dimension_semantics<parallel>, #tpu.dimension_semantics<arbitrary>], iteration_bounds = array<i64: 1, 1>, scalar_prefetch = 0 : i64, scratch_operands = 0 : i64, tpu.core_type = #tpu.core_type<tc>, window_params = [{transform_indices = @transform_0, window_bounds = array<i64: 8, 128, 9>}, {pipeline_mode = #tpu.pipeline_mode<synchronous>, transform_indices = @transform_1, window_bounds = array<i64: 9, 128>}, {pipeline_mode = #tpu.pipeline_mode<synchronous>, transform_indices = @transform_2, window_bounds = array<i64: 9, 1>}, {pipeline_mode = #tpu.pipeline_mode<synchronous>, transform_indices = @transform_3, window_bounds = array<i64: 1, 128>}, {pipeline_mode = #tpu.pipeline_mode<synchronous>, transform_indices = @transform_4, window_bounds = array<i64: 1, 128>}, {pipeline_mode = #tpu.pipeline_mode<synchronous>, transform_indices = @transform_5, window_bounds = array<i64: 1, 128>}, {pipeline_mode = #tpu.pipeline_mode<synchronous>, transform_indices = @transform_6, window_bounds = array<i64: 128, 1>}, {transform_indices = @transform_7, window_bounds = array<i64: 128, 128>}]} {
    %c0_i32 = arith.constant 0 : i32
    %0 = arith.cmpi eq, %arg1, %c0_i32 : i32
    %1 = arith.extui %0 : i1 to i32
    %c0_i32_0 = arith.constant 0 : i32
    %2 = arith.cmpi ne, %1, %c0_i32_0 : i32
    scf.if %2 {
      %cst_30 = arith.constant 0.000000e+00 : f32
      %48 = vector.broadcast %cst_30 : f32 to vector<128x128xf32>
      %c0_31 = arith.constant 0 : index
      %c0_32 = arith.constant 0 : index
      %49 = vector.load %arg9[%c0_31, %c0_32] : memref<128x128xf32, #tpu.memory_space<vmem>>, vector<128x128xf32>
      tpu.vector_store %arg9[%c0_31, %c0_32], %48 {strides = array<i32>} : memref<128x128xf32, #tpu.memory_space<vmem>>, vector<128x128xf32>,
    } else {
    }
    %c0 = arith.constant 0 : index
    %c0_1 = arith.constant 0 : index
    %c0_2 = arith.constant 0 : index
    %3 = vector.load %arg2[%c0, %c0_1, %c0_2] : memref<8x128x9xf32, #tpu.memory_space<vmem>>, vector<8x128x9xf32>
    %4 = vector.shape_cast %3 : vector<8x128x9xf32> to vector<1024x9xf32>
    %c0_3 = arith.constant 0 : index
    %c0_4 = arith.constant 0 : index
    %5 = vector.load %arg3[%c0_3, %c0_4] : memref<9x128xf32, #tpu.memory_space<vmem>>, vector<9x128xf32>
    %cst = arith.constant dense<0.000000e+00> : vector<1024x128xf32>
    %6 = tpu.matmul %4, %5, %cst {dimension_numbers = #tpu.dot_dimension_numbers<[1], [0], [0], [1], [0, 0, 1, 1], [], []>} : vector<1024x9xf32>, vector<9x128xf32>, vector<1024x128xf32> -> vector<1024x128xf32>
    %c0_5 = arith.constant 0 : index
    %c0_6 = arith.constant 0 : index
    %7 = vector.load %arg5[%c0_5, %c0_6] : memref<1x128xf32, #tpu.memory_space<vmem>>, vector<1x128xf32>
    %8 = vector.broadcast %7 : vector<1x128xf32> to vector<1024x128xf32>
    %9 = arith.addf %6, %8 : vector<1024x128xf32>
    %c0_7 = arith.constant 0 : index
    %c0_8 = arith.constant 0 : index
    %10 = vector.load %arg5[%c0_7, %c0_8] : memref<1x128xf32, #tpu.memory_space<vmem>>, vector<1x128xf32>
    %cst_9 = arith.constant dense<0.000000e+00> : vector<1xf32>
    %11 = vector.multi_reduction <add>, %10, %cst_9 [1] : vector<1x128xf32> to vector<1xf32>
    %12 = vector.shape_cast %11 : vector<1xf32> to vector<1x1xf32>
    %c0_10 = arith.constant 0 : index
    %c0_11 = arith.constant 0 : index
    %13 = vector.load %arg4[%c0_10, %c0_11] : memref<9x1xf32, #tpu.memory_space<vmem>>, vector<9x1xf32>
    %cst_12 = arith.constant dense<0.000000e+00> : vector<1024x1xf32>
    %14 = tpu.matmul %4, %13, %cst_12 {dimension_numbers = #tpu.dot_dimension_numbers<[1], [0], [0], [1], [0, 0, 1, 1], [], []>} : vector<1024x9xf32>, vector<9x1xf32>, vector<1024x1xf32> -> vector<1024x1xf32>
    %15 = vector.broadcast %12 : vector<1x1xf32> to vector<1024x1xf32>
    %16 = arith.addf %14, %15 : vector<1024x1xf32>
    %17 = arith.mulf %9, %9 : vector<1024x128xf32>
    %c0_13 = arith.constant 0 : index
    %c0_14 = arith.constant 0 : index
    %18 = vector.load %arg8[%c0_13, %c0_14] : memref<128x1xf32, #tpu.memory_space<vmem>>, vector<128x1xf32>
    %cst_15 = arith.constant dense<0.000000e+00> : vector<1024x1xf32>
    %19 = tpu.matmul %17, %18, %cst_15 {dimension_numbers = #tpu.dot_dimension_numbers<[1], [0], [0], [1], [0, 0, 1, 1], [], []>} : vector<1024x128xf32>, vector<128x1xf32>, vector<1024x1xf32> -> vector<1024x1xf32>
    %cst_16 = arith.constant 7.812500e-03 : f32
    %20 = vector.broadcast %cst_16 : f32 to vector<1024x1xf32>
    %21 = arith.mulf %16, %20 : vector<1024x1xf32>
    %cst_17 = arith.constant 7.812500e-03 : f32
    %22 = vector.broadcast %cst_17 : f32 to vector<1024x1xf32>
    %23 = arith.mulf %19, %22 : vector<1024x1xf32>
    %24 = arith.mulf %21, %21 : vector<1024x1xf32>
    %25 = arith.subf %23, %24 : vector<1024x1xf32>
    %cst_18 = arith.constant 0.000000e+00 : f32
    %26 = vector.broadcast %cst_18 : f32 to vector<1024x1xf32>
    %27 = arith.maximumf %25, %26 : vector<1024x1xf32>
    %28 = vector.broadcast %21 : vector<1024x1xf32> to vector<1024x128xf32>
    %29 = arith.subf %9, %28 : vector<1024x128xf32>
    %cst_19 = arith.constant 9.99999974E-6 : f32
    %30 = vector.broadcast %cst_19 : f32 to vector<1024x1xf32>
    %31 = arith.addf %27, %30 : vector<1024x1xf32>
    %32 = math.rsqrt %31 : vector<1024x1xf32>
    %33 = vector.broadcast %32 : vector<1024x1xf32> to vector<1024x128xf32>
    %34 = arith.mulf %29, %33 : vector<1024x128xf32>
    %c0_20 = arith.constant 0 : index
    %c0_21 = arith.constant 0 : index
    %35 = vector.load %arg6[%c0_20, %c0_21] : memref<1x128xf32, #tpu.memory_space<vmem>>, vector<1x128xf32>
    %36 = vector.broadcast %35 : vector<1x128xf32> to vector<1024x128xf32>
    %37 = arith.mulf %34, %36 : vector<1024x128xf32>
    %c0_22 = arith.constant 0 : index
    %c0_23 = arith.constant 0 : index
    %38 = vector.load %arg7[%c0_22, %c0_23] : memref<1x128xf32, #tpu.memory_space<vmem>>, vector<1x128xf32>
    %39 = vector.broadcast %38 : vector<1x128xf32> to vector<1024x128xf32>
    %40 = arith.addf %37, %39 : vector<1024x128xf32>
    %cst_24 = arith.constant 0.000000e+00 : f32
    %41 = vector.broadcast %cst_24 : f32 to vector<1024x128xf32>
    %42 = arith.maximumf %40, %41 : vector<1024x128xf32>
    %43 = vector.shape_cast %42 : vector<1024x128xf32> to vector<8x128x128xf32>
    %cst_25 = arith.constant dense<0xFF800000> : vector<128x128xf32>
    %44 = vector.multi_reduction <maximumf>, %43, %cst_25 [0] : vector<8x128x128xf32> to vector<128x128xf32>
    %c0_26 = arith.constant 0 : index
    %c0_27 = arith.constant 0 : index
    %45 = vector.load %arg9[%c0_26, %c0_27] : memref<128x128xf32, #tpu.memory_space<vmem>>, vector<128x128xf32>
    %46 = arith.maximumf %45, %44 : vector<128x128xf32>
    %c0_28 = arith.constant 0 : index
    %c0_29 = arith.constant 0 : index
    %47 = vector.load %arg9[%c0_28, %c0_29] : memref<128x128xf32, #tpu.memory_space<vmem>>, vector<128x128xf32>
    tpu.vector_store %arg9[%c0_28, %c0_29], %46 {strides = array<i32>} : memref<128x128xf32, #tpu.memory_space<vmem>>, vector<128x128xf32>,
    return
  }
  func.func @transform_0(%arg0: i32, %arg1: i32) -> (i32, i32, i32) {
    %c0_i32 = arith.constant 0 : i32
    %c0_i32_0 = arith.constant 0 : i32
    return %arg1, %arg0, %c0_i32 : i32, i32, i32
  }
  func.func @transform_1(%arg0: i32, %arg1: i32) -> (i32, i32) {
    %c0_i32 = arith.constant 0 : i32
    %c0_i32_0 = arith.constant 0 : i32
    %c0_i32_1 = arith.constant 0 : i32
    return %c0_i32, %c0_i32_0 : i32, i32
  }
  func.func @transform_2(%arg0: i32, %arg1: i32) -> (i32, i32) {
    %c0_i32 = arith.constant 0 : i32
    %c0_i32_0 = arith.constant 0 : i32
    %c0_i32_1 = arith.constant 0 : i32
    return %c0_i32, %c0_i32_0 : i32, i32
  }
  func.func @transform_3(%arg0: i32, %arg1: i32) -> (i32, i32) {
    %c0_i32 = arith.constant 0 : i32
    %c0_i32_0 = arith.constant 0 : i32
    %c0_i32_1 = arith.constant 0 : i32
    return %c0_i32, %c0_i32_0 : i32, i32
  }
  func.func @transform_4(%arg0: i32, %arg1: i32) -> (i32, i32) {
    %c0_i32 = arith.constant 0 : i32
    %c0_i32_0 = arith.constant 0 : i32
    %c0_i32_1 = arith.constant 0 : i32
    return %c0_i32, %c0_i32_0 : i32, i32
  }
  func.func @transform_5(%arg0: i32, %arg1: i32) -> (i32, i32) {
    %c0_i32 = arith.constant 0 : i32
    %c0_i32_0 = arith.constant 0 : i32
    %c0_i32_1 = arith.constant 0 : i32
    return %c0_i32, %c0_i32_0 : i32, i32
  }
  func.func @transform_6(%arg0: i32, %arg1: i32) -> (i32, i32) {
    %c0_i32 = arith.constant 0 : i32
    %c0_i32_0 = arith.constant 0 : i32
    %c0_i32_1 = arith.constant 0 : i32
    return %c0_i32, %c0_i32_0 : i32, i32
  }
  func.func @transform_7(%arg0: i32, %arg1: i32) -> (i32, i32) {
    %c0_i32 = arith.constant 0 : i32
    %c0_i32_0 = arith.constant 0 : i32
    return %arg0, %c0_i32 : i32, i32
  }
}

</mosaic_0001>

<bundles_post_ra>
// kernel: tpu_custom_call.1
= control target key start
LH: loop header
LB: loop body
LE: loop exit
PB: predicated region body
PF: predicated region fallthrough
CT: control target
= control target key end

     0   :  { %vm569_vm0 = vcmask 1040384   ;;  %vm7514_vm1 = vmmov 1   ;;  %vm184_vm3 = vcmask 72704   ;;  %s13299_s0 = inlined_call_operand.vmem [shape: f32[8,128,9], index: 0, kind: input, shape index: {}]   ;;  %s13300_s1 = inlined_call_operand.vmem [shape: f32[9,128], index: 1, kind: input, shape index: {}]   ;;  %s13301_s2 = inlined_call_operand.vmem [shape: f32[9,1], index: 2, kind: input, shape index: {}]   ;;  %s13302_s3 = inlined_call_operand.vmem [shape: f32[1,128], index: 3, kind: input, shape index: {}]   ;;  %s13303_s4 = inlined_call_operand.vmem [shape: f32[1,128], index: 4, kind: input, shape index: {}]   ;;  %s13304_s5 = inlined_call_operand.vmem [shape: f32[1,128], index: 5, kind: input, shape index: {}]   ;;  %s13305_s6 = inlined_call_operand.vmem [shape: f32[128,1], index: 6, kind: input, shape index: {}]   ;;  %s13306_s7 = inlined_call_operand.hbm [shape: f32[128,128], index: 7, kind: output, shape index: {}]  }
   0x1   :  { %v175_v0 = vld [vmem:[%s13300_s1] sm:$0xff]  ;;  %v176_v1 = vld [vmem:[%s13300_s1 + $0x8] sm:$0x1]  ;;  %vm7571_vm2 = vmpackc.low %vm569_vm0, %vm7514_vm1 }
   0x2   :  { %v7568_v2 = vld [vmem:[%s13299_s0] sm:$0xff]  ;;  %v7130_v3 = vpack.c.bf16 %v176_v1, %v175_v0  ;;  %v1282_v7 = vld [vmem:[%s13301_s2 + $0x8] sm:$0x1]  ;;  %v7613_v11 = vld [vmem:[%s13299_s0 + $0x10] sm:$0xff] }
   0x3   :  { %v7578_v5 = vld [vmem:[%s13299_s0 + $0x200] sm:$0xff]  ;;  %6518 = vmatprep.mubr.msk.f32.mxu0 %vm184_vm3, %v7568_v2  ;;  %v7601_v9 = vld [vmem:[%s13299_s0 + $0x8] sm:$0xff]  ;;  %v7618_v12 = vld [vmem:[%s13299_s0 + $0x210] sm:$0xff] }
   0x4   :  { %13819 = vst [vmem:[#allocation5_spill] sm:$0xff] %v7578_v5  ;;  %6614 = vmatprep.mubr.msk.f32.mxu1 %vm184_vm3, %v7578_v5  ;;  %v1281_v6 = vld [vmem:[%s13301_s2] sm:$0xff]  ;;  %7132 = vmatprep.subr.msk.bf16.mxu0 %vm7571_vm2, %v7130_v3  ;;  %v7606_v10 = vld [vmem:[%s13299_s0 + $0x208] sm:$0xff]  ;;  %13821 = vst [vmem:[#allocation7_spill] sm:$0xff] %v7618_v12 }
   0x5   :  { %7174 = vmatprep.subr.msk.bf16.mxu1 %vm7571_vm2, %v7130_v3  ;;  %v7136_v8 = vpack.c.bf16 %v1282_v7, %v1281_v6  ;;  %7135 = vmatpush3.bf16.msk.msra.mxu0 %vm7571_vm2, %v7130_v3  ;;  %13820 = vst [vmem:[#allocation6_spill] sm:$0xff] %v7606_v10  ;;  %v7631_v13 = vld [vmem:[%s13299_s0 + $0x18] sm:$0xff]  ;;  %v7643_v15 = vld [vmem:[%s13299_s0 + $0x20] sm:$0xff]  ;;  %v7661_v17 = vld [vmem:[%s13299_s0 + $0x28] sm:$0xff] }
   0x6   :  { %7175 = vmatpush3.bf16.msk.msra.mxu1 %vm7571_vm2, %v7130_v3  ;;  %v7636_v14 = vld [vmem:[%s13299_s0 + $0x218] sm:$0xff]  ;;  %v7648_v16 = vld [vmem:[%s13299_s0 + $0x220] sm:$0xff]  ;;  %v7666_v18 = vld [vmem:[%s13299_s0 + $0x228] sm:$0xff] }
   0x7   :  { %7138 = vmatprep.subr.msk.bf16.mxu1 %vm7571_vm2, %v7136_v8  ;;  %13822 = vst [vmem:[#allocation8_spill] sm:$0xff] %v7636_v14  ;;  %13823 = vst [vmem:[#allocation9_spill] sm:$0xff] %v7648_v16  ;;  %v7671_v19 = vld [vmem:[%s13299_s0 + $0x30] sm:$0xff]  ;;  %v7689_v21 = vld [vmem:[%s13299_s0 + $0x38] sm:$0xff] }
   0x8   :  { %6519 = vmatmul.mubr.msk.f32.vlgmr.msra.gmra.mrb[0].mxu0 %vm184_vm3, %v7601_v9  ;;  %13824 = vst [vmem:[#allocation10_spill] sm:$0xff] %v7666_v18  ;;  %v7676_v20 = vld [vmem:[%s13299_s0 + $0x230] sm:$0xff]  ;;  %v7694_v22 = vld [vmem:[%s13299_s0 + $0x238] sm:$0xff]  ;;  %v7699_v23 = vld [vmem:[%s13299_s0 + $0x40] sm:$0xff] }
   0x9   :  { %6615 = vmatmul.mubr.msk.f32.vlgmr.msra.gmra.mrb[0].mxu1 %vm184_vm3, %v7606_v10  ;;  %6521 = vmatprep.mubr.msk.f32.mxu0 %vm184_vm3, %v7613_v11  ;;  %13825 = vst [vmem:[#allocation11_spill] sm:$0xff] %v7676_v20  ;;  %13826 = vst [vmem:[#allocation12_spill] sm:$0xff] %v7694_v22  ;;  %v7704_v24 = vld [vmem:[%s13299_s0 + $0x240] sm:$0xff]  ;;  %v7717_v25 = vld [vmem:[%s13299_s0 + $0x48] sm:$0xff] }
   0xa   :  { %7141 = vmatpush3.bf16.msk.msra.mxu1 %vm7571_vm2, %v7136_v8  ;;  %6617 = vmatprep.mubr.msk.f32.mxu1 %vm184_vm3, %v7618_v12  ;;  %13827 = vst [vmem:[#allocation13_spill] sm:$0xff] %v7704_v24  ;;  %v7722_v26 = vld [vmem:[%s13299_s0 + $0x248] sm:$0xff]  ;;  %v7727_v27 = vld [vmem:[%s13299_s0 + $0x50] sm:$0xff]  ;;  %v7745_v29 = vld [vmem:[%s13299_s0 + $0x58] sm:$0xff] }
   0xb   :  { %13828 = vst [vmem:[#allocation14_spill] sm:$0xff] %v7722_v26  ;;  %v7732_v28 = vld [vmem:[%s13299_s0 + $0x250] sm:$0xff]  ;;  %v7750_v30 = vld [vmem:[%s13299_s0 + $0x258] sm:$0xff]  ;;  %v7755_v31 = vld [vmem:[%s13299_s0 + $0x60] sm:$0xff] }
   0xc   :  { %6522 = vmatmul.mubr.msk.f32.gmra.mrb[2].mxu0 %vm184_vm3, %v7631_v13  ;;  %13829 = vst [vmem:[#allocation15_spill] sm:$0xff] %v7732_v28  ;;  %13830 = vst [vmem:[#allocation16_spill] sm:$0xff] %v7750_v30  ;;  %v7760_v32 = vld [vmem:[%s13299_s0 + $0x260] sm:$0xff]  ;;  %v7773_v33 = vld [vmem:[%s13299_s0 + $0x68] sm:$0xff] }
   0xd   :  { %6618 = vmatmul.mubr.msk.f32.gmra.mrb[2].mxu1 %vm184_vm3, %v7636_v14  ;;  %6524 = vmatprep.mubr.msk.f32.mxu0 %vm184_vm3, %v7643_v15  ;;  %13831 = vst [vmem:[#allocation17_spill] sm:$0xff] %v7760_v32  ;;  %v7778_v34 = vld [vmem:[%s13299_s0 + $0x268] sm:$0xff]  ;;  %v7783_v35 = vld [vmem:[%s13299_s0 + $0x70] sm:$0xff]  ;;  %v7801_v37 = vld [vmem:[%s13299_s0 + $0x78] sm:$0xff] }
   0xe   :  { %6620 = vmatprep.mubr.msk.f32.mxu1 %vm184_vm3, %v7648_v16  ;;  %13832 = vst [vmem:[#allocation18_spill] sm:$0xff] %v7778_v34  ;;  %v7788_v36 = vld [vmem:[%s13299_s0 + $0x270] sm:$0xff]  ;;  %v7806_v38 = vld [vmem:[%s13299_s0 + $0x278] sm:$0xff]  ;;  %v7811_v39 = vld [vmem:[%s13299_s0 + $0x80] sm:$0xff] }
   0xf   :  { %13833 = vst [vmem:[#allocation19_spill] sm:$0xff] %v7788_v36  ;;  %13834 = vst [vmem:[#allocation20_spill] sm:$0xff] %v7806_v38  ;;  %v7816_v40 = vld [vmem:[%s13299_s0 + $0x280] sm:$0xff]  ;;  %v7829_v41 = vld [vmem:[%s13299_s0 + $0x88] sm:$0xff] }
  0x10   :  { %6525 = vmatmul.mubr.msk.f32.gmra.mrb[4].mxu0 %vm184_vm3, %v7661_v17  ;;  %13835 = vst [vmem:[#allocation21_spill] sm:$0xff] %v7816_v40  ;;  %v128_v42 = vld [vmem:[%s13299_s0 + $0x288] sm:$0xff]  ;;  %v7837_v43 = vld [vmem:[%s13299_s0 + $0x90] sm:$0xff]  ;;  %v7848_v45 = vld [vmem:[%s13299_s0 + $0x98] sm:$0xff] }
  0x11   :  { %6621 = vmatmul.mubr.msk.f32.gmra.mrb[4].mxu1 %vm184_vm3, %v7666_v18  ;;  %6527 = vmatprep.mubr.msk.f32.mxu0 %vm184_vm3, %v7671_v19  ;;  %v129_v44 = vld [vmem:[%s13299_s0 + $0x290] sm:$0xff]  ;;  %v130_v46 = vld [vmem:[%s13299_s0 + $0x298] sm:$0xff]  ;;  %v2123_v47 = vld [vmem:[%s13305_s6] sm:$0xff] }
  0x12   :  { %6623 = vmatprep.mubr.msk.f32.mxu1 %vm184_vm3, %v7676_v20  ;;  %v2124_v48 = vld [vmem:[%s13305_s6 + $0x8] sm:$0xff]  ;;  %v7865_v49 = vld [vmem:[%s13299_s0 + $0xa0] sm:$0xff]  ;;  %v7887_v54 = vld [vmem:[%s13299_s0 + $0xb0] sm:$0xff] }
  0x13   :  { %v131_v50 = vld [vmem:[%s13299_s0 + $0x2a0] sm:$0xff]  ;;  %v7142_v51 = vpack.c.bf16 %v2124_v48, %v2123_v47  ;;  %v7879_v52 = vld [vmem:[%s13299_s0 + $0xa8] sm:$0xff]  ;;  %v133_v55 = vld [vmem:[%s13299_s0 + $0x2b0] sm:$0xff] }
  0x14   :  { %6528 = vmatmul.mubr.msk.f32.gmra.mrb[6].mxu0 %vm184_vm3, %v7689_v21  ;;  %v132_v53 = vld [vmem:[%s13299_s0 + $0x2a8] sm:$0xff]  ;;  %v2125_v56 = vld [vmem:[%s13305_s6 + $0x10] sm:$0xff]  ;;  %v2126_v57 = vld [vmem:[%s13305_s6 + $0x18] sm:$0xff] }
  0x15   :  { %6624 = vmatmul.mubr.msk.f32.gmra.mrb[6].mxu1 %vm184_vm3, %v7694_v22  ;;  %6530 = vmatprep.mubr.msk.f32.mxu0 %vm184_vm3, %v7699_v23  ;;  %v7146_v58 = vpack.c.bf16 %v2126_v57, %v2125_v56  ;;  %v2127_v59 = vld [vmem:[%s13305_s6 + $0x20] sm:$0xff]  ;;  %v2128_v60 = vld [vmem:[%s13305_s6 + $0x28] sm:$0xff] }
  0x16   :  { %6626 = vmatprep.mubr.msk.f32.mxu1 %vm184_vm3, %v7704_v24  ;;  %7143 = vmatprep.subr.bf16.mxu0 %v7142_v51 }
  0x17   :  { %7145 = vmatpush3.bf16.msra.mxu0 %v7142_v51 }
  0x18   :  { %6531 = vmatmul.mubr.msk.f32.gmra.mrb[8].mxu0 %vm184_vm3, %v7717_v25 }
  0x19   :  { %6627 = vmatmul.mubr.msk.f32.gmra.mrb[8].mxu1 %vm184_vm3, %v7722_v26  ;;  %6533 = vmatprep.mubr.msk.f32.mxu0 %vm184_vm3, %v7727_v27 }
  0x1a   :  { %6629 = vmatprep.mubr.msk.f32.mxu1 %vm184_vm3, %v7732_v28 }
  0x1c   :  { %6534 = vmatmul.mubr.msk.f32.gmra.mrb[10].mxu0 %vm184_vm3, %v7745_v29 }
  0x1d   :  { %6630 = vmatmul.mubr.msk.f32.gmra.mrb[10].mxu1 %vm184_vm3, %v7750_v30  ;;  %6536 = vmatprep.mubr.msk.f32.mxu0 %vm184_vm3, %v7755_v31 }
  0x1e   :  { %6632 = vmatprep.mubr.msk.f32.mxu1 %vm184_vm3, %v7760_v32 }
  0x20   :  { %6537 = vmatmul.mubr.msk.f32.gmra.mrb[12].mxu0 %vm184_vm3, %v7773_v33 }
  0x21   :  { %6633 = vmatmul.mubr.msk.f32.gmra.mrb[12].mxu1 %vm184_vm3, %v7778_v34  ;;  %6539 = vmatprep.mubr.msk.f32.mxu0 %vm184_vm3, %v7783_v35 }
  0x22   :  { %6635 = vmatprep.mubr.msk.f32.mxu1 %vm184_vm3, %v7788_v36 }
  0x24   :  { %6540 = vmatmul.mubr.msk.f32.gmra.mrb[14].mxu0 %vm184_vm3, %v7801_v37 }
  0x25   :  { %6636 = vmatmul.mubr.msk.f32.gmra.mrb[14].mxu1 %vm184_vm3, %v7806_v38  ;;  %6542 = vmatprep.mubr.msk.f32.mxu0 %vm184_vm3, %v7811_v39 }
  0x26   :  { %6638 = vmatprep.mubr.msk.f32.mxu1 %vm184_vm3, %v7816_v40 }
  0x28   :  { %6543 = vmatmul.mubr.msk.f32.gmra.mrb[16].mxu0 %vm184_vm3, %v7829_v41 }
  0x29   :  { %6639 = vmatmul.mubr.msk.f32.gmra.mrb[16].mxu1 %vm184_vm3, %v128_v42  ;;  %6545 = vmatprep.mubr.msk.f32.mxu0 %vm184_vm3, %v7837_v43 }
  0x2a   :  { %6641 = vmatprep.mubr.msk.f32.mxu1 %vm184_vm3, %v129_v44 }
  0x2c   :  { %6546 = vmatmul.mubr.msk.f32.gmra.mrb[18].mxu0 %vm184_vm3, %v7848_v45 }
  0x2d   :  { %6642 = vmatmul.mubr.msk.f32.gmra.mrb[18].mxu1 %vm184_vm3, %v130_v46  ;;  %6548 = vmatprep.mubr.msk.f32.mxu0 %vm184_vm3, %v7865_v49 }
  0x2e   :  { %6644 = vmatprep.mubr.msk.f32.mxu1 %vm184_vm3, %v131_v50 }
  0x30   :  { %6549 = vmatmul.mubr.msk.f32.gmra.mrb[20].mxu0 %vm184_vm3, %v7879_v52 }
  0x31   :  { %6645 = vmatmul.mubr.msk.f32.gmra.mrb[20].mxu1 %vm184_vm3, %v132_v53 }
  0x32   :  { %12 = vsyncpa [#allocation3], 0  ;;  %6551 = vmatprep.mubr.msk.f32.mxu0 %vm184_vm3, %v7887_v54  ;;  %6647 = vmatprep.mubr.msk.f32.mxu1 %vm184_vm3, %v133_v55  ;;  %v7913_v61 = vld [vmem:[%s13299_s0 + $0xb8] sm:$0xff]  ;;  %v7921_v63 = vld [vmem:[%s13299_s0 + $0xc0] sm:$0xff]  ;;  %v7150_v1 = vpack.c.bf16 %v2128_v60, %v2127_v59 }
  0x33   :  { %v134_v62 = vld [vmem:[%s13299_s0 + $0x2b8] sm:$0xff]  ;;  %v135_v0 = vld [vmem:[%s13299_s0 + $0x2c0] sm:$0xff]  ;;  %7147 = vmatprep.subr.bf16.mxu0 %v7146_v58  ;;  %v2129_v3 = vld [vmem:[%s13305_s6 + $0x30] sm:$0xff] }
  0x34   :  { %7149 = vmatpush3.bf16.msra.mxu0 %v7146_v58  ;;  %v2130_v4 = vld [vmem:[%s13305_s6 + $0x38] sm:$0xff]  ;;  %v7941_v6 = vld [vmem:[%s13299_s0 + $0xc8] sm:$0xff]  ;;  %v7949_v8 = vld [vmem:[%s13299_s0 + $0xd0] sm:$0xff] }
  0x35   :  { %6552 = vmatmul.mubr.msk.f32.gmra.mrb[22].mxu0 %vm184_vm3, %v7913_v61  ;;  %6648 = vmatmul.mubr.msk.f32.gmra.mrb[22].mxu1 %vm184_vm3, %v134_v62  ;;  %v136_v7 = vld [vmem:[%s13299_s0 + $0x2c8] sm:$0xff]  ;;  %v137_v42 = vld [vmem:[%s13299_s0 + $0x2d0] sm:$0xff]  ;;  %v7154_v44 = vpack.c.bf16 %v2130_v4, %v2129_v3  ;;  %v2131_v46 = vld [vmem:[%s13305_s6 + $0x40] sm:$0xff] }
  0x36   :  { %6554 = vmatprep.mubr.msk.f32.mxu0 %vm184_vm3, %v7921_v63  ;;  %6650 = vmatprep.mubr.msk.f32.mxu1 %vm184_vm3, %v135_v0  ;;  %v2132_v47 = vld [vmem:[%s13305_s6 + $0x48] sm:$0xff]  ;;  %v7969_v48 = vld [vmem:[%s13299_s0 + $0xd8] sm:$0xff]  ;;  %v7979_v51 = vld [vmem:[%s13299_s0 + $0xe0] sm:$0xff] }
  0x37   :  { %7151 = vmatprep.subr.bf16.mxu0 %v7150_v1  ;;  %v7974_v50 = vld [vmem:[%s13299_s0 + $0x2d8] sm:$0xff]  ;;  %v139_v53 = vld [vmem:[%s13299_s0 + $0x2e0] sm:$0xff]  ;;  %v7158_v55 = vpack.c.bf16 %v2132_v47, %v2131_v46  ;;  %v7994_v56 = vld [vmem:[%s13299_s0 + $0xe8] sm:$0xff] }
  0x38   :  { %7153 = vmatpush3.bf16.msra.mxu0 %v7150_v1  ;;  %13836 = vst [vmem:[#allocation22_spill] sm:$0xff] %v7974_v50  ;;  %v140_v57 = vld [vmem:[%s13299_s0 + $0x2e8] sm:$0xff]  ;;  %v8002_v58 = vld [vmem:[%s13299_s0 + $0xf0] sm:$0xff]  ;;  %v8016_v60 = vld [vmem:[%s13299_s0 + $0xf8] sm:$0xff] }
  0x39   :  { %6555 = vmatmul.mubr.msk.f32.gmra.mrb[24].mxu0 %vm184_vm3, %v7941_v6  ;;  %6651 = vmatmul.mubr.msk.f32.gmra.mrb[24].mxu1 %vm184_vm3, %v136_v7  ;;  %v141_v59 = vld [vmem:[%s13299_s0 + $0x2f0] sm:$0xff]  ;;  %v142_v62 = vld [vmem:[%s13299_s0 + $0x2f8] sm:$0xff]  ;;  %v8024_v0 = vld [vmem:[%s13299_s0 + $0x100] sm:$0xff] }
  0x3a   :  { %6557 = vmatprep.mubr.msk.f32.mxu0 %vm184_vm3, %v7949_v8  ;;  %6653 = vmatprep.mubr.msk.f32.mxu1 %vm184_vm3, %v137_v42  ;;  %v143_v1 = vld [vmem:[%s13299_s0 + $0x300] sm:$0xff]  ;;  %v8038_v3 = vld [vmem:[%s13299_s0 + $0x108] sm:$0xff]  ;;  %v8046_v7 = vld [vmem:[%s13299_s0 + $0x110] sm:$0xff] }
  0x3b   :  { %7155 = vmatprep.subr.bf16.mxu0 %v7154_v44  ;;  %v144_v4 = vld [vmem:[%s13299_s0 + $0x308] sm:$0xff]  ;;  %v145_v42 = vld [vmem:[%s13299_s0 + $0x310] sm:$0xff]  ;;  %v2134_v46 = vld [vmem:[%s13305_s6 + $0x58] sm:$0xff] }
  0x3c   :  { %7157 = vmatpush3.bf16.msra.mxu0 %v7154_v44  ;;  %v2133_v44 = vld [vmem:[%s13305_s6 + $0x50] sm:$0xff]  ;;  %v8066_v47 = vld [vmem:[%s13299_s0 + $0x118] sm:$0xff]  ;;  %v2136_v40 = vld [vmem:[%s13305_s6 + $0x68] sm:$0xff] }
  0x3d   :  { %6558 = vmatmul.mubr.msk.f32.gmra.mrb[26].mxu0 %vm184_vm3, %v7969_v48  ;;  %6654 = vmatmul.mubr.msk.f32.gmra.mrb[26].mxu1 %vm184_vm3, %v7974_v50  ;;  %v8147_v50 = vld [vmem:[%s13299_s0 + $0x150] sm:$0xff]  ;;  %v8167_v36 = vld [vmem:[%s13299_s0 + $0x158] sm:$0xff]  ;;  %v8175_v32 = vld [vmem:[%s13299_s0 + $0x160] sm:$0xff] }
  0x3e   :  { %6560 = vmatprep.mubr.msk.f32.mxu0 %vm184_vm3, %v7979_v51  ;;  %6656 = vmatprep.mubr.msk.f32.mxu1 %vm184_vm3, %v139_v53  ;;  %v146_v53 = vld [vmem:[%s13299_s0 + $0x318] sm:$0xff]  ;;  %v156_v30 = vld [vmem:[%s13299_s0 + $0x368] sm:$0xff]  ;;  %v8203_v28 = vld [vmem:[%s13299_s0 + $0x170] sm:$0xff] }
  0x3f   :  { %7159 = vmatprep.subr.bf16.mxu0 %v7158_v55  ;;  %v154_v34 = vld [vmem:[%s13299_s0 + $0x358] sm:$0xff]  ;;  %v8247_v26 = vld [vmem:[%s13299_s0 + $0x190] sm:$0xff]  ;;  %v8269_v22 = vld [vmem:[%s13299_s0 + $0x1a0] sm:$0xff] }
  0x40   :  { %7161 = vmatpush3.bf16.msra.mxu0 %v7158_v55  ;;  %v7162_v55 = vpack.c.bf16 %v2134_v46, %v2133_v44  ;;  %v8103_v44 = vld [vmem:[%s13299_s0 + $0x130] sm:$0xff]  ;;  %v162_v24 = vld [vmem:[%s13299_s0 + $0x398] sm:$0xff]  ;;  %v164_v20 = vld [vmem:[%s13299_s0 + $0x3a8] sm:$0xff] }
  0x41   :  { %6561 = vmatmul.mubr.msk.f32.gmra.mrb[28].mxu0 %vm184_vm3, %v7994_v56  ;;  %6657 = vmatmul.mubr.msk.f32.gmra.mrb[28].mxu1 %vm184_vm3, %v140_v57  ;;  %v8074_v57 = vld [vmem:[%s13302_s3] sm:$0x1]  ;;  %v149_v46 = vld [vmem:[%s13299_s0 + $0x330] sm:$0xff]  ;;  %v166_v16 = vld [vmem:[%s13299_s0 + $0x3b8] sm:$0xff] }
  0x42   :  { %6563 = vmatprep.mubr.msk.f32.mxu0 %vm184_vm3, %v8002_v58  ;;  %6659 = vmatprep.mubr.msk.f32.mxu1 %vm184_vm3, %v141_v59  ;;  %v8079_v59 = vld [vmem:[%s13299_s0 + $0x120] sm:$0xff]  ;;  %v8291_v18 = vld [vmem:[%s13299_s0 + $0x1b0] sm:$0xff]  ;;  %v168_v12 = vld [vmem:[%s13299_s0 + $0x3c8] sm:$0xff] }
  0x43   :  { %7163 = vmatprep.subr.bf16.mxu0 %v7162_v55  ;;  %v8313_v14 = vld [vmem:[%s13299_s0 + $0x1c0] sm:$0xff]  ;;  %v8335_v10 = vld [vmem:[%s13299_s0 + $0x1d0] sm:$0xff]  ;;  %v170_v5 = vld [vmem:[%s13299_s0 + $0x3d8] sm:$0xff] }
  0x44   :  { %7165 = vmatpush3.bf16.msra.mxu0 %v7162_v55  ;;  %v8125_v55 = vld [vmem:[%s13299_s0 + $0x140] sm:$0xff]  ;;  %13838 = vst [vmem:[#allocation24_spill] sm:$0xff] %v8335_v10 }
  0x45   :  { %6564 = vmatmul.mubr.msk.f32.gmra.mrb[30].mxu0 %vm184_vm3, %v8016_v60  ;;  %6660 = vmatmul.mubr.msk.f32.gmra.mrb[30].mxu1 %vm184_vm3, %v142_v62  ;;  %v147_v62 = vld [vmem:[%s13299_s0 + $0x320] sm:$0xff] }
  0x46   :  { %6566 = vmatprep.mubr.msk.f32.mxu0 %vm184_vm3, %v8024_v0  ;;  %6662 = vmatprep.mubr.msk.f32.mxu1 %vm184_vm3, %v143_v1  ;;  %v1278_v1 = vsel %vm569_vm0, %v8074_v57, 0.0 }
  0x47   :  { %1279 = vadd.xlane.f32.xlu0 %v1278_v1  ;;  %v151_v1 = vld [vmem:[%s13299_s0 + $0x340] sm:$0xff] }
  0x49   :  { %6567 = vmatmul.mubr.msk.f32.gmra.mrb[32].mxu0 %vm184_vm3, %v8038_v3  ;;  %6663 = vmatmul.mubr.msk.f32.gmra.mrb[32].mxu1 %vm184_vm3, %v144_v4  ;;  %v8095_v4 = vld [vmem:[%s13299_s0 + $0x128] sm:$0xff] }
  0x4a   :  { %6569 = vmatprep.mubr.msk.f32.mxu0 %vm184_vm3, %v8046_v7  ;;  %6665 = vmatprep.mubr.msk.f32.mxu1 %vm184_vm3, %v145_v42  ;;  %v148_v42 = vld [vmem:[%s13299_s0 + $0x328] sm:$0xff] }
  0x4d   :  { %6570 = vmatmul.mubr.msk.f32.gmra.mrb[34].mxu0 %vm184_vm3, %v8066_v47  ;;  %6666 = vmatmul.mubr.msk.f32.gmra.mrb[34].mxu1 %vm184_vm3, %v146_v53  ;;  %v8117_v53 = vld [vmem:[%s13299_s0 + $0x138] sm:$0xff] }
  0x4e   :  { %6572 = vmatprep.mubr.msk.f32.mxu0 %vm184_vm3, %v8079_v59  ;;  %6668 = vmatprep.mubr.msk.f32.mxu1 %vm184_vm3, %v147_v62  ;;  %v150_v62 = vld [vmem:[%s13299_s0 + $0x338] sm:$0xff] }
  0x51   :  { %6573 = vmatmul.mubr.msk.f32.gmra.mrb[36].mxu0 %vm184_vm3, %v8095_v4  ;;  %6669 = vmatmul.mubr.msk.f32.gmra.mrb[36].mxu1 %vm184_vm3, %v148_v42  ;;  %v8139_v42 = vld [vmem:[%s13299_s0 + $0x148] sm:$0xff] }
  0x52   :  { %6575 = vmatprep.mubr.msk.f32.mxu0 %vm184_vm3, %v8103_v44  ;;  %6671 = vmatprep.mubr.msk.f32.mxu1 %vm184_vm3, %v149_v46  ;;  %v152_v46 = vld [vmem:[%s13299_s0 + $0x348] sm:$0xff] }
  0x55   :  { %6576 = vmatmul.mubr.msk.f32.gmra.mrb[38].mxu0 %vm184_vm3, %v8117_v53  ;;  %6672 = vmatmul.mubr.msk.f32.gmra.mrb[38].mxu1 %vm184_vm3, %v150_v62  ;;  %v153_v62 = vld [vmem:[%s13299_s0 + $0x350] sm:$0xff] }
  0x56   :  { %6578 = vmatprep.mubr.msk.f32.mxu0 %vm184_vm3, %v8125_v55  ;;  %6674 = vmatprep.mubr.msk.f32.mxu1 %vm184_vm3, %v151_v1  ;;  %v2135_v1 = vld [vmem:[%s13305_s6 + $0x60] sm:$0xff] }
  0x57   :  { %v7166_v38 = vpack.c.bf16 %v2136_v40, %v2135_v1  ;;  %v155_v40 = vld [vmem:[%s13299_s0 + $0x360] sm:$0xff] }
  0x59   :  { %6579 = vmatmul.mubr.msk.f32.gmra.mrb[40].mxu0 %vm184_vm3, %v8139_v42  ;;  %6675 = vmatmul.mubr.msk.f32.gmra.mrb[40].mxu1 %vm184_vm3, %v152_v46  ;;  %v2137_v46 = vld [vmem:[%s13305_s6 + $0x70] sm:$0xff] }
  0x5a   :  { %6581 = vmatprep.mubr.msk.f32.mxu0 %vm184_vm3, %v8147_v50  ;;  %6677 = vmatprep.mubr.msk.f32.mxu1 %vm184_vm3, %v153_v62  ;;  %v2138_v62 = vld [vmem:[%s13305_s6 + $0x78] sm:$0xff] }
  0x5b   :  { %7167 = vmatprep.subr.bf16.mxu0 %v7166_v38  ;;  %v7170_v1 = vpack.c.bf16 %v2138_v62, %v2137_v46  ;;  %v158_v46 = vld [vmem:[%s13299_s0 + $0x378] sm:$0xff]  ;;  %v8225_v62 = vld [vmem:[%s13299_s0 + $0x180] sm:$0xff] }
  0x5c   :  { %7169 = vmatpush3.bf16.msra.mxu0 %v7166_v38  ;;  %v8195_v38 = vld [vmem:[%s13299_s0 + $0x168] sm:$0xff] }
  0x5d   :  { %6582 = vmatmul.mubr.msk.f32.gmra.mrb[42].mxu0 %vm184_vm3, %v8167_v36  ;;  %6678 = vmatmul.mubr.msk.f32.gmra.mrb[42].mxu1 %vm184_vm3, %v154_v34  ;;  %v157_v34 = vld [vmem:[%s13299_s0 + $0x370] sm:$0xff] }
  0x5e   :  { %6584 = vmatprep.mubr.msk.f32.mxu0 %vm184_vm3, %v8175_v32  ;;  %6680 = vmatprep.mubr.msk.f32.mxu1 %vm184_vm3, %v155_v40  ;;  %v8217_v40 = vld [vmem:[%s13299_s0 + $0x178] sm:$0xff] }
  0x5f   :  { %7171 = vmatprep.subr.bf16.mxu0 %v7170_v1 }
  0x60   :  { %7173 = vmatpush3.bf16.msra.mxu0 %v7170_v1  ;;  %v8239_v1 = vld [vmem:[%s13299_s0 + $0x188] sm:$0xff] }
  0x61   :  { %6585 = vmatmul.mubr.msk.f32.gmra.mrb[44].mxu0 %vm184_vm3, %v8195_v38  ;;  %6681 = vmatmul.mubr.msk.f32.gmra.mrb[44].mxu1 %vm184_vm3, %v156_v30  ;;  %v159_v30 = vld [vmem:[%s13299_s0 + $0x380] sm:$0xff] }
  0x62   :  { %6587 = vmatprep.mubr.msk.f32.mxu0 %vm184_vm3, %v8203_v28  ;;  %6683 = vmatprep.mubr.msk.f32.mxu1 %vm184_vm3, %v157_v34  ;;  %v160_v34 = vld [vmem:[%s13299_s0 + $0x388] sm:$0xff] }
  0x65   :  { %6588 = vmatmul.mubr.msk.f32.gmra.mrb[46].mxu0 %vm184_vm3, %v8217_v40  ;;  %6684 = vmatmul.mubr.msk.f32.gmra.mrb[46].mxu1 %vm184_vm3, %v158_v46  ;;  %v161_v46 = vld [vmem:[%s13299_s0 + $0x390] sm:$0xff] }
  0x66   :  { %6590 = vmatprep.mubr.msk.f32.mxu0 %vm184_vm3, %v8225_v62  ;;  %6686 = vmatprep.mubr.msk.f32.mxu1 %vm184_vm3, %v159_v30  ;;  %v8261_v30 = vld [vmem:[%s13299_s0 + $0x198] sm:$0xff] }
  0x69   :  { %6591 = vmatmul.mubr.msk.f32.gmra.mrb[48].mxu0 %vm184_vm3, %v8239_v1  ;;  %6687 = vmatmul.mubr.msk.f32.gmra.mrb[48].mxu1 %vm184_vm3, %v160_v34  ;;  %v163_v34 = vld [vmem:[%s13299_s0 + $0x3a0] sm:$0xff] }
  0x6a   :  { %6593 = vmatprep.mubr.msk.f32.mxu0 %vm184_vm3, %v8247_v26  ;;  %6689 = vmatprep.mubr.msk.f32.mxu1 %vm184_vm3, %v161_v46  ;;  %v8283_v46 = vld [vmem:[%s13299_s0 + $0x1a8] sm:$0xff] }
  0x6d   :  { %6594 = vmatmul.mubr.msk.f32.gmra.mrb[50].mxu0 %vm184_vm3, %v8261_v30  ;;  %6690 = vmatmul.mubr.msk.f32.gmra.mrb[50].mxu1 %vm184_vm3, %v162_v24  ;;  %v165_v24 = vld [vmem:[%s13299_s0 + $0x3b0] sm:$0xff] }
  0x6e   :  { %6596 = vmatprep.mubr.msk.f32.mxu0 %vm184_vm3, %v8269_v22  ;;  %6692 = vmatprep.mubr.msk.f32.mxu1 %vm184_vm3, %v163_v34  ;;  %v8305_v34 = vld [vmem:[%s13299_s0 + $0x1b8] sm:$0xff] }
  0x71   :  { %6597 = vmatmul.mubr.msk.f32.gmra.mrb[52].mxu0 %vm184_vm3, %v8283_v46  ;;  %6693 = vmatmul.mubr.msk.f32.gmra.mrb[52].mxu1 %vm184_vm3, %v164_v20  ;;  %v167_v20 = vld [vmem:[%s13299_s0 + $0x3c0] sm:$0xff] }
  0x72   :  { %6599 = vmatprep.mubr.msk.f32.mxu0 %vm184_vm3, %v8291_v18  ;;  %6695 = vmatprep.mubr.msk.f32.mxu1 %vm184_vm3, %v165_v24  ;;  %v8327_v24 = vld [vmem:[%s13299_s0 + $0x1c8] sm:$0xff] }
  0x73   :  { %13837 = vst [vmem:[#allocation23_spill] sm:$0xff] %v8327_v24 }
  0x75   :  { %6600 = vmatmul.mubr.msk.f32.gmra.mrb[54].mxu0 %vm184_vm3, %v8305_v34  ;;  %6696 = vmatmul.mubr.msk.f32.gmra.mrb[54].mxu1 %vm184_vm3, %v166_v16  ;;  %v169_v16 = vld [vmem:[%s13299_s0 + $0x3d0] sm:$0xff] }
  0x76   :  { %6602 = vmatprep.mubr.msk.f32.mxu0 %vm184_vm3, %v8313_v14  ;;  %6698 = vmatprep.mubr.msk.f32.mxu1 %vm184_vm3, %v167_v20  ;;  %v8349_v20 = vld [vmem:[%s13299_s0 + $0x1d8] sm:$0xff] }
  0x77   :  { %13839 = vst [vmem:[#allocation25_spill] sm:$0xff] %v8349_v20 }
  0x79   :  { %6603 = vmatmul.mubr.msk.f32.gmra.mrb[56].mxu0 %vm184_vm3, %v8327_v24  ;;  %6699 = vmatmul.mubr.msk.f32.gmra.mrb[56].mxu1 %vm184_vm3, %v168_v12  ;;  %v8357_v24 = vld [vmem:[%s13299_s0 + $0x1e0] sm:$0xff] }
  0x7a   :  { %6605 = vmatprep.mubr.msk.f32.mxu0 %vm184_vm3, %v8335_v10  ;;  %6701 = vmatprep.mubr.msk.f32.mxu1 %vm184_vm3, %v169_v16  ;;  %13840 = vst [vmem:[#allocation26_spill] sm:$0xff] %v8357_v24  ;;  %v171_v12 = vld [vmem:[%s13299_s0 + $0x3e0] sm:$0xff]  ;;  %v8371_v16 = vld [vmem:[%s13299_s0 + $0x1e8] sm:$0xff] }
  0x7b   :  { %v172_v10 = vld [vmem:[%s13299_s0 + $0x3e8] sm:$0xff] }
  0x7d   :  { %6606 = vmatmul.mubr.msk.f32.gmra.mrb[58].mxu0 %vm184_vm3, %v8349_v20  ;;  %6702 = vmatmul.mubr.msk.f32.gmra.mrb[58].mxu1 %vm184_vm3, %v170_v5  ;;  %v8379_v20 = vld [vmem:[%s13299_s0 + $0x1f0] sm:$0xff] }
  0x7e   :  { %6608 = vmatprep.mubr.msk.f32.mxu0 %vm184_vm3, %v8357_v24  ;;  %6704 = vmatprep.mubr.msk.f32.mxu1 %vm184_vm3, %v171_v12  ;;  %v173_v5 = vld [vmem:[%s13299_s0 + $0x3f0] sm:$0xff]  ;;  %v8393_v12 = vld [vmem:[%s13299_s0 + $0x1f8] sm:$0xff] }
  0x7f   :  { %v174_v24 = vld [vmem:[%s13299_s0 + $0x3f8] sm:$0xff] }
  0x81   :  { %6609 = vmatmul.mubr.msk.f32.gmra.mrb[60].mxu0 %vm184_vm3, %v8371_v16  ;;  %6705 = vmatmul.mubr.msk.f32.gmra.mrb[60].mxu1 %vm184_vm3, %v172_v10 }
  0x82   :  { %6611 = vmatprep.mubr.msk.f32.mxu0 %vm184_vm3, %v8379_v20  ;;  %6707 = vmatprep.mubr.msk.f32.mxu1 %vm184_vm3, %v173_v5 }
  0x85   :  { %6612 = vmatmul.mubr.msk.f32.gmra.mrb[62].mxu0 %vm184_vm3, %v8393_v12  ;;  %6708 = vmatmul.mubr.msk.f32.gmra.mrb[62].mxu1 %vm184_vm3, %v174_v24 }
  0x86   :  { %6714 = vmatprep.mubr.msk.f32.mxu1 %vm184_vm3, %v7568_v2  ;;  %v179_v2 = vlaneseq }
  0x89   :  { %6715 = vmatmul.mubr.msk.f32.vlgmr.msra.gmra.mrb[64].mxu1 %vm184_vm3, %v7601_v9  ;;  %v8477_v9 = vshrl.u32 %v179_v2, 7 }
  0x8a   :  { %6717 = vmatprep.mubr.msk.f32.mxu1 %vm184_vm3, %v7613_v11 }
  0x8b   :  { %v13329_v10 = vsub.s32 0, %v8477_v9 }
  0x8d   :  { %6718 = vmatmul.mubr.msk.f32.gmra.mrb[66].mxu1 %vm184_vm3, %v7631_v13  ;;  %v8491_v11 = vrot.slane %v8074_v57, %v13329_v10 }
  0x8e   :  { %6720 = vmatprep.mubr.msk.f32.mxu1 %vm184_vm3, %v7643_v15 }
  0x91   :  { %6721 = vmatmul.mubr.msk.f32.gmra.mrb[68].mxu1 %vm184_vm3, %v7661_v17 }
  0x92   :  { %6723 = vmatprep.mubr.msk.f32.mxu1 %vm184_vm3, %v7671_v19 }
  0x95   :  { %6724 = vmatmul.mubr.msk.f32.gmra.mrb[70].mxu1 %vm184_vm3, %v7689_v21 }
  0x96   :  { %6726 = vmatprep.mubr.msk.f32.mxu1 %vm184_vm3, %v7699_v23 }
  0x99   :  { %6727 = vmatmul.mubr.msk.f32.gmra.mrb[72].mxu1 %vm184_vm3, %v7717_v25 }
  0x9a   :  { %6729 = vmatprep.mubr.msk.f32.mxu1 %vm184_vm3, %v7727_v27 }
  0x9d   :  { %6730 = vmatmul.mubr.msk.f32.gmra.mrb[74].mxu1 %vm184_vm3, %v7745_v29 }
  0x9e   :  { %6732 = vmatprep.mubr.msk.f32.mxu1 %vm184_vm3, %v7755_v31 }
  0xa1   :  { %6733 = vmatmul.mubr.msk.f32.gmra.mrb[76].mxu1 %vm184_vm3, %v7773_v33  ;;  %v7515_v33 = vmov 0  }
  0xa2   :  { %6735 = vmatprep.mubr.msk.f32.mxu1 %vm184_vm3, %v7783_v35  ;;  %7182 = vset.pattern.permute.xlu1 %v7515_v33 }
  0xa3   :  { %7183 = vset.pattern.permute.xlu0 %v7515_v33  ;;  %v13856_v33 = vld [vmem:[#allocation23_spill] sm:$0xff] }
  0xa5   :  { %6736 = vmatmul.mubr.msk.f32.gmra.mrb[78].mxu1 %vm184_vm3, %v7801_v37 }
  0xa6   :  { %6738 = vmatprep.mubr.msk.f32.mxu1 %vm184_vm3, %v7811_v39 }
  0xa9   :  { %6739 = vmatmul.mubr.msk.f32.gmra.mrb[80].mxu1 %vm184_vm3, %v7829_v41 }
  0xaa   :  { %6741 = vmatprep.mubr.msk.f32.mxu1 %vm184_vm3, %v7837_v43 }
  0xad   :  { %6742 = vmatmul.mubr.msk.f32.gmra.mrb[82].mxu1 %vm184_vm3, %v7848_v45 }
  0xae   :  { %6744 = vmatprep.mubr.msk.f32.mxu1 %vm184_vm3, %v7865_v49 }
  0xb1   :  { %6745 = vmatmul.mubr.msk.f32.gmra.mrb[84].mxu1 %vm184_vm3, %v7879_v52 }
  0xb2   :  { %6747 = vmatprep.mubr.msk.f32.mxu1 %vm184_vm3, %v7887_v54 }
  0xb5   :  { %6748 = vmatmul.mubr.msk.f32.gmra.mrb[86].mxu1 %vm184_vm3, %v7913_v61 }
  0xb6   :  { %6750 = vmatprep.mubr.msk.f32.mxu1 %vm184_vm3, %v7921_v63 }
  0xb9   :  { %6751 = vmatmul.mubr.msk.f32.gmra.mrb[88].mxu1 %vm184_vm3, %v7941_v6 }
  0xba   :  { %6753 = vmatprep.mubr.msk.f32.mxu1 %vm184_vm3, %v7949_v8 }
  0xbd   :  { %6754 = vmatmul.mubr.msk.f32.gmra.mrb[90].mxu1 %vm184_vm3, %v7969_v48 }
  0xbe   :  { %6756 = vmatprep.mubr.msk.f32.mxu1 %vm184_vm3, %v7979_v51 }
  0xc1   :  { %6757 = vmatmul.mubr.msk.f32.gmra.mrb[92].mxu1 %vm184_vm3, %v7994_v56 }
  0xc2   :  { %6759 = vmatprep.mubr.msk.f32.mxu1 %vm184_vm3, %v8002_v58 }
  0xc5   :  { %6760 = vmatmul.mubr.msk.f32.gmra.mrb[94].mxu1 %vm184_vm3, %v8016_v60 }
  0xc6   :  { %6762 = vmatprep.mubr.msk.f32.mxu1 %vm184_vm3, %v8024_v0 }
  0xc9   :  { %6763 = vmatmul.mubr.msk.f32.gmra.mrb[96].mxu1 %vm184_vm3, %v8038_v3 }
  0xca   :  { %6765 = vmatprep.mubr.msk.f32.mxu1 %vm184_vm3, %v8046_v7 }
  0xcd   :  { %6766 = vmatmul.mubr.msk.f32.gmra.mrb[98].mxu1 %vm184_vm3, %v8066_v47 }
  0xce   :  { %6768 = vmatprep.mubr.msk.f32.mxu1 %vm184_vm3, %v8079_v59 }
  0xd1   :  { %6769 = vmatmul.mubr.msk.f32.gmra.mrb[100].mxu1 %vm184_vm3, %v8095_v4 }
  0xd2   :  { %6771 = vmatprep.mubr.msk.f32.mxu1 %vm184_vm3, %v8103_v44 }
  0xd5   :  { %6772 = vmatmul.mubr.msk.f32.gmra.mrb[102].mxu1 %vm184_vm3, %v8117_v53 }
  0xd6   :  { %6774 = vmatprep.mubr.msk.f32.mxu1 %vm184_vm3, %v8125_v55 }
  0xd9   :  { %6775 = vmatmul.mubr.msk.f32.gmra.mrb[104].mxu1 %vm184_vm3, %v8139_v42 }
  0xda   :  { %6777 = vmatprep.mubr.msk.f32.mxu1 %vm184_vm3, %v8147_v50 }
  0xdb   :  { %v6520_v13 = vpop.f32.mrb[0].mxu0 }
  0xdc   :  { %v8495_v15 = vpop.f32.mrb[0].mxu1  ;;  %v8498_v17 = vadd.f32 %v6520_v13, %v8491_v11  ;;  %v639_v19 = vpop.f32.mrb[1].mxu0 }
  0xdd   :  { %v8500_v21 = vpop.f32.mrb[1].mxu1  ;;  %6778 = vmatmul.mubr.msk.f32.gmra.mrb[106].mxu1 %vm184_vm3, %v8167_v36  ;;  %v8505_v23 = vadd.f32 %v639_v19, %v8491_v11 }
  0xde   :  { %13841 = vst [vmem:[#allocation27_spill] sm:$0xff] %v8498_v17  ;;  %6780 = vmatprep.mubr.msk.f32.mxu1 %vm184_vm3, %v8175_v32  ;;  %v1996_v25 = vmul.f32 %v8498_v17, %v8498_v17 }
  0xdf   :  { %13842 = vst [vmem:[#allocation28_spill] sm:$0xff] %v8505_v23  ;;  %v1995_v27 = vmul.f32 %v8505_v23, %v8505_v23  ;;  %v6523_v29 = vpop.f32.mrb[2].mxu0 }
  0xe0   :  { %v8513_v31 = vpop.f32.mrb[2].mxu1  ;;  %v8516_v35 = vadd.f32 %v6523_v29, %v8491_v11  ;;  %v649_v36 = vpop.f32.mrb[3].mxu0 }
  0xe1   :  { %v8518_v37 = vpop.f32.mrb[3].mxu1  ;;  %6781 = vmatmul.mubr.msk.f32.gmra.mrb[108].mxu1 %vm184_vm3, %v8195_v38  ;;  %v8523_v32 = vadd.f32 %v649_v36, %v8491_v11  ;;  %6938 = vmatprep.mubr.f32.mxu0 %v1995_v27  ;;  %v13858_v36 = vld [vmem:[#allocation24_spill] sm:$0xff] }
  0xe2   :  { %13843 = vst [vmem:[#allocation29_spill] sm:$0xff] %v8516_v35  ;;  %6783 = vmatprep.mubr.msk.f32.mxu1 %vm184_vm3, %v8203_v28  ;;  %v1998_v39 = vmul.f32 %v8516_v35, %v8516_v35  ;;  %6939 = vmatmul.mubr.f32.vlgmr.msra.gmra.mrb[64].mxu0 %v1996_v25  ;;  %v13911_v35 = vld [vmem:[#allocation22_spill] sm:$0xff] }
  0xe3   :  { %13844 = vst [vmem:[#allocation30_spill] sm:$0xff] %v8523_v32  ;;  %v1997_v41 = vmul.f32 %v8523_v32, %v8523_v32  ;;  %v6526_v43 = vpop.f32.mrb[4].mxu0 }
  0xe4   :  { %v8531_v45 = vpop.f32.mrb[4].mxu1  ;;  %v8534_v49 = vadd.f32 %v6526_v43, %v8491_v11  ;;  %v659_v52 = vpop.f32.mrb[5].mxu0 }
  0xe5   :  { %v8536_v54 = vpop.f32.mrb[5].mxu1  ;;  %6784 = vmatmul.mubr.msk.f32.gmra.mrb[110].mxu1 %vm184_vm3, %v8217_v40  ;;  %v8541_v28 = vadd.f32 %v659_v52, %v8491_v11  ;;  %6941 = vmatprep.mubr.f32.mxu0 %v1997_v41 }
  0xe6   :  { %13845 = vst [vmem:[#allocation31_spill] sm:$0xff] %v8534_v49  ;;  %6786 = vmatprep.mubr.msk.f32.mxu1 %vm184_vm3, %v8225_v62  ;;  %v2000_v61 = vmul.f32 %v8534_v49, %v8534_v49  ;;  %6942 = vmatmul.mubr.f32.gmra.mrb[66].mxu0 %v1998_v39 }
  0xe7   :  { %13846 = vst [vmem:[#allocation32_spill] sm:$0xff] %v8541_v28  ;;  %v1999_v63 = vmul.f32 %v8541_v28, %v8541_v28  ;;  %v6529_v6 = vpop.f32.mrb[6].mxu0 }
  0xe8   :  { %v8549_v8 = vpop.f32.mrb[6].mxu1  ;;  %v8552_v48 = vadd.f32 %v6529_v6, %v8491_v11  ;;  %v669_v50 = vpop.f32.mrb[7].mxu0 }
  0xe9   :  { %v8554_v51 = vpop.f32.mrb[7].mxu1  ;;  %6787 = vmatmul.mubr.msk.f32.gmra.mrb[112].mxu1 %vm184_vm3, %v8239_v1  ;;  %v8559_v56 = vadd.f32 %v669_v50, %v8491_v11  ;;  %6944 = vmatprep.mubr.f32.mxu0 %v1999_v63  ;;  %v13860_v50 = vld [vmem:[#allocation25_spill] sm:$0xff] }
  0xea   :  { %13847 = vst [vmem:[#allocation33_spill] sm:$0xff] %v8552_v48  ;;  %6789 = vmatprep.mubr.msk.f32.mxu1 %vm184_vm3, %v8247_v26  ;;  %v2002_v58 = vmul.f32 %v8552_v48, %v8552_v48  ;;  %6945 = vmatmul.mubr.f32.gmra.mrb[68].mxu0 %v2000_v61 }
  0xeb   :  { %13848 = vst [vmem:[#allocation34_spill] sm:$0xff] %v8559_v56  ;;  %v2001_v60 = vmul.f32 %v8559_v56, %v8559_v56  ;;  %v6532_v0 = vpop.f32.mrb[8].mxu0 }
  0xec   :  { %v8567_v3 = vpop.f32.mrb[8].mxu1  ;;  %v8570_v7 = vadd.f32 %v6532_v0, %v8491_v11  ;;  %v679_v47 = vpop.f32.mrb[9].mxu0 }
  0xed   :  { %v8572_v57 = vpop.f32.mrb[9].mxu1  ;;  %6790 = vmatmul.mubr.msk.f32.gmra.mrb[114].mxu1 %vm184_vm3, %v8261_v30  ;;  %v8577_v26 = vadd.f32 %v679_v47, %v8491_v11  ;;  %6947 = vmatprep.mubr.f32.mxu0 %v2001_v60  ;;  %v13862_v60 = vld [vmem:[#allocation26_spill] sm:$0xff] }
  0xee   :  { %13849 = vst [vmem:[#allocation35_spill] sm:$0xff] %v8570_v7  ;;  %6792 = vmatprep.mubr.msk.f32.mxu1 %vm184_vm3, %v8269_v22  ;;  %v2004_v59 = vmul.f32 %v8570_v7, %v8570_v7  ;;  %6948 = vmatmul.mubr.f32.gmra.mrb[70].mxu0 %v2002_v58 }
  0xef   :  { %13850 = vst [vmem:[#allocation36_spill] sm:$0xff] %v8577_v26  ;;  %v2003_v4 = vmul.f32 %v8577_v26, %v8577_v26  ;;  %v6535_v44 = vpop.f32.mrb[10].mxu0 }
  0xf0   :  { %v8585_v53 = vpop.f32.mrb[10].mxu1  ;;  %v8588_v55 = vadd.f32 %v6535_v44, %v8491_v11  ;;  %v689_v42 = vpop.f32.mrb[11].mxu0 }
  0xf1   :  { %v8590_v38 = vpop.f32.mrb[11].mxu1  ;;  %6793 = vmatmul.mubr.msk.f32.gmra.mrb[116].mxu1 %vm184_vm3, %v8283_v46  ;;  %v8595_v22 = vadd.f32 %v689_v42, %v8491_v11  ;;  %6950 = vmatprep.mubr.f32.mxu0 %v2003_v4 }
  0xf2   :  { %13851 = vst [vmem:[#allocation37_spill] sm:$0xff] %v8588_v55  ;;  %6795 = vmatprep.mubr.msk.f32.mxu1 %vm184_vm3, %v8291_v18  ;;  %v2006_v40 = vmul.f32 %v8588_v55, %v8588_v55  ;;  %6951 = vmatmul.mubr.f32.gmra.mrb[72].mxu0 %v2004_v59 }
  0xf3   :  { %13852 = vst [vmem:[#allocation38_spill] sm:$0xff] %v8595_v22  ;;  %v2005_v62 = vmul.f32 %v8595_v22, %v8595_v22  ;;  %v6538_v1 = vpop.f32.mrb[12].mxu0 }
  0xf4   :  { %v8603_v30 = vpop.f32.mrb[12].mxu1  ;;  %v8606_v24 = vadd.f32 %v6538_v1, %v8491_v11  ;;  %v699_v46 = vpop.f32.mrb[13].mxu0 }
  0xf5   :  { %v8608_v5 = vpop.f32.mrb[13].mxu1  ;;  %6796 = vmatmul.mubr.msk.f32.gmra.mrb[118].mxu1 %vm184_vm3, %v8305_v34  ;;  %v8613_v18 = vadd.f32 %v699_v46, %v8491_v11  ;;  %6953 = vmatprep.mubr.f32.mxu0 %v2005_v62 }
  0xf6   :  { %13853 = vst [vmem:[#allocation39_spill] sm:$0xff] %v8606_v24  ;;  %6798 = vmatprep.mubr.msk.f32.mxu1 %vm184_vm3, %v8313_v14  ;;  %v2008_v2 = vmul.f32 %v8606_v24, %v8606_v24  ;;  %6954 = vmatmul.mubr.f32.gmra.mrb[74].mxu0 %v2006_v40 }
  0xf7   :  { %13854 = vst [vmem:[#allocation40_spill] sm:$0xff] %v8613_v18  ;;  %v2007_v13 = vmul.f32 %v8613_v18, %v8613_v18  ;;  %v6541_v19 = vpop.f32.mrb[14].mxu0 }
  0xf8   :  { %v8621_v25 = vpop.f32.mrb[14].mxu1  ;;  %v8624_v27 = vadd.f32 %v6541_v19, %v8491_v11  ;;  %v709_v34 = vpop.f32.mrb[15].mxu0 }
  0xf9   :  { %v8626_v29 = vpop.f32.mrb[15].mxu1  ;;  %6799 = vmatmul.mubr.msk.f32.gmra.mrb[120].mxu1 %vm184_vm3, %v13856_v33  ;;  %v8631_v14 = vadd.f32 %v709_v34, %v8491_v11  ;;  %6956 = vmatprep.mubr.f32.mxu0 %v2007_v13  ;;  %v13867_v33 = vld [vmem:[#allocation5_spill] sm:$0xff] }
  0xfa   :  { %13855 = vst [vmem:[#allocation41_spill] sm:$0xff] %v8624_v27  ;;  %6801 = vmatprep.mubr.msk.f32.mxu1 %vm184_vm3, %v13858_v36  ;;  %v2010_v39 = vmul.f32 %v8624_v27, %v8624_v27  ;;  %6957 = vmatmul.mubr.f32.gmra.mrb[76].mxu0 %v2008_v2 }
  0xfb   :  { %13857 = vst [vmem:[#allocation23_spill] sm:$0xff] %v8631_v14  ;;  %v2009_v41 = vmul.f32 %v8631_v14, %v8631_v14  ;;  %v6544_v43 = vpop.f32.mrb[16].mxu0 }
  0xfc   :  { %v8639_v52 = vpop.f32.mrb[16].mxu1  ;;  %v8642_v61 = vadd.f32 %v6544_v43, %v8491_v11  ;;  %v719_v63 = vpop.f32.mrb[17].mxu0 }
  0xfd   :  { %v8644_v6 = vpop.f32.mrb[17].mxu1  ;;  %6802 = vmatmul.mubr.msk.f32.gmra.mrb[122].mxu1 %vm184_vm3, %v13860_v50  ;;  %v8649_v58 = vadd.f32 %v719_v63, %v8491_v11  ;;  %6959 = vmatprep.mubr.f32.mxu0 %v2009_v41 }
  0xfe   :  { %13859 = vst [vmem:[#allocation24_spill] sm:$0xff] %v8642_v61  ;;  %6804 = vmatprep.mubr.msk.f32.mxu1 %vm184_vm3, %v13862_v60  ;;  %v2012_v0 = vmul.f32 %v8642_v61, %v8642_v61  ;;  %6960 = vmatmul.mubr.f32.gmra.mrb[78].mxu0 %v2010_v39  ;;  %v13869_v60 = vld [vmem:[#allocation6_spill] sm:$0xff] }
  0xff   :  { %13861 = vst [vmem:[#allocation25_spill] sm:$0xff] %v8649_v58  ;;  %v2011_v47 = vmul.f32 %v8649_v58, %v8649_v58  ;;  %v6547_v59 = vpop.f32.mrb[18].mxu0 }
 0x100   :  { %v8657_v4 = vpop.f32.mrb[18].mxu1  ;;  %v8660_v44 = vadd.f32 %v6547_v59, %v8491_v11  ;;  %v729_v42 = vpop.f32.mrb[19].mxu0 }
 0x101   :  { %v8662_v40 = vpop.f32.mrb[19].mxu1  ;;  %6805 = vmatmul.mubr.msk.f32.gmra.mrb[124].mxu1 %vm184_vm3, %v8371_v16  ;;  %v8667_v62 = vadd.f32 %v729_v42, %v8491_v11  ;;  %6962 = vmatprep.mubr.f32.mxu0 %v2011_v47  ;;  %v13871_v47 = vld [vmem:[#allocation7_spill] sm:$0xff] }
 0x102   :  { %13863 = vst [vmem:[#allocation26_spill] sm:$0xff] %v8660_v44  ;;  %6807 = vmatprep.mubr.msk.f32.mxu1 %vm184_vm3, %v8379_v20  ;;  %v2014_v1 = vmul.f32 %v8660_v44, %v8660_v44  ;;  %6963 = vmatmul.mubr.f32.gmra.mrb[80].mxu0 %v2012_v0 }
 0x103   :  { %13864 = vst [vmem:[#allocation42_spill] sm:$0xff] %v8667_v62  ;;  %v2013_v46 = vmul.f32 %v8667_v62, %v8667_v62  ;;  %v6550_v2 = vpop.f32.mrb[20].mxu0 }
 0x104   :  { %v8675_v13 = vpop.f32.mrb[20].mxu1  ;;  %v8678_v19 = vadd.f32 %v6550_v2, %v8491_v11  ;;  %v739_v16 = vpop.f32.mrb[21].mxu0 }
 0x105   :  { %v8680_v34 = vpop.f32.mrb[21].mxu1  ;;  %6808 = vmatmul.mubr.msk.f32.gmra.mrb[126].mxu1 %vm184_vm3, %v8393_v12  ;;  %v8685_v20 = vadd.f32 %v739_v16, %v8491_v11  ;;  %6965 = vmatprep.mubr.f32.mxu0 %v2013_v46 }
 0x106   :  { %13865 = vst [vmem:[#allocation43_spill] sm:$0xff] %v8678_v19  ;;  %6810 = vmatprep.mubr.msk.f32.mxu1 %vm184_vm3, %v13867_v33  ;;  %v2016_v36 = vmul.f32 %v8678_v19, %v8678_v19  ;;  %6966 = vmatmul.mubr.f32.gmra.mrb[82].mxu0 %v2014_v1 }
 0x107   :  { %13866 = vst [vmem:[#allocation44_spill] sm:$0xff] %v8685_v20  ;;  %v2015_v39 = vmul.f32 %v8685_v20, %v8685_v20 }
 0x108   :  { %v6553_v41 = vpop.f32.mrb[22].mxu0  ;;  %v8693_v43 = vpop.f32.mrb[22].mxu1 }
 0x109   :  { %v8696_v63 = vadd.f32 %v6553_v41, %v8491_v11  ;;  %v749_v12 = vpop.f32.mrb[23].mxu0  ;;  %v8698_v50 = vpop.f32.mrb[23].mxu1  ;;  %6811 = vmatmul.mubr.msk.f32.gmra.mrb[128].mxu1 %vm184_vm3, %v13869_v60  ;;  %6968 = vmatprep.mubr.f32.mxu0 %v2015_v39  ;;  %v13873_v39 = vld [vmem:[#allocation8_spill] sm:$0xff] }
 0x10a   :  { %v8703_v0 = vadd.f32 %v749_v12, %v8491_v11  ;;  %6813 = vmatprep.mubr.msk.f32.mxu1 %vm184_vm3, %v13871_v47  ;;  %6969 = vmatmul.mubr.f32.gmra.mrb[84].mxu0 %v2016_v36  ;;  %v13875_v36 = vld [vmem:[#allocation9_spill] sm:$0xff] }
 0x10b   :  { %13868 = vst [vmem:[#allocation5_spill] sm:$0xff] %v8696_v63  ;;  %v2018_v59 = vmul.f32 %v8696_v63, %v8696_v63 }
 0x10c   :  { %13870 = vst [vmem:[#allocation6_spill] sm:$0xff] %v8703_v0  ;;  %v2017_v42 = vmul.f32 %v8703_v0, %v8703_v0  ;;  %v6556_v1 = vpop.f32.mrb[24].mxu0  ;;  %v8711_v46 = vpop.f32.mrb[24].mxu1 }
 0x10d   :  { %v8714_v2 = vadd.f32 %v6556_v1, %v8491_v11  ;;  %v759_v16 = vpop.f32.mrb[25].mxu0  ;;  %v8716_v33 = vpop.f32.mrb[25].mxu1  ;;  %6814 = vmatmul.mubr.msk.f32.gmra.mrb[130].mxu1 %vm184_vm3, %v13873_v39 }
 0x10e   :  { %v8721_v41 = vadd.f32 %v759_v16, %v8491_v11  ;;  %6971 = vmatprep.mubr.f32.mxu0 %v2017_v42  ;;  %6816 = vmatprep.mubr.msk.f32.mxu1 %vm184_vm3, %v13875_v36  ;;  %v13877_v42 = vld [vmem:[#allocation10_spill] sm:$0xff] }
 0x10f   :  { %13872 = vst [vmem:[#allocation7_spill] sm:$0xff] %v8714_v2  ;;  %v2020_v12 = vmul.f32 %v8714_v2, %v8714_v2  ;;  %6972 = vmatmul.mubr.f32.gmra.mrb[86].mxu0 %v2018_v59  ;;  %v13879_v59 = vld [vmem:[#allocation11_spill] sm:$0xff] }
 0x110   :  { %13874 = vst [vmem:[#allocation8_spill] sm:$0xff] %v8721_v41  ;;  %v2019_v60 = vmul.f32 %v8721_v41, %v8721_v41  ;;  %v6559_v47 = vpop.f32.mrb[26].mxu0  ;;  %v8729_v1 = vpop.f32.mrb[26].mxu1 }
 0x111   :  { %v8732_v10 = vadd.f32 %v6559_v47, %v8491_v11  ;;  %v769_v39 = vpop.f32.mrb[27].mxu0  ;;  %v8734_v16 = vpop.f32.mrb[27].mxu1  ;;  %6817 = vmatmul.mubr.msk.f32.gmra.mrb[132].mxu1 %vm184_vm3, %v13877_v42 }
 0x112   :  { %v8739_v36 = vadd.f32 %v769_v39, %v8491_v11  ;;  %6974 = vmatprep.mubr.f32.mxu0 %v2019_v60  ;;  %6819 = vmatprep.mubr.msk.f32.mxu1 %vm184_vm3, %v13879_v59  ;;  %v13881_v60 = vld [vmem:[#allocation12_spill] sm:$0xff] }
 0x113   :  { %13876 = vst [vmem:[#allocation9_spill] sm:$0xff] %v8732_v10  ;;  %v2022_v41 = vmul.f32 %v8732_v10, %v8732_v10  ;;  %6975 = vmatmul.mubr.f32.gmra.mrb[88].mxu0 %v2020_v12  ;;  %v13883_v12 = vld [vmem:[#allocation13_spill] sm:$0xff] }
 0x114   :  { %13878 = vst [vmem:[#allocation10_spill] sm:$0xff] %v8739_v36  ;;  %v2021_v47 = vmul.f32 %v8739_v36, %v8739_v36  ;;  %v6562_v0 = vpop.f32.mrb[28].mxu0  ;;  %v8747_v20 = vpop.f32.mrb[28].mxu1 }
 0x115   :  { %v8750_v62 = vadd.f32 %v6562_v0, %v8491_v11  ;;  %v779_v42 = vpop.f32.mrb[29].mxu0  ;;  %v8752_v39 = vpop.f32.mrb[29].mxu1  ;;  %6820 = vmatmul.mubr.msk.f32.gmra.mrb[134].mxu1 %vm184_vm3, %v13881_v60 }
 0x116   :  { %v8757_v59 = vadd.f32 %v779_v42, %v8491_v11  ;;  %6977 = vmatprep.mubr.f32.mxu0 %v2021_v47  ;;  %6822 = vmatprep.mubr.msk.f32.mxu1 %vm184_vm3, %v13883_v12  ;;  %v13885_v47 = vld [vmem:[#allocation14_spill] sm:$0xff] }
 0x117   :  { %13880 = vst [vmem:[#allocation11_spill] sm:$0xff] %v8750_v62  ;;  %v2024_v36 = vmul.f32 %v8750_v62, %v8750_v62  ;;  %6978 = vmatmul.mubr.f32.gmra.mrb[90].mxu0 %v2022_v41  ;;  %v13887_v41 = vld [vmem:[#allocation15_spill] sm:$0xff] }
 0x118   :  { %13882 = vst [vmem:[#allocation12_spill] sm:$0xff] %v8757_v59  ;;  %v2023_v0 = vmul.f32 %v8757_v59, %v8757_v59  ;;  %v6565_v10 = vpop.f32.mrb[30].mxu0  ;;  %v8765_v58 = vpop.f32.mrb[30].mxu1 }
 0x119   :  { %v8768_v2 = vadd.f32 %v6565_v10, %v8491_v11  ;;  %v789_v60 = vpop.f32.mrb[31].mxu0  ;;  %v8770_v42 = vpop.f32.mrb[31].mxu1  ;;  %6823 = vmatmul.mubr.msk.f32.gmra.mrb[136].mxu1 %vm184_vm3, %v13885_v47 }
 0x11a   :  { %v8775_v12 = vadd.f32 %v789_v60, %v8491_v11  ;;  %6980 = vmatprep.mubr.f32.mxu0 %v2023_v0  ;;  %6825 = vmatprep.mubr.msk.f32.mxu1 %vm184_vm3, %v13887_v41  ;;  %v13889_v0 = vld [vmem:[#allocation16_spill] sm:$0xff] }
 0x11b   :  { %13884 = vst [vmem:[#allocation13_spill] sm:$0xff] %v8768_v2  ;;  %v2026_v59 = vmul.f32 %v8768_v2, %v8768_v2  ;;  %6981 = vmatmul.mubr.f32.gmra.mrb[92].mxu0 %v2024_v36  ;;  %v13891_v36 = vld [vmem:[#allocation17_spill] sm:$0xff] }
 0x11c   :  { %13886 = vst [vmem:[#allocation14_spill] sm:$0xff] %v8775_v12  ;;  %v2025_v10 = vmul.f32 %v8775_v12, %v8775_v12  ;;  %v6568_v62 = vpop.f32.mrb[32].mxu0  ;;  %v8783_v14 = vpop.f32.mrb[32].mxu1 }
 0x11d   :  { %v8786_v63 = vadd.f32 %v6568_v62, %v8491_v11  ;;  %v799_v47 = vpop.f32.mrb[33].mxu0  ;;  %v8788_v60 = vpop.f32.mrb[33].mxu1  ;;  %6826 = vmatmul.mubr.msk.f32.gmra.mrb[138].mxu1 %vm184_vm3, %v13889_v0 }
 0x11e   :  { %v8793_v41 = vadd.f32 %v799_v47, %v8491_v11  ;;  %6983 = vmatprep.mubr.f32.mxu0 %v2025_v10  ;;  %6828 = vmatprep.mubr.msk.f32.mxu1 %vm184_vm3, %v13891_v36  ;;  %v13893_v10 = vld [vmem:[#allocation18_spill] sm:$0xff] }
 0x11f   :  { %13888 = vst [vmem:[#allocation15_spill] sm:$0xff] %v8786_v63  ;;  %v2028_v12 = vmul.f32 %v8786_v63, %v8786_v63  ;;  %6984 = vmatmul.mubr.f32.gmra.mrb[94].mxu0 %v2026_v59  ;;  %v13895_v59 = vld [vmem:[#allocation19_spill] sm:$0xff] }
 0x120   :  { %13890 = vst [vmem:[#allocation16_spill] sm:$0xff] %v8793_v41  ;;  %v2027_v62 = vmul.f32 %v8793_v41, %v8793_v41  ;;  %v6571_v2 = vpop.f32.mrb[34].mxu0  ;;  %v8801_v18 = vpop.f32.mrb[34].mxu1 }
 0x121   :  { %v8804_v19 = vadd.f32 %v6571_v2, %v8491_v11  ;;  %v809_v0 = vpop.f32.mrb[35].mxu0  ;;  %v8806_v47 = vpop.f32.mrb[35].mxu1  ;;  %6829 = vmatmul.mubr.msk.f32.gmra.mrb[140].mxu1 %vm184_vm3, %v13893_v10 }
 0x122   :  { %v8811_v36 = vadd.f32 %v809_v0, %v8491_v11  ;;  %6986 = vmatprep.mubr.f32.mxu0 %v2027_v62  ;;  %6831 = vmatprep.mubr.msk.f32.mxu1 %vm184_vm3, %v13895_v59  ;;  %v13897_v62 = vld [vmem:[#allocation20_spill] sm:$0xff] }
 0x123   :  { %13892 = vst [vmem:[#allocation17_spill] sm:$0xff] %v8804_v19  ;;  %v2030_v41 = vmul.f32 %v8804_v19, %v8804_v19  ;;  %6987 = vmatmul.mubr.f32.gmra.mrb[96].mxu0 %v2028_v12  ;;  %v13899_v12 = vld [vmem:[#allocation21_spill] sm:$0xff] }
 0x124   :  { %13894 = vst [vmem:[#allocation18_spill] sm:$0xff] %v8811_v36  ;;  %v2029_v2 = vmul.f32 %v8811_v36, %v8811_v36  ;;  %v6574_v63 = vpop.f32.mrb[36].mxu0  ;;  %v8819_v22 = vpop.f32.mrb[36].mxu1 }
 0x125   :  { %v8822_v44 = vadd.f32 %v6574_v63, %v8491_v11  ;;  %v819_v10 = vpop.f32.mrb[37].mxu0  ;;  %v8824_v0 = vpop.f32.mrb[37].mxu1  ;;  %6832 = vmatmul.mubr.msk.f32.gmra.mrb[142].mxu1 %vm184_vm3, %v13897_v62 }
 0x126   :  { %v8829_v59 = vadd.f32 %v819_v10, %v8491_v11  ;;  %6989 = vmatprep.mubr.f32.mxu0 %v2029_v2  ;;  %6834 = vmatprep.mubr.msk.f32.mxu1 %vm184_vm3, %v13899_v12  ;;  %v7440_v2 = vld [vmem:[%s13299_s0 + $0x288] sm:$0xff]  ;;  %v7441_v12 = vld [vmem:[%s13299_s0 + $0x290] sm:$0xff] }
 0x127   :  { %13896 = vst [vmem:[#allocation19_spill] sm:$0xff] %v8822_v44  ;;  %v2032_v36 = vmul.f32 %v8822_v44, %v8822_v44  ;;  %6990 = vmatmul.mubr.f32.gmra.mrb[98].mxu0 %v2030_v41 }
 0x128   :  { %13898 = vst [vmem:[#allocation20_spill] sm:$0xff] %v8829_v59  ;;  %v2031_v63 = vmul.f32 %v8829_v59, %v8829_v59  ;;  %v6577_v19 = vpop.f32.mrb[38].mxu0  ;;  %v8837_v55 = vpop.f32.mrb[38].mxu1 }
 0x129   :  { %v8840_v61 = vadd.f32 %v6577_v19, %v8491_v11  ;;  %v829_v62 = vpop.f32.mrb[39].mxu0  ;;  %v8842_v10 = vpop.f32.mrb[39].mxu1  ;;  %6835 = vmatmul.mubr.msk.f32.gmra.mrb[144].mxu1 %vm184_vm3, %v7440_v2 }
 0x12a   :  { %v8849_v41 = vadd.f32 %v829_v62, %v8491_v11  ;;  %6992 = vmatprep.mubr.f32.mxu0 %v2031_v63  ;;  %6837 = vmatprep.mubr.msk.f32.mxu1 %vm184_vm3, %v7441_v12  ;;  %v7442_v12 = vld [vmem:[%s13299_s0 + $0x298] sm:$0xff] }
 0x12b   :  { %13900 = vst [vmem:[#allocation21_spill] sm:$0xff] %v8840_v61  ;;  %v2034_v19 = vmul.f32 %v8840_v61, %v8840_v61  ;;  %6993 = vmatmul.mubr.f32.gmra.mrb[100].mxu0 %v2032_v36 }
 0x12c   :  { %13901 = vst [vmem:[#allocation45_spill] sm:$0xff] %v8849_v41  ;;  %v2033_v59 = vmul.f32 %v8849_v41, %v8849_v41  ;;  %v6580_v44 = vpop.f32.mrb[40].mxu0  ;;  %v8859_v26 = vpop.f32.mrb[40].mxu1  ;;  %v7443_v41 = vld [vmem:[%s13299_s0 + $0x2a0] sm:$0xff] }
 0x12d   :  { %v8862_v62 = vadd.f32 %v6580_v44, %v8491_v11  ;;  %v839_v63 = vpop.f32.mrb[41].mxu0  ;;  %v8864_v2 = vpop.f32.mrb[41].mxu1  ;;  %6838 = vmatmul.mubr.msk.f32.gmra.mrb[146].mxu1 %vm184_vm3, %v7442_v12 }
 0x12e   :  { %v8871_v36 = vadd.f32 %v839_v63, %v8491_v11  ;;  %6995 = vmatprep.mubr.f32.mxu0 %v2033_v59  ;;  %6840 = vmatprep.mubr.msk.f32.mxu1 %vm184_vm3, %v7443_v41  ;;  %v7444_v41 = vld [vmem:[%s13299_s0 + $0x2a8] sm:$0xff] }
 0x12f   :  { %13902 = vst [vmem:[#allocation46_spill] sm:$0xff] %v8862_v62  ;;  %v2036_v44 = vmul.f32 %v8862_v62, %v8862_v62  ;;  %6996 = vmatmul.mubr.f32.gmra.mrb[102].mxu0 %v2034_v19 }
 0x130   :  { %13903 = vst [vmem:[#allocation47_spill] sm:$0xff] %v8871_v36  ;;  %v2035_v61 = vmul.f32 %v8871_v36, %v8871_v36  ;;  %v6583_v27 = vpop.f32.mrb[42].mxu0  ;;  %v8881_v7 = vpop.f32.mrb[42].mxu1  ;;  %v7445_v36 = vld [vmem:[%s13299_s0 + $0x2b0] sm:$0xff] }
 0x131   :  { %v8884_v63 = vadd.f32 %v6583_v27, %v8491_v11  ;;  %v849_v59 = vpop.f32.mrb[43].mxu0  ;;  %v8886_v12 = vpop.f32.mrb[43].mxu1  ;;  %6841 = vmatmul.mubr.msk.f32.gmra.mrb[148].mxu1 %vm184_vm3, %v7444_v41 }
 0x132   :  { %v8893_v19 = vadd.f32 %v849_v59, %v8491_v11  ;;  %6998 = vmatprep.mubr.f32.mxu0 %v2035_v61  ;;  %6843 = vmatprep.mubr.msk.f32.mxu1 %vm184_vm3, %v7445_v36  ;;  %v7446_v36 = vld [vmem:[%s13299_s0 + $0x2b8] sm:$0xff] }
 0x133   :  { %13904 = vst [vmem:[#allocation48_spill] sm:$0xff] %v8884_v63  ;;  %v2038_v27 = vmul.f32 %v8884_v63, %v8884_v63  ;;  %6999 = vmatmul.mubr.f32.gmra.mrb[104].mxu0 %v2036_v44 }
 0x134   :  { %13905 = vst [vmem:[#allocation49_spill] sm:$0xff] %v8893_v19  ;;  %v2037_v62 = vmul.f32 %v8893_v19, %v8893_v19  ;;  %v6586_v24 = vpop.f32.mrb[44].mxu0  ;;  %v8903_v56 = vpop.f32.mrb[44].mxu1  ;;  %v7447_v19 = vld [vmem:[%s13299_s0 + $0x2c0] sm:$0xff] }
 0x135   :  { %v8906_v59 = vadd.f32 %v6586_v24, %v8491_v11  ;;  %v859_v61 = vpop.f32.mrb[45].mxu0  ;;  %v8908_v41 = vpop.f32.mrb[45].mxu1  ;;  %6844 = vmatmul.mubr.msk.f32.gmra.mrb[150].mxu1 %vm184_vm3, %v7446_v36 }
 0x136   :  { %v8915_v44 = vadd.f32 %v859_v61, %v8491_v11  ;;  %7001 = vmatprep.mubr.f32.mxu0 %v2037_v62  ;;  %6846 = vmatprep.mubr.msk.f32.mxu1 %vm184_vm3, %v7447_v19  ;;  %v7448_v19 = vld [vmem:[%s13299_s0 + $0x2c8] sm:$0xff] }
 0x137   :  { %13906 = vst [vmem:[#allocation50_spill] sm:$0xff] %v8906_v59  ;;  %v2040_v24 = vmul.f32 %v8906_v59, %v8906_v59  ;;  %7002 = vmatmul.mubr.f32.gmra.mrb[106].mxu0 %v2038_v27 }
 0x138   :  { %13907 = vst [vmem:[#allocation51_spill] sm:$0xff] %v8915_v44  ;;  %v2039_v63 = vmul.f32 %v8915_v44, %v8915_v44  ;;  %v6589_v48 = vpop.f32.mrb[46].mxu0  ;;  %v8925_v28 = vpop.f32.mrb[46].mxu1  ;;  %v7449_v44 = vld [vmem:[%s13299_s0 + $0x2d0] sm:$0xff] }
 0x139   :  { %v8928_v61 = vadd.f32 %v6589_v48, %v8491_v11  ;;  %v869_v62 = vpop.f32.mrb[47].mxu0  ;;  %v8930_v36 = vpop.f32.mrb[47].mxu1  ;;  %6847 = vmatmul.mubr.msk.f32.gmra.mrb[152].mxu1 %vm184_vm3, %v7448_v19 }
 0x13a   :  { %v8937_v27 = vadd.f32 %v869_v62, %v8491_v11  ;;  %7004 = vmatprep.mubr.f32.mxu0 %v2039_v63  ;;  %6849 = vmatprep.mubr.msk.f32.mxu1 %vm184_vm3, %v7449_v44 }
 0x13b   :  { %13908 = vst [vmem:[#allocation52_spill] sm:$0xff] %v8928_v61  ;;  %v2042_v48 = vmul.f32 %v8928_v61, %v8928_v61  ;;  %7005 = vmatmul.mubr.f32.gmra.mrb[108].mxu0 %v2040_v24  ;;  %v7450_v24 = vld [vmem:[%s13299_s0 + $0x2e0] sm:$0xff] }
 0x13c   :  { %13909 = vst [vmem:[#allocation53_spill] sm:$0xff] %v8937_v27  ;;  %v2041_v59 = vmul.f32 %v8937_v27, %v8937_v27  ;;  %v6592_v49 = vpop.f32.mrb[48].mxu0  ;;  %v8947_v32 = vpop.f32.mrb[48].mxu1 }
 0x13d   :  { %v8950_v62 = vadd.f32 %v6592_v49, %v8491_v11  ;;  %v879_v63 = vpop.f32.mrb[49].mxu0  ;;  %v8952_v19 = vpop.f32.mrb[49].mxu1  ;;  %6850 = vmatmul.mubr.msk.f32.gmra.mrb[154].mxu1 %vm184_vm3, %v13911_v35 }
 0x13e   :  { %v8957_v44 = vadd.f32 %v879_v63, %v8491_v11  ;;  %7007 = vmatprep.mubr.f32.mxu0 %v2041_v59  ;;  %6852 = vmatprep.mubr.msk.f32.mxu1 %vm184_vm3, %v7450_v24  ;;  %v7451_v24 = vld [vmem:[%s13299_s0 + $0x2e8] sm:$0xff] }
 0x13f   :  { %13910 = vst [vmem:[#allocation54_spill] sm:$0xff] %v8950_v62  ;;  %v2044_v49 = vmul.f32 %v8950_v62, %v8950_v62  ;;  %7008 = vmatmul.mubr.f32.gmra.mrb[110].mxu0 %v2042_v48 }
 0x140   :  { %13912 = vst [vmem:[#allocation22_spill] sm:$0xff] %v8957_v44  ;;  %v2043_v27 = vmul.f32 %v8957_v44, %v8957_v44  ;;  %v6595_v61 = vpop.f32.mrb[50].mxu0  ;;  %v8967_v23 = vpop.f32.mrb[50].mxu1  ;;  %v7452_v44 = vld [vmem:[%s13299_s0 + $0x2f0] sm:$0xff] }
 0x141   :  { %13913 = vst [vmem:[#allocation55_spill] sm:$0xff] %v8967_v23  ;;  %v8970_v35 = vadd.f32 %v6595_v61, %v8491_v11  ;;  %v889_v59 = vpop.f32.mrb[51].mxu0  ;;  %v8972_v63 = vpop.f32.mrb[51].mxu1  ;;  %6853 = vmatmul.mubr.msk.f32.gmra.mrb[156].mxu1 %vm184_vm3, %v7451_v24 }
 0x142   :  { %13915 = vst [vmem:[#allocation57_spill] sm:$0xff] %v8972_v63  ;;  %v8979_v48 = vadd.f32 %v889_v59, %v8491_v11  ;;  %7010 = vmatprep.mubr.f32.mxu0 %v2043_v27  ;;  %6855 = vmatprep.mubr.msk.f32.mxu1 %vm184_vm3, %v7452_v44  ;;  %v7453_v44 = vld [vmem:[%s13299_s0 + $0x2f8] sm:$0xff] }
 0x143   :  { %13914 = vst [vmem:[#allocation56_spill] sm:$0xff] %v8970_v35  ;;  %v2046_v61 = vmul.f32 %v8970_v35, %v8970_v35  ;;  %7011 = vmatmul.mubr.f32.gmra.mrb[112].mxu0 %v2044_v49 }
 0x144   :  { %13916 = vst [vmem:[#allocation58_spill] sm:$0xff] %v8979_v48  ;;  %v2045_v62 = vmul.f32 %v8979_v48, %v8979_v48  ;;  %v6598_v17 = vpop.f32.mrb[52].mxu0  ;;  %v8989_v23 = vpop.f32.mrb[52].mxu1  ;;  %v7454_v48 = vld [vmem:[%s13299_s0 + $0x300] sm:$0xff] }
 0x145   :  { %13917 = vst [vmem:[#allocation59_spill] sm:$0xff] %v8989_v23  ;;  %v8992_v59 = vadd.f32 %v6598_v17, %v8491_v11  ;;  %v899_v27 = vpop.f32.mrb[53].mxu0  ;;  %v8994_v24 = vpop.f32.mrb[53].mxu1  ;;  %6856 = vmatmul.mubr.msk.f32.gmra.mrb[158].mxu1 %vm184_vm3, %v7453_v44 }
 0x146   :  { %13919 = vst [vmem:[#allocation61_spill] sm:$0xff] %v8994_v24  ;;  %v9001_v49 = vadd.f32 %v899_v27, %v8491_v11  ;;  %7013 = vmatprep.mubr.f32.mxu0 %v2045_v62  ;;  %6858 = vmatprep.mubr.msk.f32.mxu1 %vm184_vm3, %v7454_v48  ;;  %v7455_v48 = vld [vmem:[%s13299_s0 + $0x308] sm:$0xff] }
 0x147   :  { %13918 = vst [vmem:[#allocation60_spill] sm:$0xff] %v8992_v59  ;;  %v2048_v17 = vmul.f32 %v8992_v59, %v8992_v59  ;;  %7014 = vmatmul.mubr.f32.gmra.mrb[114].mxu0 %v2046_v61 }
 0x148   :  { %13920 = vst [vmem:[#allocation62_spill] sm:$0xff] %v9001_v49  ;;  %v2047_v35 = vmul.f32 %v9001_v49, %v9001_v49  ;;  %v6601_v23 = vpop.f32.mrb[54].mxu0  ;;  %v9011_v24 = vpop.f32.mrb[54].mxu1  ;;  %v7456_v49 = vld [vmem:[%s13299_s0 + $0x310] sm:$0xff] }
 0x149   :  { %13921 = vst [vmem:[#allocation63_spill] sm:$0xff] %v9011_v24  ;;  %v9014_v27 = vadd.f32 %v6601_v23, %v8491_v11  ;;  %v909_v62 = vpop.f32.mrb[55].mxu0  ;;  %v9016_v44 = vpop.f32.mrb[55].mxu1  ;;  %6859 = vmatmul.mubr.msk.f32.gmra.mrb[160].mxu1 %vm184_vm3, %v7455_v48 }
 0x14a   :  { %13923 = vst [vmem:[#allocation65_spill] sm:$0xff] %v9016_v44  ;;  %v9023_v61 = vadd.f32 %v909_v62, %v8491_v11  ;;  %7016 = vmatprep.mubr.f32.mxu0 %v2047_v35  ;;  %6861 = vmatprep.mubr.msk.f32.mxu1 %vm184_vm3, %v7456_v49  ;;  %v7457_v49 = vld [vmem:[%s13299_s0 + $0x318] sm:$0xff] }
 0x14b   :  { %13922 = vst [vmem:[#allocation64_spill] sm:$0xff] %v9014_v27  ;;  %v2050_v23 = vmul.f32 %v9014_v27, %v9014_v27  ;;  %7017 = vmatmul.mubr.f32.gmra.mrb[116].mxu0 %v2048_v17 }
 0x14c   :  { %13924 = vst [vmem:[#allocation66_spill] sm:$0xff] %v9023_v61  ;;  %v2049_v59 = vmul.f32 %v9023_v61, %v9023_v61  ;;  %v6604_v24 = vpop.f32.mrb[56].mxu0  ;;  %v9033_v44 = vpop.f32.mrb[56].mxu1  ;;  %v7458_v61 = vld [vmem:[%s13299_s0 + $0x320] sm:$0xff] }
 0x14d   :  { %13925 = vst [vmem:[#allocation67_spill] sm:$0xff] %v9033_v44  ;;  %v9036_v62 = vadd.f32 %v6604_v24, %v8491_v11  ;;  %v919_v35 = vpop.f32.mrb[57].mxu0  ;;  %v9038_v48 = vpop.f32.mrb[57].mxu1  ;;  %6862 = vmatmul.mubr.msk.f32.gmra.mrb[162].mxu1 %vm184_vm3, %v7457_v49 }
 0x14e   :  { %13927 = vst [vmem:[#allocation69_spill] sm:$0xff] %v9038_v48  ;;  %v9045_v17 = vadd.f32 %v919_v35, %v8491_v11  ;;  %7019 = vmatprep.mubr.f32.mxu0 %v2049_v59  ;;  %6864 = vmatprep.mubr.msk.f32.mxu1 %vm184_vm3, %v7458_v61  ;;  %v7459_v61 = vld [vmem:[%s13299_s0 + $0x328] sm:$0xff] }
 0x14f   :  { %13926 = vst [vmem:[#allocation68_spill] sm:$0xff] %v9036_v62  ;;  %v2052_v24 = vmul.f32 %v9036_v62, %v9036_v62  ;;  %7020 = vmatmul.mubr.f32.gmra.mrb[118].mxu0 %v2050_v23 }
 0x150   :  { %13928 = vst [vmem:[#allocation70_spill] sm:$0xff] %v9045_v17  ;;  %v2051_v27 = vmul.f32 %v9045_v17, %v9045_v17  ;;  %v6607_v44 = vpop.f32.mrb[58].mxu0  ;;  %v9055_v48 = vpop.f32.mrb[58].mxu1  ;;  %v7460_v17 = vld [vmem:[%s13299_s0 + $0x330] sm:$0xff] }
 0x151   :  { %13929 = vst [vmem:[#allocation71_spill] sm:$0xff] %v9055_v48  ;;  %v9058_v35 = vadd.f32 %v6607_v44, %v8491_v11  ;;  %v929_v59 = vpop.f32.mrb[59].mxu0  ;;  %v9060_v49 = vpop.f32.mrb[59].mxu1  ;;  %6865 = vmatmul.mubr.msk.f32.gmra.mrb[164].mxu1 %vm184_vm3, %v7459_v61 }
 0x152   :  { %13931 = vst [vmem:[#allocation73_spill] sm:$0xff] %v9060_v49  ;;  %v9067_v23 = vadd.f32 %v929_v59, %v8491_v11  ;;  %7022 = vmatprep.mubr.f32.mxu0 %v2051_v27  ;;  %6867 = vmatprep.mubr.msk.f32.mxu1 %vm184_vm3, %v7460_v17  ;;  %v7461_v17 = vld [vmem:[%s13299_s0 + $0x338] sm:$0xff] }
 0x153   :  { %13930 = vst [vmem:[#allocation72_spill] sm:$0xff] %v9058_v35  ;;  %v2054_v44 = vmul.f32 %v9058_v35, %v9058_v35  ;;  %7023 = vmatmul.mubr.f32.gmra.mrb[120].mxu0 %v2052_v24 }
 0x154   :  { %13932 = vst [vmem:[#allocation74_spill] sm:$0xff] %v9067_v23  ;;  %v2053_v62 = vmul.f32 %v9067_v23, %v9067_v23  ;;  %v6610_v48 = vpop.f32.mrb[60].mxu0  ;;  %v9077_v49 = vpop.f32.mrb[60].mxu1  ;;  %v7462_v23 = vld [vmem:[%s13299_s0 + $0x340] sm:$0xff] }
 0x155   :  { %13933 = vst [vmem:[#allocation75_spill] sm:$0xff] %v9077_v49  ;;  %v9080_v59 = vadd.f32 %v6610_v48, %v8491_v11  ;;  %v939_v27 = vpop.f32.mrb[61].mxu0  ;;  %v9082_v61 = vpop.f32.mrb[61].mxu1  ;;  %6868 = vmatmul.mubr.msk.f32.gmra.mrb[166].mxu1 %vm184_vm3, %v7461_v17 }
 0x156   :  { %13935 = vst [vmem:[#allocation77_spill] sm:$0xff] %v9082_v61  ;;  %v9089_v24 = vadd.f32 %v939_v27, %v8491_v11  ;;  %7025 = vmatprep.mubr.f32.mxu0 %v2053_v62  ;;  %6870 = vmatprep.mubr.msk.f32.mxu1 %vm184_vm3, %v7462_v23  ;;  %v1280_v48 = vpop.xlane.xlu0 %1279  ;;  %v7463_v23 = vld [vmem:[%s13299_s0 + $0x348] sm:$0xff] }
 0x157   :  { %13934 = vst [vmem:[#allocation76_spill] sm:$0xff] %v9080_v59  ;;  %v2056_v35 = vmul.f32 %v9080_v59, %v9080_v59  ;;  %7026 = vmatmul.mubr.f32.gmra.mrb[122].mxu0 %v2054_v44  ;;  %v13940_v44 = vsub.s32 0, %v8477_v9 }
 0x158   :  { %13936 = vst [vmem:[#allocation78_spill] sm:$0xff] %v9089_v24  ;;  %v2055_v49 = vmul.f32 %v9089_v24, %v9089_v24  ;;  %v6613_v61 = vpop.f32.mrb[62].mxu0  ;;  %v9099_v17 = vpop.f32.mrb[62].mxu1  ;;  %v9116_v24 = vadd.f32 %v8500_v21, %v8491_v11  ;;  %v9131_v21 = vadd.f32 %v8495_v15, %v8491_v11  ;;  %v7466_v15 = vld [vmem:[%s13299_s0 + $0x360] sm:$0xff] }
 0x159   :  { %13937 = vst [vmem:[#allocation79_spill] sm:$0xff] %v9099_v17  ;;  %v9102_v27 = vadd.f32 %v6613_v61, %v8491_v11  ;;  %v949_v62 = vpop.f32.mrb[63].mxu0  ;;  %v9104_v63 = vpop.f32.mrb[63].mxu1  ;;  %6871 = vmatmul.mubr.msk.f32.gmra.mrb[168].mxu1 %vm184_vm3, %v7463_v23  ;;  %v9112_v59 = vrot.slane %v1280_v48, %v13940_v44  ;;  %v7464_v17 = vld [vmem:[%s13299_s0 + $0x350] sm:$0xff]  ;;  %v7465_v44 = vld [vmem:[%s13299_s0 + $0x358] sm:$0xff] }
 0x15a   :  { %13939 = vst [vmem:[#allocation81_spill] sm:$0xff] %v9104_v63  ;;  %13941 = vst [vmem:[#allocation82_spill] sm:$0xff] %v9116_v24  ;;  %v9119_v61 = vadd.f32 %v949_v62, %v8491_v11  ;;  %7028 = vmatprep.mubr.f32.mxu0 %v2055_v49  ;;  %6873 = vmatprep.mubr.msk.f32.mxu1 %vm184_vm3, %v7464_v17  ;;  %v9142_v17 = vadd.f32 %v8518_v37, %v8491_v11 }
 0x15b   :  { %13938 = vst [vmem:[#allocation80_spill] sm:$0xff] %v9102_v27  ;;  %v2058_v23 = vmul.f32 %v9102_v27, %v9102_v27  ;;  %7029 = vmatmul.mubr.f32.gmra.mrb[124].mxu0 %v2056_v35  ;;  %13943 = vst [vmem:[#allocation84_spill] sm:$0xff] %v9131_v21  ;;  %v2059_v35 = vmul.f32 %v9116_v24, %v9116_v24  ;;  %v2060_v37 = vmul.f32 %v9131_v21, %v9131_v21  ;;  %v7469_v24 = vld [vmem:[%s13299_s0 + $0x378] sm:$0xff]  ;;  %v7471_v21 = vld [vmem:[%s13299_s0 + $0x388] sm:$0xff] }
 0x15c   :  { %13942 = vst [vmem:[#allocation83_spill] sm:$0xff] %v9119_v61  ;;  %v2057_v9 = vmul.f32 %v9119_v61, %v9119_v61  ;;  %v6716_v48 = vpop.f32.mrb[64].mxu1  ;;  %13944 = vst [vmem:[#allocation85_spill] sm:$0xff] %v9142_v17 }
 0x15d   :  { %v1362_v49 = vadd.f32 %v6716_v48, %v9112_v59  ;;  %v1356_v62 = vpop.f32.mrb[65].mxu1  ;;  %6874 = vmatmul.mubr.msk.f32.gmra.mrb[170].mxu1 %vm184_vm3, %v7465_v44 }
 0x15e   :  { %v1357_v61 = vadd.f32 %v1356_v62, %v9112_v59  ;;  %7031 = vmatprep.mubr.f32.mxu0 %v2057_v9  ;;  %6876 = vmatprep.mubr.msk.f32.mxu1 %vm184_vm3, %v7466_v15  ;;  %v9157_v62 = vadd.f32 %v8513_v31, %v8491_v11  ;;  %v7467_v15 = vld [vmem:[%s13299_s0 + $0x368] sm:$0xff]  ;;  %v7468_v31 = vld [vmem:[%s13299_s0 + $0x370] sm:$0xff] }
 0x15f   :  { %v9149_v48 = vmul.f32 0.0078125, %v1362_v49  ;;  %7032 = vmatmul.mubr.f32.gmra.mrb[126].mxu0 %v2058_v23  ;;  %v2061_v23 = vmul.f32 %v9142_v17, %v9142_v17  ;;  %v9169_v49 = vadd.f32 %v8536_v54, %v8491_v11  ;;  %v9183_v54 = vadd.f32 %v8531_v45, %v8491_v11  ;;  %v7470_v45 = vld [vmem:[%s13299_s0 + $0x380] sm:$0xff] }
 0x160   :  { %v9151_v44 = vmul.f32 0.0078125, %v1357_v61  ;;  %v6719_v27 = vpop.f32.mrb[66].mxu1  ;;  %7034 = vmatprep.mubr.f32.mxu0 %v2059_v35  ;;  %13945 = vst [vmem:[#allocation86_spill] sm:$0xff] %v9157_v62  ;;  %v2062_v17 = vmul.f32 %v9157_v62, %v9157_v62 }
 0x161   :  { %v1372_v9 = vadd.f32 %v6719_v27, %v9112_v59  ;;  %6877 = vmatmul.mubr.msk.f32.gmra.mrb[172].mxu1 %vm184_vm3, %v7467_v15  ;;  %3491 = vperm.xlu1 %7182, %v9149_v48   ;;  %v1366_v61 = vpop.f32.mrb[67].mxu1  ;;  %13946 = vst [vmem:[#allocation87_spill] sm:$0xff] %v9169_v49  ;;  %13947 = vst [vmem:[#allocation88_spill] sm:$0xff] %v9183_v54 }
 0x162   :  { %3486 = vperm.xlu0 %7183, %v9151_v44   ;;  %6879 = vmatprep.mubr.msk.f32.mxu1 %vm184_vm3, %v7468_v31  ;;  %v1367_v35 = vadd.f32 %v1366_v61, %v9112_v59  ;;  %v9194_v61 = vadd.f32 %v8554_v51, %v8491_v11  ;;  %v9207_v51 = vadd.f32 %v8549_v8, %v8491_v11  ;;  %v7472_v8 = vld [vmem:[%s13299_s0 + $0x390] sm:$0xff] }
 0x163   :  { %v9176_v27 = vmul.f32 0.0078125, %v1372_v9  ;;  %7035 = vmatmul.mubr.f32.gmra.mrb[128].mxu0 %v2060_v37  ;;  %v2063_v37 = vmul.f32 %v9169_v49, %v9169_v49  ;;  %v2064_v49 = vmul.f32 %v9183_v54, %v9183_v54  ;;  %v7473_v54 = vld [vmem:[%s13299_s0 + $0x398] sm:$0xff] }
 0x164   :  { %v6722_v15 = vpop.f32.mrb[68].mxu1  ;;  %7037 = vmatprep.mubr.f32.mxu0 %v2061_v23  ;;  %13948 = vst [vmem:[#allocation89_spill] sm:$0xff] %v9194_v61  ;;  %v9200_v23 = vmul.f32 0.0078125, %v1367_v35  ;;  %13949 = vst [vmem:[#allocation90_spill] sm:$0xff] %v9207_v51  ;;  %v9218_v35 = vadd.f32 %v8572_v57, %v8491_v11  ;;  %v9231_v57 = vadd.f32 %v8567_v3, %v8491_v11  ;;  %v7474_v3 = vld [vmem:[%s13299_s0 + $0x3a0] sm:$0xff] }
 0x165   :  { %6880 = vmatmul.mubr.msk.f32.gmra.mrb[174].mxu1 %vm184_vm3, %v7469_v24  ;;  %3501 = vperm.xlu1 %7182, %v9176_v27   ;;  %v1376_v9 = vpop.f32.mrb[69].mxu1  ;;  %v1382_v24 = vadd.f32 %v6722_v15, %v9112_v59 }
 0x166   :  { %6882 = vmatprep.mubr.msk.f32.mxu1 %vm184_vm3, %v7470_v45  ;;  %13950 = vst [vmem:[#allocation91_spill] sm:$0xff] %v9218_v35  ;;  %v2066_v45 = vmul.f32 %v9207_v51, %v9207_v51  ;;  %13951 = vst [vmem:[#allocation92_spill] sm:$0xff] %v9231_v57 }
 0x167   :  { %7038 = vmatmul.mubr.f32.gmra.mrb[130].mxu0 %v2062_v17  ;;  %v2065_v17 = vmul.f32 %v9194_v61, %v9194_v61  ;;  %v9224_v15 = vmul.f32 0.0078125, %v1382_v24 }
 0x168   :  { %v6725_v31 = vpop.f32.mrb[70].mxu1  ;;  %7040 = vmatprep.mubr.f32.mxu0 %v2063_v37  ;;  %v1377_v37 = vadd.f32 %v1376_v9, %v9112_v59  ;;  %v9242_v9 = vadd.f32 %v8590_v38, %v8491_v11  ;;  %v9257_v38 = vadd.f32 %v8585_v53, %v8491_v11  ;;  %v7476_v53 = vld [vmem:[%s13299_s0 + $0x3b0] sm:$0xff] }
 0x169   :  { %v1386_v62 = vpop.f32.mrb[71].mxu1  ;;  %6883 = vmatmul.mubr.msk.f32.gmra.mrb[176].mxu1 %vm184_vm3, %v7471_v21  ;;  %3496 = vperm.xlu1 %7182, %v9200_v23  }
 0x16a   :  { %6885 = vmatprep.mubr.msk.f32.mxu1 %vm184_vm3, %v7472_v8  ;;  %13952 = vst [vmem:[#allocation93_spill] sm:$0xff] %v9242_v9  ;;  %v9248_v24 = vmul.f32 0.0078125, %v1377_v37  ;;  %v2068_v8 = vmul.f32 %v9231_v57, %v9231_v57  ;;  %13953 = vst [vmem:[#allocation94_spill] sm:$0xff] %v9257_v38  ;;  %v7475_v37 = vld [vmem:[%s13299_s0 + $0x3a8] sm:$0xff] }
 0x16b   :  { %7041 = vmatmul.mubr.f32.gmra.mrb[132].mxu0 %v2064_v49  ;;  %v2067_v49 = vmul.f32 %v9218_v35, %v9218_v35 }
 0x16c   :  { %v6728_v21 = vpop.f32.mrb[72].mxu1  ;;  %7043 = vmatprep.mubr.f32.mxu0 %v2065_v17  ;;  %v1392_v17 = vadd.f32 %v6725_v31, %v9112_v59  ;;  %v2069_v31 = vmul.f32 %v9242_v9, %v9242_v9  ;;  %v2070_v9 = vmul.f32 %v9257_v38, %v9257_v38 }
 0x16d   :  { %v1396_v61 = vpop.f32.mrb[73].mxu1  ;;  %6886 = vmatmul.mubr.msk.f32.gmra.mrb[178].mxu1 %vm184_vm3, %v7473_v54  ;;  %3511 = vperm.xlu1 %7182, %v9224_v15  }
 0x16e   :  { %6888 = vmatprep.mubr.msk.f32.mxu1 %vm184_vm3, %v7474_v3  ;;  %v1387_v3 = vadd.f32 %v1386_v62, %v9112_v59 }
 0x16f   :  { %7044 = vmatmul.mubr.f32.gmra.mrb[134].mxu0 %v2066_v45  ;;  %v9270_v45 = vadd.f32 %v8608_v5, %v8491_v11  ;;  %v9283_v5 = vadd.f32 %v8603_v30, %v8491_v11  ;;  %v7478_v30 = vld [vmem:[%s13299_s0 + $0x3c0] sm:$0xff] }
 0x170   :  { %v9251_v54 = vpop.f32.mrb[74].mxu1  ;;  %7046 = vmatprep.mubr.f32.mxu0 %v2067_v49  ;;  %v9276_v49 = vmul.f32 0.0078125, %v1392_v17  ;;  %v7477_v17 = vld [vmem:[%s13299_s0 + $0x3b8] sm:$0xff] }
 0x171   :  { %v9259_v35 = vpop.f32.mrb[75].mxu1  ;;  %6889 = vmatmul.mubr.msk.f32.gmra.mrb[180].mxu1 %vm184_vm3, %v7475_v37  ;;  %3506 = vperm.xlu1 %7182, %v9248_v24   ;;  %13954 = vst [vmem:[#allocation95_spill] sm:$0xff] %v9270_v45  ;;  %13955 = vst [vmem:[#allocation96_spill] sm:$0xff] %v9283_v5  ;;  %v2071_v62 = vmul.f32 %v9270_v45, %v9270_v45  ;;  %v2072_v45 = vmul.f32 %v9283_v5, %v9283_v5 }
 0x172   :  { %6891 = vmatprep.mubr.msk.f32.mxu1 %vm184_vm3, %v7476_v53  ;;  %v1402_v53 = vadd.f32 %v6728_v21, %v9112_v59  ;;  %v7479_v21 = vld [vmem:[%s13299_s0 + $0x3c8] sm:$0xff] }
 0x173   :  { %7047 = vmatmul.mubr.f32.gmra.mrb[136].mxu0 %v2068_v8  ;;  %v9297_v8 = vadd.f32 %v8626_v29, %v8491_v11  ;;  %v9312_v29 = vadd.f32 %v8621_v25, %v8491_v11  ;;  %v7480_v25 = vld [vmem:[%s13299_s0 + $0x3d0] sm:$0xff] }
 0x174   :  { %v6734_v37 = vpop.f32.mrb[76].mxu1  ;;  %7049 = vmatprep.mubr.f32.mxu0 %v2069_v31  ;;  %v9303_v31 = vmul.f32 0.0078125, %v1387_v3  ;;  %v9333_v3 = vmul.f32 0.0078125, %v1402_v53 }
 0x175   :  { %v1422_v57 = vadd.f32 %v6734_v37, %v9112_v59  ;;  %v9286_v51 = vpop.f32.mrb[77].mxu1  ;;  %6892 = vmatmul.mubr.msk.f32.gmra.mrb[182].mxu1 %vm184_vm3, %v7477_v17  ;;  %3521 = vperm.xlu1 %7182, %v9276_v49   ;;  %13956 = vst [vmem:[#allocation97_spill] sm:$0xff] %v9297_v8  ;;  %13957 = vst [vmem:[#allocation98_spill] sm:$0xff] %v9312_v29 }
 0x176   :  { %6894 = vmatprep.mubr.msk.f32.mxu1 %vm184_vm3, %v7478_v30 }
 0x177   :  { %v9306_v37 = vmul.f32 0.0078125, %v1422_v57  ;;  %7050 = vmatmul.mubr.f32.gmra.mrb[138].mxu0 %v2070_v9  ;;  %v2073_v57 = vmul.f32 %v9297_v8, %v9297_v8  ;;  %v9326_v9 = vadd.f32 %v8644_v6, %v8491_v11  ;;  %v2074_v6 = vmul.f32 %v9312_v29, %v9312_v29 }
 0x178   :  { %v6737_v17 = vpop.f32.mrb[78].mxu1  ;;  %7052 = vmatprep.mubr.f32.mxu0 %v2071_v62  ;;  %v1397_v62 = vadd.f32 %v1396_v61, %v9112_v59  ;;  %v7481_v61 = vld [vmem:[%s13299_s0 + $0x3d8] sm:$0xff] }
 0x179   :  { %v1432_v38 = vadd.f32 %v6737_v17, %v9112_v59  ;;  %v9315_v63 = vpop.f32.mrb[79].mxu1  ;;  %6895 = vmatmul.mubr.msk.f32.gmra.mrb[184].mxu1 %vm184_vm3, %v7479_v21  ;;  %3516 = vperm.xlu1 %7182, %v9303_v31   ;;  %13958 = vst [vmem:[#allocation99_spill] sm:$0xff] %v9326_v9  ;;  %v9342_v21 = vadd.f32 %v8639_v52, %v8491_v11  ;;  %v7482_v52 = vld [vmem:[%s13299_s0 + $0x3e0] sm:$0xff] }
 0x17a   :  { %3551 = vperm.xlu0 %7183, %v9306_v37   ;;  %6897 = vmatprep.mubr.msk.f32.mxu1 %vm184_vm3, %v7480_v25  ;;  %v9363_v53 = vmul.f32 0.0078125, %v1397_v62  ;;  %v9387_v62 = vadd.f32 %v8680_v34, %v8491_v11 }
 0x17b   :  { %v9336_v30 = vmul.f32 0.0078125, %v1432_v38  ;;  %7053 = vmatmul.mubr.f32.gmra.mrb[140].mxu0 %v2072_v45  ;;  %13959 = vst [vmem:[#allocation100_spill] sm:$0xff] %v9342_v21  ;;  %v2075_v38 = vmul.f32 %v9326_v9, %v9326_v9  ;;  %v9356_v45 = vadd.f32 %v8662_v40, %v8491_v11  ;;  %v2076_v40 = vmul.f32 %v9342_v21, %v9342_v21 }
 0x17c   :  { %v6740_v17 = vpop.f32.mrb[80].mxu1  ;;  %7055 = vmatprep.mubr.f32.mxu0 %v2073_v57  ;;  %v1412_v57 = vadd.f32 %v9251_v54, %v9112_v59  ;;  %v7483_v54 = vld [vmem:[%s13299_s0 + $0x3e8] sm:$0xff]  ;;  %13962 = vst [vmem:[#allocation103_spill] sm:$0xff] %v9387_v62 }
 0x17d   :  { %v1442_v8 = vadd.f32 %v6740_v17, %v9112_v59  ;;  %v9345_v5 = vpop.f32.mrb[81].mxu1  ;;  %6898 = vmatmul.mubr.msk.f32.gmra.mrb[186].mxu1 %vm184_vm3, %v7481_v61  ;;  %3531 = vperm.xlu1 %7182, %v9333_v3   ;;  %13960 = vst [vmem:[#allocation101_spill] sm:$0xff] %v9356_v45  ;;  %v9373_v61 = vadd.f32 %v8657_v4, %v8491_v11  ;;  %v7484_v4 = vld [vmem:[%s13299_s0 + $0x3f0] sm:$0xff] }
 0x17e   :  { %3561 = vperm.xlu0 %7183, %v9336_v30   ;;  %6900 = vmatprep.mubr.msk.f32.mxu1 %vm184_vm3, %v7482_v52 }
 0x17f   :  { %v9367_v25 = vmul.f32 0.0078125, %v1442_v8  ;;  %7056 = vmatmul.mubr.f32.gmra.mrb[142].mxu0 %v2074_v6  ;;  %13961 = vst [vmem:[#allocation102_spill] sm:$0xff] %v9373_v61  ;;  %v2077_v8 = vmul.f32 %v9356_v45, %v9356_v45  ;;  %v9394_v6 = vmul.f32 0.0078125, %v1412_v57  ;;  %v2078_v34 = vmul.f32 %v9373_v61, %v9373_v61 }
 0x180   :  { %v6743_v17 = vpop.f32.mrb[82].mxu1  ;;  %7058 = vmatprep.mubr.f32.mxu0 %v2075_v38  ;;  %v1407_v38 = vadd.f32 %v9259_v35, %v9112_v59  ;;  %v9404_v45 = vadd.f32 %v8675_v13, %v8491_v11  ;;  %v7485_v35 = vld [vmem:[%s13299_s0 + $0x3f8] sm:$0xff]  ;;  %v9418_v57 = vadd.f32 %v8698_v50, %v8491_v11 }
 0x181   :  { %v1452_v9 = vadd.f32 %v6743_v17, %v9112_v59  ;;  %v9376_v52 = vpop.f32.mrb[83].mxu1  ;;  %6901 = vmatmul.mubr.msk.f32.gmra.mrb[188].mxu1 %vm184_vm3, %v7483_v54  ;;  %3526 = vperm.xlu1 %7182, %v9363_v53  }
 0x182   :  { %3571 = vperm.xlu0 %7183, %v9367_v25   ;;  %6903 = vmatprep.mubr.msk.f32.mxu1 %vm184_vm3, %v7484_v4  ;;  %13963 = vst [vmem:[#allocation104_spill] sm:$0xff] %v9404_v45  ;;  %13964 = vst [vmem:[#allocation105_spill] sm:$0xff] %v9418_v57  ;;  %v9421_v13 = vmul.f32 0.0078125, %v1407_v38 }
 0x183   :  { %v9398_v17 = vmul.f32 0.0078125, %v1452_v9  ;;  %7059 = vmatmul.mubr.f32.gmra.mrb[144].mxu0 %v2076_v40  ;;  %v2079_v9 = vmul.f32 %v9387_v62, %v9387_v62  ;;  %v1417_v40 = vadd.f32 %v9286_v51, %v9112_v59  ;;  %v9431_v62 = vadd.f32 %v8693_v43, %v8491_v11 }
 0x184   :  { %v6746_v54 = vpop.f32.mrb[84].mxu1  ;;  %7061 = vmatprep.mubr.f32.mxu0 %v2077_v8  ;;  %v2081_v51 = vmul.f32 %v9418_v57, %v9418_v57  ;;  %v1427_v43 = vadd.f32 %v9315_v63, %v9112_v59  ;;  %v9452_v57 = vadd.f32 %v8711_v46, %v8491_v11  ;;  %v1437_v46 = vadd.f32 %v9345_v5, %v9112_v59 }
 0x185   :  { %v1462_v21 = vadd.f32 %v6746_v54, %v9112_v59  ;;  %v9407_v4 = vpop.f32.mrb[85].mxu1  ;;  %6904 = vmatmul.mubr.msk.f32.gmra.mrb[190].mxu1 %vm184_vm3, %v7485_v35  ;;  %3541 = vperm.xlu1 %7182, %v9394_v6   ;;  %v2080_v35 = vmul.f32 %v9404_v45, %v9404_v45  ;;  %13965 = vst [vmem:[#allocation106_spill] sm:$0xff] %v9431_v62  ;;  %v9442_v38 = vmul.f32 0.0078125, %v1417_v40 }
 0x186   :  { %3581 = vperm.xlu0 %7183, %v9398_v17   ;;  %13967 = vst [vmem:[#allocation108_spill] sm:$0xff] %v9452_v57  ;;  %v9460_v40 = vadd.f32 %v8734_v16, %v8491_v11 }
 0x187   :  { %v9425_v8 = vmul.f32 0.0078125, %v1462_v21  ;;  %7062 = vmatmul.mubr.f32.gmra.mrb[146].mxu0 %v2078_v34  ;;  %v9439_v21 = vadd.f32 %v8716_v33, %v8491_v11 }
 0x188   :  { %v6749_v54 = vpop.f32.mrb[86].mxu1  ;;  %7064 = vmatprep.mubr.f32.mxu0 %v2079_v9  ;;  %13968 = vst [vmem:[#allocation109_spill] sm:$0xff] %v9460_v40  ;;  %v2085_v5 = vmul.f32 %v9460_v40, %v9460_v40  ;;  %v9494_v40 = vadd.f32 %v8747_v20, %v8491_v11  ;;  %v1457_v20 = vadd.f32 %v9407_v4, %v9112_v59 }
 0x189   :  { %v1472_v50 = vadd.f32 %v6749_v54, %v9112_v59  ;;  %v1466_v61 = vpop.f32.mrb[87].mxu1  ;;  %3536 = vperm.xlu1 %7182, %v9421_v13   ;;  %13966 = vst [vmem:[#allocation107_spill] sm:$0xff] %v9439_v21  ;;  %v2082_v54 = vmul.f32 %v9431_v62, %v9431_v62  ;;  %v2083_v63 = vmul.f32 %v9439_v21, %v9439_v21 }
 0x18a   :  { %3591 = vperm.xlu0 %7183, %v9425_v8   ;;  %v9473_v21 = vadd.f32 %v8729_v1, %v8491_v11  ;;  %v1447_v1 = vadd.f32 %v9376_v52, %v9112_v59  ;;  %13971 = vst [vmem:[#allocation112_spill] sm:$0xff] %v9494_v40 }
 0x18b   :  { %v9446_v34 = vmul.f32 0.0078125, %v1472_v50  ;;  %7065 = vmatmul.mubr.f32.gmra.mrb[148].mxu0 %v2080_v35  ;;  %v9463_v35 = vmul.f32 0.0078125, %v1427_v43  ;;  %v9481_v43 = vadd.f32 %v8752_v39, %v8491_v11 }
 0x18c   :  { %v6752_v9 = vpop.f32.mrb[88].mxu1  ;;  %7067 = vmatprep.mubr.f32.mxu0 %v2081_v51  ;;  %13969 = vst [vmem:[#allocation110_spill] sm:$0xff] %v9473_v21 }
 0x18d   :  { %v1482_v33 = vadd.f32 %v6752_v9, %v9112_v59  ;;  %v1476_v45 = vpop.f32.mrb[89].mxu1  ;;  %3546 = vperm.xlu1 %7182, %v9442_v38   ;;  %v2084_v9 = vmul.f32 %v9452_v57, %v9452_v57  ;;  %13970 = vst [vmem:[#allocation111_spill] sm:$0xff] %v9481_v43  ;;  %v2087_v52 = vmul.f32 %v9481_v43, %v9481_v43 }
 0x18e   :  { %3601 = vperm.xlu0 %7183, %v9446_v34   ;;  %v9515_v43 = vadd.f32 %v8765_v58, %v8491_v11 }
 0x18f   :  { %v9467_v50 = vmul.f32 0.0078125, %v1482_v33  ;;  %7068 = vmatmul.mubr.f32.gmra.mrb[150].mxu0 %v2082_v54  ;;  %v9484_v54 = vmul.f32 0.0078125, %v1437_v46  ;;  %v9502_v46 = vadd.f32 %v8770_v42, %v8491_v11 }
 0x190   :  { %v6755_v51 = vpop.f32.mrb[90].mxu1  ;;  %7070 = vmatprep.mubr.f32.mxu0 %v2083_v63  ;;  %13973 = vst [vmem:[#allocation114_spill] sm:$0xff] %v9515_v43 }
 0x191   :  { %v1492_v16 = vadd.f32 %v6755_v51, %v9112_v59  ;;  %v1486_v62 = vpop.f32.mrb[91].mxu1  ;;  %3556 = vperm.xlu1 %7182, %v9463_v35   ;;  %v2086_v51 = vmul.f32 %v9473_v21, %v9473_v21  ;;  %13972 = vst [vmem:[#allocation113_spill] sm:$0xff] %v9502_v46  ;;  %v2089_v4 = vmul.f32 %v9502_v46, %v9502_v46 }
 0x192   :  { %3611 = vperm.xlu0 %7183, %v9467_v50   ;;  %v9535_v46 = vadd.f32 %v8783_v14, %v8491_v11 }
 0x193   :  { %v9488_v33 = vmul.f32 0.0078125, %v1492_v16  ;;  %7071 = vmatmul.mubr.f32.gmra.mrb[152].mxu0 %v2084_v9  ;;  %v9505_v9 = vmul.f32 0.0078125, %v1447_v1  ;;  %v9523_v1 = vadd.f32 %v8788_v60, %v8491_v11 }
 0x194   :  { %v6758_v63 = vpop.f32.mrb[92].mxu1  ;;  %7073 = vmatprep.mubr.f32.mxu0 %v2085_v5  ;;  %13975 = vst [vmem:[#allocation116_spill] sm:$0xff] %v9535_v46 }
 0x195   :  { %v1502_v39 = vadd.f32 %v6758_v63, %v9112_v59  ;;  %v1496_v57 = vpop.f32.mrb[93].mxu1  ;;  %3566 = vperm.xlu1 %7182, %v9484_v54   ;;  %v2088_v63 = vmul.f32 %v9494_v40, %v9494_v40  ;;  %13974 = vst [vmem:[#allocation115_spill] sm:$0xff] %v9523_v1 }
 0x196   :  { %3621 = vperm.xlu0 %7183, %v9488_v33  }
 0x197   :  { %v9509_v16 = vmul.f32 0.0078125, %v1502_v39  ;;  %7074 = vmatmul.mubr.f32.gmra.mrb[154].mxu0 %v2086_v51  ;;  %v9526_v51 = vmul.f32 0.0078125, %v1457_v20  ;;  %v1467_v39 = vadd.f32 %v1466_v61, %v9112_v59  ;;  %v2091_v61 = vmul.f32 %v9523_v1, %v9523_v1 }
 0x198   :  { %v6761_v5 = vpop.f32.mrb[94].mxu1  ;;  %7076 = vmatprep.mubr.f32.mxu0 %v2087_v52  ;;  %v9543_v20 = vadd.f32 %v8806_v47, %v8491_v11  ;;  %v9555_v1 = vadd.f32 %v8801_v18, %v8491_v11 }
 0x199   :  { %v1512_v42 = vadd.f32 %v6761_v5, %v9112_v59  ;;  %v1506_v21 = vpop.f32.mrb[95].mxu1  ;;  %3576 = vperm.xlu1 %7182, %v9505_v9   ;;  %v2090_v5 = vmul.f32 %v9515_v43, %v9515_v43 }
 0x19a   :  { %3631 = vperm.xlu0 %7183, %v9509_v16   ;;  %13976 = vst [vmem:[#allocation117_spill] sm:$0xff] %v9543_v20  ;;  %13978 = vst [vmem:[#allocation119_spill] sm:$0xff] %v9555_v1 }
 0x19b   :  { %v9529_v58 = vmul.f32 0.0078125, %v1512_v42  ;;  %7077 = vmatmul.mubr.f32.gmra.mrb[156].mxu0 %v2088_v63  ;;  %v9546_v63 = vmul.f32 0.0078125, %v1467_v39  ;;  %v1477_v42 = vadd.f32 %v1476_v45, %v9112_v59  ;;  %v2093_v45 = vmul.f32 %v9543_v20, %v9543_v20 }
 0x19c   :  { %v6764_v52 = vpop.f32.mrb[96].mxu1  ;;  %7079 = vmatprep.mubr.f32.mxu0 %v2089_v4  ;;  %v9563_v39 = vadd.f32 %v8824_v0, %v8491_v11  ;;  %v9575_v20 = vadd.f32 %v8819_v22, %v8491_v11 }
 0x19d   :  { %v1522_v60 = vadd.f32 %v6764_v52, %v9112_v59  ;;  %v1516_v40 = vpop.f32.mrb[97].mxu1  ;;  %3586 = vperm.xlu1 %7182, %v9526_v51   ;;  %v2092_v52 = vmul.f32 %v9535_v46, %v9535_v46 }
 0x19e   :  { %3641 = vperm.xlu0 %7183, %v9529_v58   ;;  %13979 = vst [vmem:[#allocation120_spill] sm:$0xff] %v9563_v39  ;;  %13981 = vst [vmem:[#allocation122_spill] sm:$0xff] %v9575_v20 }
 0x19f   :  { %v9549_v14 = vmul.f32 0.0078125, %v1522_v60  ;;  %7080 = vmatmul.mubr.f32.gmra.mrb[158].mxu0 %v2090_v5  ;;  %v9566_v5 = vmul.f32 0.0078125, %v1477_v42  ;;  %v1487_v60 = vadd.f32 %v1486_v62, %v9112_v59  ;;  %v2095_v62 = vmul.f32 %v9563_v39, %v9563_v39 }
 0x1a0   :  { %v6767_v4 = vpop.f32.mrb[98].mxu1  ;;  %7082 = vmatprep.mubr.f32.mxu0 %v2091_v61  ;;  %v9583_v42 = vadd.f32 %v8842_v10, %v8491_v11  ;;  %v9595_v39 = vadd.f32 %v8837_v55, %v8491_v11  ;;  %v1507_v55 = vadd.f32 %v1506_v21, %v9112_v59 }
 0x1a1   :  { %13977 = vst [vmem:[#allocation118_spill] sm:$0xff] %v9549_v14  ;;  %v1532_v47 = vadd.f32 %v6767_v4, %v9112_v59  ;;  %v1526_v43 = vpop.f32.mrb[99].mxu1  ;;  %3596 = vperm.xlu1 %7182, %v9546_v63   ;;  %v2094_v4 = vmul.f32 %v9555_v1, %v9555_v1 }
 0x1a2   :  { %3651 = vperm.xlu0 %7183, %v9549_v14   ;;  %13982 = vst [vmem:[#allocation123_spill] sm:$0xff] %v9583_v42  ;;  %13984 = vst [vmem:[#allocation125_spill] sm:$0xff] %v9595_v39 }
 0x1a3   :  { %v9569_v18 = vmul.f32 0.0078125, %v1532_v47  ;;  %7083 = vmatmul.mubr.f32.gmra.mrb[160].mxu0 %v2092_v52  ;;  %v9586_v52 = vmul.f32 0.0078125, %v1487_v60  ;;  %v1497_v47 = vadd.f32 %v1496_v57, %v9112_v59  ;;  %v2097_v57 = vmul.f32 %v9583_v42, %v9583_v42 }
 0x1a4   :  { %v6770_v61 = vpop.f32.mrb[100].mxu1  ;;  %7085 = vmatprep.mubr.f32.mxu0 %v2093_v45  ;;  %v9605_v60 = vadd.f32 %v8864_v2, %v8491_v11  ;;  %v9617_v42 = vadd.f32 %v8859_v26, %v8491_v11  ;;  %v1517_v26 = vadd.f32 %v1516_v40, %v9112_v59 }
 0x1a5   :  { %13980 = vst [vmem:[#allocation121_spill] sm:$0xff] %v9569_v18  ;;  %v1542_v0 = vadd.f32 %v6770_v61, %v9112_v59  ;;  %v1536_v46 = vpop.f32.mrb[101].mxu1  ;;  %3606 = vperm.xlu1 %7182, %v9566_v5   ;;  %v2096_v61 = vmul.f32 %v9575_v20, %v9575_v20 }
 0x1a6   :  { %3661 = vperm.xlu0 %7183, %v9569_v18   ;;  %13985 = vst [vmem:[#allocation126_spill] sm:$0xff] %v9605_v60  ;;  %13987 = vst [vmem:[#allocation128_spill] sm:$0xff] %v9617_v42  ;;  %v2099_v21 = vmul.f32 %v9605_v60, %v9605_v60  ;;  %v9639_v60 = vadd.f32 %v8881_v7, %v8491_v11  ;;  %v1527_v7 = vadd.f32 %v1526_v43, %v9112_v59 }
 0x1a7   :  { %v9589_v22 = vmul.f32 0.0078125, %v1542_v0  ;;  %7086 = vmatmul.mubr.f32.gmra.mrb[162].mxu0 %v2094_v4  ;;  %v9608_v4 = vmul.f32 0.0078125, %v1497_v47  ;;  %v9627_v47 = vadd.f32 %v8886_v12, %v8491_v11 }
 0x1a8   :  { %v6773_v45 = vpop.f32.mrb[102].mxu1  ;;  %7088 = vmatprep.mubr.f32.mxu0 %v2095_v62  ;;  %13990 = vst [vmem:[#allocation131_spill] sm:$0xff] %v9639_v60 }
 0x1a9   :  { %13983 = vst [vmem:[#allocation124_spill] sm:$0xff] %v9589_v22  ;;  %v1552_v10 = vadd.f32 %v6773_v45, %v9112_v59  ;;  %v9598_v1 = vpop.f32.mrb[103].mxu1  ;;  %3616 = vperm.xlu1 %7182, %v9586_v52   ;;  %v2098_v45 = vmul.f32 %v9595_v39, %v9595_v39  ;;  %13988 = vst [vmem:[#allocation129_spill] sm:$0xff] %v9627_v47  ;;  %v2101_v40 = vmul.f32 %v9627_v47, %v9627_v47 }
 0x1aa   :  { %3671 = vperm.xlu0 %7183, %v9589_v22   ;;  %v2102_v47 = vmul.f32 %v9639_v60, %v9639_v60 }
 0x1ab   :  { %v9611_v0 = vmul.f32 0.0078125, %v1552_v10  ;;  %7089 = vmatmul.mubr.f32.gmra.mrb[164].mxu0 %v2096_v61  ;;  %v9630_v61 = vmul.f32 0.0078125, %v1507_v55  ;;  %v9649_v55 = vadd.f32 %v8908_v41, %v8491_v11  ;;  %v9665_v41 = vadd.f32 %v8930_v36, %v8491_v11 }
 0x1ac   :  { %v6776_v62 = vpop.f32.mrb[104].mxu1  ;;  %7091 = vmatprep.mubr.f32.mxu0 %v2097_v57 }
 0x1ad   :  { %13986 = vst [vmem:[#allocation127_spill] sm:$0xff] %v9611_v0  ;;  %v1562_v2 = vadd.f32 %v6776_v62, %v9112_v59  ;;  %v9620_v20 = vpop.f32.mrb[105].mxu1  ;;  %3626 = vperm.xlu1 %7182, %v9608_v4   ;;  %v2100_v62 = vmul.f32 %v9617_v42, %v9617_v42  ;;  %13991 = vst [vmem:[#allocation132_spill] sm:$0xff] %v9649_v55  ;;  %v2103_v43 = vmul.f32 %v9649_v55, %v9649_v55 }
 0x1ae   :  { %3681 = vperm.xlu0 %7183, %v9611_v0   ;;  %13995 = vst [vmem:[#allocation136_spill] sm:$0xff] %v9665_v41  ;;  %v9685_v55 = vmul.f32 %v9151_v44, %v9151_v44  ;;  %v9701_v44 = vadd.f32 %v8952_v19, %v8491_v11 }
 0x1af   :  { %v9633_v10 = vmul.f32 0.0078125, %v1562_v2  ;;  %7092 = vmatmul.mubr.f32.gmra.mrb[166].mxu0 %v2098_v45  ;;  %v9652_v45 = vmul.f32 0.0078125, %v1517_v26 }
 0x1b0   :  { %v6779_v57 = vpop.f32.mrb[106].mxu1  ;;  %7094 = vmatprep.mubr.f32.mxu0 %v2099_v21  ;;  %v9659_v21 = vadd.f32 %v8903_v56, %v8491_v11  ;;  %v1537_v56 = vadd.f32 %v1536_v46, %v9112_v59  ;;  %13999 = vst [vmem:[#allocation140_spill] sm:$0xff] %v9701_v44 }
 0x1b1   :  { %13989 = vst [vmem:[#allocation130_spill] sm:$0xff] %v9633_v10  ;;  %v1572_v12 = vadd.f32 %v6779_v57, %v9112_v59  ;;  %v9642_v39 = vpop.f32.mrb[107].mxu1  ;;  %3636 = vperm.xlu1 %7182, %v9630_v61   ;;  %13992 = vst [vmem:[#allocation133_spill] sm:$0xff] %v9652_v45 }
 0x1b2   :  { %3691 = vperm.xlu0 %7183, %v9633_v10   ;;  %13994 = vst [vmem:[#allocation135_spill] sm:$0xff] %v9659_v21  ;;  %v2104_v29 = vmul.f32 %v9659_v21, %v9659_v21 }
 0x1b3   :  { %v9655_v2 = vmul.f32 0.0078125, %v1572_v12  ;;  %7095 = vmatmul.mubr.f32.gmra.mrb[168].mxu0 %v2100_v62  ;;  %v3101_v12 = vmul.f32 %v9149_v48, %v9149_v48  ;;  %v9691_v48 = vadd.f32 %v8925_v28, %v8491_v11 }
 0x1b4   :  { %v6782_v57 = vpop.f32.mrb[108].mxu1  ;;  %7097 = vmatprep.mubr.f32.mxu0 %v2101_v40  ;;  %v9677_v40 = vmul.f32 0.0078125, %v1527_v7  ;;  %v2105_v7 = vmul.f32 %v9665_v41, %v9665_v41 }
 0x1b5   :  { %13993 = vst [vmem:[#allocation134_spill] sm:$0xff] %v9655_v2  ;;  %v1582_v26 = vadd.f32 %v6782_v57, %v9112_v59  ;;  %v9668_v42 = vpop.f32.mrb[109].mxu1  ;;  %3646 = vperm.xlu1 %7182, %v9652_v45   ;;  %v6940_v62 = vpop.f32.mrb[64].mxu0  ;;  %13998 = vst [vmem:[#allocation139_spill] sm:$0xff] %v9691_v48 }
 0x1b6   :  { %3701 = vperm.xlu0 %7183, %v9655_v2   ;;  %13996 = vst [vmem:[#allocation137_spill] sm:$0xff] %v9677_v40  ;;  %v2973_v57 = vmul.f32 0.0078125, %v6940_v62  ;;  %v2205_v60 = vpop.f32.mrb[65].mxu0 }
 0x1b7   :  { %v9679_v36 = vmul.f32 0.0078125, %v1582_v26  ;;  %7098 = vmatmul.mubr.f32.gmra.mrb[170].mxu0 %v2102_v47  ;;  %v9687_v46 = vmul.f32 0.0078125, %v2205_v60  ;;  %v3103_v60 = vmul.f32 %v9176_v27, %v9176_v27  ;;  %v9716_v27 = vadd.f32 %v8947_v32, %v8491_v11 }
 0x1b8   :  { %v6785_v2 = vpop.f32.mrb[110].mxu1  ;;  %7100 = vmatprep.mubr.f32.mxu0 %v2103_v43  ;;  %v3229_v26 = vsub.f32 %v2973_v57, %v3101_v12  ;;  %v9705_v43 = vmul.f32 0.0078125, %v1537_v56  ;;  %v9720_v56 = vmul.f32 %v9200_v23, %v9200_v23  ;;  %v2107_v23 = vmul.f32 %v9701_v44, %v9701_v44 }
 0x1b9   :  { %13997 = vst [vmem:[#allocation138_spill] sm:$0xff] %v9679_v36  ;;  %v1592_v47 = vadd.f32 %v6785_v2, %v9112_v59  ;;  %v9696_v62 = vpop.f32.mrb[111].mxu1  ;;  %3656 = vperm.xlu1 %7182, %v9677_v40   ;;  %v6943_v12 = vpop.f32.mrb[66].mxu0  ;;  %v1547_v2 = vadd.f32 %v9598_v1, %v9112_v59  ;;  %14002 = vst [vmem:[#allocation143_spill] sm:$0xff] %v9716_v27  ;;  %v2106_v1 = vmul.f32 %v9691_v48, %v9691_v48 }
 0x1ba   :  { %14000 = vst [vmem:[#allocation141_spill] sm:$0xff] %v9705_v43  ;;  %3711 = vperm.xlu0 %7183, %v9679_v36   ;;  %v3357_v57 = vmax.f32 %v3229_v26, 0.0  ;;  %v2975_v21 = vmul.f32 0.0078125, %v6943_v12  ;;  %v2215_v19 = vpop.f32.mrb[67].mxu0  ;;  %v14003_v26 = vld [vmem:[#allocation57_spill] sm:$0xff] }
 0x1bb   :  { %v9712_v41 = vmul.f32 0.0078125, %v1592_v47  ;;  %7101 = vmatmul.mubr.f32.gmra.mrb[172].mxu0 %v2104_v29  ;;  %v9722_v28 = vmul.f32 0.0078125, %v2215_v19  ;;  %v9728_v47 = vadd.f32 %v14003_v26, %v8491_v11  ;;  %v1557_v19 = vadd.f32 %v9620_v20, %v9112_v59  ;;  %v14007_v20 = vld [vmem:[#allocation55_spill] sm:$0xff] }
 0x1bc   :  { %v6788_v36 = vpop.f32.mrb[112].mxu1  ;;  %7103 = vmatprep.mubr.f32.mxu0 %v2105_v7  ;;  %v3231_v29 = vsub.f32 %v2975_v21, %v3103_v60  ;;  %v9738_v7 = vmul.f32 %v9224_v15, %v9224_v15  ;;  %v4253_v60 = vadd.f32 1e-05, %v3357_v57  ;;  %v2108_v15 = vmul.f32 %v9716_v27, %v9716_v27 }
 0x1bd   :  { %14001 = vst [vmem:[#allocation142_spill] sm:$0xff] %v9712_v41  ;;  %14004 = vst [vmem:[#allocation57_spill] sm:$0xff] %v9728_v47  ;;  %v1602_v12 = vadd.f32 %v6788_v36, %v9112_v59  ;;  %v9731_v32 = vpop.f32.mrb[113].mxu1  ;;  %3666 = vperm.xlu1 %7182, %v9705_v43   ;;  %v6946_v21 = vpop.f32.mrb[68].mxu0  ;;  %v9745_v36 = vmul.f32 0.0078125, %v1547_v2  ;;  %v9755_v0 = vadd.f32 %v14007_v20, %v8491_v11 }
 0x1be   :  { %3721 = vperm.xlu0 %7183, %v9712_v41   ;;  %v9749_v10 = vmul.f32 0.0078125, %v6946_v21  ;;  %v2225_v44 = vpop.f32.mrb[69].mxu0  ;;  %v9759_v26 = vmul.f32 %v9248_v24, %v9248_v24  ;;  %v9777_v24 = vmul.f32 %v9276_v49, %v9276_v49  ;;  %7184 = vrsqrt.f32 %v4253_v60  ;;  %v14013_v60 = vld [vmem:[#allocation59_spill] sm:$0xff] }
 0x1bf   :  { %14005 = vst [vmem:[#allocation144_spill] sm:$0xff] %v9745_v36  ;;  %v9747_v48 = vmul.f32 0.0078125, %v1602_v12  ;;  %7104 = vmatmul.mubr.f32.gmra.mrb[174].mxu0 %v2106_v1  ;;  %14008 = vst [vmem:[#allocation55_spill] sm:$0xff] %v9755_v0  ;;  %v9761_v2 = vmul.f32 0.0078125, %v2225_v44  ;;  %v2109_v12 = vmul.f32 %v9728_v47, %v9728_v47  ;;  %v14009_v1 = vld [vmem:[#allocation61_spill] sm:$0xff]  ;;  %v9779_v44 = vmul.f32 0.0078125, %v1557_v19 }
 0x1c0   :  { %v6791_v57 = vpop.f32.mrb[114].mxu1  ;;  %7106 = vmatprep.mubr.f32.mxu0 %v2107_v23  ;;  %v9767_v21 = vadd.f32 %v14009_v1, %v8491_v11  ;;  %v3233_v27 = vsub.f32 %v9749_v10, %v9738_v7  ;;  %v1567_v23 = vadd.f32 %v9642_v39, %v9112_v59  ;;  %v3359_v7 = vmax.f32 %v3231_v29, 0.0 }
 0x1c1   :  { %14006 = vst [vmem:[#allocation145_spill] sm:$0xff] %v9747_v48  ;;  %v1612_v20 = vadd.f32 %v6791_v57, %v9112_v59  ;;  %v9772_v41 = vpop.f32.mrb[115].mxu1  ;;  %3676 = vperm.xlu1 %7182, %v9745_v36   ;;  %14011 = vst [vmem:[#allocation146_spill] sm:$0xff] %v9779_v44  ;;  %v6949_v10 = vpop.f32.mrb[70].mxu0  ;;  %v2110_v49 = vmul.f32 %v9755_v0, %v9755_v0  ;;  %v9794_v39 = vmul.f32 %v9303_v31, %v9303_v31 }
 0x1c2   :  { %14010 = vst [vmem:[#allocation61_spill] sm:$0xff] %v9767_v21  ;;  %3731 = vperm.xlu0 %7183, %v9747_v48   ;;  %v9788_v47 = vmul.f32 0.0078125, %v6949_v10  ;;  %v2235_v36 = vpop.f32.mrb[71].mxu0  ;;  %v9800_v29 = vadd.f32 %v14013_v60, %v8491_v11  ;;  %v2111_v31 = vmul.f32 %v9767_v21, %v9767_v21 }
 0x1c3   :  { %v9786_v57 = vmul.f32 0.0078125, %v1612_v20  ;;  %7107 = vmatmul.mubr.f32.gmra.mrb[176].mxu0 %v2108_v15  ;;  %v9796_v19 = vmul.f32 0.0078125, %v2235_v36  ;;  %v14015_v20 = vld [vmem:[#allocation65_spill] sm:$0xff]  ;;  %v9816_v36 = vmul.f32 %v9333_v3, %v9333_v3  ;;  %v4255_v15 = vadd.f32 1e-05, %v3359_v7 }
 0x1c4   :  { %v6794_v1 = vpop.f32.mrb[116].mxu1  ;;  %7109 = vmatprep.mubr.f32.mxu0 %v2109_v12  ;;  %14014 = vst [vmem:[#allocation59_spill] sm:$0xff] %v9800_v29  ;;  %v9804_v10 = vadd.f32 %v14015_v20, %v8491_v11  ;;  %v1577_v12 = vadd.f32 %v9668_v42, %v9112_v59  ;;  %v9823_v20 = vmul.f32 0.0078125, %v1567_v23  ;;  %v9831_v3 = vmul.f32 %v9363_v53, %v9363_v53  ;;  %v14019_v23 = vld [vmem:[#allocation63_spill] sm:$0xff]  ;;  %v14021_v53 = vld [vmem:[#allocation69_spill] sm:$0xff] }
 0x1c5   :  { %14012 = vst [vmem:[#allocation147_spill] sm:$0xff] %v9786_v57  ;;  %v1622_v0 = vadd.f32 %v6794_v1, %v9112_v59  ;;  %v9809_v48 = vpop.f32.mrb[117].mxu1  ;;  %3686 = vperm.xlu1 %7182, %v9779_v44   ;;  %v6952_v1 = vpop.f32.mrb[72].mxu0  ;;  %v2112_v60 = vmul.f32 %v9800_v29, %v9800_v29  ;;  %v9839_v7 = vadd.f32 %v14019_v23, %v8491_v11  ;;  %7186 = vrsqrt.f32 %v4255_v15 }
 0x1c6   :  { %14016 = vst [vmem:[#allocation65_spill] sm:$0xff] %v9804_v10  ;;  %3741 = vperm.xlu0 %7183, %v9786_v57   ;;  %14017 = vst [vmem:[#allocation148_spill] sm:$0xff] %v9823_v20  ;;  %v9827_v43 = vmul.f32 0.0078125, %v6952_v1  ;;  %v2245_v21 = vpop.f32.mrb[73].mxu0  ;;  %v9856_v23 = vmul.f32 0.0078125, %v1577_v12  ;;  %v1587_v29 = vadd.f32 %v9696_v62, %v9112_v59  ;;  %v3361_v57 = vmax.f32 %v3233_v27, 0.0 }
 0x1c7   :  { %v9825_v44 = vmul.f32 0.0078125, %v1622_v0  ;;  %7110 = vmatmul.mubr.f32.gmra.mrb[178].mxu0 %v2110_v49  ;;  %v9833_v42 = vmul.f32 0.0078125, %v2245_v21  ;;  %14020 = vst [vmem:[#allocation63_spill] sm:$0xff] %v9839_v7  ;;  %v2113_v0 = vmul.f32 %v9804_v10, %v9804_v10  ;;  %v9850_v21 = vadd.f32 %v14021_v53, %v8491_v11  ;;  %v14024_v27 = vld [vmem:[#allocation67_spill] sm:$0xff] }
 0x1c8   :  { %v6797_v22 = vpop.f32.mrb[118].mxu1  ;;  %7112 = vmatprep.mubr.f32.mxu0 %v2111_v31  ;;  %v9854_v31 = vmul.f32 %v9394_v6, %v9394_v6  ;;  %14023 = vst [vmem:[#allocation150_spill] sm:$0xff] %v9856_v23  ;;  %v9867_v6 = vmul.f32 %v9421_v13, %v9421_v13  ;;  %v2114_v62 = vmul.f32 %v9839_v7, %v9839_v7  ;;  %v4257_v45 = vadd.f32 1e-05, %v3361_v57 }
 0x1c9   :  { %14018 = vst [vmem:[#allocation149_spill] sm:$0xff] %v9825_v44  ;;  %v9845_v1 = vpop.f32.mrb[119].mxu1  ;;  %3696 = vperm.xlu1 %7182, %v9823_v20   ;;  %14022 = vst [vmem:[#allocation69_spill] sm:$0xff] %v9850_v21  ;;  %v6955_v49 = vpop.f32.mrb[74].mxu0  ;;  %v1632_v12 = vadd.f32 %v6797_v22, %v9112_v59  ;;  %v9876_v15 = vadd.f32 %v14024_v27, %v8491_v11  ;;  %v1597_v27 = vadd.f32 %v9731_v32, %v9112_v59 }
 0x1ca   :  { %3751 = vperm.xlu0 %7183, %v9825_v44   ;;  %v9863_v20 = vmul.f32 0.0078125, %v6955_v49  ;;  %v2255_v53 = vpop.f32.mrb[75].mxu0  ;;  %v7185_v44 = vpop.eup %7184  ;;  %v9898_v13 = vmul.f32 %v9306_v37, %v9306_v37  ;;  %v9910_v32 = vmul.f32 %v9442_v38, %v9442_v38  ;;  %7188 = vrsqrt.f32 %v4257_v45 }
 0x1cb   :  { %7113 = vmatmul.mubr.f32.gmra.mrb[180].mxu0 %v2112_v60  ;;  %v9870_v40 = vmul.f32 0.0078125, %v2255_v53  ;;  %14025 = vst [vmem:[#allocation67_spill] sm:$0xff] %v9876_v15  ;;  %v14026_v60 = vld [vmem:[#allocation73_spill] sm:$0xff]  ;;  %v14028_v53 = vsub.f32 %v9687_v46, %v9685_v55  ;;  %v14030_v55 = vld [vmem:[#allocation71_spill] sm:$0xff]  ;;  %v1607_v38 = vadd.f32 %v9772_v41, %v9112_v59 }
 0x1cc   :  { %v6800_v10 = vpop.f32.mrb[120].mxu1  ;;  %7115 = vmatprep.mubr.f32.mxu0 %v2113_v0  ;;  %v9880_v49 = vadd.f32 %v14026_v60, %v8491_v11  ;;  %v2115_v0 = vmul.f32 %v9850_v21, %v9850_v21  ;;  %v9906_v46 = vadd.f32 %v14030_v55, %v8491_v11  ;;  %14032 = vst [vmem:[#allocation152_spill] sm:$0xff] %v9910_v32  ;;  %v9935_v55 = vmul.f32 0.0078125, %v1597_v27 }
 0x1cd   :  { %v9884_v22 = vpop.f32.mrb[121].mxu1  ;;  %3706 = vperm.xlu1 %7182, %v9856_v23   ;;  %v3356_v7 = vmax.f32 %v14028_v53, 0.0  ;;  %v6958_v18 = vpop.f32.mrb[76].mxu0  ;;  %v9900_v23 = vmul.f32 0.0078125, %v1587_v29  ;;  %v14034_v29 = vld [vmem:[#allocation77_spill] sm:$0xff]  ;;  %v9951_v27 = vmul.f32 %v9463_v35, %v9463_v35  ;;  %v1642_v45 = vadd.f32 %v6800_v10, %v9112_v59 }
 0x1ce   :  { %14027 = vst [vmem:[#allocation73_spill] sm:$0xff] %v9880_v49  ;;  %4515 = vperm.xlu0 %7183, %v7185_v44   ;;  %v9902_v21 = vmul.f32 0.0078125, %v6958_v18  ;;  %v2265_v14 = vpop.f32.mrb[77].mxu0  ;;  %14031 = vst [vmem:[#allocation71_spill] sm:$0xff] %v9906_v46  ;;  %v9912_v44 = vmul.f32 0.0078125, %v1632_v12  ;;  %v2116_v18 = vmul.f32 %v9876_v15, %v9876_v15  ;;  %v2117_v57 = vmul.f32 %v9880_v49, %v9880_v49 }
 0x1cf   :  { %14029 = vst [vmem:[#allocation151_spill] sm:$0xff] %v9900_v23  ;;  %7116 = vmatmul.mubr.f32.gmra.mrb[182].mxu0 %v2114_v62  ;;  %v9914_v53 = vmul.f32 0.0078125, %v2265_v14  ;;  %v9924_v62 = vadd.f32 %v14034_v29, %v8491_v11  ;;  %v9933_v14 = vmul.f32 %v9336_v30, %v9336_v30  ;;  %14036 = vst [vmem:[#allocation154_spill] sm:$0xff] %v9935_v55 }
 0x1d0   :  { %14033 = vst [vmem:[#allocation153_spill] sm:$0xff] %v9912_v44  ;;  %v9916_v37 = vpop.f32.mrb[122].mxu1  ;;  %7118 = vmatprep.mubr.f32.mxu0 %v2115_v0  ;;  %v4252_v0 = vadd.f32 1e-05, %v3356_v7  ;;  %v14037_v49 = vsub.f32 %v9788_v47, %v9777_v24  ;;  %v2118_v7 = vmul.f32 %v9906_v46, %v9906_v46  ;;  %v7187_v47 = vpop.eup %7186  ;;  %v14038_v24 = vld [vmem:[#allocation75_spill] sm:$0xff] }
 0x1d1   :  { %14035 = vst [vmem:[#allocation77_spill] sm:$0xff] %v9924_v62  ;;  %v9928_v12 = vpop.f32.mrb[123].mxu1  ;;  %3716 = vperm.xlu1 %7182, %v9900_v23   ;;  %v6961_v29 = vpop.f32.mrb[78].mxu0 }
 0x1d2   :  { %3761 = vperm.xlu0 %7183, %v9912_v44   ;;  %v3363_v15 = vmax.f32 %v14037_v49, 0.0  ;;  %v9945_v23 = vmul.f32 0.0078125, %v6961_v29  ;;  %v2275_v30 = vpop.f32.mrb[79].mxu0  ;;  %v9960_v49 = vadd.f32 %v14038_v24, %v8491_v11  ;;  %v14040_v29 = vld [vmem:[#allocation81_spill] sm:$0xff]  ;;  %7190 = vrsqrt.f32 %v4252_v0 }
 0x1d3   :  { %7119 = vmatmul.mubr.f32.gmra.mrb[184].mxu0 %v2116_v18  ;;  %v9954_v60 = vmul.f32 0.0078125, %v2275_v30  ;;  %v2119_v18 = vmul.f32 %v9924_v62, %v9924_v62  ;;  %v9966_v46 = vadd.f32 %v14040_v29, %v8491_v11  ;;  %v14042_v30 = vsub.f32 %v9722_v28, %v9720_v56 }
 0x1d4   :  { %v9956_v41 = vpop.f32.mrb[124].mxu1  ;;  %7121 = vmatprep.mubr.f32.mxu0 %v2117_v57  ;;  %14039 = vst [vmem:[#allocation75_spill] sm:$0xff] %v9960_v49  ;;  %v9975_v57 = vmul.f32 %v9367_v25, %v9367_v25  ;;  %v9982_v44 = vmul.f32 0.0078125, %v1607_v38  ;;  %v4259_v35 = vadd.f32 1e-05, %v3363_v15  ;;  %v9990_v0 = vmul.f32 %v9484_v54, %v9484_v54 }
 0x1d5   :  { %14041 = vst [vmem:[#allocation81_spill] sm:$0xff] %v9966_v46  ;;  %v9970_v10 = vpop.f32.mrb[125].mxu1  ;;  %3726 = vperm.xlu1 %7182, %v9935_v55   ;;  %v3358_v24 = vmax.f32 %v14042_v30, 0.0  ;;  %v6964_v62 = vpop.f32.mrb[80].mxu0  ;;  %v1617_v55 = vadd.f32 %v9809_v48, %v9112_v59  ;;  %v9992_v28 = vmul.f32 0.0078125, %v1642_v45  ;;  %v2120_v15 = vmul.f32 %v9960_v49, %v9960_v49  ;;  %v14044_v48 = vld [vmem:[#allocation79_spill] sm:$0xff] }
 0x1d6   :  { %4525 = vperm.xlu0 %7183, %v7187_v47   ;;  %v9986_v32 = vmul.f32 0.0078125, %v6964_v62  ;;  %v2285_v25 = vpop.f32.mrb[81].mxu0  ;;  %v10002_v62 = vadd.f32 %v14044_v48, %v8491_v11  ;;  %v2121_v54 = vmul.f32 %v9966_v46, %v9966_v46  ;;  %v10013_v45 = vmul.f32 %v9398_v17, %v9398_v17 }
 0x1d7   :  { %7122 = vmatmul.mubr.f32.gmra.mrb[186].mxu0 %v2118_v7  ;;  %14043 = vst [vmem:[#allocation155_spill] sm:$0xff] %v9992_v28  ;;  %v9994_v56 = vmul.f32 0.0078125, %v2285_v25  ;;  %7192 = vrsqrt.f32 %v4259_v35  ;;  %v10018_v25 = vmul.f32 0.0078125, %v1617_v55  ;;  %v14047_v48 = vsub.f32 %v9827_v43, %v9816_v36  ;;  %v7189_v55 = vpop.eup %7188 }
 0x1d8   :  { %v9996_v47 = vpop.f32.mrb[126].mxu1  ;;  %7124 = vmatprep.mubr.f32.mxu0 %v2119_v18  ;;  %14045 = vst [vmem:[#allocation79_spill] sm:$0xff] %v10002_v62  ;;  %v4254_v18 = vadd.f32 1e-05, %v3358_v24  ;;  %v10027_v17 = vmul.f32 %v9505_v9, %v9505_v9  ;;  %v1652_v24 = vadd.f32 %v9916_v37, %v9112_v59  ;;  %v2122_v43 = vmul.f32 %v10002_v62, %v10002_v62 }
 0x1d9   :  { %v10006_v7 = vpop.f32.mrb[127].mxu1  ;;  %3736 = vperm.xlu1 %7182, %v9982_v44   ;;  %v6967_v11 = vpop.f32.mrb[82].mxu0  ;;  %14046 = vst [vmem:[#allocation156_spill] sm:$0xff] %v10018_v25  ;;  %v3365_v29 = vmax.f32 %v14047_v48, 0.0  ;;  %v14048_v9 = vsub.f32 %v9761_v2, %v9759_v26  ;;  %v1627_v36 = vadd.f32 %v9845_v1, %v9112_v59  ;;  %v10057_v26 = vmul.f32 %v9526_v51, %v9526_v51 }
 0x1da   :  { %3771 = vperm.xlu0 %7183, %v9992_v28   ;;  %v10023_v38 = vmul.f32 0.0078125, %v6967_v11  ;;  %v2295_v46 = vpop.f32.mrb[83].mxu0  ;;  %7194 = vrsqrt.f32 %v4254_v18  ;;  %v10049_v11 = vmul.f32 %v9425_v8, %v9425_v8  ;;  %v10059_v2 = vmul.f32 0.0078125, %v1652_v24 }
 0x1db   :  { %7125 = vmatmul.mubr.f32.gmra.mrb[188].mxu0 %v2120_v15  ;;  %v10031_v30 = vmul.f32 0.0078125, %v2295_v46  ;;  %v3360_v46 = vmax.f32 %v14048_v9, 0.0  ;;  %v4261_v48 = vadd.f32 1e-05, %v3365_v29  ;;  %v10074_v24 = vmul.f32 0.0078125, %v1627_v36 }
 0x1dc   :  { %v10033_v35 = vpop.f32.mrb[128].mxu1  ;;  %7127 = vmatprep.mubr.f32.mxu0 %v2121_v54  ;;  %v7191_v49 = vpop.eup %7190  ;;  %14049 = vst [vmem:[#allocation157_spill] sm:$0xff] %v10059_v2  ;;  %v10081_v1 = vmul.f32 %v9446_v34, %v9446_v34  ;;  %v14054_v34 = vsub.f32 %v9796_v19, %v9794_v39 }
 0x1dd   :  { %v10039_v15 = vpop.f32.mrb[129].mxu1  ;;  %3746 = vperm.xlu1 %7182, %v10018_v25   ;;  %v6970_v54 = vpop.f32.mrb[84].mxu0  ;;  %7196 = vrsqrt.f32 %v4261_v48  ;;  %14051 = vst [vmem:[#allocation159_spill] sm:$0xff] %v10074_v24  ;;  %v10093_v48 = vmul.f32 %v9546_v63, %v9546_v63  ;;  %v1637_v63 = vadd.f32 %v9884_v22, %v9112_v59  ;;  %v10123_v22 = vmul.f32 %v9566_v5, %v9566_v5 }
 0x1de   :  { %4535 = vperm.xlu0 %7183, %v7189_v55   ;;  %v10053_v62 = vmul.f32 0.0078125, %v6970_v54  ;;  %v2305_v18 = vpop.f32.mrb[85].mxu0 }
 0x1df   :  { %7128 = vmatmul.mubr.f32.gmra.mrb[190].mxu0 %v2122_v43  ;;  %v10061_v55 = vmul.f32 0.0078125, %v2305_v18  ;;  %v4256_v43 = vadd.f32 1e-05, %v3360_v46  ;;  %v14052_v18 = vsub.f32 %v9863_v20, %v9854_v31  ;;  %14057 = vst [vmem:[#allocation163_spill] sm:$0xff] %v10123_v22 }
 0x1e0   :  { %v10063_v9 = vpop.permute.xlu1 %3491  ;;  %v10065_v8 = vpop.f32.mrb[130].mxu1 }
 0x1e1   :  { %14050 = vst [vmem:[#allocation158_spill] sm:$0xff] %v10063_v9  ;;  %v10069_v29 = vpop.f32.mrb[131].mxu1  ;;  %4510 = vperm.xlu1 %7182, %v7191_v49   ;;  %v3367_v37 = vmax.f32 %v14052_v18, 0.0  ;;  %v1662_v49 = vadd.f32 %v9956_v41, %v9112_v59  ;;  %v7193_v36 = vpop.eup %7192  ;;  %7198 = vrsqrt.f32 %v4256_v43  ;;  %v3362_v41 = vmax.f32 %v14054_v34, 0.0 }
 0x1e2   :  { %3781 = vperm.xlu0 %7183, %v10059_v2   ;;  %v6973_v51 = vpop.f32.mrb[86].mxu0  ;;  %v10111_v43 = vmul.f32 %v9467_v50, %v9467_v50 }
 0x1e3   :  { %v2315_v9 = vpop.f32.mrb[87].mxu0  ;;  %v10085_v46 = vmul.f32 0.0078125, %v6973_v51  ;;  %v10113_v39 = vmul.f32 0.0078125, %v1662_v49  ;;  %v4258_v51 = vadd.f32 1e-05, %v3362_v41  ;;  %v1672_v41 = vadd.f32 %v9996_v47, %v9112_v59 }
 0x1e4   :  { %v10087_v54 = vpop.permute.xlu1 %3501  ;;  %v10089_v2 = vpop.f32.mrb[132].mxu1  ;;  %v10095_v20 = vmul.f32 0.0078125, %v2315_v9 }
 0x1e5   :  { %14053 = vst [vmem:[#allocation160_spill] sm:$0xff] %v10087_v54  ;;  %v10097_v31 = vpop.f32.mrb[133].mxu1  ;;  %3756 = vperm.xlu1 %7182, %v10074_v24   ;;  %v4263_v54 = vadd.f32 1e-05, %v3367_v37  ;;  %v7195_v25 = vpop.eup %7194  ;;  %14055 = vst [vmem:[#allocation161_spill] sm:$0xff] %v10113_v39 }
 0x1e6   :  { %4545 = vperm.xlu0 %7183, %v7193_v36   ;;  %v6976_v18 = vpop.f32.mrb[88].mxu0 }
 0x1e7   :  { %v2325_v28 = vpop.f32.mrb[89].mxu0  ;;  %v10115_v19 = vmul.f32 0.0078125, %v6976_v18  ;;  %7200 = vrsqrt.f32 %v4263_v54  ;;  %v10132_v18 = vmul.f32 0.0078125, %v1637_v63 }
 0x1e8   :  { %v10117_v34 = vpop.f32.mrb[134].mxu1  ;;  %v10119_v36 = vpop.permute.xlu1 %3496  ;;  %v10125_v37 = vmul.f32 0.0078125, %v2325_v28  ;;  %7202 = vrsqrt.f32 %v4258_v51 }
 0x1e9   :  { %14056 = vst [vmem:[#allocation162_spill] sm:$0xff] %v10119_v36  ;;  %v10127_v9 = vpop.f32.mrb[135].mxu1  ;;  %4520 = vperm.xlu1 %7182, %v7195_v25   ;;  %14059 = vst [vmem:[#allocation165_spill] sm:$0xff] %v10132_v18  ;;  %v14060_v36 = vsub.f32 %v9902_v21, %v9898_v13  ;;  %v10141_v25 = vmul.f32 %v9488_v33, %v9488_v33  ;;  %v10153_v21 = vmul.f32 %v9586_v52, %v9586_v52 }
 0x1ea   :  { %14058 = vst [vmem:[#allocation164_spill] sm:$0xff] %v10125_v37  ;;  %3791 = vperm.xlu0 %7183, %v10113_v39   ;;  %v6979_v49 = vpop.f32.mrb[90].mxu0  ;;  %v7197_v39 = vpop.eup %7196  ;;  %v14062_v33 = vsub.f32 %v9833_v42, %v9831_v3  ;;  %v1647_v52 = vadd.f32 %v9928_v12, %v9112_v59  ;;  %v10177_v42 = vmul.f32 %v9509_v16, %v9509_v16 }
 0x1eb   :  { %v3369_v5 = vmax.f32 %v14060_v36, 0.0  ;;  %v2335_v24 = vpop.f32.mrb[91].mxu0  ;;  %v10145_v50 = vmul.f32 0.0078125, %v6979_v49  ;;  %v7199_v37 = vpop.eup %7198  ;;  %v10185_v12 = vmul.f32 %v9608_v4, %v9608_v4  ;;  %v14067_v16 = vsub.f32 %v9945_v23, %v9933_v14 }
 0x1ec   :  { %v10147_v54 = vpop.f32.mrb[136].mxu1  ;;  %v10149_v63 = vpop.permute.xlu1 %3511  ;;  %v10155_v13 = vmul.f32 0.0078125, %v2335_v24  ;;  %v3364_v47 = vmax.f32 %v14062_v33, 0.0  ;;  %v10190_v49 = vmul.f32 0.0078125, %v1647_v52  ;;  %v10199_v4 = vmul.f32 %v9529_v58, %v9529_v58 }
 0x1ed   :  { %14061 = vst [vmem:[#allocation166_spill] sm:$0xff] %v10149_v63  ;;  %v10157_v36 = vpop.f32.mrb[137].mxu1  ;;  %3766 = vperm.xlu1 %7182, %v10132_v18   ;;  %v4265_v63 = vadd.f32 1e-05, %v3369_v5  ;;  %v10169_v18 = vmul.f32 0.0078125, %v1672_v41  ;;  %14065 = vst [vmem:[#allocation169_spill] sm:$0xff] %v10185_v12  ;;  %v10211_v14 = vmul.f32 %v9630_v61, %v9630_v61  ;;  %v1657_v61 = vadd.f32 %v9970_v10, %v9112_v59 }
 0x1ee   :  { %4555 = vperm.xlu0 %7183, %v7197_v39   ;;  %v6982_v28 = vpop.f32.mrb[92].mxu0  ;;  %v4260_v33 = vadd.f32 1e-05, %v3364_v47 }
 0x1ef   :  { %v2345_v22 = vpop.f32.mrb[93].mxu0  ;;  %14063 = vst [vmem:[#allocation167_spill] sm:$0xff] %v10169_v18  ;;  %v10179_v39 = vmul.f32 0.0078125, %v6982_v28  ;;  %7204 = vrsqrt.f32 %v4265_v63  ;;  %v3371_v28 = vmax.f32 %v14067_v16, 0.0  ;;  %14069 = vst [vmem:[#allocation172_spill] sm:$0xff] %v10211_v14  ;;  %v14070_v16 = vsub.f32 %v9870_v40, %v9867_v6  ;;  %v14081_v6 = vld [vmem:[#allocation133_spill] sm:$0xff] }
 0x1f0   :  { %v10171_v51 = vpop.f32.mrb[138].mxu1  ;;  %v10173_v3 = vpop.permute.xlu1 %3506  ;;  %v10187_v41 = vmul.f32 0.0078125, %v2345_v22  ;;  %v1682_v22 = vadd.f32 %v10033_v35, %v9112_v59  ;;  %7206 = vrsqrt.f32 %v4260_v33  ;;  %v14076_v33 = vld [vmem:[#allocation118_spill] sm:$0xff] }
 0x1f1   :  { %14064 = vst [vmem:[#allocation168_spill] sm:$0xff] %v10173_v3  ;;  %v10181_v5 = vpop.f32.mrb[139].mxu1  ;;  %4530 = vperm.xlu1 %7182, %v7199_v37   ;;  %v7201_v23 = vpop.eup %7200  ;;  %v3366_v58 = vmax.f32 %v14070_v16, 0.0  ;;  %v4267_v12 = vadd.f32 1e-05, %v3371_v28  ;;  %v10239_v28 = vmul.f32 %v14076_v33, %v14076_v33  ;;  %v10254_v33 = vmul.f32 0.0078125, %v1657_v61 }
 0x1f2   :  { %14066 = vst [vmem:[#allocation170_spill] sm:$0xff] %v10187_v41  ;;  %3801 = vperm.xlu0 %7183, %v10169_v18   ;;  %v6985_v24 = vpop.f32.mrb[94].mxu0  ;;  %v10216_v37 = vpop.permute.xlu0 %3486  ;;  %v10231_v16 = vmul.f32 0.0078125, %v1682_v22  ;;  %v10249_v22 = vmul.f32 %v14081_v6, %v14081_v6  ;;  %v1692_v6 = vadd.f32 %v10065_v8, %v9112_v59  ;;  %v14086_v61 = vld [vmem:[#allocation121_spill] sm:$0xff] }
 0x1f3   :  { %v2355_v3 = vpop.f32.mrb[95].mxu0  ;;  %14071 = vst [vmem:[#allocation173_spill] sm:$0xff] %v10216_v37  ;;  %v10218_v18 = vmul.f32 0.0078125, %v6985_v24  ;;  %14077 = vst [vmem:[#allocation118_spill] sm:$0xff] %v10239_v28  ;;  %7208 = vrsqrt.f32 %v4267_v12 }
 0x1f4   :  { %v10205_v47 = vpop.f32.mrb[140].mxu1  ;;  %v10207_v52 = vpop.permute.xlu1 %3521  ;;  %v10220_v35 = vmul.f32 0.0078125, %v2355_v3  ;;  %14074 = vst [vmem:[#allocation176_spill] sm:$0xff] %v10231_v16  ;;  %14082 = vst [vmem:[#allocation133_spill] sm:$0xff] %v10249_v22  ;;  %v1667_v22 = vadd.f32 %v10006_v7, %v9112_v59 }
 0x1f5   :  { %14068 = vst [vmem:[#allocation171_spill] sm:$0xff] %v10207_v52  ;;  %v10222_v63 = vpop.f32.mrb[141].mxu1  ;;  %3776 = vperm.xlu1 %7182, %v10190_v49   ;;  %v7203_v3 = vpop.eup %7202 }
 0x1f6   :  { %14072 = vst [vmem:[#allocation174_spill] sm:$0xff] %v10220_v35  ;;  %14073 = vst [vmem:[#allocation175_spill] sm:$0xff] %v10222_v63  ;;  %4565 = vperm.xlu0 %7183, %v7201_v23   ;;  %v6988_v52 = vpop.f32.mrb[96].mxu0  ;;  %v4262_v23 = vadd.f32 1e-05, %v3366_v58 }
 0x1f7   :  { %v2365_v24 = vpop.f32.mrb[97].mxu0  ;;  %v10241_v10 = vmul.f32 0.0078125, %v6988_v52  ;;  %v14084_v52 = vsub.f32 %v9986_v32, %v9975_v57  ;;  %v14088_v32 = vld [vmem:[#allocation137_spill] sm:$0xff] }
 0x1f8   :  { %v10233_v37 = vpop.f32.mrb[142].mxu1  ;;  %v10235_v41 = vpop.permute.xlu1 %3516  ;;  %v10251_v14 = vmul.f32 0.0078125, %v2365_v24  ;;  %v10275_v57 = vmul.f32 %v14088_v32, %v14088_v32  ;;  %7210 = vrsqrt.f32 %v4262_v23  ;;  %v14092_v24 = vld [vmem:[#allocation152_spill] sm:$0xff] }
 0x1f9   :  { %14075 = vst [vmem:[#allocation177_spill] sm:$0xff] %v10235_v41  ;;  %14078 = vst [vmem:[#allocation178_spill] sm:$0xff] %v10241_v10  ;;  %v10243_v63 = vpop.permute.xlu0 %3551  ;;  %v10245_v40 = vpop.f32.mrb[143].mxu1  ;;  %4540 = vperm.xlu1 %7182, %v7203_v3   ;;  %v3373_v58 = vmax.f32 %v14084_v52, 0.0  ;;  %v10291_v10 = vmul.f32 0.0078125, %v1692_v6  ;;  %v14100_v6 = vld [vmem:[#allocation141_spill] sm:$0xff] }
 0x1fa   :  { %14079 = vst [vmem:[#allocation179_spill] sm:$0xff] %v10243_v63  ;;  %14080 = vst [vmem:[#allocation180_spill] sm:$0xff] %v10245_v40  ;;  %3811 = vperm.xlu0 %7183, %v10231_v16   ;;  %v6991_v41 = vpop.f32.mrb[98].mxu0  ;;  %v7205_v12 = vpop.eup %7204  ;;  %v10271_v40 = vmul.f32 %v14086_v61, %v14086_v61  ;;  %v14093_v63 = vsub.f32 %v9914_v53, %v14092_v24 }
 0x1fb   :  { %14083 = vst [vmem:[#allocation181_spill] sm:$0xff] %v10251_v14  ;;  %v2375_v3 = vpop.f32.mrb[99].mxu0  ;;  %14089 = vst [vmem:[#allocation137_spill] sm:$0xff] %v10275_v57  ;;  %v10287_v61 = vmul.f32 0.0078125, %v6991_v41  ;;  %v4269_v23 = vadd.f32 1e-05, %v3373_v58 }
 0x1fc   :  { %v10265_v35 = vpop.f32.mrb[144].mxu1  ;;  %v10267_v16 = vpop.permute.xlu1 %3531  ;;  %14087 = vst [vmem:[#allocation121_spill] sm:$0xff] %v10271_v40  ;;  %v10289_v14 = vmul.f32 0.0078125, %v2375_v3  ;;  %v14098_v58 = vld [vmem:[#allocation124_spill] sm:$0xff]  ;;  %v10313_v40 = vmul.f32 0.0078125, %v1667_v22 }
 0x1fd   :  { %14085 = vst [vmem:[#allocation182_spill] sm:$0xff] %v10267_v16  ;;  %v10277_v52 = vpop.permute.xlu0 %3561  ;;  %v10279_v8 = vpop.f32.mrb[145].mxu1  ;;  %3786 = vperm.xlu1 %7182, %v10254_v33   ;;  %v3368_v16 = vmax.f32 %v14093_v63, 0.0  ;;  %v10307_v24 = vmul.f32 %v14098_v58, %v14098_v58  ;;  %7212 = vrsqrt.f32 %v4269_v23 }
 0x1fe   :  { %14090 = vst [vmem:[#allocation183_spill] sm:$0xff] %v10277_v52  ;;  %14091 = vst [vmem:[#allocation184_spill] sm:$0xff] %v10279_v8  ;;  %4575 = vperm.xlu0 %7183, %v7205_v12   ;;  %v6994_v32 = vpop.f32.mrb[100].mxu0  ;;  %v7207_v52 = vpop.eup %7206  ;;  %v10311_v12 = vmul.f32 %v14100_v6, %v14100_v6  ;;  %v1702_v6 = vadd.f32 %v10089_v2, %v9112_v59  ;;  %v14109_v2 = vsub.f32 %v9954_v60, %v9951_v27 }
 0x1ff   :  { %14094 = vst [vmem:[#allocation152_spill] sm:$0xff] %v10289_v14  ;;  %v2385_v28 = vpop.f32.mrb[101].mxu0  ;;  %14099 = vst [vmem:[#allocation124_spill] sm:$0xff] %v10307_v24  ;;  %v4264_v8 = vadd.f32 1e-05, %v3368_v16  ;;  %v7209_v22 = vpop.eup %7208 }
 0x200   :  { %v10297_v63 = vpop.f32.mrb[146].mxu1  ;;  %v10299_v7 = vpop.permute.xlu1 %3526  ;;  %14101 = vst [vmem:[#allocation141_spill] sm:$0xff] %v10311_v12  ;;  %v10321_v57 = vmul.f32 0.0078125, %v2385_v28 }
 0x201   :  { %14095 = vst [vmem:[#allocation185_spill] sm:$0xff] %v10299_v7  ;;  %v10301_v41 = vpop.permute.xlu0 %3571  ;;  %v10303_v3 = vpop.f32.mrb[147].mxu1  ;;  %4550 = vperm.xlu1 %7182, %v7207_v52   ;;  %v10319_v52 = vmul.f32 0.0078125, %v6994_v32  ;;  %7214 = vrsqrt.f32 %v4264_v8 }
 0x202   :  { %14096 = vst [vmem:[#allocation186_spill] sm:$0xff] %v10301_v41  ;;  %14097 = vst [vmem:[#allocation187_spill] sm:$0xff] %v10303_v3  ;;  %3821 = vperm.xlu0 %7183, %v10291_v10   ;;  %v6997_v53 = vpop.f32.mrb[102].mxu0  ;;  %v14102_v41 = vsub.f32 %v10023_v38, %v10013_v45  ;;  %v14105_v3 = vld [vmem:[#allocation127_spill] sm:$0xff]  ;;  %v7211_v24 = vpop.eup %7210 }
 0x203   :  { %14103 = vst [vmem:[#allocation188_spill] sm:$0xff] %v10321_v57  ;;  %v2395_v58 = vpop.f32.mrb[103].mxu0  ;;  %v10331_v23 = vmul.f32 %v14105_v3, %v14105_v3  ;;  %v1677_v3 = vadd.f32 %v10039_v15, %v9112_v59 }
 0x204   :  { %v3375_v7 = vmax.f32 %v14102_v41, 0.0  ;;  %v10325_v14 = vpop.f32.mrb[148].mxu1  ;;  %v10327_v16 = vpop.permute.xlu1 %3541  ;;  %v3370_v41 = vmax.f32 %v14109_v2, 0.0  ;;  %v10357_v27 = vmul.f32 0.0078125, %v2395_v58 }
 0x205   :  { %14104 = vst [vmem:[#allocation189_spill] sm:$0xff] %v10327_v16  ;;  %14106 = vst [vmem:[#allocation127_spill] sm:$0xff] %v10331_v23  ;;  %v10337_v28 = vpop.permute.xlu0 %3581  ;;  %v10339_v32 = vpop.f32.mrb[149].mxu1  ;;  %3796 = vperm.xlu1 %7182, %v10313_v40   ;;  %v10347_v16 = vmul.f32 0.0078125, %v6997_v53  ;;  %v14115_v53 = vld [vmem:[#allocation130_spill] sm:$0xff]  ;;  %v10375_v58 = vmul.f32 0.0078125, %v1677_v3 }
 0x206   :  { %14107 = vst [vmem:[#allocation190_spill] sm:$0xff] %v10337_v28  ;;  %14108 = vst [vmem:[#allocation191_spill] sm:$0xff] %v10339_v32  ;;  %4585 = vperm.xlu0 %7183, %v7209_v22   ;;  %v7000_v38 = vpop.f32.mrb[104].mxu0  ;;  %v4271_v45 = vadd.f32 1e-05, %v3375_v7  ;;  %v14111_v28 = vld [vmem:[#allocation144_spill] sm:$0xff]  ;;  %v10365_v22 = vmul.f32 %v14115_v53, %v14115_v53  ;;  %v14120_v53 = vsub.f32 %v10053_v62, %v10049_v11 }
 0x207   :  { %14110 = vst [vmem:[#allocation192_spill] sm:$0xff] %v10347_v16  ;;  %v2405_v12 = vpop.f32.mrb[105].mxu0  ;;  %v10351_v57 = vmul.f32 %v14111_v28, %v14111_v28  ;;  %v10353_v32 = vmul.f32 0.0078125, %v1702_v6  ;;  %14113 = vst [vmem:[#allocation193_spill] sm:$0xff] %v10357_v27  ;;  %v14118_v6 = vld [vmem:[#allocation146_spill] sm:$0xff]  ;;  %v7213_v23 = vpop.eup %7212  ;;  %v1687_v62 = vadd.f32 %v10069_v29, %v9112_v59 }
 0x208   :  { %v10359_v8 = vpop.f32.mrb[150].mxu1  ;;  %v10361_v15 = vpop.permute.xlu1 %3536  ;;  %v10373_v28 = vmul.f32 %v14118_v6, %v14118_v6  ;;  %v4266_v60 = vadd.f32 1e-05, %v3370_v41  ;;  %7216 = vrsqrt.f32 %v4271_v45  ;;  %v1712_v41 = vadd.f32 %v10117_v34, %v9112_v59 }
 0x209   :  { %14112 = vst [vmem:[#allocation144_spill] sm:$0xff] %v10351_v57  ;;  %14114 = vst [vmem:[#allocation194_spill] sm:$0xff] %v10361_v15  ;;  %v10367_v7 = vpop.permute.xlu0 %3591  ;;  %v10369_v2 = vpop.f32.mrb[151].mxu1  ;;  %4560 = vperm.xlu1 %7182, %v7211_v24   ;;  %v10385_v24 = vmul.f32 0.0078125, %v2405_v12  ;;  %v14125_v34 = vsub.f32 %v9994_v56, %v9990_v0 }
 0x20a   :  { %14116 = vst [vmem:[#allocation130_spill] sm:$0xff] %v10367_v7  ;;  %14117 = vst [vmem:[#allocation195_spill] sm:$0xff] %v10369_v2  ;;  %3831 = vperm.xlu0 %7183, %v10353_v32   ;;  %v7003_v15 = vpop.f32.mrb[106].mxu0  ;;  %v3377_v7 = vmax.f32 %v14120_v53, 0.0  ;;  %v10383_v2 = vmul.f32 0.0078125, %v7000_v38  ;;  %7218 = vrsqrt.f32 %v4266_v60  ;;  %v10415_v60 = vmul.f32 0.0078125, %v1712_v41 }
 0x20b   :  { %14119 = vst [vmem:[#allocation146_spill] sm:$0xff] %v10373_v28  ;;  %14121 = vst [vmem:[#allocation196_spill] sm:$0xff] %v10385_v24  ;;  %v2415_v6 = vpop.f32.mrb[107].mxu0  ;;  %v3372_v12 = vmax.f32 %v14125_v34, 0.0  ;;  %v7215_v28 = vpop.eup %7214  ;;  %v14128_v24 = vld [vmem:[#allocation148_spill] sm:$0xff]  ;;  %v10417_v0 = vmul.f32 0.0078125, %v7003_v15 }
 0x20c   :  { %v10389_v3 = vpop.f32.mrb[152].mxu1  ;;  %v10391_v16 = vpop.permute.xlu1 %3546  ;;  %v4273_v45 = vadd.f32 1e-05, %v3377_v7  ;;  %v10419_v56 = vmul.f32 0.0078125, %v2415_v6  ;;  %v10434_v6 = vmul.f32 0.0078125, %v1687_v62  ;;  %v14137_v41 = vld [vmem:[#allocation138_spill] sm:$0xff] }
 0x20d   :  { %14122 = vst [vmem:[#allocation197_spill] sm:$0xff] %v10391_v16  ;;  %v10397_v11 = vpop.permute.xlu0 %3601  ;;  %v10399_v38 = vpop.f32.mrb[153].mxu1  ;;  %3806 = vperm.xlu1 %7182, %v10375_v58   ;;  %v14126_v16 = vld [vmem:[#allocation134_spill] sm:$0xff]  ;;  %v4268_v29 = vadd.f32 1e-05, %v3372_v12 }
 0x20e   :  { %14123 = vst [vmem:[#allocation198_spill] sm:$0xff] %v10397_v11  ;;  %14124 = vst [vmem:[#allocation199_spill] sm:$0xff] %v10399_v38  ;;  %4595 = vperm.xlu0 %7183, %v7213_v23   ;;  %v7006_v53 = vpop.f32.mrb[108].mxu0  ;;  %v10407_v57 = vmul.f32 %v14126_v16, %v14126_v16  ;;  %v10413_v38 = vmul.f32 %v14128_v24, %v14128_v24  ;;  %7220 = vrsqrt.f32 %v4273_v45  ;;  %v14138_v45 = vld [vmem:[#allocation150_spill] sm:$0xff] }
 0x20f   :  { %v2425_v11 = vpop.f32.mrb[109].mxu0  ;;  %14130 = vst [vmem:[#allocation200_spill] sm:$0xff] %v10419_v56  ;;  %v10451_v62 = vmul.f32 %v14138_v45, %v14138_v45  ;;  %v10453_v56 = vmul.f32 0.0078125, %v7006_v53  ;;  %7222 = vrsqrt.f32 %v4268_v29  ;;  %v1697_v53 = vadd.f32 %v10097_v31, %v9112_v59  ;;  %v14147_v31 = vld [vmem:[#allocation151_spill] sm:$0xff] }
 0x210   :  { %14127 = vst [vmem:[#allocation134_spill] sm:$0xff] %v10407_v57  ;;  %14129 = vst [vmem:[#allocation148_spill] sm:$0xff] %v10413_v38  ;;  %v10421_v23 = vpop.f32.mrb[154].mxu1  ;;  %v10423_v16 = vpop.permute.xlu1 %3556  ;;  %v10447_v38 = vmul.f32 %v14137_v41, %v14137_v41  ;;  %v14144_v57 = vld [vmem:[#allocation142_spill] sm:$0xff] }
 0x211   :  { %14131 = vst [vmem:[#allocation201_spill] sm:$0xff] %v10423_v16  ;;  %v10425_v7 = vpop.permute.xlu0 %3611  ;;  %v10427_v34 = vpop.f32.mrb[155].mxu1  ;;  %4570 = vperm.xlu1 %7182, %v7215_v28   ;;  %v14134_v16 = vsub.f32 %v10085_v46, %v10081_v1  ;;  %v1722_v28 = vadd.f32 %v10147_v54, %v9112_v59  ;;  %14139 = vst [vmem:[#allocation138_spill] sm:$0xff] %v10451_v62  ;;  %v10455_v1 = vmul.f32 0.0078125, %v2425_v11 }
 0x212   :  { %14132 = vst [vmem:[#allocation202_spill] sm:$0xff] %v10425_v7  ;;  %14133 = vst [vmem:[#allocation203_spill] sm:$0xff] %v10427_v34  ;;  %3841 = vperm.xlu0 %7183, %v10415_v60   ;;  %v7009_v15 = vpop.f32.mrb[110].mxu0  ;;  %v7217_v34 = vpop.eup %7216  ;;  %v10473_v29 = vmul.f32 %v14144_v57, %v14144_v57 }
 0x213   :  { %v3379_v7 = vmax.f32 %v14134_v16, 0.0  ;;  %v2435_v27 = vpop.f32.mrb[111].mxu0  ;;  %14140 = vst [vmem:[#allocation150_spill] sm:$0xff] %v10455_v1  ;;  %v14143_v16 = vsub.f32 %v10031_v30, %v10027_v17  ;;  %v10475_v30 = vmul.f32 0.0078125, %v1722_v28  ;;  %v10477_v17 = vmul.f32 0.0078125, %v7009_v15 }
 0x214   :  { %v10441_v12 = vpop.f32.mrb[156].mxu1  ;;  %v10443_v24 = vpop.permute.xlu1 %3566  ;;  %14145 = vst [vmem:[#allocation142_spill] sm:$0xff] %v10473_v29  ;;  %v10487_v11 = vmul.f32 0.0078125, %v2435_v27  ;;  %v14155_v29 = vld [vmem:[#allocation145_spill] sm:$0xff] }
 0x215   :  { %14135 = vst [vmem:[#allocation204_spill] sm:$0xff] %v10441_v12  ;;  %14136 = vst [vmem:[#allocation205_spill] sm:$0xff] %v10443_v24  ;;  %v10457_v46 = vpop.permute.xlu0 %3621  ;;  %v10459_v54 = vpop.f32.mrb[157].mxu1  ;;  %3816 = vperm.xlu1 %7182, %v10434_v6   ;;  %v3374_v41 = vmax.f32 %v14143_v16, 0.0  ;;  %v4275_v12 = vadd.f32 1e-05, %v3379_v7  ;;  %v10485_v16 = vmul.f32 %v14147_v31, %v14147_v31  ;;  %v14152_v31 = vsub.f32 %v10115_v19, %v10111_v43 }
 0x216   :  { %14141 = vst [vmem:[#allocation206_spill] sm:$0xff] %v10457_v46  ;;  %14142 = vst [vmem:[#allocation207_spill] sm:$0xff] %v10459_v54  ;;  %4605 = vperm.xlu0 %7183, %v7217_v34   ;;  %v7012_v24 = vpop.f32.mrb[112].mxu0  ;;  %v7219_v54 = vpop.eup %7218 }
 0x217   :  { %v2445_v46 = vpop.f32.mrb[113].mxu0  ;;  %14148 = vst [vmem:[#allocation151_spill] sm:$0xff] %v10485_v16  ;;  %14149 = vst [vmem:[#allocation209_spill] sm:$0xff] %v10487_v11  ;;  %v4270_v57 = vadd.f32 1e-05, %v3374_v41  ;;  %7224 = vrsqrt.f32 %v4275_v12  ;;  %v3381_v27 = vmax.f32 %v14152_v31, 0.0  ;;  %v10511_v12 = vmul.f32 %v14155_v29, %v14155_v29 }
 0x218   :  { %v10479_v7 = vpop.f32.mrb[158].mxu1  ;;  %v10481_v34 = vpop.permute.xlu1 %3576  ;;  %v14158_v31 = vld [vmem:[#allocation154_spill] sm:$0xff]  ;;  %v10527_v16 = vmul.f32 0.0078125, %v2445_v46 }
 0x219   :  { %14146 = vst [vmem:[#allocation208_spill] sm:$0xff] %v10481_v34  ;;  %v10489_v45 = vpop.permute.xlu0 %3631  ;;  %v10491_v62 = vpop.f32.mrb[159].mxu1  ;;  %4580 = vperm.xlu1 %7182, %v7219_v54   ;;  %v10496_v34 = vmul.f32 0.0078125, %v1697_v53  ;;  %v1732_v54 = vadd.f32 %v10171_v51, %v9112_v59  ;;  %v10513_v53 = vmul.f32 0.0078125, %v7012_v24  ;;  %v10522_v51 = vmul.f32 %v14158_v31, %v14158_v31 }
 0x21a   :  { %14150 = vst [vmem:[#allocation210_spill] sm:$0xff] %v10489_v45  ;;  %14151 = vst [vmem:[#allocation211_spill] sm:$0xff] %v10491_v62  ;;  %3851 = vperm.xlu0 %7183, %v10475_v30   ;;  %v7015_v28 = vpop.f32.mrb[114].mxu0  ;;  %v7221_v62 = vpop.eup %7220  ;;  %7226 = vrsqrt.f32 %v4270_v57  ;;  %v14160_v45 = vsub.f32 %v10061_v55, %v10057_v26  ;;  %v4277_v29 = vadd.f32 1e-05, %v3381_v27  ;;  %v10551_v27 = vmul.f32 %v9982_v44, %v9982_v44 }
 0x21b   :  { %v2455_v1 = vpop.f32.mrb[115].mxu0  ;;  %14159 = vst [vmem:[#allocation154_spill] sm:$0xff] %v10522_v51  ;;  %14161 = vst [vmem:[#allocation215_spill] sm:$0xff] %v10527_v16  ;;  %v10533_v31 = vmul.f32 0.0078125, %v1732_v54  ;;  %v1742_v44 = vadd.f32 %v10205_v47, %v9112_v59  ;;  %v14176_v47 = vld [vmem:[#allocation156_spill] sm:$0xff] }
 0x21c   :  { %v10505_v41 = vpop.f32.mrb[160].mxu1  ;;  %v10507_v15 = vpop.permute.xlu1 %3586  ;;  %14167 = vst [vmem:[#allocation219_spill] sm:$0xff] %v10551_v27  ;;  %v10555_v57 = vmul.f32 0.0078125, %v2455_v1  ;;  %7228 = vrsqrt.f32 %v4277_v29  ;;  %v14178_v1 = vsub.f32 %v10095_v20, %v10093_v48 }
 0x21d   :  { %14153 = vst [vmem:[#allocation212_spill] sm:$0xff] %v10505_v41  ;;  %14154 = vst [vmem:[#allocation213_spill] sm:$0xff] %v10507_v15  ;;  %v10515_v43 = vpop.permute.xlu0 %3641  ;;  %v10517_v19 = vpop.f32.mrb[161].mxu1  ;;  %3826 = vperm.xlu1 %7182, %v10496_v34   ;;  %v3376_v15 = vmax.f32 %v14160_v45, 0.0 }
 0x21e   :  { %14156 = vst [vmem:[#allocation145_spill] sm:$0xff] %v10515_v43  ;;  %14157 = vst [vmem:[#allocation214_spill] sm:$0xff] %v10517_v19  ;;  %4615 = vperm.xlu0 %7183, %v7221_v62   ;;  %v7018_v24 = vpop.f32.mrb[116].mxu0  ;;  %v1707_v43 = vadd.f32 %v10127_v9, %v9112_v59  ;;  %v7223_v41 = vpop.eup %7222  ;;  %v14163_v62 = vld [vmem:[#allocation147_spill] sm:$0xff]  ;;  %v10553_v19 = vmul.f32 0.0078125, %v7015_v28 }
 0x21f   :  { %v2465_v11 = vpop.f32.mrb[117].mxu0  ;;  %v10543_v46 = vmul.f32 %v14163_v62, %v14163_v62  ;;  %v4272_v54 = vadd.f32 1e-05, %v3376_v15  ;;  %14168 = vst [vmem:[#allocation220_spill] sm:$0xff] %v10555_v57  ;;  %v3378_v15 = vmax.f32 %v14178_v1, 0.0  ;;  %v10591_v27 = vmul.f32 0.0078125, %v7018_v24 }
 0x220   :  { %v10537_v26 = vpop.f32.mrb[162].mxu1  ;;  %v10539_v55 = vpop.permute.xlu1 %3596  ;;  %v10558_v62 = vmul.f32 0.0078125, %v1707_v43  ;;  %v10593_v57 = vmul.f32 0.0078125, %v2465_v11  ;;  %v14184_v11 = vld [vmem:[#allocation153_spill] sm:$0xff] }
 0x221   :  { %14162 = vst [vmem:[#allocation216_spill] sm:$0xff] %v10539_v55  ;;  %14164 = vst [vmem:[#allocation147_spill] sm:$0xff] %v10543_v46  ;;  %v10545_v45 = vpop.permute.xlu0 %3651  ;;  %v10547_v9 = vpop.f32.mrb[163].mxu1  ;;  %4590 = vperm.xlu1 %7182, %v7223_v41   ;;  %7230 = vrsqrt.f32 %v4272_v54  ;;  %v10595_v46 = vmul.f32 0.0078125, %v1742_v44  ;;  %v10611_v24 = vmul.f32 %v14184_v11, %v14184_v11  ;;  %v14185_v44 = vld [vmem:[#allocation159_spill] sm:$0xff] }
 0x222   :  { %14165 = vst [vmem:[#allocation217_spill] sm:$0xff] %v10545_v45  ;;  %14166 = vst [vmem:[#allocation218_spill] sm:$0xff] %v10547_v9  ;;  %3861 = vperm.xlu0 %7183, %v10533_v31   ;;  %v7021_v55 = vpop.f32.mrb[118].mxu0  ;;  %v14169_v45 = vsub.f32 %v10145_v50, %v10141_v25  ;;  %v7225_v43 = vpop.eup %7224  ;;  %v14174_v50 = vld [vmem:[#allocation149_spill] sm:$0xff]  ;;  %v10615_v1 = vmul.f32 %v14185_v44, %v14185_v44  ;;  %v1752_v44 = vadd.f32 %v10233_v37, %v9112_v59 }
 0x223   :  { %v2475_v41 = vpop.f32.mrb[119].mxu0  ;;  %v10580_v25 = vmul.f32 %v14174_v50, %v14174_v50  ;;  %14179 = vst [vmem:[#allocation225_spill] sm:$0xff] %v10593_v57  ;;  %v14191_v57 = vld [vmem:[#allocation163_spill] sm:$0xff] }
 0x224   :  { %v3383_v9 = vmax.f32 %v14169_v45, 0.0  ;;  %v10569_v28 = vpop.f32.mrb[164].mxu1  ;;  %v10571_v51 = vpop.permute.xlu1 %3606  ;;  %v10584_v45 = vmul.f32 %v14176_v47, %v14176_v47  ;;  %14186 = vst [vmem:[#allocation153_spill] sm:$0xff] %v10615_v1  ;;  %v10657_v1 = vmul.f32 0.0078125, %v1752_v44  ;;  %v14204_v44 = vld [vmem:[#allocation157_spill] sm:$0xff] }
 0x225   :  { %14170 = vst [vmem:[#allocation221_spill] sm:$0xff] %v10569_v28  ;;  %14171 = vst [vmem:[#allocation222_spill] sm:$0xff] %v10571_v51  ;;  %v10573_v29 = vpop.permute.xlu0 %3661  ;;  %v10575_v16 = vpop.f32.mrb[165].mxu1  ;;  %3836 = vperm.xlu1 %7182, %v10558_v62  }
 0x226   :  { %14172 = vst [vmem:[#allocation223_spill] sm:$0xff] %v10573_v29  ;;  %14173 = vst [vmem:[#allocation224_spill] sm:$0xff] %v10575_v16  ;;  %4625 = vperm.xlu0 %7183, %v7225_v43   ;;  %v7024_v51 = vpop.f32.mrb[120].mxu0  ;;  %v4279_v29 = vadd.f32 1e-05, %v3383_v9  ;;  %v1717_v16 = vadd.f32 %v10157_v36, %v9112_v59  ;;  %v7227_v28 = vpop.eup %7226 }
 0x227   :  { %14175 = vst [vmem:[#allocation149_spill] sm:$0xff] %v10580_v25  ;;  %14177 = vst [vmem:[#allocation156_spill] sm:$0xff] %v10584_v45  ;;  %v2485_v50 = vpop.f32.mrb[121].mxu0  ;;  %v4274_v43 = vadd.f32 1e-05, %v3378_v15 }
 0x228   :  { %v10597_v47 = vpop.f32.mrb[166].mxu1  ;;  %v10599_v54 = vpop.permute.xlu1 %3616  ;;  %7232 = vrsqrt.f32 %v4279_v29  ;;  %v10620_v20 = vmul.f32 0.0078125, %v1717_v16  ;;  %v14190_v16 = vld [vmem:[#allocation164_spill] sm:$0xff] }
 0x229   :  { %14180 = vst [vmem:[#allocation226_spill] sm:$0xff] %v10597_v47  ;;  %14181 = vst [vmem:[#allocation227_spill] sm:$0xff] %v10599_v54  ;;  %v10605_v9 = vpop.permute.xlu0 %3671  ;;  %v10607_v36 = vpop.f32.mrb[167].mxu1  ;;  %4600 = vperm.xlu1 %7182, %v7227_v28   ;;  %v10617_v54 = vmul.f32 0.0078125, %v7021_v55  ;;  %v14187_v28 = vsub.f32 %v10179_v39, %v10177_v42  ;;  %v14192_v47 = vsub.f32 %v14190_v16, %v14191_v57  ;;  %7234 = vrsqrt.f32 %v4274_v43 }
 0x22a   :  { %14182 = vst [vmem:[#allocation228_spill] sm:$0xff] %v10605_v9  ;;  %14183 = vst [vmem:[#allocation229_spill] sm:$0xff] %v10607_v36  ;;  %3871 = vperm.xlu0 %7183, %v10595_v46   ;;  %v7027_v48 = vpop.f32.mrb[122].mxu0  ;;  %v10625_v36 = vmul.f32 0.0078125, %v2475_v41  ;;  %v7229_v29 = vpop.eup %7228  ;;  %v1727_v57 = vadd.f32 %v10181_v5, %v9112_v59  ;;  %v10659_v43 = vmul.f32 0.0078125, %v2485_v50  ;;  %v14205_v5 = vsub.f32 %v10218_v18, %v10199_v4 }
 0x22b   :  { %v3385_v9 = vmax.f32 %v14187_v28, 0.0  ;;  %v2495_v11 = vpop.f32.mrb[123].mxu0  ;;  %v3380_v25 = vmax.f32 %v14192_v47, 0.0  ;;  %v14195_v28 = vld [vmem:[#allocation155_spill] sm:$0xff]  ;;  %v10651_v47 = vmul.f32 0.0078125, %v7024_v51  ;;  %v7231_v42 = vpop.eup %7230 }
 0x22c   :  { %14188 = vst [vmem:[#allocation159_spill] sm:$0xff] %v10625_v36  ;;  %v10631_v15 = vpop.f32.mrb[168].mxu1  ;;  %v10633_v45 = vpop.permute.xlu1 %3626  ;;  %v10647_v55 = vmul.f32 %v14195_v28, %v14195_v28  ;;  %14199 = vst [vmem:[#allocation231_spill] sm:$0xff] %v10659_v43 }
 0x22d   :  { %14189 = vst [vmem:[#allocation230_spill] sm:$0xff] %v10633_v45  ;;  %v10640_v39 = vpop.permute.xlu0 %3681  ;;  %v10642_v41 = vpop.f32.mrb[169].mxu1  ;;  %3846 = vperm.xlu1 %7182, %v10620_v20   ;;  %v4281_v45 = vadd.f32 1e-05, %v3385_v9  ;;  %v4276_v9 = vadd.f32 1e-05, %v3380_v25 }
 0x22e   :  { %14193 = vst [vmem:[#allocation164_spill] sm:$0xff] %v10640_v39  ;;  %14194 = vst [vmem:[#allocation163_spill] sm:$0xff] %v10642_v41  ;;  %4635 = vperm.xlu0 %7183, %v7229_v29   ;;  %v7030_v37 = vpop.f32.mrb[124].mxu0  ;;  %v14197_v39 = vld [vmem:[#allocation165_spill] sm:$0xff]  ;;  %v10678_v25 = vmul.f32 0.0078125, %v1727_v57 }
 0x22f   :  { %14196 = vst [vmem:[#allocation155_spill] sm:$0xff] %v10647_v55  ;;  %v2505_v16 = vpop.f32.mrb[125].mxu0  ;;  %v10655_v41 = vmul.f32 %v14197_v39, %v14197_v39  ;;  %7236 = vrsqrt.f32 %v4281_v45  ;;  %v1762_v39 = vadd.f32 %v10265_v35, %v9112_v59 }
 0x230   :  { %v10661_v29 = vpop.f32.mrb[170].mxu1  ;;  %v10663_v28 = vpop.permute.xlu1 %3636  ;;  %7238 = vrsqrt.f32 %v4276_v9 }
 0x231   :  { %14198 = vst [vmem:[#allocation165_spill] sm:$0xff] %v10655_v41  ;;  %14200 = vst [vmem:[#allocation232_spill] sm:$0xff] %v10661_v29  ;;  %v10667_v51 = vpop.permute.xlu0 %3691  ;;  %v10669_v36 = vpop.f32.mrb[171].mxu1  ;;  %4610 = vperm.xlu1 %7182, %v7231_v42   ;;  %v10676_v29 = vmul.f32 %v14204_v44, %v14204_v44  ;;  %v10685_v42 = vmul.f32 %v10190_v49, %v10190_v49  ;;  %v10691_v41 = vmul.f32 0.0078125, %v2495_v11 }
 0x232   :  { %14201 = vst [vmem:[#allocation233_spill] sm:$0xff] %v10663_v28  ;;  %14202 = vst [vmem:[#allocation234_spill] sm:$0xff] %v10667_v51  ;;  %3881 = vperm.xlu0 %7183, %v10657_v1   ;;  %v7033_v50 = vpop.f32.mrb[126].mxu0  ;;  %v3387_v51 = vmax.f32 %v14205_v5, 0.0  ;;  %v7233_v57 = vpop.eup %7232  ;;  %v14212_v49 = vsub.f32 %v10155_v13, %v10153_v21  ;;  %v14216_v13 = vld [vmem:[#allocation161_spill] sm:$0xff] }
 0x233   :  { %14203 = vst [vmem:[#allocation235_spill] sm:$0xff] %v10669_v36  ;;  %v2515_v28 = vpop.f32.mrb[127].mxu0  ;;  %14206 = vst [vmem:[#allocation157_spill] sm:$0xff] %v10685_v42  ;;  %v10689_v36 = vmul.f32 0.0078125, %v7027_v48  ;;  %v14213_v48 = vld [vmem:[#allocation175_spill] sm:$0xff] }
 0x234   :  { %14207 = vst [vmem:[#allocation236_spill] sm:$0xff] %v10691_v41  ;;  %v10693_v44 = vpop.f32.mrb[172].mxu1  ;;  %v10695_v45 = vpop.permute.xlu1 %3646  ;;  %v3382_v35 = vmax.f32 %v14212_v49, 0.0  ;;  %v1737_v11 = vadd.f32 %v14213_v48, %v9112_v59  ;;  %v10719_v49 = vmul.f32 %v14216_v13, %v14216_v13  ;;  %v10723_v48 = vmul.f32 %v10254_v33, %v10254_v33  ;;  %v14225_v41 = vld [vmem:[#allocation118_spill] sm:$0xff] }
 0x235   :  { %14208 = vst [vmem:[#allocation237_spill] sm:$0xff] %v10693_v44  ;;  %14209 = vst [vmem:[#allocation238_spill] sm:$0xff] %v10695_v45  ;;  %v10697_v18 = vpop.permute.xlu0 %3701  ;;  %v10699_v4 = vpop.f32.mrb[173].mxu1  ;;  %3856 = vperm.xlu1 %7182, %v10678_v25   ;;  %v10711_v44 = vmul.f32 0.0078125, %v1762_v39  ;;  %v10725_v45 = vmul.f32 0.0078125, %v7030_v37 }
 0x236   :  { %14210 = vst [vmem:[#allocation239_spill] sm:$0xff] %v10697_v18  ;;  %14211 = vst [vmem:[#allocation240_spill] sm:$0xff] %v10699_v4  ;;  %4645 = vperm.xlu0 %7183, %v7233_v57   ;;  %v7036_v9 = vpop.f32.mrb[128].mxu0  ;;  %v4283_v18 = vadd.f32 1e-05, %v3387_v51  ;;  %v7235_v4 = vpop.eup %7234  ;;  %v10727_v57 = vmul.f32 0.0078125, %v2505_v16 }
 0x237   :  { %v2525_v43 = vpop.f32.mrb[129].mxu0  ;;  %14217 = vst [vmem:[#allocation161_spill] sm:$0xff] %v10719_v49  ;;  %14218 = vst [vmem:[#allocation242_spill] sm:$0xff] %v10723_v48  ;;  %v4278_v5 = vadd.f32 1e-05, %v3382_v35  ;;  %v10733_v42 = vmul.f32 0.0078125, %v1737_v11  ;;  %v1772_v35 = vadd.f32 %v10297_v63, %v9112_v59 }
 0x238   :  { %v10713_v55 = vpop.f32.mrb[174].mxu1  ;;  %v10715_v21 = vpop.permute.xlu1 %3656  ;;  %14219 = vst [vmem:[#allocation243_spill] sm:$0xff] %v10725_v45  ;;  %14220 = vst [vmem:[#allocation244_spill] sm:$0xff] %v10727_v57  ;;  %7240 = vrsqrt.f32 %v4283_v18  ;;  %v10749_v11 = vmul.f32 0.0078125, %v7033_v50  ;;  %v10759_v16 = vmul.f32 0.0078125, %v2515_v28  ;;  %v14234_v63 = vld [vmem:[#allocation170_spill] sm:$0xff] }
 0x239   :  { %14214 = vst [vmem:[#allocation175_spill] sm:$0xff] %v10713_v55  ;;  %14215 = vst [vmem:[#allocation241_spill] sm:$0xff] %v10715_v21  ;;  %v10729_v51 = vpop.permute.xlu0 %3711  ;;  %v10731_v39 = vpop.f32.mrb[175].mxu1  ;;  %4620 = vperm.xlu1 %7182, %v7235_v4   ;;  %v14224_v21 = vld [vmem:[#allocation178_spill] sm:$0xff]  ;;  %7242 = vrsqrt.f32 %v4278_v5  ;;  %v14235_v50 = vld [vmem:[#allocation169_spill] sm:$0xff] }
 0x23a   :  { %14221 = vst [vmem:[#allocation245_spill] sm:$0xff] %v10729_v51  ;;  %14222 = vst [vmem:[#allocation246_spill] sm:$0xff] %v10731_v39  ;;  %3891 = vperm.xlu0 %7183, %v10711_v44   ;;  %v7039_v13 = vpop.f32.mrb[130].mxu0  ;;  %v14226_v33 = vsub.f32 %v14224_v21, %v14225_v41  ;;  %v14227_v39 = vld [vmem:[#allocation167_spill] sm:$0xff]  ;;  %v7237_v21 = vpop.eup %7236  ;;  %v14236_v48 = vsub.f32 %v14234_v63, %v14235_v50  ;;  %v14237_v28 = vld [vmem:[#allocation180_spill] sm:$0xff] }
 0x23b   :  { %14223 = vst [vmem:[#allocation247_spill] sm:$0xff] %v10733_v42  ;;  %v2535_v51 = vpop.f32.mrb[131].mxu0  ;;  %v10745_v4 = vmul.f32 %v14227_v39, %v14227_v39  ;;  %14231 = vst [vmem:[#allocation248_spill] sm:$0xff] %v10759_v16  ;;  %v1747_v45 = vadd.f32 %v14237_v28, %v9112_v59  ;;  %v10793_v28 = vmul.f32 %v10375_v58, %v10375_v58 }
 0x23c   :  { %v3389_v55 = vmax.f32 %v14226_v33, 0.0  ;;  %v10751_v18 = vpop.f32.mrb[176].mxu1  ;;  %v10753_v41 = vpop.permute.xlu1 %3666  ;;  %v10757_v33 = vmul.f32 %v10313_v40, %v10313_v40  ;;  %v3384_v57 = vmax.f32 %v14236_v48, 0.0  ;;  %v14240_v48 = vld [vmem:[#allocation176_spill] sm:$0xff]  ;;  %v1782_v58 = vadd.f32 %v10325_v14, %v9112_v59 }
 0x23d   :  { %14228 = vst [vmem:[#allocation178_spill] sm:$0xff] %v10751_v18  ;;  %14229 = vst [vmem:[#allocation118_spill] sm:$0xff] %v10753_v41  ;;  %v10761_v37 = vpop.permute.xlu0 %3721  ;;  %v10763_v39 = vpop.f32.mrb[177].mxu1  ;;  %3866 = vperm.xlu1 %7182, %v10733_v42   ;;  %v10775_v42 = vmul.f32 0.0078125, %v1772_v35  ;;  %v10783_v50 = vmul.f32 %v14240_v48, %v14240_v48  ;;  %v10798_v48 = vmul.f32 0.0078125, %v1747_v45 }
 0x23e   :  { %14230 = vst [vmem:[#allocation167_spill] sm:$0xff] %v10757_v33  ;;  %14232 = vst [vmem:[#allocation249_spill] sm:$0xff] %v10761_v37  ;;  %4655 = vperm.xlu0 %7183, %v7237_v21   ;;  %v7042_v18 = vpop.f32.mrb[132].mxu0  ;;  %v7239_v40 = vpop.eup %7238  ;;  %v4285_v49 = vadd.f32 1e-05, %v3389_v55  ;;  %v10785_v21 = vmul.f32 0.0078125, %v7036_v9 }
 0x23f   :  { %14233 = vst [vmem:[#allocation250_spill] sm:$0xff] %v10763_v39  ;;  %v2545_v39 = vpop.f32.mrb[133].mxu0  ;;  %14241 = vst [vmem:[#allocation180_spill] sm:$0xff] %v10783_v50  ;;  %v4280_v35 = vadd.f32 1e-05, %v3384_v57  ;;  %v10795_v37 = vmul.f32 0.0078125, %v2525_v43 }
 0x240   :  { %v10777_v5 = vpop.f32.mrb[178].mxu1  ;;  %v10779_v63 = vpop.permute.xlu1 %3676  ;;  %14244 = vst [vmem:[#allocation252_spill] sm:$0xff] %v10793_v28  ;;  %7244 = vrsqrt.f32 %v4285_v49  ;;  %14246 = vst [vmem:[#allocation254_spill] sm:$0xff] %v10798_v48  ;;  %v14247_v9 = vld [vmem:[#allocation121_spill] sm:$0xff]  ;;  %v10815_v49 = vmul.f32 %v10291_v10, %v10291_v10  ;;  %v10831_v10 = vmul.f32 0.0078125, %v7039_v13 }
 0x241   :  { %14238 = vst [vmem:[#allocation170_spill] sm:$0xff] %v10777_v5  ;;  %14239 = vst [vmem:[#allocation169_spill] sm:$0xff] %v10779_v63  ;;  %v10787_v55 = vpop.permute.xlu0 %3731  ;;  %v10789_v41 = vpop.f32.mrb[179].mxu1  ;;  %4630 = vperm.xlu1 %7182, %v7239_v40   ;;  %v14248_v33 = vsub.f32 %v10287_v61, %v14247_v9  ;;  %v10819_v61 = vmul.f32 %v10434_v6, %v10434_v6  ;;  %v14253_v9 = vld [vmem:[#allocation172_spill] sm:$0xff]  ;;  %7246 = vrsqrt.f32 %v4280_v35 }
 0x242   :  { %14242 = vst [vmem:[#allocation176_spill] sm:$0xff] %v10787_v55  ;;  %14243 = vst [vmem:[#allocation251_spill] sm:$0xff] %v10789_v41  ;;  %3901 = vperm.xlu0 %7183, %v10775_v42   ;;  %v7045_v63 = vpop.f32.mrb[134].mxu0  ;;  %v7241_v45 = vpop.eup %7240 }
 0x243   :  { %14245 = vst [vmem:[#allocation253_spill] sm:$0xff] %v10795_v37  ;;  %v3391_v55 = vmax.f32 %v14248_v33, 0.0  ;;  %v2555_v41 = vpop.f32.mrb[135].mxu0  ;;  %14251 = vst [vmem:[#allocation256_spill] sm:$0xff] %v10819_v61  ;;  %v14252_v33 = vld [vmem:[#allocation174_spill] sm:$0xff]  ;;  %v10833_v37 = vmul.f32 0.0078125, %v2535_v51 }
 0x244   :  { %v10809_v57 = vpop.f32.mrb[180].mxu1  ;;  %v10811_v16 = vpop.permute.xlu1 %3686  ;;  %v14254_v40 = vsub.f32 %v14252_v33, %v14253_v9 }
 0x245   :  { %14249 = vst [vmem:[#allocation121_spill] sm:$0xff] %v10809_v57  ;;  %14250 = vst [vmem:[#allocation255_spill] sm:$0xff] %v10811_v16  ;;  %v10824_v5 = vpop.permute.xlu0 %3741  ;;  %v10826_v43 = vpop.f32.mrb[181].mxu1  ;;  %3876 = vperm.xlu1 %7182, %v10798_v48   ;;  %v14257_v16 = vld [vmem:[#allocation184_spill] sm:$0xff]  ;;  %v4287_v57 = vadd.f32 1e-05, %v3391_v55  ;;  %v10851_v55 = vmul.f32 %v10353_v32, %v10353_v32 }
 0x246   :  { %v3386_v14 = vmax.f32 %v14254_v40, 0.0  ;;  %14255 = vst [vmem:[#allocation174_spill] sm:$0xff] %v10824_v5  ;;  %14256 = vst [vmem:[#allocation172_spill] sm:$0xff] %v10826_v43  ;;  %v1757_v28 = vadd.f32 %v14257_v16, %v9112_v59  ;;  %4665 = vperm.xlu0 %7183, %v7241_v45   ;;  %v7048_v6 = vpop.f32.mrb[136].mxu0  ;;  %v7243_v33 = vpop.eup %7242  ;;  %v10835_v40 = vmul.f32 0.0078125, %v1782_v58  ;;  %v10855_v58 = vmul.f32 %v10496_v34, %v10496_v34 }
 0x247   :  { %14258 = vst [vmem:[#allocation184_spill] sm:$0xff] %v10833_v37  ;;  %v2565_v50 = vpop.f32.mrb[137].mxu0  ;;  %7248 = vrsqrt.f32 %v4287_v57  ;;  %v10867_v32 = vmul.f32 0.0078125, %v2545_v39  ;;  %v1792_v34 = vadd.f32 %v10359_v8, %v9112_v59  ;;  %v10886_v8 = vmul.f32 %v10415_v60, %v10415_v60  ;;  %v14269_v39 = vld [vmem:[#allocation181_spill] sm:$0xff] }
 0x248   :  { %v10841_v5 = vpop.f32.mrb[182].mxu1  ;;  %v10843_v16 = vpop.permute.xlu1 %3696  ;;  %14262 = vst [vmem:[#allocation260_spill] sm:$0xff] %v10855_v58  ;;  %v4282_v45 = vadd.f32 1e-05, %v3386_v14  ;;  %v10857_v9 = vmul.f32 0.0078125, %v1757_v28  ;;  %v10891_v37 = vmul.f32 0.0078125, %v7045_v63 }
 0x249   :  { %14259 = vst [vmem:[#allocation257_spill] sm:$0xff] %v10843_v16  ;;  %v10845_v13 = vpop.permute.xlu0 %3751  ;;  %v10847_v51 = vpop.f32.mrb[183].mxu1  ;;  %4640 = vperm.xlu1 %7182, %v7243_v33   ;;  %v10901_v60 = vmul.f32 0.0078125, %v2555_v41  ;;  %v10921_v41 = vmul.f32 %v10475_v30, %v10475_v30  ;;  %v10937_v30 = vmul.f32 %v10620_v20, %v10620_v20  ;;  %v14290_v20 = vld [vmem:[#allocation152_spill] sm:$0xff] }
 0x24a   :  { %14260 = vst [vmem:[#allocation258_spill] sm:$0xff] %v10845_v13  ;;  %14261 = vst [vmem:[#allocation259_spill] sm:$0xff] %v10847_v51  ;;  %3911 = vperm.xlu0 %7183, %v10835_v40   ;;  %v10860_v35 = vpop.f32.mrb[138].mxu0  ;;  %v14263_v13 = vld [vmem:[#allocation124_spill] sm:$0xff]  ;;  %v10865_v51 = vmul.f32 0.0078125, %v7042_v18  ;;  %v7245_v43 = vpop.eup %7244  ;;  %7250 = vrsqrt.f32 %v4282_v45 }
 0x24b   :  { %v14264_v16 = vsub.f32 %v10319_v52, %v14263_v13  ;;  %14265 = vst [vmem:[#allocation124_spill] sm:$0xff] %v10867_v32  ;;  %v2575_v48 = vpop.f32.mrb[139].mxu0  ;;  %v14270_v13 = vld [vmem:[#allocation133_spill] sm:$0xff]  ;;  %v10897_v52 = vmul.f32 %v10558_v62, %v10558_v62  ;;  %v7247_v32 = vpop.eup %7246 }
 0x24c   :  { %v10871_v14 = vpop.f32.mrb[184].mxu1  ;;  %v10873_v28 = vpop.permute.xlu1 %3706  ;;  %14274 = vst [vmem:[#allocation133_spill] sm:$0xff] %v10901_v60 }
 0x24d   :  { %v3393_v33 = vmax.f32 %v14264_v16, 0.0  ;;  %14266 = vst [vmem:[#allocation261_spill] sm:$0xff] %v10873_v28  ;;  %v10879_v16 = vpop.permute.xlu0 %4515  ;;  %v10881_v18 = vpop.f32.mrb[185].mxu1  ;;  %3886 = vperm.xlu1 %7182, %v10857_v9   ;;  %v14271_v28 = vsub.f32 %v14269_v39, %v14270_v13  ;;  %14272 = vst [vmem:[#allocation181_spill] sm:$0xff] %v10897_v52  ;;  %v10905_v39 = vmul.f32 0.0078125, %v1792_v34 }
 0x24e   :  { %14267 = vst [vmem:[#allocation262_spill] sm:$0xff] %v10879_v16  ;;  %14268 = vst [vmem:[#allocation263_spill] sm:$0xff] %v10881_v18  ;;  %4675 = vperm.xlu0 %7183, %v7245_v43   ;;  %v10893_v57 = vpop.f32.mrb[140].mxu0  ;;  %v14273_v18 = vld [vmem:[#allocation187_spill] sm:$0xff] }
 0x24f   :  { %v3388_v61 = vmax.f32 %v14271_v28, 0.0  ;;  %v4289_v16 = vadd.f32 1e-05, %v3393_v33  ;;  %v1767_v58 = vadd.f32 %v14273_v18, %v9112_v59  ;;  %v10903_v45 = vpop.f32.mrb[141].mxu0  ;;  %14276 = vst [vmem:[#allocation264_spill] sm:$0xff] %v10905_v39 }
 0x250   :  { %14275 = vst [vmem:[#allocation187_spill] sm:$0xff] %v10903_v45  ;;  %v10909_v43 = vpop.f32.mrb[186].mxu1  ;;  %v10911_v28 = vpop.permute.xlu1 %3716  ;;  %v14281_v45 = vld [vmem:[#allocation127_spill] sm:$0xff] }
 0x251   :  { %14277 = vst [vmem:[#allocation265_spill] sm:$0xff] %v10911_v28  ;;  %v10915_v33 = vpop.permute.xlu0 %3761  ;;  %v10917_v18 = vpop.f32.mrb[187].mxu1  ;;  %4650 = vperm.xlu1 %7182, %v7247_v32   ;;  %v4284_v34 = vadd.f32 1e-05, %v3388_v61  ;;  %7252 = vrsqrt.f32 %v4289_v16  ;;  %v10926_v63 = vmul.f32 0.0078125, %v1767_v58  ;;  %v14280_v28 = vld [vmem:[#allocation192_spill] sm:$0xff]  ;;  %v1802_v61 = vadd.f32 %v10389_v3, %v9112_v59 }
 0x252   :  { %14278 = vst [vmem:[#allocation266_spill] sm:$0xff] %v10915_v33  ;;  %14279 = vst [vmem:[#allocation267_spill] sm:$0xff] %v10917_v18  ;;  %3921 = vperm.xlu0 %7183, %v10905_v39   ;;  %v10924_v13 = vpop.f32.mrb[142].mxu0  ;;  %v14282_v62 = vsub.f32 %v14280_v28, %v14281_v45  ;;  %v10931_v33 = vmul.f32 0.0078125, %v7048_v6  ;;  %v10941_v32 = vmul.f32 0.0078125, %v2565_v50  ;;  %v7249_v60 = vpop.eup %7248  ;;  %v10963_v6 = vmul.f32 %v10533_v31, %v10533_v31 }
 0x253   :  { %v10933_v18 = vpop.f32.mrb[143].mxu0  ;;  %14284 = vst [vmem:[#allocation127_spill] sm:$0xff] %v10937_v30  ;;  %7254 = vrsqrt.f32 %v4284_v34 }
 0x254   :  { %v3395_v52 = vmax.f32 %v14282_v62, 0.0  ;;  %14283 = vst [vmem:[#allocation192_spill] sm:$0xff] %v10933_v18  ;;  %14285 = vst [vmem:[#allocation268_spill] sm:$0xff] %v10941_v32  ;;  %v10943_v16 = vpop.f32.mrb[188].mxu1  ;;  %v10945_v58 = vpop.permute.xlu1 %3726  ;;  %v14291_v62 = vld [vmem:[#allocation137_spill] sm:$0xff] }
 0x255   :  { %14286 = vst [vmem:[#allocation269_spill] sm:$0xff] %v10943_v16  ;;  %14287 = vst [vmem:[#allocation270_spill] sm:$0xff] %v10945_v58  ;;  %v10949_v45 = vpop.permute.xlu0 %4525  ;;  %v10951_v28 = vpop.f32.mrb[189].mxu1  ;;  %3896 = vperm.xlu1 %7182, %v10926_v63   ;;  %v14292_v3 = vsub.f32 %v14290_v20, %v14291_v62  ;;  %v10971_v20 = vmul.f32 %v10678_v25, %v10678_v25  ;;  %v10973_v62 = vmul.f32 0.0078125, %v1802_v61 }
 0x256   :  { %14288 = vst [vmem:[#allocation271_spill] sm:$0xff] %v10949_v45  ;;  %14289 = vst [vmem:[#allocation272_spill] sm:$0xff] %v10951_v28  ;;  %4685 = vperm.xlu0 %7183, %v7249_v60   ;;  %v10959_v58 = vpop.f32.mrb[144].mxu0  ;;  %v4291_v45 = vadd.f32 1e-05, %v3395_v52  ;;  %v14293_v28 = vld [vmem:[#allocation191_spill] sm:$0xff]  ;;  %v7251_v34 = vpop.eup %7250  ;;  %v11008_v61 = vmul.f32 %v10595_v46, %v10595_v46 }
 0x257   :  { %v3390_v50 = vmax.f32 %v14292_v3, 0.0  ;;  %v1777_v16 = vadd.f32 %v14293_v28, %v9112_v59  ;;  %v10967_v39 = vpop.f32.mrb[145].mxu0  ;;  %14295 = vst [vmem:[#allocation137_spill] sm:$0xff] %v10971_v20  ;;  %v10976_v60 = vmul.f32 0.0078125, %v10860_v35  ;;  %v10978_v3 = vmul.f32 0.0078125, %v2575_v48  ;;  %v14308_v20 = vld [vmem:[#allocation195_spill] sm:$0xff] }
 0x258   :  { %14294 = vst [vmem:[#allocation152_spill] sm:$0xff] %v10967_v39  ;;  %v10980_v31 = vpop.f32.mrb[190].mxu1  ;;  %v10982_v52 = vpop.permute.xlu1 %3736  ;;  %7256 = vrsqrt.f32 %v4291_v45  ;;  %v11011_v45 = vmul.f32 0.0078125, %v10893_v57 }
 0x259   :  { %14296 = vst [vmem:[#allocation191_spill] sm:$0xff] %v10978_v3  ;;  %14297 = vst [vmem:[#allocation273_spill] sm:$0xff] %v10980_v31  ;;  %v10984_v18 = vpop.permute.xlu0 %3771  ;;  %v10986_v28 = vpop.f32.mrb[191].mxu1  ;;  %4660 = vperm.xlu1 %7182, %v7251_v34   ;;  %v4286_v39 = vadd.f32 1e-05, %v3390_v50  ;;  %v10995_v35 = vmul.f32 0.0078125, %v1777_v16  ;;  %v1812_v50 = vadd.f32 %v10421_v23, %v9112_v59  ;;  %v1787_v3 = vadd.f32 %v14308_v20, %v9112_v59 }
 0x25a   :  { %14298 = vst [vmem:[#allocation274_spill] sm:$0xff] %v10982_v52  ;;  %14299 = vst [vmem:[#allocation275_spill] sm:$0xff] %v10984_v18  ;;  %3931 = vperm.xlu0 %7183, %v10973_v62   ;;  %v10993_v48 = vpop.f32.mrb[146].mxu0  ;;  %v14301_v18 = vsub.f32 %v10383_v2, %v10365_v22  ;;  %v14305_v22 = vld [vmem:[#allocation188_spill] sm:$0xff]  ;;  %v14306_v2 = vld [vmem:[#allocation141_spill] sm:$0xff]  ;;  %v11036_v20 = vmul.f32 0.0078125, %v10924_v13 }
 0x25b   :  { %14300 = vst [vmem:[#allocation276_spill] sm:$0xff] %v10986_v28  ;;  %v11000_v28 = vpop.f32.mrb[147].mxu0  ;;  %v7253_v25 = vpop.eup %7252  ;;  %7258 = vrsqrt.f32 %v4286_v39 }
 0x25c   :  { %v3397_v52 = vmax.f32 %v14301_v18, 0.0  ;;  %14302 = vst [vmem:[#allocation277_spill] sm:$0xff] %v11000_v28  ;;  %v11004_v34 = vpop.permute.xlu1 %3746  ;;  %v14307_v18 = vsub.f32 %v14305_v22, %v14306_v2  ;;  %v14313_v2 = vld [vmem:[#allocation134_spill] sm:$0xff] }
 0x25d   :  { %14303 = vst [vmem:[#allocation278_spill] sm:$0xff] %v11004_v34  ;;  %v11013_v16 = vpop.permute.xlu0 %4535  ;;  %3906 = vperm.xlu1 %7182, %v10995_v35   ;;  %v7255_v30 = vpop.eup %7254 }
 0x25e   :  { %14304 = vst [vmem:[#allocation279_spill] sm:$0xff] %v11013_v16  ;;  %v3392_v28 = vmax.f32 %v14307_v18, 0.0  ;;  %4695 = vperm.xlu0 %7183, %v7253_v25   ;;  %v7066_v23 = vpop.f32.mrb[148].mxu0  ;;  %v4293_v34 = vadd.f32 1e-05, %v3397_v52  ;;  %v11025_v16 = vmul.f32 0.0078125, %v1812_v50  ;;  %v11033_v25 = vmul.f32 %v10657_v1, %v10657_v1 }
 0x25f   :  { %v11023_v57 = vpop.f32.mrb[149].mxu0  ;;  %v11041_v50 = vmul.f32 0.0078125, %v1787_v3  ;;  %v14314_v18 = vsub.f32 %v10417_v0, %v14313_v2  ;;  %v14316_v1 = vld [vmem:[#allocation204_spill] sm:$0xff]  ;;  %v14319_v3 = vld [vmem:[#allocation193_spill] sm:$0xff] }
 0x260   :  { %14309 = vst [vmem:[#allocation188_spill] sm:$0xff] %v11023_v57  ;;  %v11027_v32 = vpop.permute.xlu1 %4510  ;;  %v4288_v52 = vadd.f32 1e-05, %v3392_v28  ;;  %7260 = vrsqrt.f32 %v4293_v34  ;;  %v14320_v34 = vld [vmem:[#allocation144_spill] sm:$0xff] }
 0x261   :  { %14310 = vst [vmem:[#allocation141_spill] sm:$0xff] %v11027_v32  ;;  %v11029_v39 = vpop.permute.xlu0 %3781  ;;  %4670 = vperm.xlu1 %7182, %v7255_v30   ;;  %v3399_v46 = vmax.f32 %v14314_v18, 0.0  ;;  %v14321_v0 = vsub.f32 %v14319_v3, %v14320_v34 }
 0x262   :  { %14311 = vst [vmem:[#allocation195_spill] sm:$0xff] %v11029_v39  ;;  %3941 = vperm.xlu0 %7183, %v11025_v16   ;;  %v11039_v22 = vpop.f32.mrb[150].mxu0  ;;  %v1822_v39 = vadd.f32 %v14316_v1, %v9112_v59  ;;  %v7257_v32 = vpop.eup %7256  ;;  %7262 = vrsqrt.f32 %v4288_v52  ;;  %v11064_v1 = vmul.f32 %v10711_v44, %v10711_v44 }
 0x263   :  { %14312 = vst [vmem:[#allocation280_spill] sm:$0xff] %v11039_v22  ;;  %v11046_v30 = vpop.f32.mrb[151].mxu0  ;;  %v3394_v2 = vmax.f32 %v14321_v0, 0.0  ;;  %v4295_v13 = vadd.f32 1e-05, %v3399_v46 }
 0x264   :  { %14315 = vst [vmem:[#allocation134_spill] sm:$0xff] %v11046_v30  ;;  %v11052_v28 = vpop.permute.xlu1 %3756  ;;  %v11073_v31 = vmul.f32 0.0078125, %v1822_v39  ;;  %v14328_v39 = vsub.f32 %v10453_v56, %v10447_v38  ;;  %v14335_v56 = vld [vmem:[#allocation196_spill] sm:$0xff] }
 0x265   :  { %14317 = vst [vmem:[#allocation204_spill] sm:$0xff] %v11052_v28  ;;  %v11054_v57 = vpop.permute.xlu0 %4545  ;;  %3916 = vperm.xlu1 %7182, %v11041_v50   ;;  %v14323_v28 = vld [vmem:[#allocation199_spill] sm:$0xff]  ;;  %v7259_v52 = vpop.eup %7258  ;;  %v4290_v44 = vadd.f32 1e-05, %v3394_v2  ;;  %7264 = vrsqrt.f32 %v4295_v13  ;;  %v1832_v2 = vadd.f32 %v10479_v7, %v9112_v59  ;;  %v11104_v13 = vmul.f32 %v10835_v40, %v10835_v40 }
 0x266   :  { %14318 = vst [vmem:[#allocation281_spill] sm:$0xff] %v11054_v57  ;;  %4705 = vperm.xlu0 %7183, %v7257_v32   ;;  %v11060_v18 = vpop.f32.mrb[152].mxu0  ;;  %v1797_v30 = vadd.f32 %v14323_v28, %v9112_v59  ;;  %v11069_v57 = vmul.f32 0.0078125, %v10959_v58  ;;  %v3401_v28 = vmax.f32 %v14328_v39, 0.0  ;;  %v11093_v32 = vmul.f32 %v10775_v42, %v10775_v42  ;;  %v14336_v42 = vld [vmem:[#allocation146_spill] sm:$0xff]  ;;  %v14340_v40 = vld [vmem:[#allocation203_spill] sm:$0xff] }
 0x267   :  { %14322 = vst [vmem:[#allocation193_spill] sm:$0xff] %v11060_v18  ;;  %v11071_v22 = vpop.f32.mrb[153].mxu0  ;;  %14333 = vst [vmem:[#allocation288_spill] sm:$0xff] %v11104_v13  ;;  %7266 = vrsqrt.f32 %v4290_v44  ;;  %v14337_v39 = vsub.f32 %v14335_v56, %v14336_v42  ;;  %v11122_v44 = vmul.f32 0.0078125, %v1832_v2 }
 0x268   :  { %14324 = vst [vmem:[#allocation144_spill] sm:$0xff] %v11071_v22  ;;  %v11075_v3 = vpop.permute.xlu1 %4520  ;;  %v11084_v58 = vmul.f32 0.0078125, %v1797_v30  ;;  %14330 = vst [vmem:[#allocation285_spill] sm:$0xff] %v11093_v32  ;;  %v1807_v22 = vadd.f32 %v14340_v40, %v9112_v59 }
 0x269   :  { %14325 = vst [vmem:[#allocation199_spill] sm:$0xff] %v11075_v3  ;;  %v11079_v34 = vpop.permute.xlu0 %3791  ;;  %4680 = vperm.xlu1 %7182, %v7259_v52   ;;  %v11098_v52 = vmul.f32 0.0078125, %v10993_v48  ;;  %v3396_v3 = vmax.f32 %v14337_v39, 0.0  ;;  %v11114_v48 = vmul.f32 0.0078125, %v7066_v23 }
 0x26a   :  { %14326 = vst [vmem:[#allocation282_spill] sm:$0xff] %v11079_v34  ;;  %3951 = vperm.xlu0 %7183, %v11073_v31   ;;  %v11082_v46 = vpop.f32.mrb[154].mxu0  ;;  %v7261_v30 = vpop.eup %7260 }
 0x26b   :  { %14327 = vst [vmem:[#allocation283_spill] sm:$0xff] %v11082_v46  ;;  %v11089_v0 = vpop.f32.mrb[155].mxu0  ;;  %14331 = vst [vmem:[#allocation286_spill] sm:$0xff] %v11098_v52  ;;  %v4292_v23 = vadd.f32 1e-05, %v3396_v3 }
 0x26c   :  { %14329 = vst [vmem:[#allocation284_spill] sm:$0xff] %v11089_v0  ;;  %v11100_v34 = vpop.permute.xlu1 %3766  ;;  %14338 = vst [vmem:[#allocation196_spill] sm:$0xff] %v11114_v48  ;;  %v4297_v0 = vadd.f32 1e-05, %v3401_v28  ;;  %v7263_v46 = vpop.eup %7262  ;;  %v11131_v28 = vmul.f32 0.0078125, %v1807_v22  ;;  %v14351_v22 = vld [vmem:[#allocation200_spill] sm:$0xff] }
 0x26d   :  { %14332 = vst [vmem:[#allocation287_spill] sm:$0xff] %v11100_v34  ;;  %v11106_v38 = vpop.permute.xlu0 %4555  ;;  %3926 = vperm.xlu1 %7182, %v11084_v58  }
 0x26e   :  { %14334 = vst [vmem:[#allocation289_spill] sm:$0xff] %v11106_v38  ;;  %4715 = vperm.xlu0 %7183, %v7261_v30   ;;  %v11116_v34 = vpop.f32.mrb[156].mxu0  ;;  %7268 = vrsqrt.f32 %v4297_v0  ;;  %v14344_v30 = vld [vmem:[#allocation142_spill] sm:$0xff]  ;;  %v14352_v0 = vld [vmem:[#allocation148_spill] sm:$0xff] }
 0x26f   :  { %14339 = vst [vmem:[#allocation146_spill] sm:$0xff] %v11116_v34  ;;  %v11120_v38 = vpop.f32.mrb[157].mxu0  ;;  %v14345_v40 = vsub.f32 %v10477_v17, %v14344_v30  ;;  %7270 = vrsqrt.f32 %v4292_v23 }
 0x270   :  { %14341 = vst [vmem:[#allocation203_spill] sm:$0xff] %v11120_v38  ;;  %v11126_v42 = vpop.permute.xlu1 %4530  ;;  %v14347_v38 = vld [vmem:[#allocation212_spill] sm:$0xff] }
 0x271   :  { %14342 = vst [vmem:[#allocation290_spill] sm:$0xff] %v11126_v42  ;;  %v11128_v39 = vpop.permute.xlu0 %3801  ;;  %4690 = vperm.xlu1 %7182, %v7263_v46   ;;  %v3403_v7 = vmax.f32 %v14345_v40, 0.0  ;;  %v1842_v56 = vadd.f32 %v14347_v38, %v9112_v59  ;;  %v7265_v46 = vpop.eup %7264  ;;  %v14355_v38 = vld [vmem:[#allocation207_spill] sm:$0xff] }
 0x272   :  { %14343 = vst [vmem:[#allocation291_spill] sm:$0xff] %v11128_v39  ;;  %3961 = vperm.xlu0 %7183, %v11122_v44   ;;  %v11136_v2 = vpop.f32.mrb[158].mxu0  ;;  %v14353_v39 = vsub.f32 %v14351_v22, %v14352_v0 }
 0x273   :  { %14346 = vst [vmem:[#allocation142_spill] sm:$0xff] %v11136_v2  ;;  %v11140_v34 = vpop.f32.mrb[159].mxu0  ;;  %v4299_v40 = vadd.f32 1e-05, %v3403_v7  ;;  %v1817_v2 = vadd.f32 %v14355_v38, %v9112_v59  ;;  %v11156_v13 = vmul.f32 0.0078125, %v1842_v56  ;;  %v1852_v56 = vadd.f32 %v10537_v26, %v9112_v59 }
 0x274   :  { %14348 = vst [vmem:[#allocation212_spill] sm:$0xff] %v11140_v34  ;;  %v11142_v42 = vpop.permute.xlu1 %3776  ;;  %v3398_v17 = vmax.f32 %v14353_v39, 0.0 }
 0x275   :  { %14349 = vst [vmem:[#allocation292_spill] sm:$0xff] %v11142_v42  ;;  %v11144_v3 = vpop.permute.xlu0 %4565  ;;  %3936 = vperm.xlu1 %7182, %v11131_v28   ;;  %v7267_v42 = vpop.eup %7266  ;;  %7272 = vrsqrt.f32 %v4299_v40  ;;  %v11165_v7 = vmul.f32 0.0078125, %v1817_v2  ;;  %v14364_v40 = vld [vmem:[#allocation150_spill] sm:$0xff] }
 0x276   :  { %14350 = vst [vmem:[#allocation293_spill] sm:$0xff] %v11144_v3  ;;  %4725 = vperm.xlu0 %7183, %v7265_v46   ;;  %v11150_v30 = vpop.f32.mrb[160].mxu0  ;;  %v4294_v23 = vadd.f32 1e-05, %v3398_v17  ;;  %v14360_v46 = vsub.f32 %v10513_v53, %v10511_v12  ;;  %v14365_v2 = vld [vmem:[#allocation138_spill] sm:$0xff] }
 0x277   :  { %14354 = vst [vmem:[#allocation200_spill] sm:$0xff] %v11150_v30  ;;  %v11154_v34 = vpop.f32.mrb[161].mxu0 }
 0x278   :  { %14356 = vst [vmem:[#allocation148_spill] sm:$0xff] %v11154_v34  ;;  %v11158_v3 = vpop.permute.xlu1 %4540  ;;  %v3405_v22 = vmax.f32 %v14360_v46, 0.0  ;;  %7274 = vrsqrt.f32 %v4294_v23  ;;  %v14368_v46 = vld [vmem:[#allocation211_spill] sm:$0xff]  ;;  %v11188_v34 = vmul.f32 0.0078125, %v1852_v56  ;;  %v14376_v56 = vld [vmem:[#allocation221_spill] sm:$0xff] }
 0x279   :  { %14357 = vst [vmem:[#allocation207_spill] sm:$0xff] %v11158_v3  ;;  %v11160_v48 = vpop.permute.xlu0 %3811  ;;  %4700 = vperm.xlu1 %7182, %v7267_v42   ;;  %v7269_v42 = vpop.eup %7268 }
 0x27a   :  { %14358 = vst [vmem:[#allocation294_spill] sm:$0xff] %v11160_v48  ;;  %3971 = vperm.xlu0 %7183, %v11156_v13   ;;  %v11163_v39 = vpop.f32.mrb[162].mxu0  ;;  %v14366_v48 = vsub.f32 %v14364_v40, %v14365_v2  ;;  %v4301_v53 = vadd.f32 1e-05, %v3405_v22 }
 0x27b   :  { %14359 = vst [vmem:[#allocation295_spill] sm:$0xff] %v11163_v39  ;;  %v11170_v0 = vpop.f32.mrb[163].mxu0 }
 0x27c   :  { %14361 = vst [vmem:[#allocation296_spill] sm:$0xff] %v11170_v0  ;;  %v11174_v38 = vpop.permute.xlu1 %3786  ;;  %v3400_v3 = vmax.f32 %v14366_v48, 0.0  ;;  %v1827_v0 = vadd.f32 %v14368_v46, %v9112_v59  ;;  %7276 = vrsqrt.f32 %v4301_v53  ;;  %v14379_v53 = vld [vmem:[#allocation209_spill] sm:$0xff] }
 0x27d   :  { %14362 = vst [vmem:[#allocation297_spill] sm:$0xff] %v11174_v38  ;;  %v11176_v17 = vpop.permute.xlu0 %4575  ;;  %3946 = vperm.xlu1 %7182, %v11165_v7   ;;  %v7271_v38 = vpop.eup %7270 }
 0x27e   :  { %14363 = vst [vmem:[#allocation298_spill] sm:$0xff] %v11176_v17  ;;  %4735 = vperm.xlu0 %7183, %v7269_v42   ;;  %v11182_v12 = vpop.f32.mrb[164].mxu0  ;;  %v4296_v23 = vadd.f32 1e-05, %v3400_v3  ;;  %v11197_v22 = vmul.f32 0.0078125, %v1827_v0  ;;  %v14373_v42 = vld [vmem:[#allocation147_spill] sm:$0xff] }
 0x27f   :  { %14367 = vst [vmem:[#allocation150_spill] sm:$0xff] %v11182_v12  ;;  %v11186_v26 = vpop.f32.mrb[165].mxu0  ;;  %v14374_v40 = vsub.f32 %v10553_v19, %v14373_v42  ;;  %v14380_v0 = vld [vmem:[#allocation151_spill] sm:$0xff] }
 0x280   :  { %14369 = vst [vmem:[#allocation138_spill] sm:$0xff] %v11186_v26  ;;  %v11190_v17 = vpop.permute.xlu1 %4550  ;;  %7278 = vrsqrt.f32 %v4296_v23 }
 0x281   :  { %14370 = vst [vmem:[#allocation211_spill] sm:$0xff] %v11190_v17  ;;  %v11192_v39 = vpop.permute.xlu0 %3821  ;;  %4710 = vperm.xlu1 %7182, %v7271_v38   ;;  %v3407_v2 = vmax.f32 %v14374_v40, 0.0  ;;  %v1862_v17 = vadd.f32 %v14376_v56, %v9112_v59  ;;  %v7273_v38 = vpop.eup %7272  ;;  %v14383_v40 = vld [vmem:[#allocation214_spill] sm:$0xff] }
 0x282   :  { %14371 = vst [vmem:[#allocation299_spill] sm:$0xff] %v11192_v39  ;;  %3981 = vperm.xlu0 %7183, %v11188_v34   ;;  %v11195_v48 = vpop.f32.mrb[166].mxu0  ;;  %v14381_v39 = vsub.f32 %v14379_v53, %v14380_v0 }
 0x283   :  { %14372 = vst [vmem:[#allocation300_spill] sm:$0xff] %v11195_v48  ;;  %v11202_v46 = vpop.f32.mrb[167].mxu0  ;;  %v4303_v42 = vadd.f32 1e-05, %v3407_v2  ;;  %v11220_v12 = vmul.f32 0.0078125, %v1862_v17  ;;  %v14391_v17 = vld [vmem:[#allocation226_spill] sm:$0xff] }
 0x284   :  { %14375 = vst [vmem:[#allocation147_spill] sm:$0xff] %v11202_v46  ;;  %v11206_v26 = vpop.permute.xlu1 %3796  ;;  %v3402_v48 = vmax.f32 %v14381_v39, 0.0  ;;  %v1837_v46 = vadd.f32 %v14383_v40, %v9112_v59 }
 0x285   :  { %14377 = vst [vmem:[#allocation221_spill] sm:$0xff] %v11206_v26  ;;  %v11208_v3 = vpop.permute.xlu0 %4585  ;;  %3956 = vperm.xlu1 %7182, %v11197_v22   ;;  %v7275_v26 = vpop.eup %7274  ;;  %7280 = vrsqrt.f32 %v4303_v42  ;;  %v14394_v42 = vld [vmem:[#allocation215_spill] sm:$0xff] }
 0x286   :  { %14378 = vst [vmem:[#allocation301_spill] sm:$0xff] %v11208_v3  ;;  %4745 = vperm.xlu0 %7183, %v7273_v38   ;;  %v11214_v19 = vpop.f32.mrb[168].mxu0  ;;  %v4298_v23 = vadd.f32 1e-05, %v3402_v48  ;;  %v11229_v2 = vmul.f32 0.0078125, %v1837_v46  ;;  %v14388_v38 = vld [vmem:[#allocation149_spill] sm:$0xff] }
 0x287   :  { %14382 = vst [vmem:[#allocation209_spill] sm:$0xff] %v11214_v19  ;;  %v11218_v56 = vpop.f32.mrb[169].mxu0  ;;  %v14389_v53 = vsub.f32 %v10591_v27, %v14388_v38  ;;  %v14395_v46 = vld [vmem:[#allocation154_spill] sm:$0xff] }
 0x288   :  { %14384 = vst [vmem:[#allocation151_spill] sm:$0xff] %v11218_v56  ;;  %v11222_v3 = vpop.permute.xlu1 %4560  ;;  %7282 = vrsqrt.f32 %v4298_v23 }
 0x289   :  { %14385 = vst [vmem:[#allocation214_spill] sm:$0xff] %v11222_v3  ;;  %v11224_v30 = vpop.permute.xlu0 %3831  ;;  %4720 = vperm.xlu1 %7182, %v7275_v26   ;;  %v3409_v0 = vmax.f32 %v14389_v53, 0.0  ;;  %v1872_v3 = vadd.f32 %v14391_v17, %v9112_v59  ;;  %v7277_v26 = vpop.eup %7276  ;;  %v14398_v53 = vld [vmem:[#allocation218_spill] sm:$0xff] }
 0x28a   :  { %14386 = vst [vmem:[#allocation302_spill] sm:$0xff] %v11224_v30  ;;  %3991 = vperm.xlu0 %7183, %v11220_v12   ;;  %v11227_v39 = vpop.f32.mrb[170].mxu0  ;;  %v14396_v30 = vsub.f32 %v14394_v42, %v14395_v46 }
 0x28b   :  { %14387 = vst [vmem:[#allocation303_spill] sm:$0xff] %v11227_v39  ;;  %v11234_v40 = vpop.f32.mrb[171].mxu0  ;;  %v4305_v38 = vadd.f32 1e-05, %v3409_v0  ;;  %v11252_v19 = vmul.f32 0.0078125, %v1872_v3  ;;  %v1882_v3 = vadd.f32 %v10631_v15, %v9112_v59 }
 0x28c   :  { %14390 = vst [vmem:[#allocation149_spill] sm:$0xff] %v11234_v40  ;;  %v11238_v56 = vpop.permute.xlu1 %3806  ;;  %v3404_v39 = vmax.f32 %v14396_v30, 0.0  ;;  %v1847_v40 = vadd.f32 %v14398_v53, %v9112_v59 }
 0x28d   :  { %14392 = vst [vmem:[#allocation226_spill] sm:$0xff] %v11238_v56  ;;  %v11240_v48 = vpop.permute.xlu0 %4595  ;;  %3966 = vperm.xlu1 %7182, %v11229_v2   ;;  %v7279_v56 = vpop.eup %7278  ;;  %7284 = vrsqrt.f32 %v4305_v38  ;;  %v14407_v38 = vld [vmem:[#allocation220_spill] sm:$0xff] }
 0x28e   :  { %14393 = vst [vmem:[#allocation304_spill] sm:$0xff] %v11240_v48  ;;  %4755 = vperm.xlu0 %7183, %v7277_v26   ;;  %v11246_v27 = vpop.f32.mrb[172].mxu0  ;;  %v4300_v23 = vadd.f32 1e-05, %v3404_v39  ;;  %v11261_v0 = vmul.f32 0.0078125, %v1847_v40  ;;  %v14403_v26 = vsub.f32 %v10617_v54, %v10611_v24  ;;  %v14408_v40 = vld [vmem:[#allocation219_spill] sm:$0xff] }
 0x28f   :  { %14397 = vst [vmem:[#allocation215_spill] sm:$0xff] %v11246_v27  ;;  %v11250_v17 = vpop.f32.mrb[173].mxu0 }
 0x290   :  { %14399 = vst [vmem:[#allocation154_spill] sm:$0xff] %v11250_v17  ;;  %v11254_v48 = vpop.permute.xlu1 %4570  ;;  %v3411_v42 = vmax.f32 %v14403_v26, 0.0  ;;  %7286 = vrsqrt.f32 %v4300_v23  ;;  %v14411_v26 = vld [vmem:[#allocation224_spill] sm:$0xff]  ;;  %v11284_v17 = vmul.f32 0.0078125, %v1882_v3 }
 0x291   :  { %14400 = vst [vmem:[#allocation218_spill] sm:$0xff] %v11254_v48  ;;  %v11256_v18 = vpop.permute.xlu0 %3841  ;;  %4730 = vperm.xlu1 %7182, %v7279_v56   ;;  %v7281_v56 = vpop.eup %7280  ;;  %v14419_v3 = vld [vmem:[#allocation232_spill] sm:$0xff] }
 0x292   :  { %14401 = vst [vmem:[#allocation305_spill] sm:$0xff] %v11256_v18  ;;  %4001 = vperm.xlu0 %7183, %v11252_v19   ;;  %v11259_v30 = vpop.f32.mrb[174].mxu0  ;;  %v14409_v18 = vsub.f32 %v14407_v38, %v14408_v40  ;;  %v4307_v24 = vadd.f32 1e-05, %v3411_v42 }
 0x293   :  { %14402 = vst [vmem:[#allocation306_spill] sm:$0xff] %v11259_v30  ;;  %v11266_v46 = vpop.f32.mrb[175].mxu0 }
 0x294   :  { %14404 = vst [vmem:[#allocation307_spill] sm:$0xff] %v11266_v46  ;;  %v11270_v53 = vpop.permute.xlu1 %3816  ;;  %v3406_v48 = vmax.f32 %v14409_v18, 0.0  ;;  %v1857_v46 = vadd.f32 %v14411_v26, %v9112_v59  ;;  %7288 = vrsqrt.f32 %v4307_v24  ;;  %v14422_v24 = vld [vmem:[#allocation225_spill] sm:$0xff] }
 0x295   :  { %14405 = vst [vmem:[#allocation308_spill] sm:$0xff] %v11270_v53  ;;  %v11272_v39 = vpop.permute.xlu0 %4605  ;;  %3976 = vperm.xlu1 %7182, %v11261_v0   ;;  %v7283_v53 = vpop.eup %7282 }
 0x296   :  { %14406 = vst [vmem:[#allocation309_spill] sm:$0xff] %v11272_v39  ;;  %4765 = vperm.xlu0 %7183, %v7281_v56   ;;  %v11278_v54 = vpop.f32.mrb[176].mxu0  ;;  %v4302_v23 = vadd.f32 1e-05, %v3406_v48  ;;  %v11293_v42 = vmul.f32 0.0078125, %v1857_v46  ;;  %v14416_v56 = vld [vmem:[#allocation155_spill] sm:$0xff] }
 0x297   :  { %14410 = vst [vmem:[#allocation220_spill] sm:$0xff] %v11278_v54  ;;  %v11282_v15 = vpop.f32.mrb[177].mxu0  ;;  %v14417_v38 = vsub.f32 %v10651_v47, %v14416_v56  ;;  %v14423_v46 = vld [vmem:[#allocation156_spill] sm:$0xff] }
 0x298   :  { %14412 = vst [vmem:[#allocation219_spill] sm:$0xff] %v11282_v15  ;;  %v11286_v39 = vpop.permute.xlu1 %4580  ;;  %7290 = vrsqrt.f32 %v4302_v23 }
 0x299   :  { %14413 = vst [vmem:[#allocation224_spill] sm:$0xff] %v11286_v39  ;;  %v11288_v30 = vpop.permute.xlu0 %3851  ;;  %4740 = vperm.xlu1 %7182, %v7283_v53   ;;  %v3413_v40 = vmax.f32 %v14417_v38, 0.0  ;;  %v1892_v39 = vadd.f32 %v14419_v3, %v9112_v59  ;;  %v7285_v53 = vpop.eup %7284  ;;  %v14426_v38 = vld [vmem:[#allocation229_spill] sm:$0xff] }
 0x29a   :  { %14414 = vst [vmem:[#allocation310_spill] sm:$0xff] %v11288_v30  ;;  %4011 = vperm.xlu0 %7183, %v11284_v17   ;;  %v11291_v18 = vpop.f32.mrb[178].mxu0  ;;  %v14424_v30 = vsub.f32 %v14422_v24, %v14423_v46 }
 0x29b   :  { %14415 = vst [vmem:[#allocation311_spill] sm:$0xff] %v11291_v18  ;;  %v11298_v26 = vpop.f32.mrb[179].mxu0  ;;  %v4309_v56 = vadd.f32 1e-05, %v3413_v40  ;;  %v11316_v54 = vmul.f32 0.0078125, %v1892_v39  ;;  %v14433_v39 = vld [vmem:[#allocation237_spill] sm:$0xff] }
 0x29c   :  { %14418 = vst [vmem:[#allocation155_spill] sm:$0xff] %v11298_v26  ;;  %v11302_v15 = vpop.permute.xlu1 %3826  ;;  %v3408_v18 = vmax.f32 %v14424_v30, 0.0  ;;  %v1867_v26 = vadd.f32 %v14426_v38, %v9112_v59  ;;  %v1902_v38 = vadd.f32 %v14433_v39, %v9112_v59 }
 0x29d   :  { %14420 = vst [vmem:[#allocation232_spill] sm:$0xff] %v11302_v15  ;;  %v11304_v48 = vpop.permute.xlu0 %4615  ;;  %3986 = vperm.xlu1 %7182, %v11293_v42   ;;  %v7287_v15 = vpop.eup %7286  ;;  %7292 = vrsqrt.f32 %v4309_v56  ;;  %v14436_v56 = vld [vmem:[#allocation159_spill] sm:$0xff] }
 0x29e   :  { %14421 = vst [vmem:[#allocation312_spill] sm:$0xff] %v11304_v48  ;;  %4775 = vperm.xlu0 %7183, %v7285_v53   ;;  %v11310_v47 = vpop.f32.mrb[180].mxu0  ;;  %v4304_v23 = vadd.f32 1e-05, %v3408_v18  ;;  %v11325_v40 = vmul.f32 0.0078125, %v1867_v26  ;;  %v14431_v53 = vsub.f32 %v10689_v36, %v10676_v29  ;;  %v14437_v26 = vld [vmem:[#allocation153_spill] sm:$0xff] }
 0x29f   :  { %14425 = vst [vmem:[#allocation225_spill] sm:$0xff] %v11310_v47  ;;  %v11314_v3 = vpop.f32.mrb[181].mxu0 }
 0x2a0   :  { %14427 = vst [vmem:[#allocation156_spill] sm:$0xff] %v11314_v3  ;;  %v11318_v48 = vpop.permute.xlu1 %4590  ;;  %v3415_v24 = vmax.f32 %v14431_v53, 0.0  ;;  %7294 = vrsqrt.f32 %v4304_v23  ;;  %v14440_v53 = vld [vmem:[#allocation163_spill] sm:$0xff] }
 0x2a1   :  { %14428 = vst [vmem:[#allocation229_spill] sm:$0xff] %v11318_v48  ;;  %v11320_v27 = vpop.permute.xlu0 %3861  ;;  %4750 = vperm.xlu1 %7182, %v7287_v15   ;;  %v7289_v15 = vpop.eup %7288 }
 0x2a2   :  { %14429 = vst [vmem:[#allocation313_spill] sm:$0xff] %v11320_v27  ;;  %4021 = vperm.xlu0 %7183, %v11316_v54   ;;  %v11323_v30 = vpop.f32.mrb[182].mxu0  ;;  %v14438_v27 = vsub.f32 %v14436_v56, %v14437_v26  ;;  %v4311_v29 = vadd.f32 1e-05, %v3415_v24  ;;  %v14446_v56 = vld [vmem:[#allocation161_spill] sm:$0xff] }
 0x2a3   :  { %14430 = vst [vmem:[#allocation314_spill] sm:$0xff] %v11323_v30  ;;  %v11330_v46 = vpop.f32.mrb[183].mxu0  ;;  %v11348_v30 = vmul.f32 0.0078125, %v1902_v38  ;;  %v14449_v38 = vld [vmem:[#allocation175_spill] sm:$0xff] }
 0x2a4   :  { %14432 = vst [vmem:[#allocation315_spill] sm:$0xff] %v11330_v46  ;;  %v11334_v48 = vpop.permute.xlu1 %3836  ;;  %v3410_v3 = vmax.f32 %v14438_v27, 0.0  ;;  %v1877_v46 = vadd.f32 %v14440_v53, %v9112_v59  ;;  %7296 = vrsqrt.f32 %v4311_v29  ;;  %v14452_v29 = vld [vmem:[#allocation231_spill] sm:$0xff] }
 0x2a5   :  { %14434 = vst [vmem:[#allocation237_spill] sm:$0xff] %v11334_v48  ;;  %v11336_v18 = vpop.permute.xlu0 %4625  ;;  %3996 = vperm.xlu1 %7182, %v11325_v40   ;;  %v7291_v48 = vpop.eup %7290 }
 0x2a6   :  { %14435 = vst [vmem:[#allocation316_spill] sm:$0xff] %v11336_v18  ;;  %4785 = vperm.xlu0 %7183, %v7289_v15   ;;  %v11342_v36 = vpop.f32.mrb[184].mxu0  ;;  %v4306_v23 = vadd.f32 1e-05, %v3410_v3  ;;  %v11357_v24 = vmul.f32 0.0078125, %v1877_v46  ;;  %v14445_v15 = vld [vmem:[#allocation243_spill] sm:$0xff] }
 0x2a7   :  { %14439 = vst [vmem:[#allocation159_spill] sm:$0xff] %v11342_v36  ;;  %v11346_v39 = vpop.f32.mrb[185].mxu0  ;;  %v14447_v26 = vsub.f32 %v14445_v15, %v14446_v56  ;;  %v14453_v46 = vld [vmem:[#allocation165_spill] sm:$0xff] }
 0x2a8   :  { %14441 = vst [vmem:[#allocation153_spill] sm:$0xff] %v11346_v39  ;;  %v11350_v18 = vpop.permute.xlu1 %4600  ;;  %7298 = vrsqrt.f32 %v4306_v23 }
 0x2a9   :  { %14442 = vst [vmem:[#allocation163_spill] sm:$0xff] %v11350_v18  ;;  %v11352_v47 = vpop.permute.xlu0 %3871  ;;  %4760 = vperm.xlu1 %7182, %v7291_v48   ;;  %v3417_v53 = vmax.f32 %v14447_v26, 0.0  ;;  %v1912_v18 = vadd.f32 %v14449_v38, %v9112_v59  ;;  %v7293_v48 = vpop.eup %7292  ;;  %v14456_v26 = vld [vmem:[#allocation235_spill] sm:$0xff] }
 0x2aa   :  { %14443 = vst [vmem:[#allocation317_spill] sm:$0xff] %v11352_v47  ;;  %4031 = vperm.xlu0 %7183, %v11348_v30   ;;  %v11355_v27 = vpop.f32.mrb[186].mxu0  ;;  %v14454_v47 = vsub.f32 %v14452_v29, %v14453_v46 }
 0x2ab   :  { %14444 = vst [vmem:[#allocation318_spill] sm:$0xff] %v11355_v27  ;;  %v11362_v39 = vpop.f32.mrb[187].mxu0  ;;  %v4313_v56 = vadd.f32 1e-05, %v3417_v53  ;;  %v11380_v32 = vmul.f32 0.0078125, %v1912_v18  ;;  %v14463_v18 = vld [vmem:[#allocation178_spill] sm:$0xff] }
 0x2ac   :  { %14448 = vst [vmem:[#allocation243_spill] sm:$0xff] %v11362_v39  ;;  %v11366_v36 = vpop.permute.xlu1 %3846  ;;  %v3412_v27 = vmax.f32 %v14454_v47, 0.0  ;;  %v1887_v39 = vadd.f32 %v14456_v26, %v9112_v59  ;;  %v1922_v26 = vadd.f32 %v14463_v18, %v9112_v59 }
 0x2ad   :  { %14450 = vst [vmem:[#allocation161_spill] sm:$0xff] %v11366_v36  ;;  %v11368_v3 = vpop.permute.xlu0 %4635  ;;  %4006 = vperm.xlu1 %7182, %v11357_v24   ;;  %v7295_v36 = vpop.eup %7294  ;;  %7300 = vrsqrt.f32 %v4313_v56  ;;  %v14466_v56 = vld [vmem:[#allocation236_spill] sm:$0xff] }
 0x2ae   :  { %14451 = vst [vmem:[#allocation175_spill] sm:$0xff] %v11368_v3  ;;  %4795 = vperm.xlu0 %7183, %v7293_v48   ;;  %v11374_v15 = vpop.f32.mrb[188].mxu0  ;;  %v4308_v23 = vadd.f32 1e-05, %v3412_v27  ;;  %v11389_v53 = vmul.f32 0.0078125, %v1887_v39  ;;  %v14461_v48 = vsub.f32 %v10749_v11, %v10745_v4  ;;  %v14467_v39 = vld [vmem:[#allocation157_spill] sm:$0xff] }
 0x2af   :  { %14455 = vst [vmem:[#allocation231_spill] sm:$0xff] %v11374_v15  ;;  %v11378_v38 = vpop.f32.mrb[189].mxu0  ;;  %v14469_v11 = vld [vmem:[#allocation240_spill] sm:$0xff] }
 0x2b0   :  { %14457 = vst [vmem:[#allocation165_spill] sm:$0xff] %v11378_v38  ;;  %v11382_v3 = vpop.permute.xlu1 %4610  ;;  %v3419_v29 = vmax.f32 %v14461_v48, 0.0  ;;  %7302 = vrsqrt.f32 %v4308_v23  ;;  %v1897_v48 = vadd.f32 %v14469_v11, %v9112_v59 }
 0x2b1   :  { %14458 = vst [vmem:[#allocation235_spill] sm:$0xff] %v11382_v3  ;;  %v11384_v52 = vpop.permute.xlu0 %3881  ;;  %4770 = vperm.xlu1 %7182, %v7295_v36   ;;  %v7297_v36 = vpop.eup %7296 }
 0x2b2   :  { %14459 = vst [vmem:[#allocation319_spill] sm:$0xff] %v11384_v52  ;;  %4041 = vperm.xlu0 %7183, %v11380_v32   ;;  %v11387_v47 = vpop.f32.mrb[190].mxu0  ;;  %v14468_v52 = vsub.f32 %v14466_v56, %v14467_v39  ;;  %v4315_v4 = vadd.f32 1e-05, %v3419_v29  ;;  %v11415_v23 = vmul.f32 0.0078125, %v1897_v48  ;;  %v14475_v56 = vld [vmem:[#allocation170_spill] sm:$0xff] }
 0x2b3   :  { %14460 = vst [vmem:[#allocation320_spill] sm:$0xff] %v11387_v47  ;;  %v11394_v46 = vpop.f32.mrb[191].mxu0  ;;  %v11408_v47 = vmul.f32 0.0078125, %v1922_v26  ;;  %v1932_v39 = vadd.f32 %v14475_v56, %v9112_v59 }
 0x2b4   :  { %14462 = vst [vmem:[#allocation321_spill] sm:$0xff] %v11394_v46  ;;  %v11398_v3 = vpop.permute.xlu1 %3856  ;;  %v3414_v38 = vmax.f32 %v14468_v52, 0.0  ;;  %v7299_v46 = vpop.eup %7298  ;;  %7304 = vrsqrt.f32 %v4315_v4  ;;  %v14473_v52 = vld [vmem:[#allocation180_spill] sm:$0xff] }
 0x2b5   :  { %14464 = vst [vmem:[#allocation178_spill] sm:$0xff] %v11398_v3  ;;  %v11400_v27 = vpop.permute.xlu0 %4645  ;;  %4016 = vperm.xlu1 %7182, %v11389_v53   ;;  %14470 = vst [vmem:[#allocation236_spill] sm:$0xff] %v11408_v47  ;;  %v14474_v29 = vsub.f32 %v10785_v21, %v14473_v52  ;;  %v14481_v21 = vld [vmem:[#allocation246_spill] sm:$0xff]  ;;  %v11432_v15 = vmul.f32 0.0078125, %v1932_v39 }
 0x2b6   :  { %14465 = vst [vmem:[#allocation322_spill] sm:$0xff] %v11400_v27  ;;  %4805 = vperm.xlu0 %7183, %v7297_v36   ;;  %v4310_v27 = vadd.f32 1e-05, %v3414_v38  ;;  %v14478_v38 = vld [vmem:[#allocation244_spill] sm:$0xff]  ;;  %v1907_v52 = vadd.f32 %v14481_v21, %v9112_v59 }
 0x2b7   :  { %v3421_v36 = vmax.f32 %v14474_v29, 0.0  ;;  %v7301_v11 = vpop.eup %7300  ;;  %14482 = vst [vmem:[#allocation244_spill] sm:$0xff] %v11432_v15 }
 0x2b8   :  { %v11410_v18 = vpop.permute.xlu1 %4620  ;;  %7306 = vrsqrt.f32 %v4310_v27  ;;  %v11439_v27 = vmul.f32 0.0078125, %v1907_v52 }
 0x2b9   :  { %14471 = vst [vmem:[#allocation157_spill] sm:$0xff] %v11410_v18  ;;  %v11412_v3 = vpop.permute.xlu0 %3891  ;;  %4780 = vperm.xlu1 %7182, %v7299_v46   ;;  %v14479_v46 = vld [vmem:[#allocation242_spill] sm:$0xff] }
 0x2ba   :  { %14472 = vst [vmem:[#allocation240_spill] sm:$0xff] %v11412_v3  ;;  %4051 = vperm.xlu0 %7183, %v11408_v47   ;;  %v14480_v4 = vsub.f32 %v14478_v38, %v14479_v46  ;;  %v4317_v3 = vadd.f32 1e-05, %v3421_v36  ;;  %v7303_v29 = vpop.eup %7302  ;;  %14485 = vst [vmem:[#allocation323_spill] sm:$0xff] %v11439_v27  ;;  %v14486_v36 = vsub.f32 %v10831_v10, %v10815_v49  ;;  %v14487_v38 = vld [vmem:[#allocation121_spill] sm:$0xff]  ;;  %v14493_v49 = vld [vmem:[#allocation250_spill] sm:$0xff] }
 0x2bb   :  { %v1942_v46 = vadd.f32 %v14487_v38, %v9112_v59  ;;  %v1917_v10 = vadd.f32 %v14493_v49, %v9112_v59  ;;  %v14502_v49 = vld [vmem:[#allocation252_spill] sm:$0xff] }
 0x2bc   :  { %v11422_v26 = vpop.permute.xlu1 %3866  ;;  %v3416_v48 = vmax.f32 %v14480_v4, 0.0  ;;  %7308 = vrsqrt.f32 %v4317_v3 }
 0x2bd   :  { %14476 = vst [vmem:[#allocation180_spill] sm:$0xff] %v11422_v26  ;;  %v11424_v18 = vpop.permute.xlu0 %4655  ;;  %4026 = vperm.xlu1 %7182, %v11415_v23  }
 0x2be   :  { %14477 = vst [vmem:[#allocation170_spill] sm:$0xff] %v11424_v18  ;;  %4815 = vperm.xlu0 %7183, %v7301_v11   ;;  %v4312_v18 = vadd.f32 1e-05, %v3416_v48  ;;  %v3423_v11 = vmax.f32 %v14486_v36, 0.0  ;;  %v7305_v4 = vpop.eup %7304  ;;  %v14490_v48 = vld [vmem:[#allocation248_spill] sm:$0xff] }
 0x2c0   :  { %v11434_v56 = vpop.permute.xlu1 %4630  ;;  %7310 = vrsqrt.f32 %v4312_v18  ;;  %v11463_v18 = vmul.f32 0.0078125, %v1917_v10 }
 0x2c1   :  { %14483 = vst [vmem:[#allocation242_spill] sm:$0xff] %v11434_v56  ;;  %v11436_v26 = vpop.permute.xlu0 %3901  ;;  %4790 = vperm.xlu1 %7182, %v7303_v29   ;;  %v14491_v29 = vld [vmem:[#allocation167_spill] sm:$0xff]  ;;  %v11456_v56 = vmul.f32 0.0078125, %v1942_v46 }
 0x2c2   :  { %14484 = vst [vmem:[#allocation246_spill] sm:$0xff] %v11436_v26  ;;  %4061 = vperm.xlu0 %7183, %v11432_v15   ;;  %v14492_v3 = vsub.f32 %v14490_v48, %v14491_v29  ;;  %v4319_v26 = vadd.f32 1e-05, %v3423_v11  ;;  %v7307_v36 = vpop.eup %7306  ;;  %14497 = vst [vmem:[#allocation325_spill] sm:$0xff] %v11463_v18  ;;  %v14498_v11 = vsub.f32 %v10865_v51, %v10851_v55  ;;  %v14504_v51 = vld [vmem:[#allocation251_spill] sm:$0xff] }
 0x2c3   :  { %14494 = vst [vmem:[#allocation248_spill] sm:$0xff] %v11456_v56  ;;  %v1952_v48 = vadd.f32 %v10841_v5, %v9112_v59  ;;  %v1927_v55 = vadd.f32 %v14504_v51, %v9112_v59  ;;  %v14513_v51 = vld [vmem:[#allocation256_spill] sm:$0xff]  ;;  %v14526_v15 = vld [vmem:[#allocation31_spill] sm:$0xff] }
 0x2c4   :  { %v11446_v39 = vpop.permute.xlu1 %3876  ;;  %v3418_v52 = vmax.f32 %v14492_v3, 0.0  ;;  %7312 = vrsqrt.f32 %v4319_v26 }
 0x2c5   :  { %14488 = vst [vmem:[#allocation121_spill] sm:$0xff] %v11446_v39  ;;  %v11448_v21 = vpop.permute.xlu0 %4665  ;;  %4036 = vperm.xlu1 %7182, %v11439_v27   ;;  %v14532_v27 = vld [vmem:[#allocation247_spill] sm:$0xff] }
 0x2c6   :  { %14489 = vst [vmem:[#allocation324_spill] sm:$0xff] %v11448_v21  ;;  %4825 = vperm.xlu0 %7183, %v7305_v4   ;;  %v4314_v21 = vadd.f32 1e-05, %v3418_v52  ;;  %v3425_v4 = vmax.f32 %v14498_v11, 0.0  ;;  %v7309_v29 = vpop.eup %7308  ;;  %v14501_v52 = vld [vmem:[#allocation253_spill] sm:$0xff] }
 0x2c7   :  { %v14503_v26 = vsub.f32 %v14501_v52, %v14502_v49  ;;  %v1962_v52 = vadd.f32 %v10871_v14, %v9112_v59 }
 0x2c8   :  { %v11458_v38 = vpop.permute.xlu1 %4640  ;;  %7314 = vrsqrt.f32 %v4314_v21  ;;  %v11487_v21 = vmul.f32 0.0078125, %v1927_v55 }
 0x2c9   :  { %14495 = vst [vmem:[#allocation167_spill] sm:$0xff] %v11458_v38  ;;  %v11460_v39 = vpop.permute.xlu0 %3911  ;;  %4800 = vperm.xlu1 %7182, %v7307_v36   ;;  %v3420_v10 = vmax.f32 %v14503_v26, 0.0  ;;  %v4321_v36 = vadd.f32 1e-05, %v3425_v4  ;;  %v14509_v4 = vsub.f32 %v10891_v37, %v10886_v8  ;;  %v14515_v37 = vld [vmem:[#allocation172_spill] sm:$0xff] }
 0x2ca   :  { %14496 = vst [vmem:[#allocation250_spill] sm:$0xff] %v11460_v39  ;;  %4071 = vperm.xlu0 %7183, %v11456_v56   ;;  %v7311_v11 = vpop.eup %7310  ;;  %v11480_v39 = vmul.f32 0.0078125, %v1952_v48  ;;  %14508 = vst [vmem:[#allocation328_spill] sm:$0xff] %v11487_v21  ;;  %v1937_v8 = vadd.f32 %v14515_v37, %v9112_v59  ;;  %v14521_v56 = vld [vmem:[#allocation160_spill] sm:$0xff] }
 0x2cb   :  { %7316 = vrsqrt.f32 %v4321_v36 }
 0x2cc   :  { %v11470_v46 = vpop.permute.xlu1 %3886  ;;  %14505 = vst [vmem:[#allocation253_spill] sm:$0xff] %v11480_v39  ;;  %v11531_v37 = vmul.f32 0.0078125, %v1937_v8 }
 0x2cd   :  { %14499 = vst [vmem:[#allocation326_spill] sm:$0xff] %v11470_v46  ;;  %v11472_v3 = vpop.permute.xlu0 %4675  ;;  %4046 = vperm.xlu1 %7182, %v11463_v18  }
 0x2ce   :  { %14500 = vst [vmem:[#allocation327_spill] sm:$0xff] %v11472_v3  ;;  %4835 = vperm.xlu0 %7183, %v7309_v29   ;;  %v4316_v3 = vadd.f32 1e-05, %v3420_v10  ;;  %v3427_v29 = vmax.f32 %v14509_v4, 0.0  ;;  %v7313_v49 = vpop.eup %7312  ;;  %v14512_v10 = vld [vmem:[#allocation184_spill] sm:$0xff] }
 0x2cf   :  { %v14514_v36 = vsub.f32 %v14512_v10, %v14513_v51 }
 0x2d0   :  { %v11482_v5 = vpop.permute.xlu1 %4650  ;;  %7318 = vrsqrt.f32 %v4316_v3  ;;  %v11526_v3 = vmul.f32 %v14532_v27, %v14532_v27 }
 0x2d1   :  { %14506 = vst [vmem:[#allocation252_spill] sm:$0xff] %v11482_v5  ;;  %v11484_v46 = vpop.permute.xlu0 %3921  ;;  %4810 = vperm.xlu1 %7182, %v7311_v11   ;;  %v3422_v55 = vmax.f32 %v14514_v36, 0.0  ;;  %v4323_v11 = vadd.f32 1e-05, %v3427_v29  ;;  %v14553_v29 = vld [vmem:[#allocation124_spill] sm:$0xff] }
 0x2d2   :  { %14507 = vst [vmem:[#allocation251_spill] sm:$0xff] %v11484_v46  ;;  %4081 = vperm.xlu0 %7183, %v11480_v39   ;;  %v7315_v4 = vpop.eup %7314  ;;  %v11615_v39 = vmul.f32 %v11025_v16, %v11025_v16  ;;  %v14577_v16 = vld [vmem:[#allocation269_spill] sm:$0xff] }
 0x2d3   :  { %v4318_v10 = vadd.f32 1e-05, %v3422_v55  ;;  %7320 = vrsqrt.f32 %v4323_v11 }
 0x2d4   :  { %v11494_v48 = vpop.permute.xlu1 %3896 }
 0x2d5   :  { %14510 = vst [vmem:[#allocation329_spill] sm:$0xff] %v11494_v48  ;;  %v11496_v26 = vpop.permute.xlu0 %4685  ;;  %4056 = vperm.xlu1 %7182, %v11487_v21   ;;  %v11506_v48 = vmul.f32 0.0078125, %v1962_v52  ;;  %v14522_v21 = vld [vmem:[#allocation29_spill] sm:$0xff]  ;;  %v14538_v52 = vld [vmem:[#allocation254_spill] sm:$0xff]  ;;  %v7317_v8 = vpop.eup %7316  ;;  %7322 = vrsqrt.f32 %v4318_v10  ;;  %v11578_v10 = vmul.f32 %v10995_v35, %v10995_v35 }
 0x2d6   :  { %14511 = vst [vmem:[#allocation330_spill] sm:$0xff] %v11496_v26  ;;  %4845 = vperm.xlu0 %7183, %v7313_v49   ;;  %v11540_v27 = vmul.f32 %v14538_v52, %v14538_v52  ;;  %v1972_v49 = vadd.f32 %v10909_v43, %v9112_v59  ;;  %v11570_v52 = vmul.f32 %v10926_v63, %v10926_v63  ;;  %v14587_v63 = vld [vmem:[#allocation181_spill] sm:$0xff] }
 0x2d7   :  { %v1982_v26 = vadd.f32 %v14577_v16, %v9112_v59  ;;  %v11651_v16 = vmul.f32 %v11122_v44, %v11122_v44  ;;  %v14592_v44 = vsub.f32 %v11011_v45, %v11008_v61  ;;  %v11681_v61 = vmul.f32 %v11229_v2, %v11229_v2 }
 0x2d8   :  { %v11508_v38 = vpop.permute.xlu1 %4660  ;;  %v11685_v45 = vmul.f32 %v11188_v34, %v11188_v34  ;;  %v11699_v2 = vmul.f32 %v11220_v12, %v11220_v12 }
 0x2d9   :  { %14518 = vst [vmem:[#allocation184_spill] sm:$0xff] %v11508_v38  ;;  %v11518_v18 = vpop.permute.xlu0 %3931  ;;  %4820 = vperm.xlu1 %7182, %v7315_v4   ;;  %v14535_v4 = vsub.f32 %v10931_v33, %v10921_v41  ;;  %v11552_v41 = vmul.f32 %v10857_v9, %v10857_v9  ;;  %v14554_v9 = vld [vmem:[#allocation260_spill] sm:$0xff] }
 0x2da   :  { %14527 = vst [vmem:[#allocation256_spill] sm:$0xff] %v11518_v18  ;;  %4091 = vperm.xlu0 %7183, %v11506_v48   ;;  %v14555_v51 = vsub.f32 %v14553_v29, %v14554_v9  ;;  %v7319_v47 = vpop.eup %7318  ;;  %v14559_v33 = vld [vmem:[#allocation264_spill] sm:$0xff]  ;;  %v11586_v9 = vmul.f32 0.0078125, %v1972_v49  ;;  %v11606_v49 = vmul.f32 %v11084_v58, %v11084_v58  ;;  %v14572_v58 = vsub.f32 %v10976_v60, %v10963_v6 }
 0x2db   :  { %v3429_v46 = vmax.f32 %v14535_v4, 0.0  ;;  %v14558_v4 = vld [vmem:[#allocation259_spill] sm:$0xff]  ;;  %v11636_v6 = vmul.f32 %v11073_v31, %v11073_v31  ;;  %v11640_v60 = vmul.f32 %v11165_v7, %v11165_v7  ;;  %v14586_v7 = vld [vmem:[#allocation133_spill] sm:$0xff] }
 0x2dc   :  { %v11546_v11 = vpop.permute.xlu1 %3906  ;;  %v3424_v36 = vmax.f32 %v14555_v51, 0.0  ;;  %v1947_v55 = vadd.f32 %v14558_v4, %v9112_v59  ;;  %v11582_v51 = vmul.f32 %v14559_v33, %v14559_v33  ;;  %v11596_v4 = vmul.f32 %v10973_v62, %v10973_v62 }
 0x2dd   :  { %14541 = vst [vmem:[#allocation172_spill] sm:$0xff] %v11546_v11  ;;  %v11558_v38 = vpop.permute.xlu0 %4695  ;;  %4066 = vperm.xlu1 %7182, %v11531_v37   ;;  %v4325_v5 = vadd.f32 1e-05, %v3429_v46  ;;  %v11592_v46 = vmul.f32 %v11041_v50, %v11041_v50  ;;  %v14588_v50 = vsub.f32 %v14586_v7, %v14587_v63  ;;  %v11671_v63 = vmul.f32 %v11156_v13, %v11156_v13  ;;  %v14608_v7 = vld [vmem:[#allocation273_spill] sm:$0xff] }
 0x2de   :  { %14548 = vst [vmem:[#allocation160_spill] sm:$0xff] %v11558_v38  ;;  %4855 = vperm.xlu0 %7183, %v7317_v8   ;;  %v4320_v11 = vadd.f32 1e-05, %v3424_v36  ;;  %v11617_v38 = vmul.f32 0.0078125, %v1947_v55  ;;  %v7321_v55 = vpop.eup %7320 }
 0x2df   :  { %7324 = vrsqrt.f32 %v4325_v5  ;;  %v3426_v35 = vmax.f32 %v14588_v50, 0.0  ;;  %v7323_v18 = vpop.eup %7322 }
 0x2e0   :  { %v11588_v14 = vpop.permute.xlu1 %4670  ;;  %7326 = vrsqrt.f32 %v4320_v11  ;;  %v11667_v11 = vmul.f32 %v11197_v22, %v11197_v22 }
 0x2e1   :  { %14562 = vst [vmem:[#allocation29_spill] sm:$0xff] %v11588_v14  ;;  %v11602_v43 = vpop.permute.xlu0 %3941  ;;  %4830 = vperm.xlu1 %7182, %v7319_v47   ;;  %v3431_v47 = vmax.f32 %v14572_v58, 0.0  ;;  %v11624_v14 = vmul.f32 %v11131_v28, %v11131_v28  ;;  %v3433_v58 = vmax.f32 %v14592_v44, 0.0  ;;  %v4322_v50 = vadd.f32 1e-05, %v3426_v35 }
 0x2e2   :  { %14567 = vst [vmem:[#allocation31_spill] sm:$0xff] %v11602_v43  ;;  %4101 = vperm.xlu0 %7183, %v11586_v9  }
 0x2e3   :  { %v4327_v43 = vadd.f32 1e-05, %v3431_v47  ;;  %v11675_v47 = vmul.f32 0.0078125, %v1982_v26  ;;  %v11695_v26 = vmul.f32 %v11261_v0, %v11261_v0  ;;  %v4329_v36 = vadd.f32 1e-05, %v3433_v58 }
 0x2e4   :  { %v11632_v5 = vpop.permute.xlu1 %3916  ;;  %v11711_v0 = vmul.f32 %v11293_v42, %v11293_v42  ;;  %v14630_v42 = vld [vmem:[#allocation187_spill] sm:$0xff] }
 0x2e5   :  { %14578 = vst [vmem:[#allocation247_spill] sm:$0xff] %v11632_v5  ;;  %v11646_v29 = vpop.permute.xlu0 %4705  ;;  %4076 = vperm.xlu1 %7182, %v11617_v38   ;;  %7328 = vrsqrt.f32 %v4327_v43  ;;  %v1992_v43 = vadd.f32 %v14608_v7, %v9112_v59  ;;  %v11738_v7 = vmul.f32 %v11284_v17, %v11284_v17 }
 0x2e6   :  { %14583 = vst [vmem:[#allocation254_spill] sm:$0xff] %v11646_v29  ;;  %4865 = vperm.xlu0 %7183, %v7321_v55   ;;  %v14591_v29 = vld [vmem:[#allocation263_spill] sm:$0xff]  ;;  %7330 = vrsqrt.f32 %v4322_v50  ;;  %v11752_v50 = vmul.f32 %v11357_v24, %v11357_v24 }
 0x2e7   :  { %v1957_v62 = vadd.f32 %v14591_v29, %v9112_v59  ;;  %v14618_v55 = vld [vmem:[#allocation267_spill] sm:$0xff]  ;;  %7332 = vrsqrt.f32 %v4329_v36  ;;  %v14634_v29 = vld [vmem:[#allocation286_spill] sm:$0xff] }
 0x2e8   :  { %v11677_v33 = vpop.permute.xlu1 %4680  ;;  %v1967_v13 = vadd.f32 %v14618_v55, %v9112_v59  ;;  %v11794_v55 = vmul.f32 %v11380_v32, %v11380_v32  ;;  %v14648_v32 = vld [vmem:[#allocation192_spill] sm:$0xff] }
 0x2e9   :  { %14595 = vst [vmem:[#allocation124_spill] sm:$0xff] %v11677_v33  ;;  %v11691_v28 = vpop.permute.xlu0 %3951  ;;  %4840 = vperm.xlu1 %7182, %v7323_v18   ;;  %v11704_v44 = vmul.f32 0.0078125, %v1957_v62  ;;  %v14603_v18 = vsub.f32 %v11036_v20, %v11033_v25  ;;  %v7325_v58 = vpop.eup %7324  ;;  %v11723_v25 = vmul.f32 %v11252_v19, %v11252_v19  ;;  %v11727_v20 = vmul.f32 %v11325_v40, %v11325_v40  ;;  %v14615_v19 = vld [vmem:[#allocation268_spill] sm:$0xff] }
 0x2ea   :  { %14600 = vst [vmem:[#allocation260_spill] sm:$0xff] %v11691_v28  ;;  %4111 = vperm.xlu0 %7183, %v11675_v47   ;;  %v7327_v17 = vpop.eup %7326  ;;  %v3050_v31 = vmul.f32 0.0078125, %v14648_v32 }
 0x2eb   :  { %v3435_v28 = vmax.f32 %v14603_v18, 0.0 }
 0x2ec   :  { %v11719_v62 = vpop.permute.xlu1 %3926 }
 0x2ed   :  { %14609 = vst [vmem:[#allocation259_spill] sm:$0xff] %v11719_v62  ;;  %v11733_v22 = vpop.permute.xlu0 %4715  ;;  %4086 = vperm.xlu1 %7182, %v11704_v44   ;;  %v14616_v62 = vld [vmem:[#allocation127_spill] sm:$0xff]  ;;  %v4331_v18 = vadd.f32 1e-05, %v3435_v28 }
 0x2ee   :  { %14614 = vst [vmem:[#allocation264_spill] sm:$0xff] %v11733_v22  ;;  %v14617_v8 = vsub.f32 %v14615_v19, %v14616_v62  ;;  %4875 = vperm.xlu0 %7183, %v7325_v58   ;;  %v14621_v22 = vsub.f32 %v11069_v57, %v11064_v1  ;;  %v11760_v19 = vmul.f32 0.0078125, %v1992_v43  ;;  %v11766_v57 = vmul.f32 %v11389_v53, %v11389_v53  ;;  %v14635_v1 = vld [vmem:[#allocation285_spill] sm:$0xff]  ;;  %v14650_v58 = vld [vmem:[#allocation191_spill] sm:$0xff] }
 0x2ef   :  { %v11777_v43 = vmul.f32 %v11348_v30, %v11348_v30  ;;  %v11781_v62 = vmul.f32 0.0078125, %v1967_v13  ;;  %7334 = vrsqrt.f32 %v4331_v18  ;;  %v11790_v30 = vmul.f32 %v11415_v23, %v11415_v23 }
 0x2f0   :  { %v3428_v40 = vmax.f32 %v14617_v8, 0.0  ;;  %v3437_v34 = vmax.f32 %v14621_v22, 0.0  ;;  %v11756_v8 = vmul.f32 %v11316_v54, %v11316_v54  ;;  %v11762_v36 = vpop.permute.xlu1 %4690  ;;  %14625 = vst [vmem:[#allocation133_spill] sm:$0xff] %v11766_v57  ;;  %v3048_v54 = vmul.f32 0.0078125, %v14630_v42 }
 0x2f1   :  { %14624 = vst [vmem:[#allocation269_spill] sm:$0xff] %v11762_v36  ;;  %v11773_v12 = vpop.permute.xlu0 %3961  ;;  %4850 = vperm.xlu1 %7182, %v7327_v17   ;;  %v14636_v42 = vsub.f32 %v14634_v29, %v14635_v1  ;;  %14638 = vst [vmem:[#allocation263_spill] sm:$0xff] %v11790_v30  ;;  %v7329_v29 = vpop.eup %7328  ;;  %v14644_v1 = vld [vmem:[#allocation323_spill] sm:$0xff]  ;;  %v14654_v36 = vld [vmem:[#allocation193_spill] sm:$0xff] }
 0x2f2   :  { %14631 = vst [vmem:[#allocation181_spill] sm:$0xff] %v11773_v12  ;;  %v4324_v53 = vadd.f32 1e-05, %v3428_v40  ;;  %4121 = vperm.xlu0 %7183, %v11760_v19   ;;  %v4333_v22 = vadd.f32 1e-05, %v3437_v34  ;;  %v14637_v12 = vld [vmem:[#allocation280_spill] sm:$0xff]  ;;  %v3304_v33 = vsub.f32 %v3048_v54, %v11526_v3 }
 0x2f3   :  { %v3439_v28 = vmax.f32 %v14636_v42, 0.0  ;;  %v3059_v17 = vmul.f32 0.0078125, %v14637_v12  ;;  %v11804_v12 = vmul.f32 %v14644_v1, %v14644_v1  ;;  %v14651_v34 = vld [vmem:[#allocation137_spill] sm:$0xff]  ;;  %v14653_v40 = vld [vmem:[#allocation272_spill] sm:$0xff]  ;;  %v3061_v18 = vmul.f32 0.0078125, %v14654_v36  ;;  %v14672_v36 = vld [vmem:[#allocation283_spill] sm:$0xff] }
 0x2f4   :  { %v11800_v24 = vpop.permute.xlu1 %3936  ;;  %7336 = vrsqrt.f32 %v4324_v53  ;;  %v1977_v1 = vadd.f32 %v14653_v40, %v9112_v59  ;;  %v14655_v3 = vld [vmem:[#allocation196_spill] sm:$0xff]  ;;  %v3432_v57 = vmax.f32 %v3304_v33, 0.0 }
 0x2f5   :  { %14643 = vst [vmem:[#allocation273_spill] sm:$0xff] %v11800_v24  ;;  %14645 = vst [vmem:[#allocation268_spill] sm:$0xff] %v11804_v12  ;;  %v11810_v5 = vpop.permute.xlu0 %4725  ;;  %4096 = vperm.xlu1 %7182, %v11781_v62   ;;  %v14652_v24 = vsub.f32 %v14650_v58, %v14651_v34  ;;  %7338 = vrsqrt.f32 %v4333_v22  ;;  %v4335_v35 = vadd.f32 1e-05, %v3439_v28  ;;  %v14656_v54 = vld [vmem:[#allocation288_spill] sm:$0xff]  ;;  %v3315_v23 = vsub.f32 %v3059_v17, %v11582_v51  ;;  %v14659_v58 = vld [vmem:[#allocation325_spill] sm:$0xff] }
 0x2f6   :  { %14649 = vst [vmem:[#allocation127_spill] sm:$0xff] %v11810_v5  ;;  %4885 = vperm.xlu0 %7183, %v7329_v29   ;;  %v14657_v32 = vsub.f32 %v14655_v3, %v14656_v54  ;;  %v7331_v5 = vpop.eup %7330  ;;  %v14658_v53 = vld [vmem:[#allocation236_spill] sm:$0xff]  ;;  %v11846_v40 = vmul.f32 0.0078125, %v1977_v1  ;;  %v3317_v28 = vsub.f32 %v3061_v18, %v11596_v4  ;;  %v14681_v18 = vld [vmem:[#allocation262_spill] sm:$0xff] }
 0x2f7   :  { %v3430_v13 = vmax.f32 %v14652_v24, 0.0  ;;  %v11825_v12 = vmul.f32 %v14658_v53, %v14658_v53  ;;  %v11829_v24 = vmul.f32 %v14659_v58, %v14659_v58  ;;  %v7333_v3 = vpop.eup %7332  ;;  %v14666_v54 = vld [vmem:[#allocation244_spill] sm:$0xff]  ;;  %v3306_v58 = vsub.f32 %v3050_v31, %v11540_v27 }
 0x2f8   :  { %v3441_v42 = vmax.f32 %v14657_v32, 0.0  ;;  %v11835_v30 = vpop.permute.xlu1 %4700  ;;  %v11839_v51 = vmul.f32 %v14666_v54, %v14666_v54  ;;  %v14671_v29 = vld [vmem:[#allocation152_spill] sm:$0xff]  ;;  %7340 = vrsqrt.f32 %v4335_v35 }
 0x2f9   :  { %14660 = vst [vmem:[#allocation267_spill] sm:$0xff] %v11829_v24  ;;  %14665 = vst [vmem:[#allocation187_spill] sm:$0xff] %v11835_v30  ;;  %v11844_v24 = vpop.permute.xlu0 %3971  ;;  %4860 = vperm.xlu1 %7182, %v7331_v5   ;;  %v4326_v34 = vadd.f32 1e-05, %v3430_v13  ;;  %v3052_v22 = vmul.f32 0.0078125, %v14671_v29  ;;  %v3443_v30 = vmax.f32 %v3315_v23, 0.0  ;;  %v7335_v23 = vpop.eup %7334 }
 0x2fa   :  { %14667 = vst [vmem:[#allocation286_spill] sm:$0xff] %v11839_v51  ;;  %14670 = vst [vmem:[#allocation285_spill] sm:$0xff] %v11844_v24  ;;  %4895 = vperm.xlu0 %7183, %v7333_v3   ;;  %v4337_v54 = vadd.f32 1e-05, %v3441_v42  ;;  %v3063_v51 = vmul.f32 0.0078125, %v14672_v36  ;;  %v14673_v53 = vld [vmem:[#allocation328_spill] sm:$0xff] }
 0x2fb   :  { %v11853_v33 = vmul.f32 %v14673_v53, %v14673_v53  ;;  %v14675_v27 = vld [vmem:[#allocation248_spill] sm:$0xff]  ;;  %v14678_v29 = vld [vmem:[#allocation27_spill] sm:$0xff]  ;;  %v14679_v24 = vld [vmem:[#allocation158_spill] sm:$0xff]  ;;  %v3434_v32 = vmax.f32 %v3306_v58, 0.0  ;;  %7342 = vrsqrt.f32 %v4326_v34  ;;  %v4339_v17 = vadd.f32 1e-05, %v3443_v30 }
 0x2fc   :  { %v11857_v5 = vmul.f32 %v14675_v27, %v14675_v27  ;;  %v14680_v4 = vsub.f32 %v14678_v29, %v14679_v24  ;;  %v11865_v42 = vpop.permute.xlu1 %3946  ;;  %v11872_v53 = vld [vmem:[%s13303_s4] ss:$0 sm:$0xff]  ;;  %v4328_v27 = vadd.f32 1e-05, %v3432_v57  ;;  %v3308_v24 = vsub.f32 %v3052_v22, %v11552_v41  ;;  %v14687_v29 = vld [vmem:[#allocation276_spill] sm:$0xff]  ;;  %v14688_v57 = vld [vmem:[#allocation146_spill] sm:$0xff] }
 0x2fd   :  { %14674 = vst [vmem:[#allocation280_spill] sm:$0xff] %v11853_v33  ;;  %14682 = vst [vmem:[#allocation323_spill] sm:$0xff] %v11865_v42  ;;  %v14685_v33 = vld [vmem:[#allocation277_spill] sm:$0xff]  ;;  %v11875_v31 = vpop.permute.xlu0 %4735  ;;  %4106 = vperm.xlu1 %7182, %v11846_v40   ;;  %7344 = vrsqrt.f32 %v4337_v54  ;;  %v3319_v42 = vsub.f32 %v3063_v51, %v11615_v39  ;;  %v3065_v58 = vmul.f32 0.0078125, %v14688_v57  ;;  %v14691_v22 = vld [vmem:[#allocation60_spill] sm:$0xff]  ;;  %v14693_v51 = vsub.f32 %v14522_v21, %v14521_v56 }
 0x2fe   :  { %v5149_v35 = vmul.f32 %v14681_v18, %v14680_v4  ;;  %v3054_v1 = vmul.f32 0.0078125, %v14685_v33  ;;  %14686 = vst [vmem:[#allocation192_spill] sm:$0xff] %v11875_v31  ;;  %v1987_v4 = vadd.f32 %v14687_v29, %v9112_v59  ;;  %v3445_v18 = vmax.f32 %v3317_v28, 0.0  ;;  %4905 = vperm.xlu0 %7183, %v7335_v23   ;;  %v7337_v13 = vpop.eup %7336  ;;  %v14689_v36 = vld [vmem:[#allocation253_spill] sm:$0xff]  ;;  %v14694_v23 = vld [vmem:[#allocation271_spill] sm:$0xff]  ;;  %v14696_v3 = vld [vmem:[#allocation188_spill] sm:$0xff] }
 0x2ff   :  { %v11885_v33 = vmul.f32 %v11531_v37, %v11531_v37  ;;  %v11889_v34 = vmul.f32 %v14689_v36, %v14689_v36  ;;  %v7339_v30 = vpop.eup %7338  ;;  %v11899_v39 = vld [vmem:[%s13304_s5] ss:$0 sm:$0xff]  ;;  %7346 = vrsqrt.f32 %v4328_v27  ;;  %v4330_v37 = vadd.f32 1e-05, %v3434_v32  ;;  %v14697_v41 = vld [vmem:[#allocation142_spill] sm:$0xff] }
 0x300   :  { %v5284_v28 = vmul.f32 %v11872_v53, %v5149_v35  ;;  %v11894_v54 = vpop.permute.xlu1 %4710  ;;  %v5151_v36 = vmul.f32 %v14694_v23, %v14693_v51  ;;  %v3310_v29 = vsub.f32 %v3054_v1, %v11570_v52  ;;  %v3436_v35 = vmax.f32 %v3308_v24, 0.0  ;;  %v14703_v23 = vld [vmem:[#allocation200_spill] sm:$0xff] }
 0x301   :  { %14692 = vst [vmem:[#allocation191_spill] sm:$0xff] %v11894_v54  ;;  %v11906_v57 = vpop.permute.xlu0 %3981  ;;  %4870 = vperm.xlu1 %7182, %v7337_v13   ;;  %v11908_v59 = vmul.f32 0.0078125, %v1987_v4  ;;  %v3056_v54 = vmul.f32 0.0078125, %v14696_v3  ;;  %v4341_v31 = vadd.f32 1e-05, %v3445_v18  ;;  %7348 = vrsqrt.f32 %v4339_v17 }
 0x302   :  { %14695 = vst [vmem:[#allocation137_spill] sm:$0xff] %v11906_v57  ;;  %4915 = vperm.xlu0 %7183, %v7339_v30   ;;  %v3447_v27 = vmax.f32 %v3319_v42, 0.0  ;;  %v3321_v32 = vsub.f32 %v3065_v58, %v11636_v6  ;;  %v3067_v56 = vmul.f32 0.0078125, %v14697_v41  ;;  %v11915_v21 = vmul.f32 %v11617_v38, %v11617_v38  ;;  %v7341_v42 = vpop.eup %7340  ;;  %v14702_v41 = vld [vmem:[#allocation134_spill] sm:$0xff]  ;;  %v14711_v57 = vld [vmem:[#allocation144_spill] sm:$0xff] }
 0x303   :  { %v11919_v52 = vmul.f32 %v11506_v48, %v11506_v48  ;;  %v11924_v3 = vadd.f32 %v11899_v39, %v5284_v28  ;;  %v11930_v6 = vmul.f32 %v11704_v44, %v11704_v44  ;;  %7350 = vrsqrt.f32 %v4330_v37 }
 0x304   :  { %v11926_v17 = vpop.permute.xlu1 %3956  ;;  %v5286_v38 = vmul.f32 %v11872_v53, %v5151_v36  ;;  %v3438_v4 = vmax.f32 %v3310_v29, 0.0  ;;  %v4332_v48 = vadd.f32 1e-05, %v3436_v35  ;;  %v3312_v58 = vsub.f32 %v3056_v54, %v11578_v10  ;;  %v14736_v54 = vld [vmem:[#allocation203_spill] sm:$0xff] }
 0x305   :  { %14700 = vst [vmem:[#allocation272_spill] sm:$0xff] %v11926_v17  ;;  %v11933_v18 = vpop.permute.xlu0 %4745  ;;  %4116 = vperm.xlu1 %7182, %v11908_v59   ;;  %v3058_v28 = vmul.f32 0.0078125, %v14702_v41  ;;  %7352 = vrsqrt.f32 %v4341_v31  ;;  %v4343_v30 = vadd.f32 1e-05, %v3447_v27  ;;  %v3449_v51 = vmax.f32 %v3321_v32, 0.0  ;;  %v7343_v24 = vpop.eup %7342  ;;  %v14707_v41 = vld [vmem:[#allocation64_spill] sm:$0xff] }
 0x306   :  { %14701 = vst [vmem:[#allocation193_spill] sm:$0xff] %v11933_v18  ;;  %4925 = vperm.xlu0 %7183, %v7341_v42   ;;  %v3323_v44 = vsub.f32 %v3067_v56, %v11651_v16  ;;  %v3069_v37 = vmul.f32 0.0078125, %v14703_v23  ;;  %v11943_v29 = vmul.f32 %v11586_v9, %v11586_v9  ;;  %v11954_v23 = vadd.f32 %v11899_v39, %v5286_v38  ;;  %v14713_v31 = vld [vmem:[#allocation295_spill] sm:$0xff] }
 0x307   :  { %v7345_v27 = vpop.eup %7344  ;;  %v4334_v36 = vadd.f32 1e-05, %v3438_v4  ;;  %v3060_v13 = vmul.f32 0.0078125, %v14711_v57  ;;  %7354 = vrsqrt.f32 %v4332_v48  ;;  %v3440_v10 = vmax.f32 %v3312_v58, 0.0  ;;  %v14716_v58 = vld [vmem:[#allocation279_spill] sm:$0xff] }
 0x308   :  { %v11949_v42 = vpop.permute.xlu1 %4720  ;;  %v3314_v35 = vsub.f32 %v3058_v28, %v11592_v46  ;;  %v3071_v17 = vmul.f32 0.0078125, %v14713_v31  ;;  %7356 = vrsqrt.f32 %v4343_v30  ;;  %v3451_v56 = vmax.f32 %v3323_v44, 0.0  ;;  %v14733_v44 = vld [vmem:[#allocation171_spill] sm:$0xff] }
 0x309   :  { %14708 = vst [vmem:[#allocation196_spill] sm:$0xff] %v11949_v42  ;;  %v11957_v9 = vpop.permute.xlu0 %3991  ;;  %4880 = vperm.xlu1 %7182, %v7343_v24   ;;  %v7347_v1 = vpop.eup %7346  ;;  %v4345_v42 = vadd.f32 1e-05, %v3449_v51  ;;  %v3325_v38 = vsub.f32 %v3069_v37, %v11671_v63  ;;  %v11964_v4 = vmul.f32 %v11781_v62, %v11781_v62  ;;  %v11968_v57 = vmul.f32 %v11675_v47, %v11675_v47  ;;  %v14714_v24 = vld [vmem:[#allocation166_spill] sm:$0xff]  ;;  %v14732_v62 = vld [vmem:[#allocation33_spill] sm:$0xff] }
 0x30a   :  { %14712 = vst [vmem:[#allocation288_spill] sm:$0xff] %v11957_v9  ;;  %4935 = vperm.xlu0 %7183, %v7345_v27   ;;  %v11972_v46 = vmul.f32 %v11846_v40, %v11846_v40  ;;  %v14715_v48 = vsub.f32 %v14526_v15, %v14714_v24  ;;  %7358 = vrsqrt.f32 %v4334_v36  ;;  %v3316_v47 = vsub.f32 %v3060_v13, %v11606_v49  ;;  %v14721_v9 = vld [vmem:[#allocation284_spill] sm:$0xff] }
 0x30b   :  { %v7349_v63 = vpop.eup %7348  ;;  %v4336_v40 = vadd.f32 1e-05, %v3440_v10  ;;  %v3442_v27 = vmax.f32 %v3314_v35, 0.0  ;;  %v3062_v15 = vmul.f32 0.0078125, %v14721_v9  ;;  %v3327_v24 = vsub.f32 %v3071_v17, %v11685_v45  ;;  %v14725_v10 = vld [vmem:[#allocation28_spill] sm:$0xff]  ;;  %v14726_v9 = vld [vmem:[#allocation173_spill] sm:$0xff] }
 0x30c   :  { %v5153_v28 = vmul.f32 %v14716_v58, %v14715_v48  ;;  %v11978_v30 = vpop.permute.xlu1 %3966  ;;  %7360 = vrsqrt.f32 %v4345_v42  ;;  %v4347_v58 = vadd.f32 1e-05, %v3451_v56  ;;  %v3453_v51 = vmax.f32 %v3325_v38, 0.0  ;;  %v14728_v17 = vld [vmem:[#allocation141_spill] sm:$0xff]  ;;  %v14730_v56 = vld [vmem:[#allocation278_spill] sm:$0xff] }
 0x30d   :  { %14717 = vst [vmem:[#allocation236_spill] sm:$0xff] %v11978_v30  ;;  %v11984_v31 = vpop.permute.xlu0 %4755  ;;  %4890 = vperm.xlu1 %7182, %v7347_v1   ;;  %v7351_v48 = vpop.eup %7350  ;;  %v14722_v30 = vld [vmem:[#allocation150_spill] sm:$0xff]  ;;  %v11991_v49 = vmul.f32 %v11760_v19, %v11760_v19  ;;  %v14724_v1 = vld [vmem:[#allocation68_spill] sm:$0xff]  ;;  %v14727_v45 = vsub.f32 %v14725_v10, %v14726_v9  ;;  %v14734_v16 = vsub.f32 %v14732_v62, %v14733_v44  ;;  %v14735_v19 = vld [vmem:[#allocation281_spill] sm:$0xff]  ;;  %v3444_v18 = vmax.f32 %v3316_v47, 0.0 }
 0x30e   :  { %14720 = vst [vmem:[#allocation325_spill] sm:$0xff] %v11984_v31  ;;  %4945 = vperm.xlu0 %7183, %v7349_v63   ;;  %v3073_v32 = vmul.f32 0.0078125, %v14722_v30  ;;  %v5288_v35 = vmul.f32 %v11872_v53, %v5153_v28  ;;  %v14731_v38 = vld [vmem:[#allocation62_spill] sm:$0xff]  ;;  %v3064_v36 = vmul.f32 0.0078125, %v14736_v54  ;;  %7362 = vrsqrt.f32 %v4336_v40  ;;  %v14738_v30 = vld [vmem:[#allocation300_spill] sm:$0xff] }
 0x30f   :  { %v7353_v37 = vpop.eup %7352  ;;  %v5148_v63 = vmul.f32 %v14728_v17, %v14727_v45  ;;  %v5155_v31 = vmul.f32 %v14735_v19, %v14734_v16  ;;  %v4338_v28 = vadd.f32 1e-05, %v3442_v27  ;;  %v3318_v10 = vsub.f32 %v3062_v15, %v11624_v14  ;;  %v14742_v15 = vld [vmem:[#allocation30_spill] sm:$0xff]  ;;  %v14747_v19 = vld [vmem:[#allocation212_spill] sm:$0xff]  ;;  %v14853_v14 = vld [vmem:[#allocation309_spill] sm:$0xff] }
 0x310   :  { %v12000_v42 = vpop.permute.xlu1 %4730  ;;  %v3455_v9 = vmax.f32 %v3327_v24, 0.0  ;;  %7364 = vrsqrt.f32 %v4347_v58  ;;  %v4349_v45 = vadd.f32 1e-05, %v3453_v51  ;;  %v3329_v17 = vsub.f32 %v3073_v32, %v11699_v2  ;;  %v14743_v24 = vld [vmem:[#allocation162_spill] sm:$0xff]  ;;  %v14745_v58 = vld [vmem:[#allocation199_spill] sm:$0xff] }
 0x311   :  { %14729 = vst [vmem:[#allocation244_spill] sm:$0xff] %v12000_v42  ;;  %v12009_v13 = vpop.permute.xlu0 %4001  ;;  %4900 = vperm.xlu1 %7182, %v7351_v48   ;;  %v3075_v62 = vmul.f32 0.0078125, %v14738_v30  ;;  %v7355_v44 = vpop.eup %7354  ;;  %v12016_v16 = vmul.f32 %v11908_v59, %v11908_v59  ;;  %v12019_v54 = vadd.f32 %v11899_v39, %v5288_v35  ;;  %v5283_v47 = vmul.f32 %v11872_v53, %v5148_v63  ;;  %v14748_v42 = vld [vmem:[#allocation209_spill] sm:$0xff] }
 0x312   :  { %14737 = vst [vmem:[#allocation152_spill] sm:$0xff] %v12009_v13  ;;  %4955 = vperm.xlu0 %7183, %v7353_v37   ;;  %v7357_v51 = vpop.eup %7356  ;;  %v5290_v2 = vmul.f32 %v11872_v53, %v5155_v31  ;;  %v4340_v32 = vadd.f32 1e-05, %v3444_v18  ;;  %v14744_v48 = vsub.f32 %v14742_v15, %v14743_v24  ;;  %v3320_v30 = vsub.f32 %v3064_v36, %v11640_v60  ;;  %v14757_v24 = vld [vmem:[#allocation148_spill] sm:$0xff] }
 0x313   :  { %7366 = vrsqrt.f32 %v4338_v28  ;;  %v3446_v63 = vmax.f32 %v3318_v10, 0.0  ;;  %v3066_v27 = vmul.f32 0.0078125, %v14747_v19  ;;  %v4351_v13 = vadd.f32 1e-05, %v3455_v9  ;;  %v14751_v10 = vld [vmem:[#allocation35_spill] sm:$0xff]  ;;  %v14754_v9 = vld [vmem:[#allocation289_spill] sm:$0xff] }
 0x314   :  { %v12024_v37 = vpop.permute.xlu1 %3976  ;;  %v5150_v59 = vmul.f32 %v14745_v58, %v14744_v48  ;;  %7368 = vrsqrt.f32 %v4349_v45  ;;  %v3457_v31 = vmax.f32 %v3329_v17, 0.0  ;;  %v3331_v18 = vsub.f32 %v3075_v62, %v11723_v25  ;;  %v14752_v48 = vld [vmem:[#allocation182_spill] sm:$0xff] }
 0x315   :  { %14741 = vst [vmem:[#allocation283_spill] sm:$0xff] %v12024_v37  ;;  %v12032_v35 = vpop.permute.xlu0 %4765  ;;  %4910 = vperm.xlu1 %7182, %v7355_v44   ;;  %v7359_v37 = vpop.eup %7358  ;;  %v3077_v15 = vmul.f32 0.0078125, %v14748_v42  ;;  %v12039_v60 = vadd.f32 %v11899_v39, %v5283_v47  ;;  %v14753_v58 = vsub.f32 %v14751_v10, %v14752_v48  ;;  %v12050_v25 = vadd.f32 %v11899_v39, %v5290_v2  ;;  %v14758_v2 = vld [vmem:[#allocation303_spill] sm:$0xff] }
 0x316   :  { %14746 = vst [vmem:[#allocation328_spill] sm:$0xff] %v12032_v35  ;;  %4965 = vperm.xlu0 %7183, %v7357_v51   ;;  %v7361_v45 = vpop.eup %7360  ;;  %7370 = vrsqrt.f32 %v4340_v32  ;;  %v5285_v42 = vmul.f32 %v11872_v53, %v5150_v59  ;;  %v3448_v17 = vmax.f32 %v3320_v30, 0.0  ;;  %v4342_v47 = vadd.f32 1e-05, %v3446_v63  ;;  %v14761_v63 = vld [vmem:[#allocation32_spill] sm:$0xff]  ;;  %v14778_v30 = vld [vmem:[#allocation207_spill] sm:$0xff] }
 0x317   :  { %v5157_v51 = vmul.f32 %v14754_v9, %v14753_v58  ;;  %v3322_v28 = vsub.f32 %v3066_v27, %v11667_v11  ;;  %v3068_v10 = vmul.f32 0.0078125, %v14757_v24  ;;  %7372 = vrsqrt.f32 %v4351_v13  ;;  %v14762_v11 = vld [vmem:[#allocation168_spill] sm:$0xff]  ;;  %v14764_v24 = vld [vmem:[#allocation290_spill] sm:$0xff] }
 0x318   :  { %v12047_v19 = vpop.permute.xlu1 %4740  ;;  %v4353_v48 = vadd.f32 1e-05, %v3457_v31  ;;  %v3459_v58 = vmax.f32 %v3331_v18, 0.0  ;;  %v3333_v9 = vsub.f32 %v3077_v15, %v11738_v7  ;;  %v3079_v35 = vmul.f32 0.0078125, %v14758_v2  ;;  %v7363_v32 = vpop.eup %7362  ;;  %v14766_v2 = vld [vmem:[#allocation296_spill] sm:$0xff] }
 0x319   :  { %14755 = vst [vmem:[#allocation248_spill] sm:$0xff] %v12047_v19  ;;  %v12053_v62 = vpop.permute.xlu0 %4011  ;;  %4920 = vperm.xlu1 %7182, %v7359_v37   ;;  %v5292_v37 = vmul.f32 %v11872_v53, %v5157_v51  ;;  %v14763_v27 = vsub.f32 %v14761_v63, %v14762_v11  ;;  %v12071_v18 = vadd.f32 %v11899_v39, %v5285_v42  ;;  %v4344_v15 = vadd.f32 1e-05, %v3448_v17  ;;  %v14767_v11 = vld [vmem:[#allocation215_spill] sm:$0xff]  ;;  %v14781_v19 = vld [vmem:[#allocation306_spill] sm:$0xff] }
 0x31a   :  { %14756 = vst [vmem:[#allocation27_spill] sm:$0xff] %v12053_v62  ;;  %4975 = vperm.xlu0 %7183, %v7361_v45   ;;  %v7365_v31 = vpop.eup %7364  ;;  %v3070_v59 = vmul.f32 0.0078125, %v14766_v2  ;;  %7374 = vrsqrt.f32 %v4342_v47  ;;  %v3450_v51 = vmax.f32 %v3322_v28, 0.0  ;;  %v3324_v63 = vsub.f32 %v3068_v10, %v11681_v61  ;;  %v14770_v28 = vld [vmem:[#allocation37_spill] sm:$0xff] }
 0x31b   :  { %v5152_v13 = vmul.f32 %v14764_v24, %v14763_v27  ;;  %v3081_v27 = vmul.f32 0.0078125, %v14767_v11  ;;  %7376 = vrsqrt.f32 %v4353_v48  ;;  %v4355_v24 = vadd.f32 1e-05, %v3459_v58  ;;  %v14773_v10 = vld [vmem:[#allocation293_spill] sm:$0xff] }
 0x31c   :  { %v12067_v45 = vpop.permute.xlu1 %3986  ;;  %v3461_v62 = vmax.f32 %v3333_v9, 0.0  ;;  %v3335_v7 = vsub.f32 %v3079_v35, %v11756_v8  ;;  %v12082_v2 = vadd.f32 %v11899_v39, %v5292_v37  ;;  %7378 = vrsqrt.f32 %v4344_v15  ;;  %v14775_v8 = vld [vmem:[#allocation34_spill] sm:$0xff]  ;;  %v14776_v35 = vld [vmem:[#allocation177_spill] sm:$0xff] }
 0x31d   :  { %14765 = vst [vmem:[#allocation158_spill] sm:$0xff] %v12067_v45  ;;  %v12074_v36 = vpop.permute.xlu0 %4775  ;;  %4930 = vperm.xlu1 %7182, %v7363_v32   ;;  %v7367_v42 = vpop.eup %7366  ;;  %v5287_v47 = vmul.f32 %v11872_v53, %v5152_v13  ;;  %v14771_v32 = vld [vmem:[#allocation189_spill] sm:$0xff]  ;;  %v14777_v9 = vsub.f32 %v14775_v8, %v14776_v35  ;;  %v3326_v37 = vsub.f32 %v3070_v59, %v11695_v26  ;;  %v4346_v13 = vadd.f32 1e-05, %v3450_v51  ;;  %v14800_v51 = vld [vmem:[#allocation151_spill] sm:$0xff] }
 0x31e   :  { %4985 = vperm.xlu0 %7183, %v7365_v31   ;;  %v14772_v61 = vsub.f32 %v14770_v28, %v14771_v32  ;;  %v7369_v48 = vpop.eup %7368  ;;  %v3452_v28 = vmax.f32 %v3324_v63, 0.0  ;;  %v14780_v32 = vld [vmem:[#allocation138_spill] sm:$0xff]  ;;  %7380 = vrsqrt.f32 %v4355_v24  ;;  %v4357_v15 = vadd.f32 1e-05, %v3461_v62 }
 0x31f   :  { %v5154_v45 = vmul.f32 %v14778_v30, %v14777_v9  ;;  %v3463_v58 = vmax.f32 %v3335_v7, 0.0  ;;  %v3083_v8 = vmul.f32 0.0078125, %v14781_v19  ;;  %v12104_v26 = vadd.f32 %v11899_v39, %v5287_v47  ;;  %v14787_v19 = vld [vmem:[#allocation147_spill] sm:$0xff] }
 0x320   :  { %v5159_v11 = vmul.f32 %v14773_v10, %v14772_v61  ;;  %v12089_v31 = vpop.permute.xlu1 %4750  ;;  %v3072_v61 = vmul.f32 0.0078125, %v14780_v32  ;;  %v3337_v10 = vsub.f32 %v3081_v27, %v11777_v43  ;;  %v3454_v7 = vmax.f32 %v3326_v37, 0.0 }
 0x321   :  { %14774 = vst [vmem:[#allocation262_spill] sm:$0xff] %v12089_v31  ;;  %v12097_v17 = vpop.permute.xlu0 %4021  ;;  %4940 = vperm.xlu1 %7182, %v7367_v42   ;;  %v7371_v31 = vpop.eup %7370  ;;  %v5289_v62 = vmul.f32 %v11872_v53, %v5154_v45  ;;  %7382 = vrsqrt.f32 %v4346_v13  ;;  %v4348_v47 = vadd.f32 1e-05, %v3452_v28  ;;  %v14792_v28 = vld [vmem:[#allocation298_spill] sm:$0xff]  ;;  %v3076_v44 = vmul.f32 0.0078125, %v14800_v51 }
 0x322   :  { %14779 = vst [vmem:[#allocation277_spill] sm:$0xff] %v12097_v17  ;;  %4995 = vperm.xlu0 %7183, %v7369_v48   ;;  %v7373_v35 = vpop.eup %7372  ;;  %v5294_v42 = vmul.f32 %v11872_v53, %v5159_v11  ;;  %v3074_v48 = vmul.f32 0.0078125, %v14787_v19  ;;  %v3328_v30 = vsub.f32 %v3072_v61, %v11711_v0  ;;  %v3465_v63 = vmax.f32 %v3337_v10, 0.0  ;;  %v14788_v17 = vld [vmem:[#allocation220_spill] sm:$0xff]  ;;  %v14789_v19 = vld [vmem:[#allocation39_spill] sm:$0xff]  ;;  %v14794_v61 = vld [vmem:[#allocation185_spill] sm:$0xff] }
 0x323   :  { %7384 = vrsqrt.f32 %v4357_v15  ;;  %v4359_v11 = vadd.f32 1e-05, %v3463_v58  ;;  %v3085_v24 = vmul.f32 0.0078125, %v14788_v17  ;;  %v14793_v0 = vld [vmem:[#allocation36_spill] sm:$0xff]  ;;  %v14796_v15 = vld [vmem:[#allocation211_spill] sm:$0xff]  ;;  %v14812_v17 = vld [vmem:[#allocation225_spill] sm:$0xff] }
 0x324   :  { %v12109_v9 = vpop.permute.xlu1 %3996  ;;  %v7375_v43 = vpop.eup %7374  ;;  %v12122_v37 = vadd.f32 %v11899_v39, %v5294_v42  ;;  %v14795_v10 = vsub.f32 %v14793_v0, %v14794_v61  ;;  %v4350_v45 = vadd.f32 1e-05, %v3454_v7  ;;  %v3330_v42 = vsub.f32 %v3074_v48, %v11727_v20  ;;  %v14802_v7 = vld [vmem:[#allocation311_spill] sm:$0xff]  ;;  %v14810_v20 = vld [vmem:[#allocation149_spill] sm:$0xff] }
 0x325   :  { %14784 = vst [vmem:[#allocation276_spill] sm:$0xff] %v12109_v9  ;;  %v12115_v32 = vpop.permute.xlu0 %4785  ;;  %4950 = vperm.xlu1 %7182, %v7371_v31   ;;  %v3339_v9 = vsub.f32 %v3083_v8, %v11794_v55  ;;  %v14790_v31 = vld [vmem:[#allocation179_spill] sm:$0xff]  ;;  %v7377_v55 = vpop.eup %7376  ;;  %7386 = vrsqrt.f32 %v4348_v47  ;;  %v3341_v61 = vsub.f32 %v3085_v24, %v11825_v12  ;;  %v14809_v12 = vld [vmem:[#allocation301_spill] sm:$0xff] }
 0x326   :  { %5005 = vperm.xlu0 %7183, %v7373_v35   ;;  %v14791_v13 = vsub.f32 %v14789_v19, %v14790_v31  ;;  %v5156_v58 = vmul.f32 %v14796_v15, %v14795_v10  ;;  %v12141_v19 = vadd.f32 %v11899_v39, %v5289_v62  ;;  %v3456_v31 = vmax.f32 %v3328_v30, 0.0 }
 0x327   :  { %7388 = vrsqrt.f32 %v4359_v11  ;;  %v3467_v0 = vmax.f32 %v3339_v9, 0.0  ;;  %v3087_v10 = vmul.f32 0.0078125, %v14802_v7  ;;  %v14806_v11 = vld [vmem:[#allocation41_spill] sm:$0xff]  ;;  %v14807_v9 = vld [vmem:[#allocation183_spill] sm:$0xff]  ;;  %v3332_v7 = vsub.f32 %v3076_v44, %v11752_v50  ;;  %v14814_v44 = vld [vmem:[#allocation38_spill] sm:$0xff] }
 0x328   :  { %v5161_v27 = vmul.f32 %v14792_v28, %v14791_v13  ;;  %v12132_v35 = vpop.permute.xlu1 %4760  ;;  %v4361_v13 = vadd.f32 1e-05, %v3465_v63  ;;  %v7379_v28 = vpop.eup %7378  ;;  %v5291_v62 = vmul.f32 %v11872_v53, %v5156_v58  ;;  %7390 = vrsqrt.f32 %v4350_v45 }
 0x329   :  { %14797 = vst [vmem:[#allocation146_spill] sm:$0xff] %v12132_v35  ;;  %v12138_v40 = vpop.permute.xlu0 %4031  ;;  %4960 = vperm.xlu1 %7182, %v7375_v43   ;;  %v7381_v30 = vpop.eup %7380  ;;  %v3458_v63 = vmax.f32 %v3330_v42, 0.0  ;;  %v3078_v58 = vmul.f32 0.0078125, %v14810_v20  ;;  %v3469_v45 = vmax.f32 %v3341_v61, 0.0  ;;  %v14811_v42 = vld [vmem:[#allocation286_spill] sm:$0xff]  ;;  %v14821_v61 = vld [vmem:[#allocation304_spill] sm:$0xff] }
 0x32a   :  { %14801 = vst [vmem:[#allocation253_spill] sm:$0xff] %v12138_v40  ;;  %5015 = vperm.xlu0 %7183, %v7377_v55   ;;  %v5296_v43 = vmul.f32 %v11872_v53, %v5161_v27  ;;  %v14808_v55 = vsub.f32 %v14806_v11, %v14807_v9  ;;  %v4352_v27 = vadd.f32 1e-05, %v3456_v31  ;;  %7392 = vrsqrt.f32 %v4361_v13  ;;  %v14818_v13 = vld [vmem:[#allocation24_spill] sm:$0xff]  ;;  %v14822_v35 = vld [vmem:[#allocation154_spill] sm:$0xff] }
 0x32b   :  { %v3343_v40 = vsub.f32 %v3087_v10, %v14811_v42  ;;  %v3089_v11 = vmul.f32 0.0078125, %v14812_v17  ;;  %v7383_v9 = vpop.eup %7382  ;;  %v12167_v50 = vadd.f32 %v11899_v39, %v5291_v62  ;;  %v4354_v42 = vadd.f32 1e-05, %v3458_v63 }
 0x32c   :  { %v12150_v47 = vpop.permute.xlu1 %4006  ;;  %v5163_v24 = vmul.f32 %v14809_v12, %v14808_v55  ;;  %v12164_v55 = vadd.f32 %v11899_v39, %v5296_v43  ;;  %v14817_v12 = vld [vmem:[#allocation214_spill] sm:$0xff]  ;;  %v3460_v8 = vmax.f32 %v3332_v7, 0.0  ;;  %v3080_v62 = vmul.f32 0.0078125, %v14822_v35 }
 0x32d   :  { %14805 = vst [vmem:[#allocation60_spill] sm:$0xff] %v12150_v47  ;;  %v12157_v59 = vpop.permute.xlu0 %4795  ;;  %4970 = vperm.xlu1 %7182, %v7379_v28   ;;  %v4363_v47 = vadd.f32 1e-05, %v3467_v0  ;;  %14813 = vst [vmem:[#allocation271_spill] sm:$0xff] %v12167_v50  ;;  %v14815_v28 = vld [vmem:[#allocation194_spill] sm:$0xff]  ;;  %v7385_v17 = vpop.eup %7384  ;;  %7394 = vrsqrt.f32 %v4352_v27  ;;  %v3471_v63 = vmax.f32 %v3343_v40, 0.0 }
 0x32e   :  { %5025 = vperm.xlu0 %7183, %v7381_v30   ;;  %v14816_v31 = vsub.f32 %v14814_v44, %v14815_v28  ;;  %v14819_v30 = vld [vmem:[#allocation186_spill] sm:$0xff]  ;;  %v5298_v43 = vmul.f32 %v11872_v53, %v5163_v24  ;;  %v3345_v24 = vsub.f32 %v3089_v11, %v11857_v5  ;;  %v14830_v40 = vld [vmem:[#allocation263_spill] sm:$0xff] }
 0x32f   :  { %v14820_v0 = vsub.f32 %v14818_v13, %v14819_v30  ;;  %v14827_v30 = vld [vmem:[#allocation314_spill] sm:$0xff]  ;;  %7396 = vrsqrt.f32 %v4363_v47  ;;  %v7387_v7 = vpop.eup %7386  ;;  %v4356_v47 = vadd.f32 1e-05, %v3460_v8  ;;  %v14837_v28 = vld [vmem:[#allocation159_spill] sm:$0xff] }
 0x330   :  { %v5158_v20 = vmul.f32 %v14817_v12, %v14816_v31  ;;  %v12177_v10 = vpop.permute.xlu1 %4770  ;;  %v14826_v12 = vld [vmem:[#allocation133_spill] sm:$0xff]  ;;  %7398 = vrsqrt.f32 %v4354_v42  ;;  %v3473_v8 = vmax.f32 %v3345_v24, 0.0  ;;  %v14858_v50 = vld [vmem:[#allocation155_spill] sm:$0xff] }
 0x331   :  { %v5165_v15 = vmul.f32 %v14821_v61, %v14820_v0  ;;  %v12181_v51 = vpop.permute.xlu0 %4041  ;;  %4980 = vperm.xlu1 %7182, %v7383_v9   ;;  %v3334_v13 = vsub.f32 %v3078_v58, %v14826_v12  ;;  %v3091_v0 = vmul.f32 0.0078125, %v14827_v30  ;;  %v4365_v61 = vadd.f32 1e-05, %v3469_v45  ;;  %v7389_v58 = vpop.eup %7388  ;;  %v14832_v12 = vld [vmem:[#allocation40_spill] sm:$0xff]  ;;  %v14833_v30 = vld [vmem:[#allocation197_spill] sm:$0xff] }
 0x332   :  { %14823 = vst [vmem:[#allocation188_spill] sm:$0xff] %v12181_v51  ;;  %5035 = vperm.xlu0 %7183, %v7385_v17   ;;  %v5293_v27 = vmul.f32 %v11872_v53, %v5158_v20  ;;  %v12195_v17 = vadd.f32 %v11899_v39, %v5298_v43  ;;  %v3336_v45 = vsub.f32 %v3080_v62, %v14830_v40  ;;  %v14835_v20 = vld [vmem:[#allocation218_spill] sm:$0xff]  ;;  %v7391_v42 = vpop.eup %7390  ;;  %v4367_v43 = vadd.f32 1e-05, %v3471_v63  ;;  %v14844_v63 = vld [vmem:[#allocation219_spill] sm:$0xff] }
 0x333   :  { %v5300_v9 = vmul.f32 %v11872_v53, %v5165_v15  ;;  %v3462_v11 = vmax.f32 %v3334_v13, 0.0  ;;  %v14834_v51 = vsub.f32 %v14832_v12, %v14833_v30  ;;  %v14836_v15 = vld [vmem:[#allocation307_spill] sm:$0xff]  ;;  %7400 = vrsqrt.f32 %v4365_v61  ;;  %v14841_v12 = vld [vmem:[#allocation302_spill] sm:$0xff] }
 0x334   :  { %v12192_v31 = vpop.permute.xlu1 %4016  ;;  %14829 = vst [vmem:[#allocation134_spill] sm:$0xff] %v12195_v17  ;;  %v3082_v44 = vmul.f32 0.0078125, %v14836_v15  ;;  %v3093_v62 = vmul.f32 0.0078125, %v14837_v28  ;;  %v7393_v40 = vpop.eup %7392  ;;  %7402 = vrsqrt.f32 %v4356_v47  ;;  %v3464_v61 = vmax.f32 %v3336_v45, 0.0  ;;  %v14846_v15 = vld [vmem:[#allocation268_spill] sm:$0xff]  ;;  %v14851_v17 = vld [vmem:[#allocation190_spill] sm:$0xff] }
 0x335   :  { %14828 = vst [vmem:[#allocation142_spill] sm:$0xff] %v12192_v31  ;;  %v12198_v5 = vpop.permute.xlu0 %4805  ;;  %4990 = vperm.xlu1 %7182, %v7387_v7   ;;  %v5160_v35 = vmul.f32 %v14835_v20, %v14834_v51  ;;  %v3347_v31 = vsub.f32 %v3091_v0, %v11889_v34  ;;  %v14842_v51 = vld [vmem:[#allocation88_spill] sm:$0xff]  ;;  %v5435_v20 = vadd.f32 %v11899_v39, %v5300_v9  ;;  %v3084_v28 = vmul.f32 0.0078125, %v14844_v63  ;;  %v14847_v7 = vld [vmem:[#allocation318_spill] sm:$0xff] }
 0x336   :  { %14831 = vst [vmem:[#allocation200_spill] sm:$0xff] %v12198_v5  ;;  %5045 = vperm.xlu0 %7183, %v7389_v58   ;;  %v12210_v5 = vadd.f32 %v11899_v39, %v5293_v27  ;;  %v4358_v58 = vadd.f32 1e-05, %v3462_v11  ;;  %v3338_v13 = vsub.f32 %v3082_v44, %v14846_v15  ;;  %7404 = vrsqrt.f32 %v4367_v43  ;;  %v14850_v11 = vld [vmem:[#allocation26_spill] sm:$0xff] }
 0x337   :  { %v5295_v27 = vmul.f32 %v11872_v53, %v5160_v35  ;;  %v3475_v48 = vmax.f32 %v3347_v31, 0.0  ;;  %v4369_v9 = vadd.f32 1e-05, %v3473_v8  ;;  %v3349_v30 = vsub.f32 %v3093_v62, %v11919_v52  ;;  %v7395_v47 = vpop.eup %7394  ;;  %v14856_v52 = vld [vmem:[#allocation90_spill] sm:$0xff] }
 0x338   :  { %14840 = vst [vmem:[#allocation64_spill] sm:$0xff] %v12210_v5  ;;  %v12215_v34 = vpop.permute.xlu1 %4780  ;;  %v3095_v0 = vmul.f32 0.0078125, %v14847_v7  ;;  %v14852_v35 = vsub.f32 %v14850_v11, %v14851_v17  ;;  %v4360_v8 = vadd.f32 1e-05, %v3464_v61  ;;  %v14857_v7 = vld [vmem:[#allocation267_spill] sm:$0xff]  ;;  %v3086_v45 = vmul.f32 0.0078125, %v14858_v50 }
 0x339   :  { %14843 = vst [vmem:[#allocation144_spill] sm:$0xff] %v12215_v34  ;;  %v12219_v24 = vpop.permute.xlu0 %4051  ;;  %5000 = vperm.xlu1 %7182, %v7391_v42   ;;  %v5563_v42 = vmax.f32 %v5435_v20, 0.0  ;;  %v7397_v43 = vpop.eup %7396  ;;  %v3340_v15 = vsub.f32 %v3084_v28, %v14857_v7  ;;  %7406 = vrsqrt.f32 %v4358_v58  ;;  %v12241_v20 = vadd.f32 %v11899_v39, %v5295_v27  ;;  %v14874_v34 = vld [vmem:[#allocation312_spill] sm:$0xff] }
 0x33a   :  { %14845 = vst [vmem:[#allocation295_spill] sm:$0xff] %v12219_v24  ;;  %5055 = vperm.xlu0 %7183, %v7393_v40   ;;  %v5167_v44 = vmul.f32 %v14853_v14, %v14852_v35  ;;  %v14855_v40 = vld [vmem:[#allocation305_spill] sm:$0xff]  ;;  %v3466_v17 = vmax.f32 %v3338_v13, 0.0  ;;  %v4371_v14 = vadd.f32 1e-05, %v3475_v48  ;;  %v7399_v11 = vpop.eup %7398  ;;  %7408 = vrsqrt.f32 %v4369_v9  ;;  %v14860_v24 = vld [vmem:[#allocation231_spill] sm:$0xff] }
 0x33b   :  { %14859 = vst [vmem:[#allocation279_spill] sm:$0xff] %v12241_v20  ;;  %v3477_v61 = vmax.f32 %v3349_v30, 0.0  ;;  %v3351_v35 = vsub.f32 %v3095_v0, %v11943_v29  ;;  %v3097_v62 = vmul.f32 0.0078125, %v14860_v24  ;;  %v14861_v28 = vmax.f32 %v11924_v3, 0.0  ;;  %v14866_v13 = vld [vmem:[#allocation201_spill] sm:$0xff]  ;;  %v14870_v0 = vld [vmem:[#allocation280_spill] sm:$0xff] }
 0x33c   :  { %v12232_v31 = vpop.permute.xlu1 %4026  ;;  %v5302_v27 = vmul.f32 %v11872_v53, %v5167_v44  ;;  %7410 = vrsqrt.f32 %v4360_v8  ;;  %v3468_v29 = vmax.f32 %v3340_v15, 0.0  ;;  %v3342_v24 = vsub.f32 %v3086_v45, %v14870_v0  ;;  %v14871_v3 = vld [vmem:[#allocation43_spill] sm:$0xff]  ;;  %v14876_v7 = vld [vmem:[#allocation156_spill] sm:$0xff] }
 0x33d   :  { %14854 = vst [vmem:[#allocation166_spill] sm:$0xff] %v12232_v31  ;;  %v12238_v5 = vpop.permute.xlu0 %4815  ;;  %5010 = vperm.xlu1 %7182, %v7395_v47   ;;  %v12247_v50 = vmax.f32 %v14861_v28, %v5563_v42  ;;  %v14865_v31 = vld [vmem:[#allocation23_spill] sm:$0xff]  ;;  %v7401_v30 = vpop.eup %7400  ;;  %v14872_v42 = vld [vmem:[#allocation130_spill] sm:$0xff]  ;;  %v4362_v44 = vadd.f32 1e-05, %v3466_v17  ;;  %v14880_v47 = vld [vmem:[#allocation229_spill] sm:$0xff]  ;;  %7412 = vrsqrt.f32 %v4371_v14  ;;  %v3353_v0 = vsub.f32 %v3097_v62, %v11968_v57 }
 0x33e   :  { %5065 = vperm.xlu0 %7183, %v7397_v43   ;;  %v14867_v48 = vsub.f32 %v14865_v31, %v14866_v13  ;;  %v14868_v43 = vld [vmem:[#allocation224_spill] sm:$0xff]  ;;  %v14873_v28 = vsub.f32 %v14871_v3, %v14872_v42  ;;  %v3088_v31 = vmul.f32 0.0078125, %v14876_v7  ;;  %v14877_v13 = vld [vmem:[#allocation25_spill] sm:$0xff]  ;;  %v7403_v8 = vpop.eup %7402  ;;  %v4373_v45 = vadd.f32 1e-05, %v3477_v61  ;;  %v14882_v7 = vld [vmem:[#allocation310_spill] sm:$0xff] }
 0x33f   :  { %14862 = vst [vmem:[#allocation284_spill] sm:$0xff] %v12247_v50  ;;  %v3479_v15 = vmax.f32 %v3351_v35, 0.0  ;;  %v14881_v3 = vld [vmem:[#allocation320_spill] sm:$0xff]  ;;  %v5437_v17 = vadd.f32 %v11899_v39, %v5302_v27  ;;  %v14885_v35 = vld [vmem:[#allocation315_spill] sm:$0xff]  ;;  %7414 = vrsqrt.f32 %v4362_v44  ;;  %v14892_v44 = vld [vmem:[#allocation153_spill] sm:$0xff] }
 0x340   :  { %v5162_v63 = vmul.f32 %v14868_v43, %v14867_v48  ;;  %v12256_v9 = vpop.permute.xlu1 %4790  ;;  %v5169_v50 = vmul.f32 %v14874_v34, %v14873_v28  ;;  %v14878_v48 = vld [vmem:[#allocation205_spill] sm:$0xff]  ;;  %v3099_v34 = vmul.f32 0.0078125, %v14881_v3  ;;  %v14883_v28 = vld [vmem:[#allocation92_spill] sm:$0xff]  ;;  %v7405_v14 = vpop.eup %7404  ;;  %v3090_v57 = vmul.f32 0.0078125, %v14885_v35  ;;  %v14888_v3 = vld [vmem:[#allocation198_spill] sm:$0xff] }
 0x341   :  { %14869 = vst [vmem:[#allocation150_spill] sm:$0xff] %v12256_v9  ;;  %v12263_v58 = vpop.permute.xlu0 %4061  ;;  %5020 = vperm.xlu1 %7182, %v7399_v11   ;;  %v14879_v43 = vsub.f32 %v14877_v13, %v14878_v48  ;;  %v3344_v27 = vsub.f32 %v3088_v31, %v11885_v33  ;;  %v14890_v13 = vld [vmem:[#allocation316_spill] sm:$0xff]  ;;  %7416 = vrsqrt.f32 %v4373_v45  ;;  %v3092_v33 = vmul.f32 0.0078125, %v14892_v44  ;;  %v14893_v31 = vld [vmem:[#allocation42_spill] sm:$0xff] }
 0x342   :  { %14875 = vst [vmem:[#allocation68_spill] sm:$0xff] %v12263_v58  ;;  %5075 = vperm.xlu0 %7183, %v7401_v30   ;;  %v5297_v11 = vmul.f32 %v11872_v53, %v5162_v63  ;;  %v3470_v30 = vmax.f32 %v3342_v24, 0.0  ;;  %v5304_v61 = vmul.f32 %v11872_v53, %v5169_v50  ;;  %v3481_v24 = vmax.f32 %v3353_v0, 0.0  ;;  %v14900_v44 = vld [vmem:[#allocation202_spill] sm:$0xff] }
 0x343   :  { %v5164_v9 = vmul.f32 %v14880_v47, %v14879_v43  ;;  %v4364_v47 = vadd.f32 1e-05, %v3468_v29  ;;  %v14887_v43 = vld [vmem:[#allocation5_spill] sm:$0xff]  ;;  %v4375_v29 = vadd.f32 1e-05, %v3479_v15  ;;  %v3355_v50 = vsub.f32 %v3099_v34, %v11991_v49  ;;  %v7407_v35 = vpop.eup %7406 }
 0x344   :  { %v12277_v48 = vpop.permute.xlu1 %4036  ;;  %v14889_v42 = vsub.f32 %v14887_v43, %v14888_v3  ;;  %v5565_v58 = vmax.f32 %v5437_v17, 0.0  ;;  %v4366_v45 = vadd.f32 1e-05, %v3470_v30  ;;  %v5439_v15 = vadd.f32 %v11899_v39, %v5304_v61 }
 0x345   :  { %14884 = vst [vmem:[#allocation28_spill] sm:$0xff] %v12277_v48  ;;  %v12281_v62 = vpop.permute.xlu0 %4825  ;;  %5030 = vperm.xlu1 %7182, %v7403_v8   ;;  %v5299_v63 = vmul.f32 %v11872_v53, %v5164_v9  ;;  %v12291_v8 = vadd.f32 %v11899_v39, %v5297_v11  ;;  %v14894_v9 = vld [vmem:[#allocation208_spill] sm:$0xff]  ;;  %7418 = vrsqrt.f32 %v4364_v47  ;;  %v3346_v49 = vsub.f32 %v3090_v57, %v11915_v21  ;;  %v14898_v11 = vld [vmem:[#allocation243_spill] sm:$0xff] }
 0x346   :  { %14886 = vst [vmem:[#allocation173_spill] sm:$0xff] %v12281_v62  ;;  %v5171_v48 = vmul.f32 %v14890_v13, %v14889_v42  ;;  %5085 = vperm.xlu0 %7183, %v7405_v14   ;;  %v14895_v20 = vsub.f32 %v14893_v31, %v14894_v9  ;;  %v14896_v62 = vld [vmem:[#allocation163_spill] sm:$0xff]  ;;  %v7409_v42 = vpop.eup %7408  ;;  %v3472_v34 = vmax.f32 %v3344_v27, 0.0  ;;  %v3094_v13 = vmul.f32 0.0078125, %v14898_v11 }
 0x347   :  { %14891 = vst [vmem:[#allocation141_spill] sm:$0xff] %v12291_v8  ;;  %v5434_v17 = vadd.f32 %v11899_v39, %v5299_v63  ;;  %v14899_v14 = vld [vmem:[#allocation7_spill] sm:$0xff]  ;;  %v7411_v47 = vpop.eup %7410  ;;  %7420 = vrsqrt.f32 %v4375_v29  ;;  %v4377_v61 = vadd.f32 1e-05, %v3481_v24  ;;  %v3483_v21 = vmax.f32 %v3355_v50, 0.0  ;;  %v14905_v63 = vld [vmem:[#allocation232_spill] sm:$0xff] }
 0x348   :  { %v5166_v43 = vmul.f32 %v14896_v62, %v14895_v20  ;;  %v12298_v3 = vpop.permute.xlu1 %4800  ;;  %v14901_v20 = vsub.f32 %v14899_v14, %v14900_v44  ;;  %v14902_v62 = vld [vmem:[#allocation175_spill] sm:$0xff]  ;;  %v5306_v30 = vmul.f32 %v11872_v53, %v5171_v48  ;;  %v7413_v57 = vpop.eup %7412  ;;  %7422 = vrsqrt.f32 %v4366_v45  ;;  %v14908_v29 = vld [vmem:[#allocation165_spill] sm:$0xff] }
 0x349   :  { %v12302_v0 = vpop.permute.xlu0 %4071  ;;  %5040 = vperm.xlu1 %7182, %v7407_v35   ;;  %v14903_v35 = vmax.f32 %v11954_v23, 0.0  ;;  %v14906_v9 = vld [vmem:[#allocation87_spill] sm:$0xff]  ;;  %v3474_v48 = vmax.f32 %v3346_v49, 0.0  ;;  %v3096_v24 = vmul.f32 0.0078125, %v14908_v29  ;;  %v5567_v23 = vmax.f32 %v5439_v15, 0.0  ;;  %v14910_v45 = vld [vmem:[#allocation313_spill] sm:$0xff] }
 0x34a   :  { %14897 = vst [vmem:[#allocation278_spill] sm:$0xff] %v12302_v0  ;;  %v5173_v31 = vmul.f32 %v14902_v62, %v14901_v20  ;;  %5095 = vperm.xlu0 %7183, %v7409_v42   ;;  %v3348_v0 = vsub.f32 %v3092_v33, %v11930_v6  ;;  %v5301_v14 = vmul.f32 %v11872_v53, %v5166_v43  ;;  %v5562_v6 = vmax.f32 %v5434_v17, 0.0  ;;  %v14911_v49 = vld [vmem:[#allocation94_spill] sm:$0xff]  ;;  %v14913_v15 = vld [vmem:[#allocation213_spill] sm:$0xff] }
 0x34b   :  { %v12313_v27 = vmax.f32 %v14903_v35, %v5565_v58  ;;  %v4368_v58 = vadd.f32 1e-05, %v3472_v34  ;;  %v3350_v20 = vsub.f32 %v3094_v13, %v11964_v4  ;;  %v5441_v33 = vadd.f32 %v11899_v39, %v5306_v30  ;;  %v7415_v35 = vpop.eup %7414  ;;  %v14918_v30 = vld [vmem:[#allocation89_spill] sm:$0xff] }
 0x34c   :  { %v12319_v44 = vpop.permute.xlu1 %4046  ;;  %v5308_v62 = vmul.f32 %v11872_v53, %v5173_v31  ;;  %7424 = vrsqrt.f32 %v4377_v61  ;;  %v4379_v43 = vadd.f32 1e-05, %v3483_v21  ;;  %v3476_v29 = vmax.f32 %v3348_v0, 0.0  ;;  %v7417_v31 = vpop.eup %7416 }
 0x34d   :  { %14904 = vst [vmem:[#allocation62_spill] sm:$0xff] %v12313_v27  ;;  %14907 = vst [vmem:[#allocation33_spill] sm:$0xff] %v12319_v44  ;;  %v12323_v50 = vpop.permute.xlu0 %4835  ;;  %5050 = vperm.xlu1 %7182, %v7411_v47   ;;  %v5436_v11 = vadd.f32 %v11899_v39, %v5301_v14  ;;  %v14912_v47 = vld [vmem:[#allocation44_spill] sm:$0xff]  ;;  %v14915_v44 = vld [vmem:[#allocation235_spill] sm:$0xff]  ;;  %v4370_v17 = vadd.f32 1e-05, %v3474_v48  ;;  %v3352_v21 = vsub.f32 %v3096_v24, %v11972_v46  ;;  %7426 = vrsqrt.f32 %v4368_v58 }
 0x34e   :  { %14909 = vst [vmem:[#allocation171_spill] sm:$0xff] %v12323_v50  ;;  %5105 = vperm.xlu0 %7183, %v7413_v57   ;;  %v14914_v34 = vsub.f32 %v14912_v47, %v14913_v15  ;;  %v14917_v57 = vld [vmem:[#allocation237_spill] sm:$0xff]  ;;  %v3478_v0 = vmax.f32 %v3350_v20, 0.0  ;;  %v5443_v14 = vadd.f32 %v11899_v39, %v5308_v62  ;;  %v14921_v47 = vld [vmem:[#allocation19_spill] sm:$0xff]  ;;  %v14925_v61 = vmax.f32 %v12019_v54, 0.0 }
 0x34f   :  { %v14919_v50 = vld [vmem:[#allocation321_spill] sm:$0xff]  ;;  %v7419_v48 = vpop.eup %7418  ;;  %v14926_v46 = vmax.f32 %v12039_v60, 0.0  ;;  %7428 = vrsqrt.f32 %v4379_v43  ;;  %v4372_v58 = vadd.f32 1e-05, %v3476_v29  ;;  %v5564_v20 = vmax.f32 %v5436_v11, 0.0  ;;  %v14941_v60 = vld [vmem:[#allocation6_spill] sm:$0xff] }
 0x350   :  { %v5168_v4 = vmul.f32 %v14915_v44, %v14914_v34  ;;  %v12335_v13 = vpop.permute.xlu1 %4810  ;;  %v3098_v27 = vmul.f32 0.0078125, %v14919_v50  ;;  %v14922_v44 = vld [vmem:[#allocation228_spill] sm:$0xff]  ;;  %v5569_v50 = vmax.f32 %v5441_v33, 0.0  ;;  %7430 = vrsqrt.f32 %v4370_v17 }
 0x351   :  { %14916 = vst [vmem:[#allocation281_spill] sm:$0xff] %v12335_v13  ;;  %v12341_v42 = vpop.permute.xlu0 %4081  ;;  %5060 = vperm.xlu1 %7182, %v7415_v35   ;;  %v14923_v15 = vsub.f32 %v14921_v47, %v14922_v44  ;;  %v14924_v34 = vld [vmem:[#allocation160_spill] sm:$0xff]  ;;  %v12350_v13 = vmax.f32 %v14925_v61, %v5567_v23  ;;  %v12354_v24 = vmax.f32 %v14926_v46, %v5562_v6  ;;  %v14928_v35 = vld [vmem:[#allocation258_spill] sm:$0xff]  ;;  %v7421_v54 = vpop.eup %7420  ;;  %v14931_v23 = vld [vmem:[#allocation317_spill] sm:$0xff]  ;;  %v3480_v6 = vmax.f32 %v3352_v21, 0.0 }
 0x352   :  { %14920 = vst [vmem:[#allocation203_spill] sm:$0xff] %v12341_v42  ;;  %5115 = vperm.xlu0 %7183, %v7417_v31   ;;  %v5303_v62 = vmul.f32 %v11872_v53, %v5168_v4  ;;  %v14929_v47 = vsub.f32 %v14691_v22, %v14928_v35  ;;  %v14932_v61 = vld [vmem:[#allocation96_spill] sm:$0xff]  ;;  %v3354_v33 = vsub.f32 %v3098_v27, %v12016_v16  ;;  %v4374_v11 = vadd.f32 1e-05, %v3478_v0  ;;  %v14934_v4 = vld [vmem:[#allocation9_spill] sm:$0xff]  ;;  %v7423_v17 = vpop.eup %7422  ;;  %v14940_v16 = vld [vmem:[#allocation91_spill] sm:$0xff] }
 0x353   :  { %v5185_v8 = vmul.f32 %v14924_v34, %v14923_v15  ;;  %14927 = vst [vmem:[#allocation300_spill] sm:$0xff] %v12354_v24  ;;  %v5571_v29 = vmax.f32 %v5443_v14, 0.0  ;;  %v14935_v15 = vld [vmem:[#allocation206_spill] sm:$0xff]  ;;  %v14938_v35 = vmax.f32 %v12050_v25, 0.0  ;;  %v14939_v21 = vld [vmem:[#allocation161_spill] sm:$0xff]  ;;  %v14945_v42 = vld [vmem:[#allocation11_spill] sm:$0xff]  ;;  %7432 = vrsqrt.f32 %v4372_v58 }
 0x354   :  { %v5201_v31 = vmul.f32 %v12074_v36, %v14929_v47  ;;  %v12361_v44 = vpop.permute.xlu1 %4056  ;;  %v14936_v22 = vsub.f32 %v14934_v4, %v14935_v15  ;;  %v14937_v34 = vld [vmem:[#allocation322_spill] sm:$0xff]  ;;  %v14944_v14 = vld [vmem:[#allocation157_spill] sm:$0xff]  ;;  %v5438_v25 = vadd.f32 %v11899_v39, %v5303_v62  ;;  %7434 = vrsqrt.f32 %v4374_v11 }
 0x355   :  { %14930 = vst [vmem:[#allocation30_spill] sm:$0xff] %v12361_v44  ;;  %v12366_v43 = vpop.permute.xlu0 %4845  ;;  %5070 = vperm.xlu1 %7182, %v7419_v48   ;;  %v5320_v46 = vmul.f32 %v11872_v53, %v5185_v8  ;;  %v12375_v47 = vmax.f32 %v14938_v35, %v5569_v50  ;;  %v14942_v48 = vld [vmem:[#allocation216_spill] sm:$0xff]  ;;  %v14946_v4 = vld [vmem:[#allocation210_spill] sm:$0xff]  ;;  %v14949_v8 = vmax.f32 %v12071_v18, 0.0  ;;  %v12410_v62 = vld [vmem:[%s13303_s4] ss:$0 sm:$0xff] }
 0x356   :  { %14933 = vst [vmem:[#allocation162_spill] sm:$0xff] %v12366_v43  ;;  %v5175_v36 = vmul.f32 %v14937_v34, %v14936_v22  ;;  %5125 = vperm.xlu0 %7183, %v7421_v54   ;;  %v14943_v0 = vsub.f32 %v14941_v60, %v14942_v48  ;;  %v14947_v15 = vsub.f32 %v14945_v42, %v14946_v4  ;;  %v14948_v22 = vld [vmem:[#allocation170_spill] sm:$0xff]  ;;  %v7425_v27 = vpop.eup %7424  ;;  %v4376_v60 = vadd.f32 1e-05, %v3480_v6  ;;  %v14951_v48 = vld [vmem:[#allocation319_spill] sm:$0xff]  ;;  %v14953_v42 = vld [vmem:[#allocation21_spill] sm:$0xff] }
 0x357   :  { %v12389_v54 = vmax.f32 %v14949_v8, %v5564_v20  ;;  %v5336_v50 = vmul.f32 %v11872_v53, %v5201_v31  ;;  %v3482_v43 = vmax.f32 %v3354_v33, 0.0  ;;  %v14954_v4 = vld [vmem:[#allocation164_spill] sm:$0xff]  ;;  %v14956_v58 = vld [vmem:[#allocation254_spill] sm:$0xff]  ;;  %v14958_v20 = vmax.f32 %v12082_v2, 0.0 }
 0x358   :  { %v5170_v44 = vmul.f32 %v14944_v14, %v14943_v0  ;;  %v5177_v34 = vmul.f32 %v14948_v22, %v14947_v15  ;;  %v12393_v35 = vpop.permute.xlu1 %4820  ;;  %v14952_v0 = vld [vmem:[#allocation98_spill] sm:$0xff]  ;;  %v14955_v15 = vsub.f32 %v14953_v42, %v14954_v4  ;;  %v5310_v31 = vmul.f32 %v12410_v62, %v5175_v36  ;;  %v14961_v2 = vld [vmem:[#allocation8_spill] sm:$0xff] }
 0x359   :  { %14950 = vst [vmem:[#allocation199_spill] sm:$0xff] %v12389_v54  ;;  %v12401_v18 = vpop.permute.xlu0 %4091  ;;  %5080 = vperm.xlu1 %7182, %v7423_v17   ;;  %v12405_v53 = vmax.f32 %v14958_v20, %v5571_v29  ;;  %v5455_v6 = vadd.f32 %v11899_v39, %v5320_v46  ;;  %v14962_v29 = vld [vmem:[#allocation222_spill] sm:$0xff]  ;;  %v7427_v20 = vpop.eup %7426  ;;  %v5566_v14 = vmax.f32 %v5438_v25, 0.0  ;;  %v5471_v46 = vadd.f32 %v11899_v39, %v5336_v50  ;;  %v12439_v39 = vld [vmem:[%s13304_s5] ss:$0 sm:$0xff] }
 0x35a   :  { %v5187_v22 = vmul.f32 %v14956_v58, %v14955_v15  ;;  %14957 = vst [vmem:[#allocation212_spill] sm:$0xff] %v12401_v18  ;;  %5135 = vperm.xlu0 %7183, %v7425_v27   ;;  %v5305_v17 = vmul.f32 %v12410_v62, %v5170_v44  ;;  %v5312_v11 = vmul.f32 %v12410_v62, %v5177_v34  ;;  %v14964_v15 = vld [vmem:[#allocation242_spill] sm:$0xff]  ;;  %v7429_v34 = vpop.eup %7428  ;;  %7436 = vrsqrt.f32 %v4376_v60 }
 0x35b   :  { %v14963_v4 = vsub.f32 %v14961_v2, %v14962_v29  ;;  %v14967_v27 = vld [vmem:[#allocation266_spill] sm:$0xff]  ;;  %v4378_v33 = vadd.f32 1e-05, %v3482_v43  ;;  %v14970_v2 = vld [vmem:[#allocation13_spill] sm:$0xff]  ;;  %v5583_v43 = vmax.f32 %v5455_v6, 0.0  ;;  %v14976_v60 = vsub.f32 %v14842_v51, %v14841_v12 }
 0x35c   :  { %v14968_v24 = vsub.f32 %v14707_v41, %v14967_v27  ;;  %v12429_v44 = vpop.permute.xlu1 %4066  ;;  %v14971_v29 = vld [vmem:[#allocation145_spill] sm:$0xff]  ;;  %v5322_v8 = vmul.f32 %v12410_v62, %v5187_v22  ;;  %v5445_v41 = vadd.f32 %v12439_v39, %v5310_v31  ;;  %v5440_v22 = vadd.f32 %v12439_v39, %v5305_v17  ;;  %v14980_v31 = vld [vmem:[#allocation264_spill] sm:$0xff] }
 0x35d   :  { %v5172_v58 = vmul.f32 %v14964_v15, %v14963_v4  ;;  %14969 = vst [vmem:[#allocation209_spill] sm:$0xff] %v12429_v44  ;;  %v14972_v4 = vsub.f32 %v14970_v2, %v14971_v29  ;;  %v14973_v15 = vld [vmem:[#allocation324_spill] sm:$0xff]  ;;  %v4856_v36 = vpop.permute.xlu0 %4855  ;;  %5090 = vperm.xlu1 %7182, %v7427_v20   ;;  %v7431_v2 = vpop.eup %7430  ;;  %v5447_v20 = vadd.f32 %v12439_v39, %v5312_v11  ;;  %v14981_v50 = vmax.f32 %v12104_v26, 0.0  ;;  %v14983_v11 = vld [vmem:[#allocation10_spill] sm:$0xff] }
 0x35e   :  { %v5203_v42 = vmul.f32 %v12115_v32, %v14968_v24  ;;  %v14974_v32 = vld [vmem:[#allocation180_spill] sm:$0xff]  ;;  %v14975_v24 = vld [vmem:[#allocation95_spill] sm:$0xff]  ;;  %v5217_v27 = vmul.f32 %v4856_v36, %v14976_v60  ;;  %5145 = vperm.xlu0 %7183, %v7429_v34   ;;  %v5599_v54 = vmax.f32 %v5471_v46, 0.0  ;;  %7438 = vrsqrt.f32 %v4378_v33  ;;  %v14991_v33 = vld [vmem:[#allocation269_spill] sm:$0xff] }
 0x35f   :  { %v5179_v25 = vmul.f32 %v14973_v15, %v14972_v4  ;;  %v5307_v29 = vmul.f32 %v12410_v62, %v5172_v58  ;;  %v14977_v4 = vld [vmem:[#allocation46_spill] sm:$0xff]  ;;  %v12456_v6 = vmax.f32 %v14981_v50, %v5566_v14  ;;  %v14984_v58 = vld [vmem:[#allocation227_spill] sm:$0xff]  ;;  %v7433_v14 = vpop.eup %7432  ;;  %v5573_v46 = vmax.f32 %v5445_v41, 0.0  ;;  %v14988_v50 = vld [vmem:[#allocation20_spill] sm:$0xff] }
 0x360   :  { %v14978_v15 = vld [vmem:[#allocation234_spill] sm:$0xff]  ;;  %v5338_v12 = vmul.f32 %v12410_v62, %v5203_v42  ;;  %v5352_v51 = vmul.f32 %v12410_v62, %v5217_v27  ;;  %v12460_v36 = vpop.permute.xlu1 %4830  ;;  %v14985_v34 = vsub.f32 %v14983_v11, %v14984_v58  ;;  %v14986_v60 = vld [vmem:[#allocation167_spill] sm:$0xff]  ;;  %v5710_v42 = vmax.f32 %v12350_v13, %v5583_v43 }
 0x361   :  { %v14979_v44 = vsub.f32 %v14977_v4, %v14978_v15  ;;  %14982 = vst [vmem:[#allocation35_spill] sm:$0xff] %v12460_v36  ;;  %v5314_v17 = vmul.f32 %v12410_v62, %v5179_v25  ;;  %v12468_v26 = vpop.permute.xlu0 %4101  ;;  %5100 = vperm.xlu1 %7182, %v7431_v2   ;;  %v14989_v27 = vld [vmem:[#allocation118_spill] sm:$0xff]  ;;  %v5568_v36 = vmax.f32 %v5440_v22, 0.0  ;;  %v5575_v11 = vmax.f32 %v5447_v20, 0.0  ;;  %v14992_v41 = vld [vmem:[#allocation275_spill] sm:$0xff] }
 0x362   :  { %v5174_v4 = vmul.f32 %v14986_v60, %v14985_v34  ;;  %14987 = vst [vmem:[#allocation182_spill] sm:$0xff] %v12468_v26  ;;  %v14990_v15 = vsub.f32 %v14988_v50, %v14989_v27  ;;  %v5487_v25 = vadd.f32 %v12439_v39, %v5352_v51  ;;  %v5442_v58 = vadd.f32 %v12439_v39, %v5307_v29  ;;  %v7435_v34 = vpop.eup %7434  ;;  %v14995_v29 = vld [vmem:[#allocation48_spill] sm:$0xff] }
 0x363   :  { %v5189_v18 = vmul.f32 %v14980_v31, %v14979_v44  ;;  %v5457_v44 = vadd.f32 %v12439_v39, %v5322_v8  ;;  %v5711_v60 = vmax.f32 %v5710_v42, %v5599_v54  ;;  %v5473_v2 = vadd.f32 %v12439_v39, %v5338_v12 }
 0x364   :  { %v5184_v31 = vmul.f32 %v14991_v33, %v14990_v15  ;;  %v14993_v13 = vsub.f32 %v14724_v1, %v14992_v41  ;;  %v5615_v50 = vmax.f32 %v5487_v25, 0.0  ;;  %v12483_v27 = vpop.permute.xlu1 %4076  ;;  %v5449_v51 = vadd.f32 %v12439_v39, %v5314_v17  ;;  %v14996_v15 = vld [vmem:[#allocation239_spill] sm:$0xff] }
 0x365   :  { %v5324_v8 = vmul.f32 %v12410_v62, %v5189_v18  ;;  %14994 = vst [vmem:[#allocation289_spill] sm:$0xff] %v12483_v27  ;;  %v5309_v22 = vmul.f32 %v12410_v62, %v5174_v4  ;;  %v5585_v20 = vmax.f32 %v5457_v44, 0.0  ;;  %v14997_v18 = vsub.f32 %v14995_v29, %v14996_v15  ;;  %v14998_v33 = vld [vmem:[#allocation127_spill] sm:$0xff]  ;;  %v4866_v42 = vpop.permute.xlu0 %4865  ;;  %5110 = vperm.xlu1 %7182, %v7433_v14   ;;  %v7437_v44 = vpop.eup %7436 }
 0x366   :  { %v5205_v43 = vmul.f32 %v12157_v59, %v14993_v13  ;;  %v5319_v12 = vmul.f32 %v12410_v62, %v5184_v31  ;;  %v14999_v1 = vsub.f32 %v14731_v38, %v14730_v56  ;;  %v12496_v25 = vmax.f32 %v5711_v60, %v5615_v50  ;;  %v15008_v15 = vld [vmem:[#allocation187_spill] sm:$0xff] }
 0x367   :  { %v5191_v54 = vmul.f32 %v14998_v33, %v14997_v18  ;;  %v15001_v17 = vsub.f32 %v14856_v52, %v14855_v40  ;;  %v15002_v41 = vmax.f32 %v12122_v37, 0.0  ;;  %v15003_v14 = vmax.f32 %v12141_v19, 0.0  ;;  %v15010_v33 = vld [vmem:[#allocation271_spill] sm:$0xff] }
 0x368   :  { %v5200_v59 = vmul.f32 %v12177_v10, %v14999_v1  ;;  %15000 = vst [vmem:[#allocation148_spill] sm:$0xff] %v12496_v25  ;;  %v15004_v31 = vmax.f32 %v12164_v55, 0.0  ;;  %v5570_v38 = vmax.f32 %v5442_v58, 0.0  ;;  %v5459_v10 = vadd.f32 %v12439_v39, %v5324_v8  ;;  %v12516_v50 = vpop.permute.xlu1 %4840  ;;  %v15006_v55 = vld [vmem:[#allocation169_spill] sm:$0xff]  ;;  %v15012_v1 = vld [vmem:[#allocation12_spill] sm:$0xff] }
 0x369   :  { %v5219_v4 = vmul.f32 %v4866_v42, %v15001_v17  ;;  %v12503_v13 = vmax.f32 %v15002_v41, %v5573_v46  ;;  %v12507_v29 = vmax.f32 %v15003_v14, %v5568_v36  ;;  %v5601_v60 = vmax.f32 %v5473_v2, 0.0  ;;  %v15005_v36 = vld [vmem:[#allocation45_spill] sm:$0xff]  ;;  %v12526_v18 = vpop.permute.xlu0 %4111  ;;  %5120 = vperm.xlu1 %7182, %v7435_v34   ;;  %v15013_v17 = vld [vmem:[#allocation230_spill] sm:$0xff]  ;;  %v15015_v41 = vld [vmem:[#allocation252_spill] sm:$0xff] }
 0x36a   :  { %v12511_v56 = vmax.f32 %v15004_v31, %v5575_v11  ;;  %v5340_v40 = vmul.f32 %v12410_v62, %v5205_v43  ;;  %v5577_v37 = vmax.f32 %v5449_v51, 0.0  ;;  %v12519_v46 = vadd.f32 %v12439_v39, %v5309_v22  ;;  %15009 = vst [vmem:[#allocation303_spill] sm:$0xff] %v12526_v18  ;;  %v7439_v22 = vpop.eup %7438  ;;  %v15016_v31 = vld [vmem:[#allocation50_spill] sm:$0xff]  ;;  %v15017_v34 = vld [vmem:[#allocation245_spill] sm:$0xff] }
 0x36b   :  { %v5354_v52 = vmul.f32 %v12410_v62, %v5219_v4  ;;  %v5326_v19 = vmul.f32 %v12410_v62, %v5191_v54  ;;  %v15007_v11 = vsub.f32 %v15005_v36, %v15006_v55  ;;  %v5724_v8 = vmax.f32 %v12375_v47, %v5585_v20  ;;  %v15019_v47 = vld [vmem:[#allocation192_spill] sm:$0xff]  ;;  %v15021_v55 = vld [vmem:[#allocation195_spill] sm:$0xff]  ;;  %v15215_v18 = vld [vmem:[#allocation142_spill] sm:$0xff] }
 0x36c   :  { %v5454_v2 = vadd.f32 %v12439_v39, %v5319_v12  ;;  %v5335_v43 = vmul.f32 %v12410_v62, %v5200_v59  ;;  %v15011_v42 = vmax.f32 %v15010_v33, 0.0  ;;  %v15014_v4 = vsub.f32 %v15012_v1, %v15013_v17  ;;  %v15020_v12 = vld [vmem:[#allocation72_spill] sm:$0xff]  ;;  %v15025_v1 = vld [vmem:[#allocation134_spill] sm:$0xff] }
 0x36d   :  { %v5186_v58 = vmul.f32 %v15008_v15, %v15007_v11  ;;  %v5489_v51 = vadd.f32 %v12439_v39, %v5354_v52  ;;  %v15018_v36 = vsub.f32 %v15016_v31, %v15017_v34  ;;  %v15022_v59 = vsub.f32 %v15020_v12, %v15021_v55  ;;  %v15023_v11 = vld [vmem:[#allocation200_spill] sm:$0xff]  ;;  %v15028_v31 = vld [vmem:[#allocation217_spill] sm:$0xff]  ;;  %5130 = vperm.xlu1 %7182, %v7437_v44  }
 0x36e   :  { %v12534_v54 = vmax.f32 %v15011_v42, %v5570_v38  ;;  %v5176_v14 = vmul.f32 %v15015_v41, %v15014_v4  ;;  %v5587_v15 = vmax.f32 %v5459_v10, 0.0  ;;  %v5725_v25 = vmax.f32 %v5724_v8, %v5601_v60  ;;  %v12549_v42 = vpop.permute.xlu1 %4086  ;;  %v15027_v41 = vld [vmem:[#allocation15_spill] sm:$0xff]  ;;  %v4876_v60 = vpop.permute.xlu0 %4875  ;;  %v15036_v44 = vld [vmem:[#allocation144_spill] sm:$0xff] }
 0x36f   :  { %v5193_v20 = vmul.f32 %v15019_v47, %v15018_v36  ;;  %v5207_v52 = vmul.f32 %v15023_v11, %v15022_v59  ;;  %v5475_v38 = vadd.f32 %v12439_v39, %v5340_v40  ;;  %v5617_v33 = vmax.f32 %v5489_v51, 0.0  ;;  %15024 = vst [vmem:[#allocation32_spill] sm:$0xff] %v12549_v42  ;;  %v15030_v36 = vld [vmem:[#allocation327_spill] sm:$0xff] }
 0x370   :  { %v15026_v17 = vmax.f32 %v15025_v1, 0.0  ;;  %v15029_v34 = vsub.f32 %v15027_v41, %v15028_v31  ;;  %v5461_v12 = vadd.f32 %v12439_v39, %v5326_v19  ;;  %v5321_v10 = vmul.f32 %v12410_v62, %v5186_v58  ;;  %v15033_v1 = vld [vmem:[#allocation66_spill] sm:$0xff]  ;;  %v15034_v58 = vld [vmem:[#allocation204_spill] sm:$0xff] }
 0x371   :  { %v5582_v40 = vmax.f32 %v5454_v2, 0.0  ;;  %v5470_v8 = vadd.f32 %v12439_v39, %v5335_v43  ;;  %v12564_v51 = vmax.f32 %v5725_v25, %v5617_v33  ;;  %v12570_v59 = vmul.f32 %v12410_v62, %v5176_v14  ;;  %v15037_v33 = vld [vmem:[#allocation76_spill] sm:$0xff]  ;;  %v15038_v41 = vld [vmem:[#allocation282_spill] sm:$0xff]  ;;  %5140 = vperm.xlu1 %7182, %v7439_v22  }
 0x372   :  { %v12553_v4 = vmax.f32 %v15026_v17, %v5577_v37  ;;  %v12559_v47 = vmul.f32 %v15030_v36, %v15029_v34  ;;  %v15032_v37 = vsub.f32 %v14883_v28, %v14882_v7  ;;  %v5328_v11 = vmul.f32 %v12410_v62, %v5193_v20  ;;  %v4851_v14 = vpop.permute.xlu1 %4850  ;;  %v15041_v36 = vld [vmem:[#allocation249_spill] sm:$0xff] }
 0x373   :  { %15031 = vst [vmem:[#allocation168_spill] sm:$0xff] %v12564_v51  ;;  %v5342_v19 = vmul.f32 %v12410_v62, %v5207_v52  ;;  %v15035_v17 = vsub.f32 %v15033_v1, %v15034_v58  ;;  %v5738_v43 = vmax.f32 %v12405_v53, %v5587_v15  ;;  %v5603_v25 = vmax.f32 %v5475_v38, 0.0  ;;  %v15040_v52 = vld [vmem:[#allocation52_spill] sm:$0xff]  ;;  %v12592_v38 = vpop.permute.xlu0 %4121  ;;  %v15046_v58 = vld [vmem:[#allocation47_spill] sm:$0xff]  ;;  %v15217_v51 = vld [vmem:[#allocation85_spill] sm:$0xff] }
 0x374   :  { %v5221_v55 = vmul.f32 %v4876_v60, %v15032_v37  ;;  %v15039_v31 = vsub.f32 %v15037_v33, %v15038_v41  ;;  %v5589_v34 = vmax.f32 %v5461_v12, 0.0  ;;  %v5456_v20 = vadd.f32 %v12439_v39, %v5321_v10  ;;  %v15043_v37 = vld [vmem:[#allocation193_spill] sm:$0xff]  ;;  %15045 = vst [vmem:[#allocation290_spill] sm:$0xff] %v12592_v38  ;;  %v15049_v12 = vld [vmem:[#allocation191_spill] sm:$0xff] }
 0x375   :  { %v5202_v2 = vmul.f32 %v15036_v44, %v15035_v17  ;;  %v15042_v60 = vsub.f32 %v15040_v52, %v15041_v36  ;;  %v15044_v53 = vsub.f32 %v14906_v9, %v14905_v63  ;;  %v5598_v10 = vmax.f32 %v5470_v8, 0.0  ;;  %v15053_v36 = vld [vmem:[#allocation173_spill] sm:$0xff] }
 0x376   :  { %v5209_v7 = vmul.f32 %v12238_v5, %v15039_v31  ;;  %v5356_v28 = vmul.f32 %v12410_v62, %v5221_v55  ;;  %v5703_v5 = vmax.f32 %v12456_v6, %v5582_v40  ;;  %v15047_v55 = vld [vmem:[#allocation255_spill] sm:$0xff]  ;;  %v5463_v41 = vadd.f32 %v12439_v39, %v5328_v11  ;;  %v15050_v6 = vld [vmem:[#allocation80_spill] sm:$0xff]  ;;  %v12609_v8 = vpop.permute.xlu1 %4096 }
 0x377   :  { %v5195_v1 = vmul.f32 %v15043_v37, %v15042_v60  ;;  %v5216_v15 = vmul.f32 %v4851_v14, %v15044_v53  ;;  %v15048_v17 = vsub.f32 %v15046_v58, %v15047_v55  ;;  %v5477_v31 = vadd.f32 %v12439_v39, %v5342_v19  ;;  %v15051_v40 = vld [vmem:[#allocation291_spill] sm:$0xff]  ;;  %15054 = vst [vmem:[#allocation296_spill] sm:$0xff] %v12609_v8  ;;  %v4886_v53 = vpop.permute.xlu0 %4885 }
 0x378   :  { %v5491_v33 = vadd.f32 %v12439_v39, %v5356_v28  ;;  %v5337_v63 = vmul.f32 %v12410_v62, %v5202_v2  ;;  %v5739_v14 = vmax.f32 %v5738_v43, %v5603_v25  ;;  %v5344_v22 = vmul.f32 %v12410_v62, %v5209_v7  ;;  %v15235_v8 = vld [vmem:[#allocation59_spill] sm:$0xff] }
 0x379   :  { %v5188_v44 = vmul.f32 %v15049_v12, %v15048_v17  ;;  %v5351_v9 = vmul.f32 %v12410_v62, %v5216_v15  ;;  %v15052_v52 = vsub.f32 %v15050_v6, %v15051_v40  ;;  %v5752_v28 = vmax.f32 %v12503_v13, %v5589_v34  ;;  %v15057_v12 = vld [vmem:[#allocation70_spill] sm:$0xff]  ;;  %v15058_v13 = vld [vmem:[#allocation287_spill] sm:$0xff] }
 0x37a   :  { %v5619_v37 = vmax.f32 %v5491_v33, 0.0  ;;  %v5584_v11 = vmax.f32 %v5456_v20, 0.0  ;;  %v5330_v19 = vmul.f32 %v12410_v62, %v5195_v1  ;;  %v5704_v25 = vmax.f32 %v5703_v5, %v5598_v10  ;;  %v15060_v20 = vld [vmem:[#allocation150_spill] sm:$0xff]  ;;  %v4861_v10 = vpop.permute.xlu1 %4860 }
 0x37b   :  { %v5211_v60 = vmul.f32 %v15053_v36, %v15052_v52  ;;  %v5486_v2 = vadd.f32 %v12439_v39, %v5351_v9  ;;  %v5323_v43 = vmul.f32 %v12410_v62, %v5188_v44  ;;  %v15056_v15 = vsub.f32 %v14911_v49, %v14910_v45  ;;  %v15061_v49 = vld [vmem:[#allocation49_spill] sm:$0xff] }
 0x37c   :  { %v12615_v7 = vmax.f32 %v5739_v14, %v5619_v37  ;;  %v5605_v55 = vmax.f32 %v5477_v31, 0.0  ;;  %v5472_v17 = vadd.f32 %v12439_v39, %v5337_v63  ;;  %v15059_v34 = vsub.f32 %v15057_v12, %v15058_v13  ;;  %v15062_v31 = vld [vmem:[#allocation257_spill] sm:$0xff]  ;;  %v15064_v63 = vld [vmem:[#allocation196_spill] sm:$0xff]  ;;  %v4896_v37 = vpop.permute.xlu0 %4895 }
 0x37d   :  { %v5223_v58 = vmul.f32 %v4886_v53, %v15056_v15  ;;  %v5614_v33 = vmax.f32 %v5486_v2, 0.0  ;;  %v5591_v9 = vmax.f32 %v5463_v41, 0.0  ;;  %v5479_v6 = vadd.f32 %v12439_v39, %v5344_v22 }
 0x37e   :  { %15055 = vst [vmem:[#allocation215_spill] sm:$0xff] %v12615_v7  ;;  %v5204_v1 = vmul.f32 %v15060_v20, %v15059_v34  ;;  %v5346_v5 = vmul.f32 %v12410_v62, %v5211_v60  ;;  %v5465_v45 = vadd.f32 %v12439_v39, %v5330_v19  ;;  %v15063_v14 = vsub.f32 %v15061_v49, %v15062_v31 }
 0x37f   :  { %v5358_v44 = vmul.f32 %v12410_v62, %v5223_v58  ;;  %v12633_v52 = vmax.f32 %v5704_v25, %v5614_v33  ;;  %v15066_v36 = vsub.f32 %v14918_v30, %v14917_v57  ;;  %v5717_v22 = vmax.f32 %v12507_v29, %v5584_v11  ;;  %v12648_v11 = vpop.permute.xlu1 %4106 }
 0x380   :  { %v5190_v40 = vmul.f32 %v15064_v63, %v15063_v14  ;;  %v5458_v60 = vadd.f32 %v12439_v39, %v5323_v43  ;;  %v15067_v19 = vsub.f32 %v14932_v61, %v14931_v23  ;;  %v5753_v15 = vmax.f32 %v5752_v28, %v5605_v55  ;;  %15068 = vst [vmem:[#allocation189_spill] sm:$0xff] %v12648_v11  ;;  %v4906_v28 = vpop.permute.xlu0 %4905  ;;  %v15069_v55 = vld [vmem:[#allocation74_spill] sm:$0xff] }
 0x381   :  { %15065 = vst [vmem:[#allocation37_spill] sm:$0xff] %v12633_v52  ;;  %v5218_v41 = vmul.f32 %v4861_v10, %v15066_v36  ;;  %v5493_v2 = vadd.f32 %v12439_v39, %v5358_v44  ;;  %v5600_v58 = vmax.f32 %v5472_v17, 0.0  ;;  %v5339_v25 = vmul.f32 %v12410_v62, %v5204_v1  ;;  %v15070_v17 = vld [vmem:[#allocation292_spill] sm:$0xff] }
 0x382   :  { %v5225_v53 = vmul.f32 %v4896_v37, %v15067_v19  ;;  %v5607_v13 = vmax.f32 %v5479_v6, 0.0  ;;  %v5481_v57 = vadd.f32 %v12439_v39, %v5346_v5  ;;  %v5766_v43 = vmax.f32 %v12511_v56, %v5591_v9  ;;  %v15074_v56 = vld [vmem:[#allocation51_spill] sm:$0xff]  ;;  %v15075_v9 = vld [vmem:[#allocation261_spill] sm:$0xff] }
 0x383   :  { %v5353_v12 = vmul.f32 %v12410_v62, %v5218_v41  ;;  %v5621_v30 = vmax.f32 %v5493_v2, 0.0  ;;  %v5593_v34 = vmax.f32 %v5465_v45, 0.0  ;;  %v5325_v23 = vmul.f32 %v12410_v62, %v5190_v40  ;;  %v15077_v45 = vld [vmem:[#allocation244_spill] sm:$0xff]  ;;  %v4871_v37 = vpop.permute.xlu1 %4870  ;;  %v15078_v2 = vld [vmem:[#allocation14_spill] sm:$0xff]  ;;  %v15079_v19 = vld [vmem:[#allocation233_spill] sm:$0xff] }
 0x384   :  { %v5360_v29 = vmul.f32 %v12410_v62, %v5225_v53  ;;  %v15071_v20 = vsub.f32 %v15069_v55, %v15070_v17  ;;  %v15073_v5 = vsub.f32 %v14952_v0, %v14951_v48  ;;  %v15076_v10 = vsub.f32 %v15074_v56, %v15075_v9  ;;  %v15081_v48 = vld [vmem:[#allocation184_spill] sm:$0xff]  ;;  %v15088_v17 = vld [vmem:[#allocation281_spill] sm:$0xff] }
 0x385   :  { %v5488_v61 = vadd.f32 %v12439_v39, %v5353_v12  ;;  %v12657_v33 = vmax.f32 %v5753_v15, %v5621_v30  ;;  %v5718_v31 = vmax.f32 %v5717_v22, %v5600_v58  ;;  %v5474_v14 = vadd.f32 %v12439_v39, %v5339_v25  ;;  %v12678_v25 = vpop.permute.xlu0 %4915  ;;  %v15091_v56 = vld [vmem:[#allocation265_spill] sm:$0xff] }
 0x386   :  { %v5206_v1 = vmul.f32 %v12298_v3, %v15071_v20  ;;  %v5495_v6 = vadd.f32 %v12439_v39, %v5360_v29  ;;  %v5227_v44 = vmul.f32 %v4906_v28, %v15073_v5  ;;  %v5192_v49 = vmul.f32 %v15077_v45, %v15076_v10  ;;  %v15086_v28 = vld [vmem:[#allocation297_spill] sm:$0xff]  ;;  %v15093_v10 = vld [vmem:[#allocation248_spill] sm:$0xff] }
 0x387   :  { %15072 = vst [vmem:[#allocation293_spill] sm:$0xff] %v12657_v33  ;;  %v5616_v63 = vmax.f32 %v5488_v61, 0.0  ;;  %v5767_v40 = vmax.f32 %v5766_v43, %v5607_v13  ;;  %v5609_v36 = vmax.f32 %v5481_v57, 0.0  ;;  %v15080_v53 = vsub.f32 %v15078_v2, %v15079_v19  ;;  %v15099_v2 = vld [vmem:[#allocation83_spill] sm:$0xff]  ;;  %v15100_v19 = vld [vmem:[#allocation221_spill] sm:$0xff]  ;;  %v15226_v33 = vld [vmem:[#allocation132_spill] sm:$0xff] }
 0x388   :  { %v5623_v3 = vmax.f32 %v5495_v6, 0.0  ;;  %v5362_v41 = vmul.f32 %v12410_v62, %v5227_v44  ;;  %v5586_v15 = vmax.f32 %v5458_v60, 0.0  ;;  %v15083_v22 = vsub.f32 %v14940_v16, %v14939_v21  ;;  %v15085_v60 = vld [vmem:[#allocation78_spill] sm:$0xff]  ;;  %v12693_v6 = vpop.permute.xlu1 %4116  ;;  %v15090_v44 = vld [vmem:[#allocation53_spill] sm:$0xff] }
 0x389   :  { %v5178_v0 = vmul.f32 %v15081_v48, %v15080_v53  ;;  %v12673_v12 = vmax.f32 %v5718_v31, %v5616_v63  ;;  %v5780_v13 = vmax.f32 %v12553_v4, %v5593_v34  ;;  %v5341_v57 = vmul.f32 %v12410_v62, %v5206_v1  ;;  %15089 = vst [vmem:[#allocation207_spill] sm:$0xff] %v12693_v6  ;;  %v15169_v6 = vld [vmem:[#allocation294_spill] sm:$0xff] }
 0x38a   :  { %v5220_v58 = vmul.f32 %v4871_v37, %v15083_v22  ;;  %v12682_v30 = vmax.f32 %v5767_v40, %v5623_v3  ;;  %v5497_v29 = vadd.f32 %v12439_v39, %v5362_v41  ;;  %v5572_v43 = vmax.f32 %v12519_v46, 0.0  ;;  %v15097_v40 = vld [vmem:[#allocation330_spill] sm:$0xff]  ;;  %v15102_v22 = vld [vmem:[#allocation64_spill] sm:$0xff] }
 0x38b   :  { %15082 = vst [vmem:[#allocation34_spill] sm:$0xff] %v12673_v12  ;;  %v5602_v61 = vmax.f32 %v5474_v14, 0.0  ;;  %v15087_v55 = vsub.f32 %v15085_v60, %v15086_v28  ;;  %v5460_v16 = vadd.f32 %v12439_v39, %v5325_v23  ;;  %v5327_v4 = vmul.f32 %v12410_v62, %v5192_v49  ;;  %v12703_v14 = vpop.permute.xlu0 %4925  ;;  %v15094_v23 = vld [vmem:[#allocation17_spill] sm:$0xff]  ;;  %v15095_v49 = vld [vmem:[#allocation223_spill] sm:$0xff] }
 0x38c   :  { %15084 = vst [vmem:[#allocation177_spill] sm:$0xff] %v12682_v30  ;;  %v5355_v21 = vmul.f32 %v12410_v62, %v5220_v58  ;;  %v5781_v34 = vmax.f32 %v5780_v13, %v5609_v36  ;;  %v5625_v1 = vmax.f32 %v5497_v29, 0.0  ;;  %v5446_v5 = vadd.f32 %v12439_v39, %v12570_v59  ;;  %v4881_v60 = vpop.permute.xlu1 %4880  ;;  %v15165_v12 = vld [vmem:[#allocation199_spill] sm:$0xff] }
 0x38d   :  { %v5208_v20 = vmul.f32 %v15088_v17, %v15087_v55  ;;  %v5731_v46 = vmax.f32 %v12534_v54, %v5586_v15  ;;  %v15092_v9 = vsub.f32 %v15090_v44, %v15091_v56  ;;  %v15096_v63 = vsub.f32 %v15094_v23, %v15095_v49  ;;  %v15105_v17 = vld [vmem:[#allocation93_spill] sm:$0xff]  ;;  %v15214_v30 = vld [vmem:[#allocation139_spill] sm:$0xff] }
 0x38e   :  { %v5490_v31 = vadd.f32 %v12439_v39, %v5355_v21  ;;  %v5313_v3 = vmul.f32 %v12410_v62, %v5178_v0  ;;  %v5476_v59 = vadd.f32 %v12439_v39, %v5341_v57  ;;  %v12711_v41 = vmax.f32 %v5781_v34, %v5625_v1  ;;  %v15112_v56 = vld [vmem:[#allocation121_spill] sm:$0xff] }
 0x38f   :  { %v5194_v45 = vmul.f32 %v15093_v10, %v15092_v9  ;;  %v5183_v36 = vmul.f32 %v15097_v40, %v15096_v63  ;;  %v5732_v54 = vmax.f32 %v5731_v46, %v5602_v61  ;;  %v5343_v37 = vmul.f32 %v12410_v62, %v5208_v20  ;;  %v15106_v20 = vld [vmem:[#allocation178_spill] sm:$0xff]  ;;  %v12729_v34 = vpop.permute.xlu0 %4935  ;;  %v15113_v9 = vld [vmem:[#allocation97_spill] sm:$0xff] }
 0x390   :  { %15098 = vst [vmem:[#allocation138_spill] sm:$0xff] %v12711_v41  ;;  %v15101_v53 = vsub.f32 %v15099_v2, %v15100_v19  ;;  %v5618_v15 = vmax.f32 %v5490_v31, 0.0  ;;  %v15103_v58 = vmax.f32 %v15102_v22, 0.0  ;;  %v5316_v29 = vmul.f32 %v12410_v62, %v12559_v47  ;;  %v15108_v47 = vld [vmem:[#allocation16_spill] sm:$0xff]  ;;  %v15114_v63 = vld [vmem:[#allocation18_spill] sm:$0xff]  ;;  %v15115_v40 = vld [vmem:[#allocation241_spill] sm:$0xff] }
 0x391   :  { %v5588_v0 = vmax.f32 %v5460_v16, 0.0  ;;  %v5462_v57 = vadd.f32 %v12439_v39, %v5327_v4  ;;  %v5574_v28 = vmax.f32 %v5446_v5, 0.0  ;;  %v5329_v61 = vmul.f32 %v12410_v62, %v5194_v45  ;;  %v15109_v16 = vld [vmem:[#allocation238_spill] sm:$0xff]  ;;  %v15111_v4 = vld [vmem:[#allocation29_spill] sm:$0xff] }
 0x392   :  { %v5210_v48 = vmul.f32 %v12393_v35, %v15101_v53  ;;  %v5744_v13 = vmax.f32 %v15103_v58, %v5572_v43  ;;  %v12724_v55 = vmax.f32 %v5732_v54, %v5618_v15  ;;  %v15107_v21 = vsub.f32 %v15105_v17, %v15106_v20  ;;  %v4891_v53 = vpop.permute.xlu1 %4890 }
 0x393   :  { %v5318_v43 = vmul.f32 %v12410_v62, %v5183_v36  ;;  %v5448_v1 = vadd.f32 %v12439_v39, %v5313_v3  ;;  %v15110_v46 = vsub.f32 %v15108_v47, %v15109_v16  ;;  %v5604_v5 = vmax.f32 %v5476_v59, 0.0  ;;  %v15117_v3 = vld [vmem:[#allocation124_spill] sm:$0xff]  ;;  %v15118_v59 = vld [vmem:[#allocation279_spill] sm:$0xff]  ;;  %v15121_v47 = vld [vmem:[#allocation54_spill] sm:$0xff] }
 0x394   :  { %15104 = vst [vmem:[#allocation306_spill] sm:$0xff] %v12724_v55  ;;  %v5222_v35 = vmul.f32 %v4881_v60, %v15107_v21  ;;  %v4202_v10 = vsub.f32 %v15113_v9, %v15112_v56  ;;  %v5478_v45 = vadd.f32 %v12439_v39, %v5343_v37  ;;  %v5345_v31 = vmul.f32 %v12410_v62, %v5210_v48  ;;  %v15122_v16 = vld [vmem:[#allocation176_spill] sm:$0xff]  ;;  %v15173_v55 = vld [vmem:[#allocation114_spill] sm:$0xff] }
 0x395   :  { %v5180_v44 = vmul.f32 %v15111_v4, %v15110_v46  ;;  %v5451_v49 = vadd.f32 %v12439_v39, %v5316_v29  ;;  %v15116_v36 = vsub.f32 %v15114_v63, %v15115_v40  ;;  %v5745_v2 = vmax.f32 %v5744_v13, %v5588_v0  ;;  %v12754_v29 = vpop.permute.xlu0 %4945  ;;  %v15125_v56 = vld [vmem:[#allocation56_spill] sm:$0xff] }
 0x396   :  { %v5357_v23 = vmul.f32 %v12410_v62, %v5222_v35  ;;  %v5590_v19 = vmax.f32 %v5462_v57, 0.0  ;;  %v15119_v15 = vmax.f32 %v15118_v59, 0.0  ;;  %v5464_v58 = vadd.f32 %v12439_v39, %v5329_v61  ;;  %v15128_v9 = vld [vmem:[#allocation328_spill] sm:$0xff] }
 0x397   :  { %v5182_v54 = vmul.f32 %v15117_v3, %v15116_v36  ;;  %v15120_v48 = vsub.f32 %v14975_v24, %v14974_v32  ;;  %v5453_v17 = vadd.f32 %v12439_v39, %v5318_v43  ;;  %v5576_v20 = vmax.f32 %v5448_v1, 0.0  ;;  %v15124_v24 = vld [vmem:[#allocation325_spill] sm:$0xff]  ;;  %v15126_v43 = vld [vmem:[#allocation174_spill] sm:$0xff] }
 0x398   :  { %v5758_v22 = vmax.f32 %v15119_v15, %v5574_v28  ;;  %v5492_v37 = vadd.f32 %v12439_v39, %v5357_v23  ;;  %v5315_v13 = vmul.f32 %v12410_v62, %v5180_v44  ;;  %v5746_v0 = vmax.f32 %v5745_v2, %v5604_v5  ;;  %v4901_v5 = vpop.permute.xlu1 %4900  ;;  %v15130_v36 = vld [vmem:[#allocation141_spill] sm:$0xff]  ;;  %v15135_v15 = vld [vmem:[#allocation262_spill] sm:$0xff] }
 0x399   :  { %v5224_v60 = vmul.f32 %v4891_v53, %v15120_v48  ;;  %v5606_v57 = vmax.f32 %v5478_v45, 0.0  ;;  %v5480_v21 = vadd.f32 %v12439_v39, %v5345_v31  ;;  %v5317_v35 = vmul.f32 %v12410_v62, %v5182_v54  ;;  %v12772_v40 = vpop.permute.xlu0 %4955  ;;  %v15133_v53 = vld [vmem:[#allocation270_spill] sm:$0xff] }
 0x39a   :  { %v5620_v28 = vmax.f32 %v5492_v37, 0.0  ;;  %v15123_v32 = vsub.f32 %v15121_v47, %v15122_v16  ;;  %v5759_v4 = vmax.f32 %v5758_v22, %v5590_v19  ;;  %v15127_v1 = vsub.f32 %v15125_v56, %v15126_v43  ;;  %v15132_v19 = vld [vmem:[#allocation22_spill] sm:$0xff] }
 0x39b   :  { %v5359_v61 = vmul.f32 %v12410_v62, %v5224_v60  ;;  %v5592_v45 = vmax.f32 %v5464_v58, 0.0  ;;  %v5226_v63 = vmul.f32 %v4901_v5, %v4202_v10  ;;  %v15131_v3 = vmax.f32 %v15130_v36, 0.0  ;;  %v15136_v37 = vld [vmem:[#allocation58_spill] sm:$0xff] }
 0x39c   :  { %v5197_v46 = vmul.f32 %v15124_v24, %v15123_v32  ;;  %v5199_v44 = vmul.f32 %v15128_v9, %v15127_v1  ;;  %v12769_v23 = vmax.f32 %v5746_v0, %v5620_v28  ;;  %v5450_v2 = vadd.f32 %v12439_v39, %v5315_v13  ;;  %v15137_v48 = vld [vmem:[#allocation274_spill] sm:$0xff]  ;;  %v12790_v43 = vpop.permute.xlu1 %4910 }
 0x39d   :  { %v5494_v31 = vadd.f32 %v12439_v39, %v5359_v61  ;;  %v5772_v54 = vmax.f32 %v15131_v3, %v5576_v20  ;;  %v15134_v59 = vsub.f32 %v15132_v19, %v15133_v53  ;;  %v15138_v58 = vsub.f32 %v15136_v37, %v15137_v48  ;;  %v15139_v60 = vld [vmem:[#allocation146_spill] sm:$0xff]  ;;  %v15149_v37 = vld [vmem:[#allocation329_spill] sm:$0xff]  ;;  %v15152_v3 = vld [vmem:[#allocation256_spill] sm:$0xff] }
 0x39e   :  { %15129 = vst [vmem:[#allocation147_spill] sm:$0xff] %v12769_v23  ;;  %v5760_v28 = vmax.f32 %v5759_v4, %v5606_v57  ;;  %v5608_v61 = vmax.f32 %v5480_v21, 0.0  ;;  %v5361_v47 = vmul.f32 %v12410_v62, %v5226_v63  ;;  %v15140_v16 = vld [vmem:[#allocation246_spill] sm:$0xff]  ;;  %v5579_v24 = vmax.f32 %v5451_v49, 0.0  ;;  %v12796_v21 = vpop.permute.xlu0 %4965  ;;  %v15146_v49 = vld [vmem:[#allocation99_spill] sm:$0xff]  ;;  %v15150_v48 = vld [vmem:[#allocation101_spill] sm:$0xff] }
 0x39f   :  { %v5196_v22 = vmul.f32 %v15135_v15, %v15134_v59  ;;  %v5198_v0 = vmul.f32 %v15139_v60, %v15138_v58  ;;  %v5622_v10 = vmax.f32 %v5494_v31, 0.0  ;;  %v15141_v32 = vld [vmem:[#allocation102_spill] sm:$0xff]  ;;  %v5452_v13 = vadd.f32 %v12439_v39, %v5317_v35  ;;  %v15144_v31 = vld [vmem:[#allocation104_spill] sm:$0xff]  ;;  %v15157_v58 = vld [vmem:[#allocation103_spill] sm:$0xff] }
 0x3a0   :  { %v5332_v56 = vmul.f32 %v12410_v62, %v5197_v46  ;;  %v5334_v1 = vmul.f32 %v12410_v62, %v5199_v44  ;;  %v5773_v9 = vmax.f32 %v5772_v54, %v5592_v45  ;;  %v5496_v57 = vadd.f32 %v12439_v39, %v5361_v47  ;;  %v15143_v4 = vld [vmem:[#allocation250_spill] sm:$0xff]  ;;  %v15147_v54 = vld [vmem:[#allocation251_spill] sm:$0xff]  ;;  %v15151_v47 = vld [vmem:[#allocation284_spill] sm:$0xff] }
 0x3a1   :  { %v12793_v5 = vmax.f32 %v5760_v28, %v5622_v10  ;;  %v15145_v36 = vld [vmem:[#allocation326_spill] sm:$0xff]  ;;  %v5581_v35 = vmax.f32 %v5453_v17, 0.0  ;;  %v5331_v46 = vmul.f32 %v12410_v62, %v5196_v22  ;;  %v5578_v19 = vmax.f32 %v5450_v2, 0.0  ;;  %v12809_v10 = vpop.permute.xlu1 %4920  ;;  %v15153_v22 = vld [vmem:[#allocation108_spill] sm:$0xff]  ;;  %v15158_v20 = vld [vmem:[#allocation31_spill] sm:$0xff] }
 0x3a2   :  { %v5333_v53 = vmul.f32 %v12410_v62, %v5198_v0  ;;  %v5774_v44 = vmax.f32 %v5773_v9, %v5608_v61  ;;  %v5624_v45 = vmax.f32 %v5496_v57, 0.0  ;;  %v15148_v59 = vld [vmem:[#allocation106_spill] sm:$0xff]  ;;  %v5580_v60 = vmax.f32 %v5452_v13, 0.0  ;;  %v12817_v9 = vpop.permute.xlu0 %4975  ;;  %v15156_v63 = vld [vmem:[#allocation172_spill] sm:$0xff] }
 0x3a3   :  { %15142 = vst [vmem:[#allocation220_spill] sm:$0xff] %v12793_v5  ;;  %v5467_v28 = vadd.f32 %v12439_v39, %v5332_v56  ;;  %v5682_v17 = vmax.f32 %v15151_v47, %v5579_v24  ;;  %v5469_v0 = vadd.f32 %v12439_v39, %v5334_v1  ;;  %v15155_v57 = vld [vmem:[#allocation62_spill] sm:$0xff]  ;;  %v5466_v11 = vadd.f32 %v12439_v39, %v5331_v46  ;;  %v15160_v24 = vld [vmem:[#allocation300_spill] sm:$0xff]  ;;  %v15171_v46 = vld [vmem:[#allocation171_spill] sm:$0xff] }
 0x3a4   :  { %v12815_v61 = vmax.f32 %v5774_v44, %v5624_v45  ;;  %v5696_v15 = vmax.f32 %v15155_v57, %v5581_v35  ;;  %v15159_v56 = vld [vmem:[#allocation110_spill] sm:$0xff]  ;;  %v5675_v47 = vmax.f32 %v15160_v24, %v5578_v19  ;;  %v15163_v1 = vld [vmem:[#allocation260_spill] sm:$0xff]  ;;  %v5468_v42 = vadd.f32 %v12439_v39, %v5333_v53  ;;  %v15190_v53 = vld [vmem:[#allocation299_spill] sm:$0xff] }
 0x3a5   :  { %v15164_v44 = vld [vmem:[#allocation112_spill] sm:$0xff]  ;;  %v5689_v35 = vmax.f32 %v15165_v12, %v5580_v60  ;;  %v5595_v5 = vmax.f32 %v5467_v28, 0.0  ;;  %v12838_v19 = vpop.permute.xlu1 %4930  ;;  %v5597_v60 = vmax.f32 %v5469_v0, 0.0  ;;  %v5594_v38 = vmax.f32 %v5466_v11, 0.0  ;;  %v15189_v0 = vld [vmem:[#allocation86_spill] sm:$0xff] }
 0x3a6   :  { %15154 = vst [vmem:[#allocation39_spill] sm:$0xff] %v12815_v61  ;;  %v15168_v23 = vld [vmem:[#allocation84_spill] sm:$0xff]  ;;  %v12846_v7 = vpop.permute.xlu0 %4985  ;;  %v5596_v12 = vmax.f32 %v5468_v42, 0.0  ;;  %v15191_v2 = vsub.f32 %v15189_v0, %v15190_v53  ;;  %v15201_v0 = vld [vmem:[#allocation277_spill] sm:$0xff]  ;;  %v15210_v42 = vld [vmem:[#allocation35_spill] sm:$0xff] }
 0x3a7   :  { %v15170_v41 = vsub.f32 %v15168_v23, %v15169_v6  ;;  %15178 = vst [vmem:[#allocation179_spill] sm:$0xff] %v12846_v7  ;;  %v15192_v7 = vld [vmem:[#allocation162_spill] sm:$0xff]  ;;  %v5683_v57 = vmax.f32 %v5682_v17, %v5595_v5  ;;  %v5697_v27 = vmax.f32 %v5696_v15, %v5597_v60  ;;  %v15206_v23 = vld [vmem:[#allocation135_spill] sm:$0xff]  ;;  %v15216_v6 = vld [vmem:[#allocation129_spill] sm:$0xff] }
 0x3a8   :  { %v5215_v24 = vmul.f32 %v15192_v7, %v15191_v2  ;;  %v15202_v7 = vld [vmem:[#allocation131_spill] sm:$0xff]  ;;  %v12877_v2 = vmax.f32 %v5675_v47, %v5594_v38  ;;  %v15207_v15 = vld [vmem:[#allocation82_spill] sm:$0xff]  ;;  %v12887_v45 = vmax.f32 %v5689_v35, %v5596_v12  ;;  %v15220_v35 = vld [vmem:[#allocation100_spill] sm:$0xff] }
 0x3a9   :  { %v5213_v52 = vmul.f32 %v15171_v46, %v15170_v41  ;;  %v12867_v46 = vpop.permute.xlu1 %4940  ;;  %v15208_v60 = vld [vmem:[#allocation226_spill] sm:$0xff]  ;;  %v15221_v12 = vld [vmem:[#allocation240_spill] sm:$0xff]  ;;  %v15223_v38 = vld [vmem:[#allocation295_spill] sm:$0xff]  ;;  %v15231_v41 = vsub.f32 %v15148_v59, %v15147_v54 }
 0x3aa   :  { %v12875_v17 = vpop.permute.xlu0 %4995  ;;  %v15209_v13 = vsub.f32 %v15207_v15, %v15208_v60  ;;  %v5350_v47 = vmul.f32 %v12410_v62, %v5215_v24  ;;  %v15224_v53 = vld [vmem:[#allocation143_spill] sm:$0xff] }
 0x3ab   :  { %v5348_v11 = vmul.f32 %v12410_v62, %v5213_v52  ;;  %v15218_v52 = vld [vmem:[#allocation308_spill] sm:$0xff]  ;;  %v5235_v24 = vmul.f32 %v12754_v29, %v15231_v41  ;;  %v15237_v29 = vsub.f32 %v15146_v49, %v15145_v36 }
 0x3ac   :  { %v5212_v61 = vmul.f32 %v15210_v42, %v15209_v13  ;;  %v15219_v15 = vsub.f32 %v15217_v51, %v15218_v52  ;;  %v15222_v42 = vsub.f32 %v15220_v35, %v15221_v12  ;;  %v15230_v35 = vld [vmem:[#allocation55_spill] sm:$0xff] }
 0x3ad   :  { %v5483_v28 = vadd.f32 %v12439_v39, %v5348_v11  ;;  %v12905_v5 = vpop.permute.xlu1 %4950  ;;  %v15227_v11 = vsub.f32 %v15141_v32, %v15140_v16  ;;  %v15233_v32 = vld [vmem:[#allocation136_spill] sm:$0xff]  ;;  %v5228_v59 = vmul.f32 %v12790_v43, %v15237_v29  ;;  %v5370_v49 = vmul.f32 %v12410_v62, %v5235_v24 }
 0x3ae   :  { %v5214_v13 = vmul.f32 %v12516_v50, %v15219_v15  ;;  %v5229_v60 = vmul.f32 %v12678_v25, %v15222_v42  ;;  %v15228_v50 = vsub.f32 %v15144_v31, %v15143_v4  ;;  %v12919_v15 = vpop.permute.xlu0 %5005  ;;  %v15229_v25 = vld [vmem:[#allocation68_spill] sm:$0xff]  ;;  %v5347_v42 = vmul.f32 %v12410_v62, %v5212_v61 }
 0x3af   :  { %v5231_v51 = vmul.f32 %v12703_v14, %v15227_v11  ;;  %v15234_v11 = vld [vmem:[#allocation278_spill] sm:$0xff]  ;;  %v15236_v31 = vsub.f32 %v15153_v22, %v15152_v3  ;;  %v5611_v12 = vmax.f32 %v5483_v28, 0.0  ;;  %v15239_v4 = vld [vmem:[#allocation140_spill] sm:$0xff] }
 0x3b0   :  { %v5233_v52 = vmul.f32 %v12729_v34, %v15228_v50  ;;  %v5485_v34 = vadd.f32 %v12439_v39, %v5350_v47  ;;  %v5349_v61 = vmul.f32 %v12410_v62, %v5214_v13  ;;  %v5364_v54 = vmul.f32 %v12410_v62, %v5229_v60  ;;  %v15241_v13 = vld [vmem:[#allocation203_spill] sm:$0xff] }
 0x3b1   :  { %v5237_v50 = vmul.f32 %v12772_v40, %v15236_v31  ;;  %v4961_v41 = vpop.permute.xlu1 %4960  ;;  %v5366_v47 = vmul.f32 %v12410_v62, %v5231_v51  ;;  %v15240_v40 = vsub.f32 %v15159_v56, %v15158_v20  ;;  %v15242_v60 = vld [vmem:[#allocation63_spill] sm:$0xff]  ;;  %v5482_v43 = vadd.f32 %v12439_v39, %v5347_v42 }
 0x3b2   :  { %v5368_v3 = vmul.f32 %v12410_v62, %v5233_v52  ;;  %v12951_v28 = vpop.permute.xlu0 %5015  ;;  %v15243_v31 = vsub.f32 %v15150_v48, %v15149_v37  ;;  %v5613_v20 = vmax.f32 %v5485_v34, 0.0  ;;  %v15246_v56 = vsub.f32 %v15164_v44, %v15163_v1  ;;  %v15255_v44 = vld [vmem:[#allocation179_spill] sm:$0xff] }
 0x3b3   :  { %v5239_v22 = vmul.f32 %v12796_v21, %v15240_v40  ;;  %v5372_v21 = vmul.f32 %v12410_v62, %v5237_v50  ;;  %v5684_v36 = vmax.f32 %v5683_v57, %v5611_v12  ;;  %v5484_v42 = vadd.f32 %v12439_v39, %v5349_v61 }
 0x3b4   :  { %v5230_v51 = vmul.f32 %v12809_v10, %v15243_v31  ;;  %v5241_v40 = vmul.f32 %v12817_v9, %v15246_v56  ;;  %v5499_v24 = vadd.f32 %v12439_v39, %v5364_v54  ;;  %v5363_v37 = vmul.f32 %v12410_v62, %v5228_v59  ;;  %v15247_v10 = vld [vmem:[#allocation212_spill] sm:$0xff]  ;;  %v15248_v31 = vld [vmem:[#allocation67_spill] sm:$0xff] }
 0x3b5   :  { %v4971_v48 = vpop.permute.xlu1 %4970  ;;  %v5501_v34 = vadd.f32 %v12439_v39, %v5366_v47  ;;  %v5503_v50 = vadd.f32 %v12439_v39, %v5368_v3  ;;  %v5374_v16 = vmul.f32 %v12410_v62, %v5239_v22  ;;  %v5610_v12 = vmax.f32 %v5482_v43, 0.0  ;;  %v15258_v9 = vld [vmem:[#allocation303_spill] sm:$0xff]  ;;  %v15265_v22 = vld [vmem:[#allocation273_spill] sm:$0xff] }
 0x3b6   :  { %v5026_v1 = vpop.permute.xlu0 %5025  ;;  %v5505_v61 = vadd.f32 %v12439_v39, %v5370_v49  ;;  %v5365_v54 = vmul.f32 %v12410_v62, %v5230_v51  ;;  %v5698_v59 = vmax.f32 %v5697_v27, %v5613_v20  ;;  %v5507_v56 = vadd.f32 %v12439_v39, %v5372_v21  ;;  %v15253_v21 = vld [vmem:[#allocation181_spill] sm:$0xff] }
 0x3b7   :  { %v5376_v14 = vmul.f32 %v12410_v62, %v5241_v40  ;;  %v15251_v47 = vsub.f32 %v15157_v58, %v15156_v63  ;;  %v5612_v29 = vmax.f32 %v5484_v42, 0.0  ;;  %v5627_v57 = vmax.f32 %v5499_v24, 0.0 }
 0x3b8   :  { %v5498_v43 = vadd.f32 %v12439_v39, %v5363_v37  ;;  %v5629_v51 = vmax.f32 %v5501_v34, 0.0  ;;  %v5631_v27 = vmax.f32 %v5503_v50, 0.0  ;;  %v5509_v20 = vadd.f32 %v12439_v39, %v5374_v16  ;;  %v15259_v34 = vld [vmem:[#allocation75_spill] sm:$0xff] }
 0x3b9   :  { %v5232_v3 = vmul.f32 %v12838_v19, %v15251_v47  ;;  %v12989_v49 = vpop.permute.xlu1 %4980  ;;  %v15254_v40 = vsub.f32 %v15173_v55, %v15253_v21  ;;  %v5677_v19 = vmax.f32 %v12877_v2, %v5610_v12  ;;  %v5633_v52 = vmax.f32 %v5505_v61, 0.0 }
 0x3ba   :  { %v12996_v58 = vpop.permute.xlu0 %5035  ;;  %v5500_v37 = vadd.f32 %v12439_v39, %v5365_v54  ;;  %v5635_v26 = vmax.f32 %v5507_v56, 0.0  ;;  %v5511_v16 = vadd.f32 %v12439_v39, %v5376_v14  ;;  %v13009_v2 = vmax.f32 %v5684_v36, %v5627_v57  ;;  %v15262_v54 = vld [vmem:[#allocation148_spill] sm:$0xff] }
 0x3bb   :  { %v5243_v63 = vmul.f32 %v15255_v44, %v15254_v40  ;;  %v5367_v55 = vmul.f32 %v12410_v62, %v5232_v3  ;;  %v5691_v44 = vmax.f32 %v12887_v45, %v5612_v29  ;;  %v5626_v12 = vmax.f32 %v5498_v43, 0.0  ;;  %v15263_v3 = vld [vmem:[#allocation168_spill] sm:$0xff]  ;;  %v15264_v29 = vld [vmem:[#allocation109_spill] sm:$0xff] }
 0x3bc   :  { %v13013_v61 = vmax.f32 %v5698_v59, %v5629_v51  ;;  %v13016_v47 = vmax.f32 %v15262_v54, %v5631_v27  ;;  %v5637_v56 = vmax.f32 %v5509_v20, 0.0  ;;  %v13020_v42 = vmax.f32 %v15263_v3, %v5633_v52  ;;  %v15268_v51 = vld [vmem:[#allocation215_spill] sm:$0xff]  ;;  %v15270_v54 = vld [vmem:[#allocation285_spill] sm:$0xff] }
 0x3bd   :  { %v13011_v24 = vpop.permute.xlu1 %4990  ;;  %v5378_v14 = vmul.f32 %v12410_v62, %v5243_v63  ;;  %v5628_v45 = vmax.f32 %v5500_v37, 0.0  ;;  %v15266_v36 = vsub.f32 %v15264_v29, %v15265_v22  ;;  %v15267_v43 = vsub.f32 %v15202_v7, %v15201_v0  ;;  %v15269_v63 = vld [vmem:[#allocation116_spill] sm:$0xff]  ;;  %v15272_v3 = vld [vmem:[#allocation105_spill] sm:$0xff]  ;;  %v15273_v22 = vld [vmem:[#allocation247_spill] sm:$0xff] }
 0x3be   :  { %v5046_v50 = vpop.permute.xlu0 %5045  ;;  %v13029_v21 = vmax.f32 %v15268_v51, %v5635_v26  ;;  %v5639_v27 = vmax.f32 %v5511_v16, 0.0  ;;  %v5502_v20 = vadd.f32 %v12439_v39, %v5367_v55  ;;  %v15271_v40 = vsub.f32 %v15269_v63, %v15270_v54  ;;  %v15275_v0 = vld [vmem:[#allocation119_spill] sm:$0xff]  ;;  %v15276_v7 = vld [vmem:[#allocation137_spill] sm:$0xff] }
 0x3bf   :  { %v5238_v57 = vmul.f32 %v4961_v41, %v15266_v36  ;;  %v5255_v59 = vmul.f32 %v5046_v50, %v15267_v43  ;;  %v13036_v37 = vmax.f32 %v5677_v19, %v5626_v12  ;;  %v15274_v41 = vsub.f32 %v15272_v3, %v15273_v22  ;;  %v15278_v36 = vld [vmem:[#allocation293_spill] sm:$0xff]  ;;  %v15279_v19 = vld [vmem:[#allocation122_spill] sm:$0xff]  ;;  %v15282_v63 = vld [vmem:[#allocation111_spill] sm:$0xff] }
 0x3c0   :  { %v5245_v52 = vmul.f32 %v12875_v17, %v15271_v40  ;;  %v15277_v50 = vsub.f32 %v15275_v0, %v15276_v7  ;;  %v5755_v43 = vmax.f32 %v15278_v36, %v5637_v56  ;;  %v5513_v17 = vadd.f32 %v12439_v39, %v5378_v14  ;;  %v15280_v40 = vld [vmem:[#allocation288_spill] sm:$0xff]  ;;  %v15285_v56 = vld [vmem:[#allocation253_spill] sm:$0xff] }
 0x3c1   :  { %v5234_v29 = vmul.f32 %v12867_v46, %v15274_v41  ;;  %v5390_v16 = vmul.f32 %v12410_v62, %v5255_v59  ;;  %v13047_v55 = vpop.permute.xlu1 %5000  ;;  %v15281_v12 = vsub.f32 %v15279_v19, %v15280_v40  ;;  %v15283_v46 = vld [vmem:[#allocation323_spill] sm:$0xff]  ;;  %v13058_v41 = vmax.f32 %v5691_v44, %v5628_v45  ;;  %v15287_v7 = vld [vmem:[#allocation177_spill] sm:$0xff]  ;;  %v15289_v40 = vld [vmem:[#allocation152_spill] sm:$0xff] }
 0x3c2   :  { %v5247_v26 = vmul.f32 %v12919_v15, %v15277_v50  ;;  %v15284_v54 = vsub.f32 %v15282_v63, %v15283_v46  ;;  %v5056_v22 = vpop.permute.xlu0 %5055  ;;  %v5373_v15 = vmul.f32 %v12410_v62, %v5238_v57  ;;  %v15286_v0 = vsub.f32 %v15206_v23, %v15285_v56  ;;  %v15288_v19 = vld [vmem:[#allocation125_spill] sm:$0xff]  ;;  %v15291_v46 = vld [vmem:[#allocation107_spill] sm:$0xff] }
 0x3c3   :  { %v5249_v51 = vmul.f32 %v12951_v28, %v15281_v12  ;;  %v5525_v59 = vadd.f32 %v12439_v39, %v5390_v16  ;;  %v5769_v50 = vmax.f32 %v15287_v7, %v5639_v27  ;;  %v5630_v36 = vmax.f32 %v5502_v20, 0.0 }
 0x3c4   :  { %v5240_v3 = vmul.f32 %v4971_v48, %v15284_v54  ;;  %v5257_v14 = vmul.f32 %v5056_v22, %v15286_v0  ;;  %v5380_v28 = vmul.f32 %v12410_v62, %v5245_v52  ;;  %v15290_v12 = vsub.f32 %v15288_v19, %v15289_v40  ;;  %v15292_v54 = vld [vmem:[#allocation259_spill] sm:$0xff]  ;;  %v15297_v19 = vld [vmem:[#allocation113_spill] sm:$0xff] }
 0x3c5   :  { %v5369_v44 = vmul.f32 %v12410_v62, %v5234_v29  ;;  %v5382_v45 = vmul.f32 %v12410_v62, %v5247_v26  ;;  %v5653_v57 = vmax.f32 %v5525_v59, 0.0  ;;  %v13073_v63 = vpop.permute.xlu1 %5010  ;;  %v5641_v23 = vmax.f32 %v5513_v17, 0.0  ;;  %v15294_v59 = vld [vmem:[#allocation188_spill] sm:$0xff] }
 0x3c6   :  { %v5251_v48 = vmul.f32 %v5026_v1, %v15290_v12  ;;  %v5392_v16 = vmul.f32 %v12410_v62, %v5257_v14  ;;  %v15293_v27 = vsub.f32 %v15291_v46, %v15292_v54  ;;  %v5384_v52 = vmul.f32 %v12410_v62, %v5249_v51  ;;  %v5066_v1 = vpop.permute.xlu0 %5065  ;;  %v15296_v14 = vld [vmem:[#allocation37_spill] sm:$0xff] }
 0x3c7   :  { %v5375_v22 = vmul.f32 %v12410_v62, %v5240_v3  ;;  %v5508_v29 = vadd.f32 %v12439_v39, %v5373_v15  ;;  %v13082_v56 = vmax.f32 %v5755_v43, %v5653_v57  ;;  %v15295_v0 = vsub.f32 %v15214_v30, %v15294_v59  ;;  %v15298_v3 = vld [vmem:[#allocation272_spill] sm:$0xff] }
 0x3c8   :  { %v5236_v20 = vmul.f32 %v12905_v5, %v15293_v27  ;;  %v5527_v26 = vadd.f32 %v12439_v39, %v5392_v16  ;;  %v13089_v7 = vmax.f32 %v15296_v14, %v5630_v36  ;;  %v5515_v5 = vadd.f32 %v12439_v39, %v5380_v28  ;;  %v15300_v36 = vld [vmem:[#allocation138_spill] sm:$0xff] }
 0x3c9   :  { %v5259_v17 = vmul.f32 %v5066_v1, %v15295_v0  ;;  %v5386_v51 = vmul.f32 %v12410_v62, %v5251_v48  ;;  %v15299_v40 = vsub.f32 %v15297_v19, %v15298_v3  ;;  %v13098_v43 = vadd.f32 %v12439_v39, %v5369_v44  ;;  %v13102_v16 = vpop.permute.xlu1 %5020 }
 0x3ca   :  { %v5517_v12 = vadd.f32 %v12439_v39, %v5382_v45  ;;  %v5655_v57 = vmax.f32 %v5527_v26, 0.0  ;;  %v5783_v46 = vmax.f32 %v15300_v36, %v5641_v23  ;;  %v5371_v28 = vmul.f32 %v12410_v62, %v5236_v20  ;;  %v5076_v27 = vpop.permute.xlu0 %5075  ;;  %v15302_v20 = vld [vmem:[#allocation128_spill] sm:$0xff] }
 0x3cb   :  { %v5242_v15 = vmul.f32 %v12989_v49, %v15299_v40  ;;  %v5394_v30 = vmul.f32 %v12410_v62, %v5259_v17  ;;  %v5519_v48 = vadd.f32 %v12439_v39, %v5384_v52  ;;  %v5510_v54 = vadd.f32 %v12439_v39, %v5375_v22  ;;  %v15303_v17 = vld [vmem:[#allocation27_spill] sm:$0xff] }
 0x3cc   :  { %v5636_v49 = vmax.f32 %v5508_v29, 0.0  ;;  %v13108_v1 = vmax.f32 %v5769_v50, %v5655_v57  ;;  %v15301_v45 = vsub.f32 %v15224_v53, %v15223_v38  ;;  %v5643_v59 = vmax.f32 %v5515_v5, 0.0  ;;  %v15305_v29 = vld [vmem:[#allocation115_spill] sm:$0xff]  ;;  %v15306_v50 = vld [vmem:[#allocation236_spill] sm:$0xff] }
 0x3cd   :  { %v5529_v44 = vadd.f32 %v12439_v39, %v5394_v30  ;;  %v5521_v0 = vadd.f32 %v12439_v39, %v5386_v51  ;;  %v5377_v23 = vmul.f32 %v12410_v62, %v5242_v15  ;;  %v15304_v52 = vsub.f32 %v15302_v20, %v15303_v17  ;;  %v13125_v38 = vpop.permute.xlu1 %5030 }
 0x3ce   :  { %v5261_v26 = vmul.f32 %v5076_v27, %v15301_v45  ;;  %v5645_v14 = vmax.f32 %v5517_v12, 0.0  ;;  %v15307_v19 = vsub.f32 %v15305_v29, %v15306_v50  ;;  %v5632_v5 = vmax.f32 %v13098_v43, 0.0  ;;  %v5086_v30 = vpop.permute.xlu0 %5085  ;;  %v15310_v29 = vld [vmem:[#allocation220_spill] sm:$0xff]  ;;  %v15312_v50 = vld [vmem:[#allocation283_spill] sm:$0xff]  ;;  %v15352_v43 = vld [vmem:[#allocation69_spill] sm:$0xff] }
 0x3cf   :  { %v5253_v22 = vmul.f32 %v12996_v58, %v15304_v52  ;;  %v5657_v40 = vmax.f32 %v5529_v44, 0.0  ;;  %v13129_v51 = vadd.f32 %v12439_v39, %v5371_v28  ;;  %v5647_v15 = vmax.f32 %v5519_v48, 0.0  ;;  %v15308_v58 = vld [vmem:[#allocation147_spill] sm:$0xff] }
 0x3d0   :  { %v5244_v3 = vmul.f32 %v13011_v24, %v15307_v19  ;;  %v5396_v53 = vmul.f32 %v12410_v62, %v5261_v26  ;;  %v5638_v57 = vmax.f32 %v5510_v54, 0.0  ;;  %v5748_v12 = vmax.f32 %v15308_v58, %v5636_v49  ;;  %v13171_v58 = vld [vmem:[%s13304_s5] ss:$0 sm:$0xff] }
 0x3d1   :  { %v13132_v36 = vmax.f32 %v5783_v46, %v5657_v40  ;;  %v15309_v24 = vsub.f32 %v15230_v35, %v15229_v25  ;;  %v5686_v45 = vmax.f32 %v13009_v2, %v5643_v59  ;;  %v5649_v26 = vmax.f32 %v5521_v0, 0.0  ;;  %v5041_v17 = vpop.permute.xlu1 %5040  ;;  %v15311_v35 = vld [vmem:[#allocation117_spill] sm:$0xff] }
 0x3d2   :  { %v5531_v27 = vadd.f32 %v12439_v39, %v5396_v53  ;;  %v5512_v20 = vadd.f32 %v12439_v39, %v5377_v23  ;;  %v5388_v28 = vmul.f32 %v12410_v62, %v5253_v22  ;;  %v5700_v48 = vmax.f32 %v13013_v61, %v5645_v14  ;;  %v5096_v61 = vpop.permute.xlu0 %5095 }
 0x3d3   :  { %v5263_v44 = vmul.f32 %v5086_v30, %v15309_v24  ;;  %v5379_v54 = vmul.f32 %v12410_v62, %v5244_v3  ;;  %v5714_v52 = vmax.f32 %v13016_v47, %v5647_v15  ;;  %v5762_v25 = vmax.f32 %v15310_v29, %v5638_v57  ;;  %v15322_v29 = vld [vmem:[#allocation39_spill] sm:$0xff] }
 0x3d4   :  { %v5659_v49 = vmax.f32 %v5531_v27, 0.0  ;;  %v15313_v2 = vsub.f32 %v15311_v35, %v15312_v50  ;;  %v15314_v0 = vsub.f32 %v15216_v6, %v15215_v18  ;;  %v5749_v22 = vmax.f32 %v5748_v12, 0.0  ;;  %v15316_v27 = vld [vmem:[#allocation166_spill] sm:$0xff] }
 0x3d5   :  { %v5398_v46 = vmul.f32 %v12410_v62, %v5263_v44  ;;  %v15315_v62 = vsub.f32 %v15235_v8, %v15234_v11  ;;  %v5728_v3 = vmax.f32 %v13020_v42, %v5649_v26  ;;  %v5640_v40 = vmax.f32 %v5512_v20, 0.0  ;;  %v5051_v8 = vpop.permute.xlu1 %5050  ;;  %v15319_v26 = vld [vmem:[#allocation158_spill] sm:$0xff] }
 0x3d6   :  { %v5246_v59 = vmul.f32 %v13047_v55, %v15313_v2  ;;  %v5254_v23 = vmul.f32 %v5041_v17, %v15314_v0  ;;  %v5687_v14 = vmax.f32 %v5686_v45, %v5659_v49  ;;  %v5523_v53 = vadd.f32 %v12439_v39, %v5388_v28  ;;  %v13162_v55 = vld [vmem:[%s13303_s4] ss:$0 sm:$0xff]  ;;  %v15318_v45 = vld [vmem:[#allocation120_spill] sm:$0xff]  ;;  %s7516_s4 = smov [#allocation2]  }
 0x3d7   :  { %v5533_v19 = vadd.f32 %v12439_v39, %v5398_v46  ;;  %v5265_v47 = vmul.f32 %v5096_v61, %v15315_v62  ;;  %v5514_v6 = vadd.f32 %v12439_v39, %v5379_v54  ;;  %v5763_v42 = vmax.f32 %v5762_v25, 0.0  ;;  %v5106_v39 = vpop.permute.xlu0 %5105  ;;  %s5839_s5 = sshll.u32 %s7516_s4, 4  ;;  %s5840_s5 = int_to_ptr.vmem [resolvable:$true] %s5839_s5 }
 0x3d8   :  { %v5389_v18 = vmul.f32 %v13162_v55, %v5254_v23  ;;  %v5803_v15 = vmax.f32 %v5687_v14, 0.0  ;;  %v5381_v11 = vmul.f32 %v13162_v55, %v5246_v59  ;;  %v15317_v24 = vsub.f32 %v15226_v33, %v15316_v27  ;;  %s7490_s10 = scalar_lea.vmem %s5840_s5, 2048  ;;  %p7495_p1 = scmp.lt.s32.totalorder %s5840_s5, %s5840_s5 }
 0x3d9   :  { %v5661_v57 = vmax.f32 %v5533_v19, 0.0  ;;  %v5400_v30 = vmul.f32 %v13162_v55, %v5265_v47  ;;  %v15320_v20 = vsub.f32 %v15318_v45, %v15319_v26  ;;  %v15321_v46 = vsub.f32 %v15242_v60, %v15241_v13  ;;  %v15323_v13 = vld [vmem:[#allocation28_spill] sm:$0xff]  ;;  %p7491_p0 = scmp.ne.s32.totalorder %s5840_s5, %s7490_s10  ;;  %p7496_p2 = scmp.lt.s32.totalorder %s7490_s10, %s7490_s10 }
 0x3da   :  { %v5524_v12 = vadd.f32 %v13171_v58, %v5389_v18  ;;  %v5256_v44 = vmul.f32 %v5051_v8, %v15317_v24  ;;  %5819 = vst [vmem:[#allocation2 + $0x8] sm:$0xff] %v5803_v15  ;;  %v5776_v25 = vmax.f32 %v15322_v29, %v5640_v40  ;;  %v5651_v35 = vmax.f32 %v5523_v53, 0.0  ;;  %v15326_v15 = vld [vmem:[#allocation123_spill] sm:$0xff] }
 0x3db   :  { %v5248_v28 = vmul.f32 %v13073_v63, %v15320_v20  ;;  %v5701_v54 = vmax.f32 %v5700_v48, %v5661_v57  ;;  %v5535_v49 = vadd.f32 %v13171_v58, %v5400_v30  ;;  %v5267_v17 = vmul.f32 %v5106_v39, %v15321_v46  ;;  %v5061_v63 = vpop.permute.xlu1 %5060  ;;  %v5116_v62 = vpop.permute.xlu0 %5115  ;;  %v15327_v57 = vld [vmem:[#allocation276_spill] sm:$0xff]  ;;  %p7497_p3 = por %p7496_p2, %p7495_p1 }
 0x3dc   :  { %v5652_v50 = vmax.f32 %v5524_v12, 0.0  ;;  %v5391_v33 = vmul.f32 %v13162_v55, %v5256_v44  ;;  %v5642_v2 = vmax.f32 %v5514_v6, 0.0  ;;  %v5516_v48 = vadd.f32 %v13171_v58, %v5381_v11 }
 0x3dd   :  { %v5805_v59 = vmax.f32 %v5701_v54, 0.0  ;;  %v5663_v0 = vmax.f32 %v5535_v49, 0.0  ;;  %v5402_v23 = vmul.f32 %v13162_v55, %v5267_v17  ;;  %v15324_v60 = vsub.f32 %v15233_v32, %v15323_v13  ;;  %v15331_v54 = vld [vmem:[#allocation71_spill] sm:$0xff]  ;;  %v15332_v49 = vld [vmem:[#allocation182_spill] sm:$0xff]  ;;  %p7498_p4 = pnand %p7497_p3, %p7491_p0 }
 0x3de   :  { %v13189_v61 = vmax.f32 %v5749_v22, %v5652_v50  ;;  %v5526_v14 = vadd.f32 %v13171_v58, %v5391_v33  ;;  %v5383_v47 = vmul.f32 %v13162_v55, %v5248_v28  ;;  %v15325_v18 = vsub.f32 %v15248_v31, %v15247_v10 }
 0x3df   :  { %v5258_v19 = vmul.f32 %v5061_v63, %v15324_v60  ;;  %5821 = vst [vmem:[#allocation2 + $0x18] sm:$0xff] %v5805_v59  ;;  %v5715_v40 = vmax.f32 %v5714_v52, %v5663_v0  ;;  %v5537_v53 = vadd.f32 %v13171_v58, %v5402_v23  ;;  %v5742_v22 = vmax.f32 %v13029_v21, %v5651_v35  ;;  %v5071_v44 = vpop.permute.xlu1 %5070  ;;  %v15329_v21 = vld [vmem:[#allocation33_spill] sm:$0xff] }
 0x3e0   :  { %v5269_v6 = vmul.f32 %v5116_v62, %v15325_v18  ;;  %v15328_v30 = vsub.f32 %v15326_v15, %v15327_v57  ;;  %v5654_v32 = vmax.f32 %v5526_v14, 0.0  ;;  %v5679_v12 = vmax.f32 %v13036_v37, %v5642_v2  ;;  %v15335_v14 = vld [vmem:[#allocation30_spill] sm:$0xff] }
 0x3e1   :  { %v5393_v11 = vmul.f32 %v13162_v55, %v5258_v19  ;;  %v5807_v27 = vmax.f32 %v5715_v40, 0.0  ;;  %v5665_v52 = vmax.f32 %v5537_v53, 0.0  ;;  %v5644_v39 = vmax.f32 %v5516_v48, 0.0  ;;  %v15334_v48 = vld [vmem:[#allocation57_spill] sm:$0xff]  ;;  %v15338_v18 = vld [vmem:[#allocation126_spill] sm:$0xff] }
 0x3e2   :  { %v5250_v8 = vmul.f32 %v13102_v16, %v15328_v30  ;;  %v5404_v24 = vmul.f32 %v13162_v55, %v5269_v6  ;;  %v13208_v10 = vmax.f32 %v5763_v42, %v5654_v32  ;;  %v15330_v45 = vsub.f32 %v15239_v4, %v15329_v21  ;;  %v5126_v16 = vpop.permute.xlu0 %5125  ;;  %v15339_v6 = vld [vmem:[#allocation60_spill] sm:$0xff] }
 0x3e3   :  { %v5528_v31 = vadd.f32 %v13171_v58, %v5393_v11  ;;  %v5518_v20 = vadd.f32 %v13171_v58, %v5383_v47  ;;  %5823 = vst [vmem:[#allocation2 + $0x28] sm:$0xff] %v5807_v27  ;;  %v5729_v28 = vmax.f32 %v5728_v3, %v5665_v52  ;;  %v15333_v46 = vsub.f32 %v15331_v54, %v15332_v49  ;;  %v5081_v0 = vpop.permute.xlu1 %5080 }
 0x3e4   :  { %v5260_v26 = vmul.f32 %v5071_v44, %v15330_v45  ;;  %v5539_v37 = vadd.f32 %v13171_v58, %v5404_v24  ;;  %v5385_v42 = vmul.f32 %v13162_v55, %v5250_v8  ;;  %v5777_v29 = vmax.f32 %v5776_v25, 0.0  ;;  %v15341_v24 = vld [vmem:[#allocation61_spill] sm:$0xff] }
 0x3e5   :  { %v5271_v17 = vmul.f32 %v5126_v16, %v15333_v46  ;;  %v5656_v35 = vmax.f32 %v5528_v31, 0.0  ;;  %v5680_v33 = vmax.f32 %v5679_v12, 0.0  ;;  %v5809_v4 = vmax.f32 %v5729_v28, 0.0  ;;  %v15342_v44 = vld [vmem:[#allocation209_spill] sm:$0xff]  ;;  %v15345_v16 = vld [vmem:[#allocation290_spill] sm:$0xff] }
 0x3e6   :  { %v5395_v50 = vmul.f32 %v13162_v55, %v5260_v26  ;;  %v5667_v2 = vmax.f32 %v5539_v37, 0.0  ;;  %v5693_v3 = vmax.f32 %v13058_v41, %v5644_v39  ;;  %v15336_v13 = vsub.f32 %v15334_v48, %v15335_v14  ;;  %v5136_v25 = vpop.permute.xlu0 %5135  ;;  %v15344_v26 = vld [vmem:[#allocation79_spill] sm:$0xff]  ;;  %v15351_v48 = vld [vmem:[#allocation32_spill] sm:$0xff] }
 0x3e7   :  { %v5406_v59 = vmul.f32 %v13162_v55, %v5271_v17  ;;  %v13223_v23 = vmax.f32 %v5777_v29, %v5656_v35  ;;  %v5646_v19 = vmax.f32 %v5518_v20, 0.0  ;;  %5825 = vst [vmem:[#allocation2 + $0x38] sm:$0xff] %v5809_v4  ;;  %v15337_v40 = vsub.f32 %v15259_v34, %v15258_v9  ;;  %v5091_v27 = vpop.permute.xlu1 %5090  ;;  %v15347_v17 = vld [vmem:[#allocation34_spill] sm:$0xff] }
 0x3e8   :  { %v5530_v63 = vadd.f32 %v13171_v58, %v5395_v50  ;;  %v5262_v60 = vmul.f32 %v5081_v0, %v15336_v13  ;;  %v5743_v62 = vmax.f32 %v5742_v22, %v5667_v2  ;;  %v5520_v41 = vadd.f32 %v13171_v58, %v5385_v42  ;;  %v15349_v0 = vld [vmem:[#allocation289_spill] sm:$0xff] }
 0x3e9   :  { %v5541_v47 = vadd.f32 %v13171_v58, %v5406_v59  ;;  %v5273_v53 = vmul.f32 %v5136_v25, %v15337_v40  ;;  %v15340_v15 = vsub.f32 %v15338_v18, %v15339_v6  ;;  %v5757_v32 = vmax.f32 %v13082_v56, 0.0  ;;  %v15348_v59 = vld [vmem:[#allocation65_spill] sm:$0xff] }
 0x3ea   :  { %v5658_v30 = vmax.f32 %v5530_v63, 0.0  ;;  %v5397_v8 = vmul.f32 %v13162_v55, %v5262_v60  ;;  %v5811_v11 = vmax.f32 %v5743_v62, 0.0  ;;  %v5694_v52 = vmax.f32 %v5693_v3, 0.0  ;;  %v5146_v21 = vpop.permute.xlu0 %5145 }
 0x3eb   :  { %v5252_v57 = vmul.f32 %v13125_v38, %v15340_v15  ;;  %v5669_v22 = vmax.f32 %v5541_v47, 0.0  ;;  %v5408_v12 = vmul.f32 %v13162_v55, %v5273_v53  ;;  %v15343_v39 = vsub.f32 %v15341_v24, %v15342_v44  ;;  %v5101_v50 = vpop.permute.xlu1 %5100  ;;  %v15353_v53 = vld [vmem:[#allocation306_spill] sm:$0xff]  ;;  %v15356_v44 = vld [vmem:[#allocation189_spill] sm:$0xff] }
 0x3ec   :  { %v5802_v9 = vmax.f32 %v5658_v30, %v5680_v33  ;;  %v5532_v34 = vadd.f32 %v13171_v58, %v5397_v8  ;;  %v5707_v38 = vmax.f32 %v13089_v7, %v5646_v19  ;;  %5827 = vst [vmem:[#allocation2 + $0x48] sm:$0xff] %v5811_v11  ;;  %v15346_v20 = vsub.f32 %v15344_v26, %v15345_v16  ;;  %v15355_v30 = vld [vmem:[#allocation73_spill] sm:$0xff] }
 0x3ed   :  { %v5264_v31 = vmul.f32 %v5091_v27, %v15343_v39  ;;  %v5813_v45 = vmax.f32 %v5669_v22, %v5757_v32  ;;  %v5543_v56 = vadd.f32 %v13171_v58, %v5408_v12  ;;  %v5648_v37 = vmax.f32 %v5520_v41, 0.0  ;;  %v15357_v39 = vld [vmem:[#allocation77_spill] sm:$0xff] }
 0x3ee   :  { %v5275_v28 = vmul.f32 %v5146_v21, %v15346_v20  ;;  %v5387_v54 = vmul.f32 %v13162_v55, %v5252_v57  ;;  %5818 = vst [vmem:[#allocation2] sm:$0xff] %v5802_v9  ;;  %v5660_v49 = vmax.f32 %v5532_v34, 0.0  ;;  %v5720_v42 = vmax.f32 %v15347_v17, %v5632_v5  ;;  %v15354_v57 = vld [vmem:[#allocation296_spill] sm:$0xff] }
 0x3ef   :  { %v5399_v46 = vmul.f32 %v13162_v55, %v5264_v31  ;;  %v5771_v7 = vmax.f32 %v13108_v1, 0.0  ;;  %5829 = vst [vmem:[#allocation2 + $0x58] sm:$0xff] %v5813_v45  ;;  %v5671_v29 = vmax.f32 %v5543_v56, 0.0  ;;  %v5634_v33 = vmax.f32 %v13129_v51, 0.0  ;;  %v5111_v40 = vpop.permute.xlu1 %5110 }
 0x3f0   :  { %v5410_v35 = vmul.f32 %v13162_v55, %v5275_v28  ;;  %v5804_v4 = vmax.f32 %v5660_v49, %v5694_v52  ;;  %v15350_v3 = vsub.f32 %v15348_v59, %v15349_v0  ;;  %v4244_v14 = vsub.f32 %v15352_v43, %v15351_v48  ;;  %v15358_v28 = vld [vmem:[#allocation207_spill] sm:$0xff] }
 0x3f1   :  { %v5534_v2 = vadd.f32 %v13171_v58, %v5399_v46  ;;  %v5708_v5 = vmax.f32 %v5707_v38, 0.0  ;;  %v5815_v13 = vmax.f32 %v5671_v29, %v5771_v7  ;;  %v5721_v60 = vmax.f32 %v5720_v42, %v5648_v37  ;;  %v15359_v37 = vld [vmem:[#allocation81_spill] sm:$0xff] }
 0x3f2   :  { %v5266_v63 = vmul.f32 %v5101_v50, %v15350_v3  ;;  %v5545_v1 = vadd.f32 %v13171_v58, %v5410_v35  ;;  %v5522_v25 = vadd.f32 %v13171_v58, %v5387_v54  ;;  %5820 = vst [vmem:[#allocation2 + $0x10] sm:$0xff] %v5804_v4  ;;  %v5785_v62 = vmax.f32 %v13132_v36, 0.0 }
 0x3f3   :  { %v5662_v19 = vmax.f32 %v5534_v2, 0.0  ;;  %5831 = vst [vmem:[#allocation2 + $0x68] sm:$0xff] %v5815_v13  ;;  %v5734_v41 = vmax.f32 %v15353_v53, %v5634_v33  ;;  %v5268_v15 = vmul.f32 %v5111_v40, %v4244_v14  ;;  %v4246_v8 = vsub.f32 %v15355_v30, %v15354_v57  ;;  %v5121_v36 = vpop.permute.xlu1 %5120 }
 0x3f4   :  { %v5401_v51 = vmul.f32 %v13162_v55, %v5266_v63  ;;  %v5673_v47 = vmax.f32 %v5545_v1, 0.0  ;;  %v5722_v11 = vmax.f32 %v5721_v60, 0.0  ;;  %v5650_v22 = vmax.f32 %v5522_v25, 0.0 }
 0x3f5   :  { %v5806_v18 = vmax.f32 %v5662_v19, %v5708_v5  ;;  %v5403_v27 = vmul.f32 %v13162_v55, %v5268_v15  ;;  %v5735_v52 = vmax.f32 %v5734_v41, 0.0  ;;  %v5270_v24 = vmul.f32 %v5121_v36, %v4246_v8 }
 0x3f6   :  { %v5536_v6 = vadd.f32 %v13171_v58, %v5401_v51  ;;  %v5817_v32 = vmax.f32 %v5673_v47, %v5785_v62  ;;  %v4248_v31 = vsub.f32 %v15357_v39, %v15356_v44  ;;  %v4250_v54 = vsub.f32 %v15359_v37, %v15358_v28 }
 0x3f7   :  { %5822 = vst [vmem:[#allocation2 + $0x20] sm:$0xff] %v5806_v18  ;;  %v5538_v34 = vadd.f32 %v13171_v58, %v5403_v27  ;;  %v5736_v21 = vmax.f32 %v5735_v52, %v5650_v22  ;;  %v5405_v45 = vmul.f32 %v13162_v55, %v5270_v24  ;;  %v5131_v56 = vpop.permute.xlu1 %5130 }
 0x3f8   :  { %v5664_v12 = vmax.f32 %v5536_v6, 0.0  ;;  %5833 = vst [vmem:[#allocation2 + $0x78] sm:$0xff] %v5817_v32  ;;  %v5272_v20 = vmul.f32 %v5131_v56, %v4248_v31 }
 0x3f9   :  { %v5666_v38 = vmax.f32 %v5538_v34, 0.0  ;;  %v5540_v16 = vadd.f32 %v13171_v58, %v5405_v45 }
 0x3fa   :  { %v5808_v9 = vmax.f32 %v5664_v12, %v5722_v11  ;;  %v5407_v46 = vmul.f32 %v13162_v55, %v5272_v20 }
 0x3fb   :  { %v5810_v26 = vmax.f32 %v5666_v38, %v5736_v21  ;;  %v5668_v49 = vmax.f32 %v5540_v16, 0.0  ;;  %v5141_v17 = vpop.permute.xlu1 %5140 }
 0x3fc   :  { %5824 = vst [vmem:[#allocation2 + $0x30] sm:$0xff] %v5808_v9  ;;  %v5542_v7 = vadd.f32 %v13171_v58, %v5407_v46  ;;  %v5274_v29 = vmul.f32 %v5141_v17, %v4250_v54 }
 0x3fd   :  { %5826 = vst [vmem:[#allocation2 + $0x40] sm:$0xff] %v5810_v26  ;;  %v5812_v42 = vmax.f32 %v5668_v49, %v13189_v61 }
 0x3fe   :  { %v5670_v35 = vmax.f32 %v5542_v7, 0.0  ;;  %v5409_v50 = vmul.f32 %v13162_v55, %v5274_v29 }
 0x3ff   :  { %5828 = vst [vmem:[#allocation2 + $0x50] sm:$0xff] %v5812_v42 }
 0x400   :  { %v5814_v33 = vmax.f32 %v5670_v35, %v13208_v10  ;;  %v5544_v4 = vadd.f32 %v13171_v58, %v5409_v50 }
 0x402   :  { %5830 = vst [vmem:[#allocation2 + $0x60] sm:$0xff] %v5814_v33  ;;  %v5672_v2 = vmax.f32 %v5544_v4, 0.0 }
 0x404   :  { %v5816_v59 = vmax.f32 %v5672_v2, %v13223_v23 }
 0x406   :  { %5832 = vst [vmem:[#allocation2 + $0x70] sm:$0xff] %v5816_v59 }
 0x407   :  { %7501 = shalt.err (!%p7498_p4)
}
 0x408   :  { %s7502_s13 = scalar_lea.hbm %s13306_s7, 2048 }
 0x409   :  { %p7503_p5 = scmp.ne.s32.totalorder %s13306_s7, %s7502_s13  ;;  %p7506_p6 = scmp.lt.u32.totalorder %s7502_s13, %s13306_s7 }
 0x40b   :  { %p7508_p7 = pnand %p7506_p6, %p7503_p5 }
 0x40d   :  { %7511 = shalt.err (!%p7508_p7)
}
 0x40e   :  { %s7517_s17 = smov 128   ;;  %s7518_s18 = smov 8  }
 0x40f   :  { %5845 = dma.vmem_to_hbm [thread:$0]  %s5840_s5, 2048, %s13306_s7, [#allocation3], %s7517_s17, %s7517_s17, %s7518_s18  }
 0x410   :  { %7512 = dma.done.wait [#allocation3], 2048  }
 0x411   :  { %7513 = vsyncadd [#allocation3], 4294965248 }
 0x412   :  { %5849 = vsyncpa [#allocation3], 1 }

</bundles_post_ra>
